<compile_context>
chip_gen: v5e
topology: v5e:2x2
jax: 0.10.0
libtpu: 0.0.40
codegen_flags: <defaults>
</compile_context>

<pallas_src>
import jax
import jax.numpy as jnp
from jax.experimental import pallas as pl
from jax.experimental.pallas import tpu as pltpu


D_IN, D_H1, D_H2, D_OUT = 4096, 2028, 256, 40
D_H1_PAD = 2048  # 2028 rounded up to a lane multiple (16 * 128)


def _fused_mlp_kernel(x_ref, w1_ref, b1_ref, w2_ref, b2_ref, w3_ref, b3_ref,
                      o_ref, acc_ref):
    """Fused 3-layer MLP.

    Grid = (M tiles, K tiles of the layer-1 contraction).  Layer-1 partials
    accumulate into acc_ref (tm, 2048) in f32; on the last K step the epilogue
    applies bias+ReLU and runs layers 2 and 3 against the VMEM-resident w2/w3
    before storing the (tm, 40) result.
    """
    k = pl.program_id(1)
    tk = w1_ref.shape[0]

    @pl.when(k == 0)
    def _():
        acc_ref[...] = jnp.zeros_like(acc_ref)

    # x is fully K-resident per M block (tiny in bf16); slice the current K
    # chunk in-kernel instead of DMA-ing a new x tile every step.
    x_blk = x_ref[:, pl.ds(pl.multiple_of(k * tk, tk), tk)]
    acc_ref[...] += jnp.dot(x_blk, w1_ref[...],
                            preferred_element_type=jnp.float32)

    @pl.when(k == pl.num_programs(1) - 1)
    def _():
        h1 = jnp.maximum(acc_ref[...] + b1_ref[...], 0.0)
        h2 = jnp.maximum(
            jnp.dot(h1.astype(w2_ref.dtype), w2_ref[...],
                    preferred_element_type=jnp.float32) + b2_ref[...],
            0.0,
        )
        out = jnp.dot(h2.astype(w3_ref.dtype), w3_ref[...],
                      preferred_element_type=jnp.float32) + b3_ref[...]
        o_ref[...] = out.astype(o_ref.dtype)


def prepare_params(params, dtype=jnp.bfloat16):
    """Cast weights to bf16 and zero-pad D_H1 2028->2048 (done once)."""
    (w1, b1), (w2, b2), (w3, b3) = params
    assert w1.shape == (D_IN, D_H1) and b1.shape == (D_H1,)
    assert w2.shape == (D_H1, D_H2) and b2.shape == (D_H2,)
    assert w3.shape == (D_H2, D_OUT) and b3.shape == (D_OUT,)
    pad = D_H1_PAD - D_H1
    w1p = jnp.pad(w1, ((0, 0), (0, pad))).astype(dtype)
    b1p = jnp.pad(b1, (0, pad)).reshape(1, D_H1_PAD).astype(jnp.float32)
    w2p = jnp.pad(w2, ((0, pad), (0, 0))).astype(dtype)
    b2p = b2.reshape(1, D_H2).astype(jnp.float32)
    w3p = w3.astype(dtype)
    b3p = b3.reshape(1, D_OUT).astype(jnp.float32)
    return (w1p, b1p, w2p, b2p, w3p, b3p)


def torch_nn_forward(x, prepared, *, tk=1024, tm=128):
    """Fused forward for TorchNN: relu(relu(x@w1+b1)@w2+b2)@w3+b3."""
    w1p, b1p, w2p, b2p, w3p, b3p = prepared
    B, K = x.shape
    assert K == D_IN, f"expected input dim {D_IN}, got {K}"

    # Contraction tile must divide K.  Never fall back to tk=K: a full-K w1
    # block (double-buffered) would exceed v7x's 64 MiB VMEM; fall back to a
    # smaller divisor instead.  (K is fixed at 4096 so tk=1024 always works.)
    tk = min(tk, K)
    if K % tk != 0:
        for cand in (512, 256, 128, 8):
            if cand <= K and K % cand == 0:
                tk = cand
                break
        else:
            raise ValueError(f"no valid contraction tile for K={K}")
    nk = K // tk

    # Batch (M) tiling: small batches run as one M block padded to a multiple
    # of 8 sublanes; larger batches tile at tm so per-block VMEM stays bounded
    # and the "parallel" M axis can shard across TensorCores.
    if B <= tm:
        tm = max(8, ((B + 7) // 8) * 8)
    Bp = ((B + tm - 1) // tm) * tm
    if Bp != B:
        x = jnp.pad(x, ((0, Bp - B), (0, 0)))
    nm = Bp // tm

    x = x.astype(w1p.dtype)  # stream activations in bf16 too

    resident = dict(pipeline_mode=pl.Buffered(1))  # grid-invariant operands

    out = pl.pallas_call(
        _fused_mlp_kernel,
        out_shape=jax.ShapeDtypeStruct((Bp, D_OUT), jnp.float32),
        grid_spec=pltpu.PrefetchScalarGridSpec(
            num_scalar_prefetch=0,
            grid=(nm, nk),
            in_specs=[
                pl.BlockSpec((tm, D_IN), lambda m, k: (m, 0)),        # x (M-tiled, K-resident)
                pl.BlockSpec((tk, D_H1_PAD), lambda m, k: (k, 0)),    # w1 (K-tiled)
                pl.BlockSpec((1, D_H1_PAD), lambda m, k: (0, 0), **resident),    # b1
                pl.BlockSpec((D_H1_PAD, D_H2), lambda m, k: (0, 0), **resident), # w2
                pl.BlockSpec((1, D_H2), lambda m, k: (0, 0), **resident),        # b2
                pl.BlockSpec((D_H2, D_OUT), lambda m, k: (0, 0), **resident),    # w3
                pl.BlockSpec((1, D_OUT), lambda m, k: (0, 0), **resident),       # b3
            ],
            out_specs=pl.BlockSpec((tm, D_OUT), lambda m, k: (m, 0)),
            scratch_shapes=[pltpu.VMEM((tm, D_H1_PAD), jnp.float32)],
        ),
        compiler_params=pltpu.CompilerParams(
            dimension_semantics=("parallel", "arbitrary"),
            # bf16 + tk=1024: ~4 MB w1 tile double-buffered + ~1 MB resident
            # w2 + small x/acc/biases => ~10-12 MB; 32 MiB covers all of
            # v5e/v6e/v7x with headroom.
            vmem_limit_bytes=32 * 1024 * 1024,
        ),
    )(x, w1p, b1p, w2p, b2p, w3p, b3p)

    return out[:B] if Bp != B else out


def init_params(key):
    """Deterministic synthetic parameters with the shapes from TorchNN.__init__."""
    dims = [(D_IN, D_H1), (D_H1, D_H2), (D_H2, D_OUT)]
    params = []
    for i, (din, dout) in enumerate(dims):
        kw, kb = jax.random.split(jax.random.fold_in(key, i))
        scale = 1.0 / jnp.sqrt(din)  # mimic nn.Linear's U(-1/sqrt(fan_in), ...)
        w = jax.random.uniform(kw, (din, dout), jnp.float32, -scale, scale)
        b = jax.random.uniform(kb, (dout,), jnp.float32, -scale, scale)
        params.append((w, b))
    return params


def reference_forward(x, params):
    (w1, b1), (w2, b2), (w3, b3) = params
    hp = jax.lax.Precision.HIGHEST
    h = jnp.maximum(jnp.dot(x, w1, precision=hp) + b1, 0.0)
    h = jnp.maximum(jnp.dot(h, w2, precision=hp) + b2, 0.0)
    return jnp.dot(h, w3, precision=hp) + b3


if __name__ == "__main__":
    key = jax.random.PRNGKey(0)
    kx, kp = jax.random.split(key)

    batch = 8
    x = jax.random.normal(kx, (batch, D_IN), jnp.float32)
    params = init_params(kp)
    prepared = prepare_params(params)

    out = jax.block_until_ready(torch_nn_forward(x, prepared))
    assert out.shape == (batch, D_OUT) and out.dtype == jnp.float32

    ref = reference_forward(x, params)
    max_err = float(jnp.max(jnp.abs(out - ref)))
    assert jnp.allclose(out, ref, atol=2e-2, rtol=2e-2), f"max_err={max_err}"

    print("KERNEL_OK")
</pallas_src>

<mosaic_0001>
module attributes {stable_mosaic.version = 11 : i64} {
  func.func @_fused_mlp_kernel(%arg0: i32, %arg1: i32, %arg2: memref<8x4096xbf16, #tpu.memory_space<vmem>>, %arg3: memref<1024x2048xbf16, #tpu.memory_space<vmem>>, %arg4: memref<1x2048xf32, #tpu.memory_space<vmem>>, %arg5: memref<2048x256xbf16, #tpu.memory_space<vmem>>, %arg6: memref<1x256xf32, #tpu.memory_space<vmem>>, %arg7: memref<256x40xbf16, #tpu.memory_space<vmem>>, %arg8: memref<1x40xf32, #tpu.memory_space<vmem>>, %arg9: memref<8x40xf32, #tpu.memory_space<vmem>>, %arg10: memref<8x2048xf32, #tpu.memory_space<vmem>>) attributes {dimension_semantics = [#tpu.dimension_semantics<parallel>, #tpu.dimension_semantics<arbitrary>], iteration_bounds = array<i64: 1, 4>, scalar_prefetch = 0 : i64, scratch_operands = 1 : i64, tpu.core_type = #tpu.core_type<tc>, window_params = [{transform_indices = @transform_0, window_bounds = array<i64: 8, 4096>}, {transform_indices = @transform_1, window_bounds = array<i64: 1024, 2048>}, {pipeline_mode = #tpu.pipeline_mode<synchronous>, transform_indices = @transform_2, window_bounds = array<i64: 1, 2048>}, {pipeline_mode = #tpu.pipeline_mode<synchronous>, transform_indices = @transform_3, window_bounds = array<i64: 2048, 256>}, {pipeline_mode = #tpu.pipeline_mode<synchronous>, transform_indices = @transform_4, window_bounds = array<i64: 1, 256>}, {pipeline_mode = #tpu.pipeline_mode<synchronous>, transform_indices = @transform_5, window_bounds = array<i64: 256, 40>}, {pipeline_mode = #tpu.pipeline_mode<synchronous>, transform_indices = @transform_6, window_bounds = array<i64: 1, 40>}, {transform_indices = @transform_7, window_bounds = array<i64: 8, 40>}]} {
    %c0_i32 = arith.constant 0 : i32
    %0 = arith.cmpi eq, %arg1, %c0_i32 : i32
    %1 = arith.extui %0 : i1 to i32
    %c0_i32_0 = arith.constant 0 : i32
    %2 = arith.cmpi ne, %1, %c0_i32_0 : i32
    scf.if %2 {
      %cst_8 = arith.constant 0.000000e+00 : f32
      %15 = vector.broadcast %cst_8 : f32 to vector<8x2048xf32>
      %c0_9 = arith.constant 0 : index
      %c0_10 = arith.constant 0 : index
      %16 = vector.load %arg10[%c0_9, %c0_10] : memref<8x2048xf32, #tpu.memory_space<vmem>>, vector<8x2048xf32>
      tpu.vector_store %arg10[%c0_9, %c0_10], %15 {strides = array<i32>} : memref<8x2048xf32, #tpu.memory_space<vmem>>, vector<8x2048xf32>,
    } else {
    }
    %c1024_i32 = arith.constant 1024 : i32
    %3 = arith.muli %arg1, %c1024_i32 : i32
    %4 = tpu.assume_multiple %3, 1024 : i32
    %c0 = arith.constant 0 : index
    %5 = arith.index_cast %4 : i32 to index
    %6 = vector.load %arg2[%c0, %5] : memref<8x4096xbf16, #tpu.memory_space<vmem>>, vector<8x1024xbf16>
    %c0_1 = arith.constant 0 : index
    %c0_2 = arith.constant 0 : index
    %7 = vector.load %arg10[%c0_1, %c0_2] : memref<8x2048xf32, #tpu.memory_space<vmem>>, vector<8x2048xf32>
    %c0_3 = arith.constant 0 : index
    %c0_4 = arith.constant 0 : index
    %8 = vector.load %arg3[%c0_3, %c0_4] : memref<1024x2048xbf16, #tpu.memory_space<vmem>>, vector<1024x2048xbf16>
    %cst = arith.constant dense<0.000000e+00> : vector<8x2048xf32>
    %9 = tpu.matmul %6, %8, %cst {dimension_numbers = #tpu.dot_dimension_numbers<[1], [0], [0], [1], [0, 0, 1, 1], [], []>} : vector<8x1024xbf16>, vector<1024x2048xbf16>, vector<8x2048xf32> -> vector<8x2048xf32>
    %10 = arith.addf %7, %9 : vector<8x2048xf32>
    %c0_5 = arith.constant 0 : index
    %c0_6 = arith.constant 0 : index
    %11 = vector.load %arg10[%c0_5, %c0_6] : memref<8x2048xf32, #tpu.memory_space<vmem>>, vector<8x2048xf32>
    tpu.vector_store %arg10[%c0_5, %c0_6], %10 {strides = array<i32>} : memref<8x2048xf32, #tpu.memory_space<vmem>>, vector<8x2048xf32>,
    %c3_i32 = arith.constant 3 : i32
    %12 = arith.cmpi eq, %arg1, %c3_i32 : i32
    %13 = arith.extui %12 : i1 to i32
    %c0_i32_7 = arith.constant 0 : i32
    %14 = arith.cmpi ne, %13, %c0_i32_7 : i32
    scf.if %14 {
      %c0_8 = arith.constant 0 : index
      %c0_9 = arith.constant 0 : index
      %15 = vector.load %arg10[%c0_8, %c0_9] : memref<8x2048xf32, #tpu.memory_space<vmem>>, vector<8x2048xf32>
      %c0_10 = arith.constant 0 : index
      %c0_11 = arith.constant 0 : index
      %16 = vector.load %arg4[%c0_10, %c0_11] : memref<1x2048xf32, #tpu.memory_space<vmem>>, vector<1x2048xf32>
      %17 = vector.broadcast %16 : vector<1x2048xf32> to vector<8x2048xf32>
      %18 = arith.addf %15, %17 : vector<8x2048xf32>
      %cst_12 = arith.constant 0.000000e+00 : f32
      %19 = vector.broadcast %cst_12 : f32 to vector<8x2048xf32>
      %20 = arith.maximumf %18, %19 : vector<8x2048xf32>
      %21 = arith.truncf %20 : vector<8x2048xf32> to vector<8x2048xbf16>
      %c0_13 = arith.constant 0 : index
      %c0_14 = arith.constant 0 : index
      %22 = vector.load %arg5[%c0_13, %c0_14] : memref<2048x256xbf16, #tpu.memory_space<vmem>>, vector<2048x256xbf16>
      %cst_15 = arith.constant dense<0.000000e+00> : vector<8x256xf32>
      %23 = tpu.matmul %21, %22, %cst_15 {dimension_numbers = #tpu.dot_dimension_numbers<[1], [0], [0], [1], [0, 0, 1, 1], [], []>} : vector<8x2048xbf16>, vector<2048x256xbf16>, vector<8x256xf32> -> vector<8x256xf32>
      %c0_16 = arith.constant 0 : index
      %c0_17 = arith.constant 0 : index
      %24 = vector.load %arg6[%c0_16, %c0_17] : memref<1x256xf32, #tpu.memory_space<vmem>>, vector<1x256xf32>
      %25 = vector.broadcast %24 : vector<1x256xf32> to vector<8x256xf32>
      %26 = arith.addf %23, %25 : vector<8x256xf32>
      %cst_18 = arith.constant 0.000000e+00 : f32
      %27 = vector.broadcast %cst_18 : f32 to vector<8x256xf32>
      %28 = arith.maximumf %26, %27 : vector<8x256xf32>
      %29 = arith.truncf %28 : vector<8x256xf32> to vector<8x256xbf16>
      %c0_19 = arith.constant 0 : index
      %c0_20 = arith.constant 0 : index
      %30 = vector.load %arg7[%c0_19, %c0_20] : memref<256x40xbf16, #tpu.memory_space<vmem>>, vector<256x40xbf16>
      %cst_21 = arith.constant dense<0.000000e+00> : vector<8x40xf32>
      %31 = tpu.matmul %29, %30, %cst_21 {dimension_numbers = #tpu.dot_dimension_numbers<[1], [0], [0], [1], [0, 0, 1, 1], [], []>} : vector<8x256xbf16>, vector<256x40xbf16>, vector<8x40xf32> -> vector<8x40xf32>
      %c0_22 = arith.constant 0 : index
      %c0_23 = arith.constant 0 : index
      %32 = vector.load %arg8[%c0_22, %c0_23] : memref<1x40xf32, #tpu.memory_space<vmem>>, vector<1x40xf32>
      %33 = vector.broadcast %32 : vector<1x40xf32> to vector<8x40xf32>
      %34 = arith.addf %31, %33 : vector<8x40xf32>
      %c0_24 = arith.constant 0 : index
      %c0_25 = arith.constant 0 : index
      %35 = vector.load %arg9[%c0_24, %c0_25] : memref<8x40xf32, #tpu.memory_space<vmem>>, vector<8x40xf32>
      tpu.vector_store %arg9[%c0_24, %c0_25], %34 {strides = array<i32>} : memref<8x40xf32, #tpu.memory_space<vmem>>, vector<8x40xf32>,
    } else {
    }
    return
  }
  func.func @transform_0(%arg0: i32, %arg1: i32) -> (i32, i32) {
    %c0_i32 = arith.constant 0 : i32
    %c0_i32_0 = arith.constant 0 : i32
    return %arg0, %c0_i32 : i32, i32
  }
  func.func @transform_1(%arg0: i32, %arg1: i32) -> (i32, i32) {
    %c0_i32 = arith.constant 0 : i32
    %c0_i32_0 = arith.constant 0 : i32
    return %arg1, %c0_i32 : i32, i32
  }
  func.func @transform_2(%arg0: i32, %arg1: i32) -> (i32, i32) {
    %c0_i32 = arith.constant 0 : i32
    %c0_i32_0 = arith.constant 0 : i32
    %c0_i32_1 = arith.constant 0 : i32
    return %c0_i32, %c0_i32_0 : i32, i32
  }
  func.func @transform_3(%arg0: i32, %arg1: i32) -> (i32, i32) {
    %c0_i32 = arith.constant 0 : i32
    %c0_i32_0 = arith.constant 0 : i32
    %c0_i32_1 = arith.constant 0 : i32
    return %c0_i32, %c0_i32_0 : i32, i32
  }
  func.func @transform_4(%arg0: i32, %arg1: i32) -> (i32, i32) {
    %c0_i32 = arith.constant 0 : i32
    %c0_i32_0 = arith.constant 0 : i32
    %c0_i32_1 = arith.constant 0 : i32
    return %c0_i32, %c0_i32_0 : i32, i32
  }
  func.func @transform_5(%arg0: i32, %arg1: i32) -> (i32, i32) {
    %c0_i32 = arith.constant 0 : i32
    %c0_i32_0 = arith.constant 0 : i32
    %c0_i32_1 = arith.constant 0 : i32
    return %c0_i32, %c0_i32_0 : i32, i32
  }
  func.func @transform_6(%arg0: i32, %arg1: i32) -> (i32, i32) {
    %c0_i32 = arith.constant 0 : i32
    %c0_i32_0 = arith.constant 0 : i32
    %c0_i32_1 = arith.constant 0 : i32
    return %c0_i32, %c0_i32_0 : i32, i32
  }
  func.func @transform_7(%arg0: i32, %arg1: i32) -> (i32, i32) {
    %c0_i32 = arith.constant 0 : i32
    %c0_i32_0 = arith.constant 0 : i32
    return %arg0, %c0_i32 : i32, i32
  }
}

</mosaic_0001>

<bundles_post_ra>
// kernel: tpu_custom_call.1
= control target key start
LH: loop header
LB: loop body
LE: loop exit
PB: predicated region body
PF: predicated region fallthrough
CT: control target
= control target key end

     0   :  { %s20283_s0 = inlined_call_operand.hbm [shape: bf16[8,4096], index: 0, kind: input, shape index: {}]   ;;  %s20284_s1 = inlined_call_operand.hbm [shape: bf16[4096,2048], index: 1, kind: input, shape index: {}]   ;;  %s20285_s2 = inlined_call_operand.hbm [shape: f32[1,2048], index: 2, kind: input, shape index: {}]   ;;  %s20286_s3 = inlined_call_operand.hbm [shape: bf16[2048,256], index: 3, kind: input, shape index: {}]   ;;  %s20287_s4 = inlined_call_operand.hbm [shape: f32[1,256], index: 4, kind: input, shape index: {}]   ;;  %s20288_s5 = inlined_call_operand.vmem [shape: bf16[256,40], index: 5, kind: input, shape index: {}]   ;;  %s20289_s6 = inlined_call_operand.hbm [shape: f32[1,40], index: 6, kind: input, shape index: {}]   ;;  %s20290_s7 = inlined_call_operand.hbm [shape: f32[8,40], index: 7, kind: output, shape index: {}]  }
   0x1   :  { %20291 = sst [smem:[#allocation21_spill]] %s20283_s0 }
   0x2   :  { %20292 = sst [smem:[#allocation22_spill]] %s20285_s2 }
   0x3   :  { %12 = vsyncpa [#allocation4], 0 }
   0x4   :  { %13 = vsyncpa [#allocation7], 0 }
   0x5   :  { %15 = vsyncpa [#allocation7 + $0x1], 0 }
   0x6   :  { %16 = vsyncpa [#allocation10], 0 }
   0x7   :  { %17 = vsyncpa [#allocation13], 0 }
   0x8   :  { %18 = vsyncpa [#allocation5], 0  ;;  %s17613_s24 = smov 0   ;;  %s17615_s25 = smov 0  }
   0x9   :  { %s17617_s26 = smov 0   ;;  %s17619_s27 = smov 0  }
   0xa   :  { %s17621_s28 = smov 0   ;;  %s17623_s29 = smov 0  }
   0xb LB: > { %s17642_s30 = sadd.s32 4294967295, %s17560_s29   ;;  %p82_p0 = scmp.ne.s32.totalorder %s17544_s25, %s17540_s24  ;;  %s17560_s29 = sphi %s17623_s29, %s24_s29   ;;  %s17556_s28 = sphi %s17621_s28, %s20304_s28   ;;  %s17552_s27 = sphi %s17619_s27, %s20303_s27   ;;  %s17548_s26 = sphi %s17617_s26, %s20302_s26   ;;  %s17544_s25 = sphi %s17615_s25, %s20301_s25   ;;  %s17540_s24 = sphi %s17613_s24, %s20300_s24  }
   0xc   : > { %p83_p1 = scmp.eq.s32.totalorder %s17642_s30, 0  ;;  %p10655_p2 = scmp.ge.s32.totalorder %s17560_s29, 1 }
   0xd   : > { %p224_p3 = scmp.lt.s32.totalorder %s17560_s29, 5  ;;  %s20294_s2 = sld [smem:[#allocation22_spill]] }
   0xe   : > { %p17650_p4 = por %p83_p1, %p82_p0  ;;  %s17562_s13 = smov [#allocation8]  }
   0xf   : > { %p17657_p5 = pnand %p10655_p2, %p224_p3  ;;  %s253_s14 = sshll.u32 %s17562_s13, 4  ;;  %s254_s14 = int_to_ptr.vmem [resolvable:$true] %s253_s14 }
  0x10   : > { %s262_s17 = sshll.u32 %s20286_s3, 4  ;;  %s17563_s19 = smov [#allocation9]   ;;  %s263_s17 = int_to_ptr.hbm [resolvable:$true] %s262_s17 }
  0x11   : > { %p17189_p6 = pneg %p17657_p5  ;;  %s264_s20 = sshll.u32 %s17563_s19, 4  ;;  %s265_s20 = int_to_ptr.vmem [resolvable:$true] %s264_s20 }
  0x12   : > { %s17564_s21 = smov 128   ;;  %s17565_s22 = smov 8  }
  0x13   : > { %s251_s11 = sshll.u32 %s20294_s2, 4  ;;  %p17668_p7 = pnand %p17189_p6, %p83_p1  ;;  %s252_s11 = int_to_ptr.hbm [resolvable:$true] %s251_s11 }
  0x14   : > { %s20297_s0 = sld [smem:[#allocation21_spill]]  ;;  %s277_s15 = sshll.u32 %s20287_s4, 4  ;;  %s278_s15 = int_to_ptr.hbm [resolvable:$true] %s277_s15 }
  0x15   : > { %17195 = dma.hbm_to_vmem [thread:$0]  (!%p17668_p7), %s252_s11, 256, %s254_s14, [#allocation7]  }
  0x16   : > { %17198 = dma.hbm_to_vmem [thread:$0]  (!%p17668_p7), %s263_s17, 32768, %s265_s20, [#allocation10], %s17564_s21, %s17564_s21, %s17565_s22  }
  0x17   : > { %s17566_s16 = smov [#allocation3]   ;;  %s17567_s11 = smov [#allocation11]  }
  0x18   : > { %s241_s19 = sshll.u32 %s17566_s16, 4  ;;  %s279_s14 = sshll.u32 %s17567_s11, 4  ;;  %s242_s19 = int_to_ptr.vmem [resolvable:$true] %s241_s19  ;;  %s280_s14 = int_to_ptr.vmem [resolvable:$true] %s279_s14 }
  0x19   : > { %s292_s21 = sshll.u32 %s20289_s6, 4  ;;  %s17568_s22 = smov [#allocation12]   ;;  %s293_s21 = int_to_ptr.hbm [resolvable:$true] %s292_s21 }
  0x1a   : > { %s239_s9 = sshll.u32 %s20297_s0, 4  ;;  %s294_s23 = sshll.u32 %s17568_s22, 4  ;;  %s240_s9 = int_to_ptr.hbm [resolvable:$true] %s239_s9  ;;  %s295_s23 = int_to_ptr.vmem [resolvable:$true] %s294_s23 }
  0x1b   : > { %17192 = dma.hbm_to_vmem [thread:$0]  (!%p17668_p7), %s240_s9, 2048, %s242_s19, [#allocation4]  }
  0x1c   : > { %17201 = dma.hbm_to_vmem [thread:$0]  (!%p17668_p7), %s278_s15, 32, %s280_s14, [#allocation10]  }
  0x1d   : > { %17204 = dma.hbm_to_vmem [thread:$0]  (!%p17668_p7), %s293_s21, 16, %s295_s23, [#allocation13]  }
  0x1e   : > { %s33_s24 = sadd.s32 1, %s17556_s28  ;;  %s69_s9 = sadd.s32 1, %s17548_s26 }
  0x1f   : > { %p34_p8 = scmp.ge.s32.totalorder %s33_s24, 4  ;;  %p76_p9 = scmp.ne.s32.totalorder %s17548_s26, %s17544_s25 }
  0x20   : > { %p77_p10 = scmp.eq.s32.totalorder %s17560_s29, 0  ;;  %p17214_p12 = scmp.lt.s32.totalorder %s17560_s29, 4 }
  0x21   : > { %s20306_s24 = smov (%p34_p8, %s33_s24), 0  ;;  %s305_s15 = sand.u32 1, %s17560_s29  }
  0x22   : > { %p17698_p11 = por %p77_p10, %p76_p9  ;;  %s66_s13 = ssub.s32 %s17556_s28, %s20306_s24 }
  0x23   : > { %p67_p13 = scmp.eq.s32.totalorder %s66_s13, 0  ;;  %s307_s18 = sand.u32 1, %s17548_s26  }
  0x24   : > { %s15866_s16 = sshll.u32 %s17556_s28, 13  ;;  %s10662_s11 = sshll.u32 %s307_s18, 13 }
  0x25   : > { %s17709_s19 = scalar_select %p67_p13, %s17548_s26, %s69_s9  }
  0x26   : > { %s315_s20 = scalar_lea.hbm %s20284_s1, %s15866_s16  ;;  %s309_s22 = scalar_lea.vmem [#allocation6], %s10662_s11 }
  0x27   : > { %s316_s21 = sshll.u32 %s315_s20, 4  ;;  %s318_s23 = sshll.u32 %s309_s22, 4  ;;  %s317_s21 = int_to_ptr.hbm [resolvable:$true] %s316_s21  ;;  %s319_s23 = int_to_ptr.vmem [resolvable:$true] %s318_s23 }
  0x28   : > { %p17206_p0 = pnand %p17214_p12, %p17698_p11  ;;  %s306_s0 = scalar_lea.sflag [#allocation7], %s305_s15 }
  0x29   : > { %s17569_s2 = smov 1024   ;;  %s17570_s13 = smov 64  }
  0x2a   : > { %17208 = dma.hbm_to_vmem [thread:$0]  (!%p17206_p0), %s317_s21, 131072, %s319_s23, %s306_s0, %s17569_s2, %s17569_s2, %s17570_s13  }
  0x2b   : > { %330 = sbr.rel (%p17657_p5) target bundleno = 2280 (0x8e8), region = 48 }
  0x30   : > { %17515 = dma.done.wait (%p83_p1), [#allocation4], 2048  }
  0x31   : > { %17517 = vsyncadd (%p83_p1), [#allocation4], 4294965248  ;;  %s337_s9 = sand.u32 1, %s17642_s30   ;;  %s339_s10 = sand.u32 1, %s17544_s25  }
  0x32   : > { %s10668_s18 = sshll.u32 %s339_s10, 13  ;;  %s338_s16 = scalar_lea.sflag [#allocation7], %s337_s9 }
  0x33   : > { %s17726_s15 = scalar_lea.vmem [#allocation6], %s10668_s18 }
  0x34   : > { %17519 = dma.done.wait (%p17650_p4), %s338_s16, 131072  }
  0x35   : > { %17521 = vsyncadd (%p17650_p4), %s338_s16, 4294836224 }
  0x36   : > { %17523 = dma.done.wait (%p83_p1), [#allocation7], 256  }
  0x37   : > { %17525 = vsyncadd (%p83_p1), [#allocation7], 4294967040 }
  0x38   : > { %17527 = dma.done.wait (%p83_p1), [#allocation10], 32800  }
  0x39   : > { %17529 = vsyncadd (%p83_p1), [#allocation10], 4294934496 }
  0x3a   : > { %17531 = dma.done.wait (%p83_p1), [#allocation13], 16  }
  0x3b   : > { %17533 = vsyncadd (%p83_p1), [#allocation13], 4294967280  ;;  %p10673_p2 = scmp.ne.s32.totalorder %s17552_s27, 0 }
  0x3d   : > { %392 = sbr.rel (%p10673_p2) target bundleno = 83 (0x53), region = 76 }
  0x42   : > { %v17571_v0 = vmov 0.0  }
  0x43   : > { %393 = vst [vmem:[#allocation2 + $0x30] sm:$0xff] %v17571_v0 }
  0x44   : > { %394 = vst [vmem:[#allocation2] sm:$0xff] %v17571_v0 }
  0x45   : > { %395 = vst [vmem:[#allocation2 + $0x58] sm:$0xff] %v17571_v0 }
  0x46   : > { %396 = vst [vmem:[#allocation2 + $0x18] sm:$0xff] %v17571_v0 }
  0x47   : > { %397 = vst [vmem:[#allocation2 + $0x50] sm:$0xff] %v17571_v0 }
  0x48   : > { %398 = vst [vmem:[#allocation2 + $0x68] sm:$0xff] %v17571_v0 }
  0x49   : > { %399 = vst [vmem:[#allocation2 + $0x8] sm:$0xff] %v17571_v0 }
  0x4a   : > { %400 = vst [vmem:[#allocation2 + $0x48] sm:$0xff] %v17571_v0 }
  0x4b   : > { %401 = vst [vmem:[#allocation2 + $0x40] sm:$0xff] %v17571_v0 }
  0x4c   : > { %402 = vst [vmem:[#allocation2 + $0x20] sm:$0xff] %v17571_v0 }
  0x4d   : > { %403 = vst [vmem:[#allocation2 + $0x10] sm:$0xff] %v17571_v0 }
  0x4e   : > { %404 = vst [vmem:[#allocation2 + $0x38] sm:$0xff] %v17571_v0 }
  0x4f   : > { %405 = vst [vmem:[#allocation2 + $0x60] sm:$0xff] %v17571_v0 }
  0x50   : > { %406 = vst [vmem:[#allocation2 + $0x70] sm:$0xff] %v17571_v0 }
  0x51   : > { %407 = vst [vmem:[#allocation2 + $0x78] sm:$0xff] %v17571_v0 }
  0x52   : > { %408 = vst [vmem:[#allocation2 + $0x28] sm:$0xff] %v17571_v0 }
  0x53 PF: > { %v11126_v1 = vld [vmem:[%s17726_s15 + $0x380] sm:$0xf]  ;;  %s10674_s0 = sshll.u32 %s17552_s27, 10  ;;  %p14772_p1 = scmp.ne.s32.totalorder %s17552_s27, 3 }
  0x54   : > { %v15987_v2 = vld [vmem:[%s17726_s15 + $0x3bc] sm:$0xf0]  ;;  %s410_s2 = sshra.s32 %s10674_s0, 7 }
  0x55   : > { %v11638_v3 = vld [vmem:[%s17726_s15 + $0x780] sm:$0xf]  ;;  %v11127_v4 = vor.u32 %v15987_v2, %v11126_v1  ;;  %s10675_s8 = sshll.u32 %s410_s2, 2 }
  0x56   : > { %v16115_v5 = vld [vmem:[%s17726_s15 + $0x7bc] sm:$0xf0]  ;;  %s17838_s12 = scalar_lea.vmem [#allocation3], %s10675_s8 }
  0x57   : > { %v12150_v6 = vld [vmem:[%s17726_s15 + $0xb80] sm:$0xf]  ;;  %v11639_v8 = vor.u32 %v16115_v5, %v11638_v3  ;;  %6606 = vmatpush.bf16.msra.mxu0 %v11127_v4 }
  0x58   : > { %v16243_v7 = vld [vmem:[%s17726_s15 + $0xbbc] sm:$0xf0] }
  0x59   : > { %v12151_v9 = vor.u32 %v16243_v7, %v12150_v6  ;;  %v12662_v10 = vld [vmem:[%s17726_s15 + $0xf80] sm:$0xf]  ;;  %6619 = vmatpush.bf16.msra.mxu1 %v11639_v8 }
  0x5a   : > { %v16371_v11 = vld [vmem:[%s17726_s15 + $0xfbc] sm:$0xf0] }
  0x5b   : > { %v11062_v12 = vld [vmem:[%s17726_s15 + $0x300] sm:$0xf]  ;;  %v12663_v13 = vor.u32 %v16371_v11, %v12662_v10  ;;  %6632 = vmatpush.bf16.msra.mxu2 %v12151_v9 }
  0x5c   : > { %v15971_v14 = vld [vmem:[%s17726_s15 + $0x33c] sm:$0xf0] }
  0x5d   : > { %v11574_v15 = vld [vmem:[%s17726_s15 + $0x700] sm:$0xf]  ;;  %v11063_v17 = vor.u32 %v15971_v14, %v11062_v12  ;;  %6645 = vmatpush.bf16.msra.mxu3 %v12663_v13 }
  0x5e   : > { %v16099_v16 = vld [vmem:[%s17726_s15 + $0x73c] sm:$0xf0] }
  0x5f   : > { %v11575_v18 = vor.u32 %v16099_v16, %v11574_v15  ;;  %v12086_v19 = vld [vmem:[%s17726_s15 + $0xb00] sm:$0xf]  ;;  %6607 = vmatpush.bf16.msra.mxu0 %v11063_v17 }
  0x60   : > { %v16227_v20 = vld [vmem:[%s17726_s15 + $0xb3c] sm:$0xf0] }
  0x61   : > { %v12598_v21 = vld [vmem:[%s17726_s15 + $0xf00] sm:$0xf]  ;;  %v12087_v22 = vor.u32 %v16227_v20, %v12086_v19  ;;  %6620 = vmatpush.bf16.msra.mxu1 %v11575_v18 }
  0x62   : > { %v16355_v23 = vld [vmem:[%s17726_s15 + $0xf3c] sm:$0xf0] }
  0x63   : > { %v10998_v24 = vld [vmem:[%s17726_s15 + $0x280] sm:$0xf]  ;;  %v12599_v26 = vor.u32 %v16355_v23, %v12598_v21  ;;  %6633 = vmatpush.bf16.msra.mxu2 %v12087_v22 }
  0x64   : > { %v15955_v25 = vld [vmem:[%s17726_s15 + $0x2bc] sm:$0xf0] }
  0x65   : > { %v11510_v27 = vld [vmem:[%s17726_s15 + $0x680] sm:$0xf]  ;;  %v10999_v30 = vor.u32 %v15955_v25, %v10998_v24  ;;  %6646 = vmatpush.bf16.msra.mxu3 %v12599_v26 }
  0x66   : > { %v16083_v28 = vld [vmem:[%s17726_s15 + $0x6bc] sm:$0xf0] }
  0x67   : > { %v12022_v29 = vld [vmem:[%s17726_s15 + $0xa80] sm:$0xf]  ;;  %v11511_v34 = vor.u32 %v16083_v28, %v11510_v27  ;;  %6608 = vmatpush.bf16.msra.mxu0 %v10999_v30 }
  0x68   : > { %v16211_v31 = vld [vmem:[%s17726_s15 + $0xabc] sm:$0xf0] }
  0x69   : > { %v12534_v32 = vld [vmem:[%s17726_s15 + $0xe80] sm:$0xf]  ;;  %v12023_v35 = vor.u32 %v16211_v31, %v12022_v29  ;;  %6621 = vmatpush.bf16.msra.mxu1 %v11511_v34 }
  0x6a   : > { %v16339_v33 = vld [vmem:[%s17726_s15 + $0xebc] sm:$0xf0] }
  0x6b   : > { %v10934_v36 = vld [vmem:[%s17726_s15 + $0x200] sm:$0xf]  ;;  %v12535_v39 = vor.u32 %v16339_v33, %v12534_v32  ;;  %6634 = vmatpush.bf16.msra.mxu2 %v12023_v35 }
  0x6c   : > { %v15939_v37 = vld [vmem:[%s17726_s15 + $0x23c] sm:$0xf0] }
  0x6d   : > { %v11446_v38 = vld [vmem:[%s17726_s15 + $0x600] sm:$0xf]  ;;  %v10935_v45 = vor.u32 %v15939_v37, %v10934_v36  ;;  %6647 = vmatpush.bf16.msra.mxu3 %v12535_v39 }
  0x6e   : > { %v16067_v40 = vld [vmem:[%s17726_s15 + $0x63c] sm:$0xf0] }
  0x6f   : > { %v11958_v41 = vld [vmem:[%s17726_s15 + $0xa00] sm:$0xf]  ;;  %v11447_v46 = vor.u32 %v16067_v40, %v11446_v38  ;;  %6609 = vmatpush.bf16.msra.mxu0 %v10935_v45 }
  0x70   : > { %v16195_v42 = vld [vmem:[%s17726_s15 + $0xa3c] sm:$0xf0] }
  0x71   : > { %v12470_v43 = vld [vmem:[%s17726_s15 + $0xe00] sm:$0xf]  ;;  %v11959_v47 = vor.u32 %v16195_v42, %v11958_v41  ;;  %6622 = vmatpush.bf16.msra.mxu1 %v11447_v46 }
  0x72   : > { %v16323_v44 = vld [vmem:[%s17726_s15 + $0xe3c] sm:$0xf0] }
  0x73   : > { %v10870_v48 = vld [vmem:[%s17726_s15 + $0x180] sm:$0xf]  ;;  %v12471_v51 = vor.u32 %v16323_v44, %v12470_v43  ;;  %6635 = vmatpush.bf16.msra.mxu2 %v11959_v47 }
  0x74   : > { %v15923_v49 = vld [vmem:[%s17726_s15 + $0x1bc] sm:$0xf0] }
  0x75   : > { %v11382_v50 = vld [vmem:[%s17726_s15 + $0x580] sm:$0xf]  ;;  %v10871_v57 = vor.u32 %v15923_v49, %v10870_v48  ;;  %6648 = vmatpush.bf16.msra.mxu3 %v12471_v51 }
  0x76   : > { %v16051_v52 = vld [vmem:[%s17726_s15 + $0x5bc] sm:$0xf0] }
  0x77   : > { %v11894_v53 = vld [vmem:[%s17726_s15 + $0x980] sm:$0xf]  ;;  %v11383_v58 = vor.u32 %v16051_v52, %v11382_v50  ;;  %6610 = vmatpush.bf16.msra.mxu0 %v10871_v57 }
  0x78   : > { %v16179_v54 = vld [vmem:[%s17726_s15 + $0x9bc] sm:$0xf0] }
  0x79   : > { %v12406_v55 = vld [vmem:[%s17726_s15 + $0xd80] sm:$0xf]  ;;  %v11895_v59 = vor.u32 %v16179_v54, %v11894_v53  ;;  %6623 = vmatpush.bf16.msra.mxu1 %v11383_v58 }
  0x7a   : > { %v16307_v56 = vld [vmem:[%s17726_s15 + $0xdbc] sm:$0xf0] }
  0x7b   : > { %v10806_v60 = vld [vmem:[%s17726_s15 + $0x100] sm:$0xf]  ;;  %v12407_v63 = vor.u32 %v16307_v56, %v12406_v55  ;;  %6636 = vmatpush.bf16.msra.mxu2 %v11895_v59 }
  0x7c   : > { %v15907_v61 = vld [vmem:[%s17726_s15 + $0x13c] sm:$0xf0] }
  0x7d   : > { %v11318_v62 = vld [vmem:[%s17726_s15 + $0x500] sm:$0xf]  ;;  %v10807_v5 = vor.u32 %v15907_v61, %v10806_v60  ;;  %6649 = vmatpush.bf16.msra.mxu3 %v12407_v63 }
  0x7e   : > { %v16035_v0 = vld [vmem:[%s17726_s15 + $0x53c] sm:$0xf0] }
  0x7f   : > { %v11830_v1 = vld [vmem:[%s17726_s15 + $0x900] sm:$0xf]  ;;  %v11319_v6 = vor.u32 %v16035_v0, %v11318_v62  ;;  %6611 = vmatpush.bf16.msra.mxu0 %v10807_v5 }
  0x80   : > { %v16163_v2 = vld [vmem:[%s17726_s15 + $0x93c] sm:$0xf0] }
  0x81   : > { %v12342_v3 = vld [vmem:[%s17726_s15 + $0xd00] sm:$0xf]  ;;  %v11831_v7 = vor.u32 %v16163_v2, %v11830_v1  ;;  %6624 = vmatpush.bf16.msra.mxu1 %v11319_v6 }
  0x82   : > { %v16291_v4 = vld [vmem:[%s17726_s15 + $0xd3c] sm:$0xf0] }
  0x83   : > { %v10742_v8 = vld [vmem:[%s17726_s15 + $0x80] sm:$0xf]  ;;  %v12343_v11 = vor.u32 %v16291_v4, %v12342_v3  ;;  %6637 = vmatpush.bf16.msra.mxu2 %v11831_v7 }
  0x84   : > { %v15891_v9 = vld [vmem:[%s17726_s15 + $0xbc] sm:$0xf0] }
  0x85   : > { %v11254_v10 = vld [vmem:[%s17726_s15 + $0x480] sm:$0xf]  ;;  %v10743_v17 = vor.u32 %v15891_v9, %v10742_v8  ;;  %6650 = vmatpush.bf16.msra.mxu3 %v12343_v11  ;;  %v415_v8 = vld [vmem:[%s17838_s12 + $0x8] sm:$0xff] }
  0x86   : > { %v16019_v12 = vld [vmem:[%s17726_s15 + $0x4bc] sm:$0xf0] }
  0x87   : > { %v11766_v13 = vld [vmem:[%s17726_s15 + $0x880] sm:$0xf]  ;;  %v11255_v20 = vor.u32 %v16019_v12, %v11254_v10  ;;  %6612 = vmatpush.bf16.msra.mxu0 %v10743_v17  ;;  %v1464_v12 = vunpack.c.l.b16 %v415_v8 }
  0x88   : > { %v16147_v14 = vld [vmem:[%s17726_s15 + $0x8bc] sm:$0xf0] }
  0x89   : > { %v12278_v15 = vld [vmem:[%s17726_s15 + $0xc80] sm:$0xf]  ;;  %v11767_v21 = vor.u32 %v16147_v14, %v11766_v13  ;;  %6625 = vmatpush.bf16.msra.mxu1 %v11255_v20  ;;  %v1465_v14 = vunpack.c.h.b16 %v415_v8  ;;  %v416_v8 = vld [vmem:[%s17838_s12 + $0x10] sm:$0xff] }
  0x8a   : > { %v16275_v16 = vld [vmem:[%s17726_s15 + $0xcbc] sm:$0xf0] }
  0x8b   : > { %v10678_v18 = vld [vmem:[%s17726_s15] sm:$0xf]  ;;  %v12279_v25 = vor.u32 %v16275_v16, %v12278_v15  ;;  %6638 = vmatpush.bf16.msra.mxu2 %v11767_v21  ;;  %v17846_v21 = vpack.c.b16 %v1464_v12, %v1464_v12 }
  0x8c   : > { %v15875_v19 = vld [vmem:[%s17726_s15 + $0x3c] sm:$0xf0] }
  0x8d   : > { %v11190_v22 = vld [vmem:[%s17726_s15 + $0x400] sm:$0xf]  ;;  %v10679_v32 = vor.u32 %v15875_v19, %v10678_v18  ;;  %6651 = vmatpush.bf16.msra.mxu3 %v12279_v25 }
  0x8e   : > { %v16003_v23 = vld [vmem:[%s17726_s15 + $0x43c] sm:$0xf0] }
  0x8f   : > { %v11702_v24 = vld [vmem:[%s17726_s15 + $0x800] sm:$0xf]  ;;  %v11191_v36 = vor.u32 %v16003_v23, %v11190_v22  ;;  %6613 = vmatpush.bf16.msra.mxu0 %v10679_v32  ;;  %v17848_v22 = vpack.c.b16 %v1465_v14, %v1465_v14  ;;  %v16235_v14 = vld [vmem:[%s17726_s15 + $0xb84] sm:$0xf] }
  0x90   : > { %v16131_v26 = vld [vmem:[%s17726_s15 + $0x83c] sm:$0xf0] }
  0x91   : > { %v12214_v27 = vld [vmem:[%s17726_s15 + $0xc00] sm:$0xf]  ;;  %v11703_v37 = vor.u32 %v16131_v26, %v11702_v24  ;;  %6626 = vmatpush.bf16.msra.mxu1 %v11191_v36 }
  0x92   : > { %v16259_v28 = vld [vmem:[%s17726_s15 + $0xc3c] sm:$0xf0] }
  0x93   : > { %v13174_v29 = vld [vmem:[%s17726_s15 + $0x1380] sm:$0xf]  ;;  %v12215_v40 = vor.u32 %v16259_v28, %v12214_v27  ;;  %6639 = vmatpush.bf16.msra.mxu2 %v11703_v37 }
  0x94   : > { %v16499_v30 = vld [vmem:[%s17726_s15 + $0x13bc] sm:$0xf0] }
  0x95   : > { %v13686_v31 = vld [vmem:[%s17726_s15 + $0x1780] sm:$0xf]  ;;  %v13175_v41 = vor.u32 %v16499_v30, %v13174_v29  ;;  %6652 = vmatpush.bf16.msra.mxu3 %v12215_v40 }
  0x96   : > { %v16627_v33 = vld [vmem:[%s17726_s15 + $0x17bc] sm:$0xf0]  ;;  %6640 = vmatmul.bf16.vlgmr.msra.gmra.mxu2 %v17846_v21 }
  0x97   : > { %v14198_v34 = vld [vmem:[%s17726_s15 + $0x1b80] sm:$0xf]  ;;  %v13687_v42 = vor.u32 %v16627_v33, %v13686_v31  ;;  %6658 = vmatpush.bf16.msrb.mxu0 %v13175_v41 }
  0x98   : > { %v16755_v35 = vld [vmem:[%s17726_s15 + $0x1bbc] sm:$0xf0]  ;;  %6653 = vmatmul.bf16.vlgmr.msra.gmra.mxu3 %v17848_v22 }
  0x99   : > { %v14710_v38 = vld [vmem:[%s17726_s15 + $0x1f80] sm:$0xf]  ;;  %v14199_v43 = vor.u32 %v16755_v35, %v14198_v34  ;;  %6671 = vmatpush.bf16.msrb.mxu1 %v13687_v42 }
  0x9a   : > { %v16883_v39 = vld [vmem:[%s17726_s15 + $0x1fbc] sm:$0xf0] }
  0x9b   : > { %v13110_v44 = vld [vmem:[%s17726_s15 + $0x1300] sm:$0xf]  ;;  %v14711_v47 = vor.u32 %v16883_v39, %v14710_v38  ;;  %6684 = vmatpush.bf16.msrb.mxu2 %v14199_v43 }
  0x9c   : > { %v16483_v45 = vld [vmem:[%s17726_s15 + $0x133c] sm:$0xf0] }
  0x9d   : > { %v13622_v46 = vld [vmem:[%s17726_s15 + $0x1700] sm:$0xf]  ;;  %v13111_v53 = vor.u32 %v16483_v45, %v13110_v44  ;;  %6697 = vmatpush.bf16.msrb.mxu3 %v14711_v47 }
  0x9e   : > { %v16611_v48 = vld [vmem:[%s17726_s15 + $0x173c] sm:$0xf0] }
  0x9f   : > { %v14134_v49 = vld [vmem:[%s17726_s15 + $0x1b00] sm:$0xf]  ;;  %v13623_v56 = vor.u32 %v16611_v48, %v13622_v46  ;;  %6659 = vmatpush.bf16.msrb.mxu0 %v13111_v53 }
  0xa0   : > { %v16739_v50 = vld [vmem:[%s17726_s15 + $0x1b3c] sm:$0xf0] }
  0xa1   : > { %v14646_v51 = vld [vmem:[%s17726_s15 + $0x1f00] sm:$0xf]  ;;  %v14135_v57 = vor.u32 %v16739_v50, %v14134_v49  ;;  %6672 = vmatpush.bf16.msrb.mxu1 %v13623_v56 }
  0xa2   : > { %v16867_v52 = vld [vmem:[%s17726_s15 + $0x1f3c] sm:$0xf0] }
  0xa3   : > { %v13046_v54 = vld [vmem:[%s17726_s15 + $0x1280] sm:$0xf]  ;;  %v14647_v60 = vor.u32 %v16867_v52, %v14646_v51  ;;  %6685 = vmatpush.bf16.msrb.mxu2 %v14135_v57 }
  0xa4   : > { %v16467_v55 = vld [vmem:[%s17726_s15 + $0x12bc] sm:$0xf0] }
  0xa5   : > { %v13558_v58 = vld [vmem:[%s17726_s15 + $0x1680] sm:$0xf]  ;;  %v13047_v1 = vor.u32 %v16467_v55, %v13046_v54  ;;  %6698 = vmatpush.bf16.msrb.mxu3 %v14647_v60 }
  0xa6   : > { %v16595_v59 = vld [vmem:[%s17726_s15 + $0x16bc] sm:$0xf0] }
  0xa7   : > { %v14070_v61 = vld [vmem:[%s17726_s15 + $0x1a80] sm:$0xf]  ;;  %v13559_v4 = vor.u32 %v16595_v59, %v13558_v58  ;;  %6660 = vmatpush.bf16.msrb.mxu0 %v13047_v1 }
  0xa8   : > { %v16723_v62 = vld [vmem:[%s17726_s15 + $0x1abc] sm:$0xf0] }
  0xa9   : > { %v14582_v63 = vld [vmem:[%s17726_s15 + $0x1e80] sm:$0xf]  ;;  %v14071_v5 = vor.u32 %v16723_v62, %v14070_v61  ;;  %6673 = vmatpush.bf16.msrb.mxu1 %v13559_v4  ;;  %v417_v4 = vld [vmem:[%s17838_s12 + $0x18] sm:$0xff] }
  0xaa   : > { %v16851_v0 = vld [vmem:[%s17726_s15 + $0x1ebc] sm:$0xf0] }
  0xab   : > { %v12982_v2 = vld [vmem:[%s17726_s15 + $0x1200] sm:$0xf]  ;;  %v14583_v9 = vor.u32 %v16851_v0, %v14582_v63  ;;  %6686 = vmatpush.bf16.msrb.mxu2 %v14071_v5 }
  0xac   : > { %v16451_v3 = vld [vmem:[%s17726_s15 + $0x123c] sm:$0xf0] }
  0xad   : > { %v13494_v6 = vld [vmem:[%s17726_s15 + $0x1600] sm:$0xf]  ;;  %v12983_v19 = vor.u32 %v16451_v3, %v12982_v2  ;;  %6699 = vmatpush.bf16.msrb.mxu3 %v14583_v9  ;;  %v15979_v9 = vld [vmem:[%s17726_s15 + $0x384] sm:$0xf] }
  0xae   : > { %v16579_v7 = vld [vmem:[%s17726_s15 + $0x163c] sm:$0xf0] }
  0xaf   : > { %v14006_v10 = vld [vmem:[%s17726_s15 + $0x1a00] sm:$0xf]  ;;  %v13495_v20 = vor.u32 %v16579_v7, %v13494_v6  ;;  %6661 = vmatpush.bf16.msrb.mxu0 %v12983_v19  ;;  %v16363_v19 = vld [vmem:[%s17726_s15 + $0xf84] sm:$0xf] }
  0xb0   : > { %v16707_v11 = vld [vmem:[%s17726_s15 + $0x1a3c] sm:$0xf0] }
  0xb1   : > { %v414_v13 = vld [vmem:[%s17838_s12] sm:$0xff]  ;;  %v14007_v23 = vor.u32 %v16707_v11, %v14006_v10  ;;  %6674 = vmatpush.bf16.msrb.mxu1 %v13495_v20 }
  0xb2   : > { %v14518_v15 = vld [vmem:[%s17726_s15 + $0x1e00] sm:$0xf]  ;;  %v1462_v17 = vunpack.c.l.b16 %v414_v13  ;;  %v1463_v18 = vunpack.c.h.b16 %v414_v13  ;;  %v11128_v10 = vld [vmem:[%s17726_s15 + $0x3c0] sm:$0xf0] }
  0xb3   : > { %v16835_v16 = vld [vmem:[%s17726_s15 + $0x1e3c] sm:$0xf0]  ;;  %6687 = vmatpush.bf16.msrb.mxu2 %v14007_v23  ;;  %v16107_v11 = vld [vmem:[%s17726_s15 + $0x784] sm:$0xf]  ;;  %v1466_v23 = vunpack.c.l.b16 %v416_v8 }
  0xb4   : > { %v12918_v24 = vld [vmem:[%s17726_s15 + $0x1180] sm:$0xf]  ;;  %v17853_v27 = vpack.c.b16 %v1462_v17, %v1462_v17  ;;  %v17855_v28 = vpack.c.b16 %v1463_v18, %v1463_v18  ;;  %v14519_v29 = vor.u32 %v16835_v16, %v14518_v15  ;;  %v11640_v13 = vld [vmem:[%s17726_s15 + $0x7c0] sm:$0xf0]  ;;  %v1468_v16 = vunpack.c.l.b16 %v417_v4 }
  0xb5   : > { %v16435_v25 = vld [vmem:[%s17726_s15 + $0x11bc] sm:$0xf0]  ;;  %v12152_v15 = vld [vmem:[%s17726_s15 + $0xbc0] sm:$0xf0] }
  0xb6   : > { %v13430_v26 = vld [vmem:[%s17726_s15 + $0x1580] sm:$0xf]  ;;  %6614 = vmatmul.bf16.vlgmr.msra.gmra.mxu0 %v17853_v27  ;;  %v12919_v35 = vor.u32 %v16435_v25, %v12918_v24  ;;  %6627 = vmatmul.bf16.vlgmr.msra.gmra.mxu1 %v17855_v28  ;;  %v12664_v20 = vld [vmem:[%s17726_s15 + $0xfc0] sm:$0xf0]  ;;  %v1469_v24 = vunpack.c.h.b16 %v417_v4 }
  0xb7   : > { %v16563_v30 = vld [vmem:[%s17726_s15 + $0x15bc] sm:$0xf0]  ;;  %6700 = vmatpush.bf16.msrb.mxu3 %v14519_v29  ;;  %v1467_v29 = vunpack.c.h.b16 %v416_v8  ;;  %v12472_v4 = vld [vmem:[%s17726_s15 + $0xe40] sm:$0xf0] }
  0xb8   : > { %v13942_v31 = vld [vmem:[%s17726_s15 + $0x1980] sm:$0xf]  ;;  %v13431_v36 = vor.u32 %v16563_v30, %v13430_v26  ;;  %6662 = vmatpush.bf16.msrb.mxu0 %v12919_v35  ;;  %v11131_v26 = vor.u32 %v15979_v9, %v11128_v10  ;;  %v11643_v30 = vor.u32 %v16107_v11, %v11640_v13  ;;  %v12667_v35 = vor.u32 %v16363_v19, %v12664_v20  ;;  %v15915_v8 = vld [vmem:[%s17726_s15 + $0x184] sm:$0xf] }
  0xb9   : > { %v16691_v32 = vld [vmem:[%s17726_s15 + $0x19bc] sm:$0xf0]  ;;  %v10872_v9 = vld [vmem:[%s17726_s15 + $0x1c0] sm:$0xf0] }
  0xba   : > { %v14454_v33 = vld [vmem:[%s17726_s15 + $0x1d80] sm:$0xf]  ;;  %v13943_v37 = vor.u32 %v16691_v32, %v13942_v31  ;;  %6675 = vmatpush.bf16.msrb.mxu1 %v13431_v36  ;;  %v12155_v31 = vor.u32 %v16235_v14, %v12152_v15  ;;  %v15963_v32 = vld [vmem:[%s17726_s15 + $0x304] sm:$0xf] }
  0xbb   : > { %v16819_v34 = vld [vmem:[%s17726_s15 + $0x1dbc] sm:$0xf0]  ;;  %v11576_v36 = vld [vmem:[%s17726_s15 + $0x740] sm:$0xf0] }
  0xbc   : > { %v12854_v38 = vld [vmem:[%s17726_s15 + $0x1100] sm:$0xf]  ;;  %v14455_v41 = vor.u32 %v16819_v34, %v14454_v33  ;;  %6688 = vmatpush.bf16.msrb.mxu2 %v13943_v37  ;;  %v11064_v33 = vld [vmem:[%s17726_s15 + $0x340] sm:$0xf0] }
  0xbd   : > { %v16419_v39 = vld [vmem:[%s17726_s15 + $0x113c] sm:$0xf0]  ;;  %v16091_v34 = vld [vmem:[%s17726_s15 + $0x704] sm:$0xf] }
  0xbe   : > { %v13366_v40 = vld [vmem:[%s17726_s15 + $0x1500] sm:$0xf]  ;;  %v12855_v47 = vor.u32 %v16419_v39, %v12854_v38  ;;  %6701 = vmatpush.bf16.msrb.mxu3 %v14455_v41  ;;  %v16219_v37 = vld [vmem:[%s17726_s15 + $0xb04] sm:$0xf]  ;;  %v17906_v39 = vpack.c.b16 %v1468_v16, %v1468_v16 }
  0xbf   : > { %v16547_v42 = vld [vmem:[%s17726_s15 + $0x153c] sm:$0xf0]  ;;  %v12088_v38 = vld [vmem:[%s17726_s15 + $0xb40] sm:$0xf0] }
  0xc0   : > { %v13878_v43 = vld [vmem:[%s17726_s15 + $0x1900] sm:$0xf]  ;;  %v13367_v48 = vor.u32 %v16547_v42, %v13366_v40  ;;  %6663 = vmatpush.bf16.msrb.mxu0 %v12855_v47  ;;  %v16347_v40 = vld [vmem:[%s17726_s15 + $0xf04] sm:$0xf]  ;;  %v17910_v42 = vpack.c.b16 %v1466_v23, %v1466_v23  ;;  %v12091_v47 = vor.u32 %v16219_v37, %v12088_v38 }
  0xc1   : > { %v16675_v44 = vld [vmem:[%s17726_s15 + $0x193c] sm:$0xf0]  ;;  %v12600_v41 = vld [vmem:[%s17726_s15 + $0xf40] sm:$0xf0] }
  0xc2   : > { %v14390_v45 = vld [vmem:[%s17726_s15 + $0x1d00] sm:$0xf]  ;;  %v13879_v49 = vor.u32 %v16675_v44, %v13878_v43  ;;  %6676 = vmatpush.bf16.msrb.mxu1 %v13367_v48  ;;  %v17912_v43 = vpack.c.b16 %v1469_v24, %v1469_v24  ;;  %v11067_v44 = vor.u32 %v15963_v32, %v11064_v33  ;;  %v15947_v48 = vld [vmem:[%s17726_s15 + $0x284] sm:$0xf] }
  0xc3   : > { %v16803_v46 = vld [vmem:[%s17726_s15 + $0x1d3c] sm:$0xf0]  ;;  %v16043_v10 = vld [vmem:[%s17726_s15 + $0x584] sm:$0xf] }
  0xc4   : > { %v12790_v50 = vld [vmem:[%s17726_s15 + $0x1080] sm:$0xf]  ;;  %v14391_v53 = vor.u32 %v16803_v46, %v14390_v45  ;;  %6689 = vmatpush.bf16.msrb.mxu2 %v13879_v49  ;;  %v17914_v45 = vpack.c.b16 %v1467_v29, %v1467_v29  ;;  %v11579_v46 = vor.u32 %v16091_v34, %v11576_v36  ;;  %v11000_v49 = vld [vmem:[%s17726_s15 + $0x2c0] sm:$0xf0] }
  0xc5   : > { %v16403_v51 = vld [vmem:[%s17726_s15 + $0x10bc] sm:$0xf0]  ;;  %v16171_v13 = vld [vmem:[%s17726_s15 + $0x984] sm:$0xf] }
  0xc6   : > { %v13302_v52 = vld [vmem:[%s17726_s15 + $0x1480] sm:$0xf]  ;;  %v12791_v60 = vor.u32 %v16403_v51, %v12790_v50  ;;  %6702 = vmatpush.bf16.msrb.mxu3 %v14391_v53  ;;  %v16075_v50 = vld [vmem:[%s17726_s15 + $0x684] sm:$0xf]  ;;  %v12603_v51 = vor.u32 %v16347_v40, %v12600_v41 }
  0xc7   : > { %v16531_v54 = vld [vmem:[%s17726_s15 + $0x14bc] sm:$0xf0]  ;;  %v16203_v53 = vld [vmem:[%s17726_s15 + $0xa84] sm:$0xf] }
  0xc8   : > { %v13814_v55 = vld [vmem:[%s17726_s15 + $0x1880] sm:$0xf]  ;;  %v13303_v0 = vor.u32 %v16531_v54, %v13302_v52  ;;  %6664 = vmatpush.bf16.msrb.mxu0 %v12791_v60  ;;  %v11512_v52 = vld [vmem:[%s17726_s15 + $0x6c0] sm:$0xf0] }
  0xc9   : > { %v16659_v56 = vld [vmem:[%s17726_s15 + $0x18bc] sm:$0xf0]  ;;  %v12024_v54 = vld [vmem:[%s17726_s15 + $0xac0] sm:$0xf0] }
  0xca   : > { %v14326_v57 = vld [vmem:[%s17726_s15 + $0x1c80] sm:$0xf]  ;;  %v13815_v1 = vor.u32 %v16659_v56, %v13814_v55  ;;  %6677 = vmatpush.bf16.msrb.mxu1 %v13303_v0  ;;  %v16331_v55 = vld [vmem:[%s17726_s15 + $0xe84] sm:$0xf] }
  0xcb   : > { %v16787_v58 = vld [vmem:[%s17726_s15 + $0x1cbc] sm:$0xf0]  ;;  %v12536_v56 = vld [vmem:[%s17726_s15 + $0xec0] sm:$0xf0] }
  0xcc   : > { %v12726_v59 = vld [vmem:[%s17726_s15 + $0x1000] sm:$0xf]  ;;  %v14327_v5 = vor.u32 %v16787_v58, %v14326_v57  ;;  %6690 = vmatpush.bf16.msrb.mxu2 %v13815_v1  ;;  %v11003_v57 = vor.u32 %v15947_v48, %v11000_v49  ;;  %v11515_v58 = vor.u32 %v16075_v50, %v11512_v52  ;;  %v15931_v60 = vld [vmem:[%s17726_s15 + $0x204] sm:$0xf] }
  0xcd   : > { %v16387_v61 = vld [vmem:[%s17726_s15 + $0x103c] sm:$0xf0]  ;;  %v11448_v0 = vld [vmem:[%s17726_s15 + $0x640] sm:$0xf0] }
  0xce   : > { %v13238_v62 = vld [vmem:[%s17726_s15 + $0x1400] sm:$0xf]  ;;  %v12727_v12 = vor.u32 %v16387_v61, %v12726_v59  ;;  %6703 = vmatpush.bf16.msrb.mxu3 %v14327_v5  ;;  %v12027_v59 = vor.u32 %v16203_v53, %v12024_v54  ;;  %v10936_v61 = vld [vmem:[%s17726_s15 + $0x240] sm:$0xf0] }
  0xcf   : > { %v16515_v63 = vld [vmem:[%s17726_s15 + $0x143c] sm:$0xf0]  ;;  %v16187_v1 = vld [vmem:[%s17726_s15 + $0xa04] sm:$0xf]  ;;  %v10939_v5 = vor.u32 %v15931_v60, %v10936_v61 }
  0xd0   : > { %v13750_v2 = vld [vmem:[%s17726_s15 + $0x1800] sm:$0xf]  ;;  %v13239_v17 = vor.u32 %v16515_v63, %v13238_v62  ;;  %6665 = vmatpush.bf16.msrb.mxu0 %v12727_v12  ;;  %v16059_v62 = vld [vmem:[%s17726_s15 + $0x604] sm:$0xf]  ;;  %v12539_v63 = vor.u32 %v16331_v55, %v12536_v56 }
  0xd1   : > { %v16643_v3 = vld [vmem:[%s17726_s15 + $0x183c] sm:$0xf0]  ;;  %v11384_v12 = vld [vmem:[%s17726_s15 + $0x5c0] sm:$0xf0] }
  0xd2   : > { %v14262_v6 = vld [vmem:[%s17726_s15 + $0x1c00] sm:$0xf]  ;;  %v13751_v18 = vor.u32 %v16643_v3, %v13750_v2  ;;  %6678 = vmatpush.bf16.msrb.mxu1 %v13239_v17  ;;  %v11960_v2 = vld [vmem:[%s17726_s15 + $0xa40] sm:$0xf0]  ;;  %v10875_v17 = vor.u32 %v15915_v8, %v10872_v9 }
  0xd3   : > { %v16771_v7 = vld [vmem:[%s17726_s15 + $0x1c3c] sm:$0xf0]  ;;  %6666 = vmatmul.bf16.vlgmr.msrb.gmra.mxu0 %v17910_v42  ;;  %v16315_v3 = vld [vmem:[%s17726_s15 + $0xe04] sm:$0xf] }
  0xd4   : > { %v14263_v25 = vor.u32 %v16771_v7, %v14262_v6  ;;  %6691 = vmatpush.bf16.msrb.mxu2 %v13751_v18  ;;  %6710 = vmatpush.bf16.msra.mxu0 %v11131_v26  ;;  %v11451_v6 = vor.u32 %v16059_v62, %v11448_v0  ;;  %v11963_v7 = vor.u32 %v16187_v1, %v11960_v2  ;;  %v11896_v14 = vld [vmem:[%s17726_s15 + $0x9c0] sm:$0xf0] }
  0xd5   : > { %6679 = vmatmul.bf16.vlgmr.msrb.gmra.mxu1 %v17914_v45  ;;  %v12475_v11 = vor.u32 %v16315_v3, %v12472_v4  ;;  %v16299_v15 = vld [vmem:[%s17726_s15 + $0xd84] sm:$0xf]  ;;  %v11387_v18 = vor.u32 %v16043_v10, %v11384_v12  ;;  %v11899_v19 = vor.u32 %v16171_v13, %v11896_v14 }
  0xd6   : > { %6704 = vmatpush.bf16.msrb.mxu3 %v14263_v25  ;;  %6723 = vmatpush.bf16.msra.mxu1 %v11643_v30  ;;  %v12408_v16 = vld [vmem:[%s17726_s15 + $0xdc0] sm:$0xf0] }
  0xd7   : > { %6692 = vmatmul.bf16.vlgmr.msrb.gmra.mxu2 %v17906_v39  ;;  %v15899_v20 = vld [vmem:[%s17726_s15 + $0x104] sm:$0xf]  ;;  %v12411_v25 = vor.u32 %v16299_v15, %v12408_v16 }
  0xd8   : > { %6736 = vmatpush.bf16.msra.mxu2 %v12155_v31  ;;  %6711 = vmatpush.bf16.msra.mxu0 %v11067_v44  ;;  %v10808_v23 = vld [vmem:[%s17726_s15 + $0x140] sm:$0xf0] }
  0xd9   : > { %6705 = vmatmul.bf16.vlgmr.msrb.gmra.mxu3 %v17912_v43  ;;  %v16027_v24 = vld [vmem:[%s17726_s15 + $0x504] sm:$0xf]  ;;  %v10811_v33 = vor.u32 %v15899_v20, %v10808_v23 }
  0xda   : > { %6749 = vmatpush.bf16.msra.mxu3 %v12667_v35  ;;  %6724 = vmatpush.bf16.msra.mxu1 %v11579_v46  ;;  %v11320_v26 = vld [vmem:[%s17726_s15 + $0x540] sm:$0xf0] }
  0xdb   : > { %v16155_v29 = vld [vmem:[%s17726_s15 + $0x904] sm:$0xf]  ;;  %v11323_v34 = vor.u32 %v16027_v24, %v11320_v26 }
  0xdc   : > { %6737 = vmatpush.bf16.msra.mxu2 %v12091_v47  ;;  %6712 = vmatpush.bf16.msra.mxu0 %v11003_v57  ;;  %v11832_v30 = vld [vmem:[%s17726_s15 + $0x940] sm:$0xf0] }
  0xdd   : > { %v16283_v31 = vld [vmem:[%s17726_s15 + $0xd04] sm:$0xf]  ;;  %v11835_v35 = vor.u32 %v16155_v29, %v11832_v30 }
  0xde   : > { %6750 = vmatpush.bf16.msra.mxu3 %v12603_v51  ;;  %6725 = vmatpush.bf16.msra.mxu1 %v11515_v58  ;;  %v12344_v32 = vld [vmem:[%s17726_s15 + $0xd40] sm:$0xf0] }
  0xdf   : > { %v15883_v36 = vld [vmem:[%s17726_s15 + $0x84] sm:$0xf]  ;;  %v12347_v40 = vor.u32 %v16283_v31, %v12344_v32 }
  0xe0   : > { %6738 = vmatpush.bf16.msra.mxu2 %v12027_v59  ;;  %6713 = vmatpush.bf16.msra.mxu0 %v10939_v5  ;;  %v10744_v37 = vld [vmem:[%s17726_s15 + $0xc0] sm:$0xf0] }
  0xe1   : > { %v16011_v38 = vld [vmem:[%s17726_s15 + $0x484] sm:$0xf]  ;;  %v10747_v49 = vor.u32 %v15883_v36, %v10744_v37 }
  0xe2   : > { %6751 = vmatpush.bf16.msra.mxu3 %v12539_v63  ;;  %6726 = vmatpush.bf16.msra.mxu1 %v11451_v6  ;;  %v11256_v41 = vld [vmem:[%s17726_s15 + $0x4c0] sm:$0xf0] }
  0xe3   : > { %v16139_v44 = vld [vmem:[%s17726_s15 + $0x884] sm:$0xf]  ;;  %v11259_v52 = vor.u32 %v16011_v38, %v11256_v41 }
  0xe4   : > { %6739 = vmatpush.bf16.msra.mxu2 %v11963_v7  ;;  %6714 = vmatpush.bf16.msra.mxu0 %v10875_v17  ;;  %v11768_v46 = vld [vmem:[%s17726_s15 + $0x8c0] sm:$0xf0] }
  0xe5   : > { %v16267_v47 = vld [vmem:[%s17726_s15 + $0xc84] sm:$0xf]  ;;  %v11771_v53 = vor.u32 %v16139_v44, %v11768_v46 }
  0xe6   : > { %6752 = vmatpush.bf16.msra.mxu3 %v12475_v11  ;;  %6727 = vmatpush.bf16.msra.mxu1 %v11387_v18  ;;  %v12280_v48 = vld [vmem:[%s17726_s15 + $0xcc0] sm:$0xf0] }
  0xe7   : > { %v15867_v50 = vld [vmem:[%s17726_s15 + $0x4] sm:$0xf]  ;;  %v12283_v57 = vor.u32 %v16267_v47, %v12280_v48 }
  0xe8   : > { %6740 = vmatpush.bf16.msra.mxu2 %v11899_v19  ;;  %6715 = vmatpush.bf16.msra.mxu0 %v10811_v33  ;;  %v10680_v51 = vld [vmem:[%s17726_s15 + $0x40] sm:$0xf0] }
  0xe9   : > { %v15995_v54 = vld [vmem:[%s17726_s15 + $0x404] sm:$0xf]  ;;  %v10683_v0 = vor.u32 %v15867_v50, %v10680_v51 }
  0xea   : > { %6753 = vmatpush.bf16.msra.mxu3 %v12411_v25  ;;  %6728 = vmatpush.bf16.msra.mxu1 %v11323_v34  ;;  %v11192_v55 = vld [vmem:[%s17726_s15 + $0x440] sm:$0xf0] }
  0xeb   : > { %v16123_v56 = vld [vmem:[%s17726_s15 + $0x804] sm:$0xf]  ;;  %v11195_v4 = vor.u32 %v15995_v54, %v11192_v55 }
  0xec   : > { %6741 = vmatpush.bf16.msra.mxu2 %v11835_v35  ;;  %v11704_v58 = vld [vmem:[%s17726_s15 + $0x840] sm:$0xf0]  ;;  %6716 = vmatpush.bf16.msra.mxu0 %v10747_v49 }
  0xed   : > { %v16251_v59 = vld [vmem:[%s17726_s15 + $0xc04] sm:$0xf]  ;;  %v11707_v5 = vor.u32 %v16123_v56, %v11704_v58 }
  0xee   : > { %6754 = vmatpush.bf16.msra.mxu3 %v12347_v40  ;;  %v12216_v60 = vld [vmem:[%s17726_s15 + $0xc40] sm:$0xf0]  ;;  %6729 = vmatpush.bf16.msra.mxu1 %v11259_v52 }
  0xef   : > { %v16491_v61 = vld [vmem:[%s17726_s15 + $0x1384] sm:$0xf]  ;;  %v12219_v8 = vor.u32 %v16251_v59, %v12216_v60 }
  0xf0   : > { %v13176_v62 = vld [vmem:[%s17726_s15 + $0x13c0] sm:$0xf0]  ;;  %6742 = vmatpush.bf16.msra.mxu2 %v11771_v53  ;;  %6717 = vmatpush.bf16.msra.mxu0 %v10683_v0 }
  0xf1   : > { %v16619_v63 = vld [vmem:[%s17726_s15 + $0x1784] sm:$0xf]  ;;  %v13179_v9 = vor.u32 %v16491_v61, %v13176_v62 }
  0xf2   : > { %v13688_v1 = vld [vmem:[%s17726_s15 + $0x17c0] sm:$0xf0]  ;;  %6755 = vmatpush.bf16.msra.mxu3 %v12283_v57  ;;  %6730 = vmatpush.bf16.msra.mxu1 %v11195_v4 }
  0xf3   : > { %v16747_v2 = vld [vmem:[%s17726_s15 + $0x1b84] sm:$0xf]  ;;  %v13691_v10 = vor.u32 %v16619_v63, %v13688_v1  ;;  %6718 = vmatmul.bf16.vlgmr.msra.gmra.mxu0 %v17853_v27 }
  0xf4   : > { %v14200_v3 = vld [vmem:[%s17726_s15 + $0x1bc0] sm:$0xf0]  ;;  %6743 = vmatpush.bf16.msra.mxu2 %v11707_v5  ;;  %6762 = vmatpush.bf16.msrb.mxu0 %v13179_v9 }
  0xf5   : > { %v16875_v6 = vld [vmem:[%s17726_s15 + $0x1f84] sm:$0xf]  ;;  %v14203_v11 = vor.u32 %v16747_v2, %v14200_v3  ;;  %6731 = vmatmul.bf16.vlgmr.msra.gmra.mxu1 %v17855_v28 }
  0xf6   : > { %v14712_v7 = vld [vmem:[%s17726_s15 + $0x1fc0] sm:$0xf0]  ;;  %6756 = vmatpush.bf16.msra.mxu3 %v12219_v8  ;;  %6775 = vmatpush.bf16.msrb.mxu1 %v13691_v10 }
  0xf7   : > { %v16475_v12 = vld [vmem:[%s17726_s15 + $0x1304] sm:$0xf]  ;;  %v14715_v15 = vor.u32 %v16875_v6, %v14712_v7  ;;  %6744 = vmatmul.bf16.vlgmr.msra.gmra.mxu2 %v17846_v21 }
  0xf8   : > { %v13112_v13 = vld [vmem:[%s17726_s15 + $0x1340] sm:$0xf0]  ;;  %6788 = vmatpush.bf16.msrb.mxu2 %v14203_v11 }
  0xf9   : > { %v16603_v14 = vld [vmem:[%s17726_s15 + $0x1704] sm:$0xf]  ;;  %v13115_v23 = vor.u32 %v16475_v12, %v13112_v13  ;;  %6757 = vmatmul.bf16.vlgmr.msra.gmra.mxu3 %v17848_v22 }
  0xfa   : > { %v13624_v16 = vld [vmem:[%s17726_s15 + $0x1740] sm:$0xf0]  ;;  %6801 = vmatpush.bf16.msrb.mxu3 %v14715_v15 }
  0xfb   : > { %v16731_v17 = vld [vmem:[%s17726_s15 + $0x1b04] sm:$0xf]  ;;  %v13627_v24 = vor.u32 %v16603_v14, %v13624_v16  ;;  %6763 = vmatpush.bf16.msrb.mxu0 %v13115_v23 }
  0xfc   : > { %v14136_v18 = vld [vmem:[%s17726_s15 + $0x1b40] sm:$0xf0] }
  0xfd   : > { %v16859_v19 = vld [vmem:[%s17726_s15 + $0x1f04] sm:$0xf]  ;;  %v14139_v25 = vor.u32 %v16731_v17, %v14136_v18  ;;  %6776 = vmatpush.bf16.msrb.mxu1 %v13627_v24 }
  0xfe   : > { %v14648_v20 = vld [vmem:[%s17726_s15 + $0x1f40] sm:$0xf0] }
  0xff   : > { %v16459_v26 = vld [vmem:[%s17726_s15 + $0x1284] sm:$0xf]  ;;  %v14651_v31 = vor.u32 %v16859_v19, %v14648_v20  ;;  %6789 = vmatpush.bf16.msrb.mxu2 %v14139_v25 }
 0x100   : > { %v13048_v29 = vld [vmem:[%s17726_s15 + $0x12c0] sm:$0xf0] }
 0x101   : > { %v16587_v30 = vld [vmem:[%s17726_s15 + $0x1684] sm:$0xf]  ;;  %v13051_v37 = vor.u32 %v16459_v26, %v13048_v29  ;;  %6802 = vmatpush.bf16.msrb.mxu3 %v14651_v31 }
 0x102   : > { %v13560_v32 = vld [vmem:[%s17726_s15 + $0x16c0] sm:$0xf0] }
 0x103   : > { %v16715_v33 = vld [vmem:[%s17726_s15 + $0x1a84] sm:$0xf]  ;;  %v13563_v38 = vor.u32 %v16587_v30, %v13560_v32  ;;  %6764 = vmatpush.bf16.msrb.mxu0 %v13051_v37 }
 0x104   : > { %v14072_v34 = vld [vmem:[%s17726_s15 + $0x1ac0] sm:$0xf0] }
 0x105   : > { %v16843_v35 = vld [vmem:[%s17726_s15 + $0x1e84] sm:$0xf]  ;;  %v14075_v40 = vor.u32 %v16715_v33, %v14072_v34  ;;  %6777 = vmatpush.bf16.msrb.mxu1 %v13563_v38 }
 0x106   : > { %v14584_v36 = vld [vmem:[%s17726_s15 + $0x1ec0] sm:$0xf0] }
 0x107   : > { %v16443_v41 = vld [vmem:[%s17726_s15 + $0x1204] sm:$0xf]  ;;  %v14587_v47 = vor.u32 %v16843_v35, %v14584_v36  ;;  %6790 = vmatpush.bf16.msrb.mxu2 %v14075_v40 }
 0x108   : > { %v12984_v44 = vld [vmem:[%s17726_s15 + $0x1240] sm:$0xf0] }
 0x109   : > { %v16571_v46 = vld [vmem:[%s17726_s15 + $0x1604] sm:$0xf]  ;;  %v12987_v53 = vor.u32 %v16443_v41, %v12984_v44  ;;  %6803 = vmatpush.bf16.msrb.mxu3 %v14587_v47  ;;  %v11134_v44 = vld [vmem:[%s17726_s15 + $0x388] sm:$0xf] }
 0x10a   : > { %v13496_v48 = vld [vmem:[%s17726_s15 + $0x1640] sm:$0xf0]  ;;  %v11646_v47 = vld [vmem:[%s17726_s15 + $0x788] sm:$0xf] }
 0x10b   : > { %v16699_v49 = vld [vmem:[%s17726_s15 + $0x1a04] sm:$0xf]  ;;  %v13499_v54 = vor.u32 %v16571_v46, %v13496_v48  ;;  %6765 = vmatpush.bf16.msrb.mxu0 %v12987_v53  ;;  %v15988_v46 = vld [vmem:[%s17726_s15 + $0x3c4] sm:$0xf0] }
 0x10c   : > { %v14008_v50 = vld [vmem:[%s17726_s15 + $0x1a40] sm:$0xf0] }
 0x10d   : > { %v16827_v51 = vld [vmem:[%s17726_s15 + $0x1e04] sm:$0xf]  ;;  %v14011_v55 = vor.u32 %v16699_v49, %v14008_v50  ;;  %6778 = vmatpush.bf16.msrb.mxu1 %v13499_v54  ;;  %v16116_v49 = vld [vmem:[%s17726_s15 + $0x7c4] sm:$0xf0] }
 0x10e   : > { %v14520_v52 = vld [vmem:[%s17726_s15 + $0x1e40] sm:$0xf0]  ;;  %v12158_v50 = vld [vmem:[%s17726_s15 + $0xb88] sm:$0xf] }
 0x10f   : > { %v16427_v56 = vld [vmem:[%s17726_s15 + $0x1184] sm:$0xf]  ;;  %v14523_v59 = vor.u32 %v16827_v51, %v14520_v52  ;;  %6791 = vmatpush.bf16.msrb.mxu2 %v14011_v55  ;;  %v16244_v51 = vld [vmem:[%s17726_s15 + $0xbc4] sm:$0xf0] }
 0x110   : > { %v12920_v57 = vld [vmem:[%s17726_s15 + $0x11c0] sm:$0xf0]  ;;  %v12670_v54 = vld [vmem:[%s17726_s15 + $0xf88] sm:$0xf] }
 0x111   : > { %v16555_v58 = vld [vmem:[%s17726_s15 + $0x1584] sm:$0xf]  ;;  %v12923_v1 = vor.u32 %v16427_v56, %v12920_v57  ;;  %6804 = vmatpush.bf16.msrb.mxu3 %v14523_v59  ;;  %v16372_v55 = vld [vmem:[%s17726_s15 + $0xfc4] sm:$0xf0]  ;;  %v11135_v57 = vor.u32 %v15988_v46, %v11134_v44  ;;  %v12159_v59 = vor.u32 %v16244_v51, %v12158_v50 }
 0x112   : > { %v13432_v60 = vld [vmem:[%s17726_s15 + $0x15c0] sm:$0xf0]  ;;  %v11902_v44 = vld [vmem:[%s17726_s15 + $0x988] sm:$0xf] }
 0x113   : > { %v16683_v61 = vld [vmem:[%s17726_s15 + $0x1984] sm:$0xf]  ;;  %v13435_v2 = vor.u32 %v16555_v58, %v13432_v60  ;;  %6766 = vmatpush.bf16.msrb.mxu0 %v12923_v1  ;;  %v11647_v58 = vor.u32 %v16116_v49, %v11646_v47  ;;  %v11070_v60 = vld [vmem:[%s17726_s15 + $0x308] sm:$0xf] }
 0x114   : > { %v13944_v62 = vld [vmem:[%s17726_s15 + $0x19c0] sm:$0xf0]  ;;  %v12094_v1 = vld [vmem:[%s17726_s15 + $0xb08] sm:$0xf] }
 0x115   : > { %v16811_v63 = vld [vmem:[%s17726_s15 + $0x1d84] sm:$0xf]  ;;  %v13947_v3 = vor.u32 %v16683_v61, %v13944_v62  ;;  %6779 = vmatpush.bf16.msrb.mxu1 %v13435_v2  ;;  %v15972_v61 = vld [vmem:[%s17726_s15 + $0x344] sm:$0xf0] }
 0x116   : > { %v14456_v0 = vld [vmem:[%s17726_s15 + $0x1dc0] sm:$0xf0]  ;;  %v11582_v62 = vld [vmem:[%s17726_s15 + $0x708] sm:$0xf] }
 0x117   : > { %v16411_v4 = vld [vmem:[%s17726_s15 + $0x1104] sm:$0xf]  ;;  %v14459_v7 = vor.u32 %v16811_v63, %v14456_v0  ;;  %6792 = vmatpush.bf16.msrb.mxu2 %v13947_v3  ;;  %v12671_v63 = vor.u32 %v16372_v55, %v12670_v54  ;;  %v16100_v0 = vld [vmem:[%s17726_s15 + $0x744] sm:$0xf0] }
 0x118   : > { %v12856_v5 = vld [vmem:[%s17726_s15 + $0x1140] sm:$0xf0]  ;;  %v16228_v2 = vld [vmem:[%s17726_s15 + $0xb44] sm:$0xf0] }
 0x119   : > { %v16539_v6 = vld [vmem:[%s17726_s15 + $0x1504] sm:$0xf]  ;;  %v12859_v13 = vor.u32 %v16411_v4, %v12856_v5  ;;  %6805 = vmatpush.bf16.msrb.mxu3 %v14459_v7  ;;  %v12606_v3 = vld [vmem:[%s17726_s15 + $0xf08] sm:$0xf]  ;;  %v11071_v5 = vor.u32 %v15972_v61, %v11070_v60  ;;  %v12095_v7 = vor.u32 %v16228_v2, %v12094_v1 }
 0x11a   : > { %v13368_v8 = vld [vmem:[%s17726_s15 + $0x1540] sm:$0xf0]  ;;  %v16356_v4 = vld [vmem:[%s17726_s15 + $0xf44] sm:$0xf0] }
 0x11b   : > { %v16667_v9 = vld [vmem:[%s17726_s15 + $0x1904] sm:$0xf]  ;;  %v13371_v14 = vor.u32 %v16539_v6, %v13368_v8  ;;  %6767 = vmatpush.bf16.msrb.mxu0 %v12859_v13  ;;  %v11583_v6 = vor.u32 %v16100_v0, %v11582_v62  ;;  %v11006_v8 = vld [vmem:[%s17726_s15 + $0x288] sm:$0xf] }
 0x11c   : > { %v13880_v10 = vld [vmem:[%s17726_s15 + $0x1940] sm:$0xf0]  ;;  %v12030_v13 = vld [vmem:[%s17726_s15 + $0xa88] sm:$0xf] }
 0x11d   : > { %v16795_v11 = vld [vmem:[%s17726_s15 + $0x1d04] sm:$0xf]  ;;  %v13883_v15 = vor.u32 %v16667_v9, %v13880_v10  ;;  %6780 = vmatpush.bf16.msrb.mxu1 %v13371_v14  ;;  %v15956_v9 = vld [vmem:[%s17726_s15 + $0x2c4] sm:$0xf0] }
 0x11e   : > { %v14392_v12 = vld [vmem:[%s17726_s15 + $0x1d40] sm:$0xf0]  ;;  %v11518_v10 = vld [vmem:[%s17726_s15 + $0x688] sm:$0xf] }
 0x11f   : > { %v16395_v16 = vld [vmem:[%s17726_s15 + $0x1084] sm:$0xf]  ;;  %v14395_v19 = vor.u32 %v16795_v11, %v14392_v12  ;;  %6793 = vmatpush.bf16.msrb.mxu2 %v13883_v15  ;;  %v12607_v11 = vor.u32 %v16356_v4, %v12606_v3  ;;  %v16084_v12 = vld [vmem:[%s17726_s15 + $0x6c4] sm:$0xf0] }
 0x120   : > { %v12792_v17 = vld [vmem:[%s17726_s15 + $0x10c0] sm:$0xf0]  ;;  %v16212_v14 = vld [vmem:[%s17726_s15 + $0xac4] sm:$0xf0] }
 0x121   : > { %v16523_v18 = vld [vmem:[%s17726_s15 + $0x1484] sm:$0xf]  ;;  %v12795_v29 = vor.u32 %v16395_v16, %v12792_v17  ;;  %6806 = vmatpush.bf16.msrb.mxu3 %v14395_v19  ;;  %v12542_v15 = vld [vmem:[%s17726_s15 + $0xe88] sm:$0xf]  ;;  %v11007_v17 = vor.u32 %v15956_v9, %v11006_v8  ;;  %v12031_v19 = vor.u32 %v16212_v14, %v12030_v13 }
 0x122   : > { %v13304_v20 = vld [vmem:[%s17726_s15 + $0x14c0] sm:$0xf0]  ;;  %v16340_v16 = vld [vmem:[%s17726_s15 + $0xec4] sm:$0xf0] }
 0x123   : > { %v16651_v23 = vld [vmem:[%s17726_s15 + $0x1884] sm:$0xf]  ;;  %v13307_v32 = vor.u32 %v16523_v18, %v13304_v20  ;;  %6768 = vmatpush.bf16.msrb.mxu0 %v12795_v29  ;;  %v11519_v18 = vor.u32 %v16084_v12, %v11518_v10  ;;  %v10942_v20 = vld [vmem:[%s17726_s15 + $0x208] sm:$0xf] }
 0x124   : > { %v13816_v24 = vld [vmem:[%s17726_s15 + $0x18c0] sm:$0xf0]  ;;  %v11966_v29 = vld [vmem:[%s17726_s15 + $0xa08] sm:$0xf] }
 0x125   : > { %v16779_v25 = vld [vmem:[%s17726_s15 + $0x1c84] sm:$0xf]  ;;  %v13819_v33 = vor.u32 %v16651_v23, %v13816_v24  ;;  %6781 = vmatpush.bf16.msrb.mxu1 %v13307_v32  ;;  %v15940_v23 = vld [vmem:[%s17726_s15 + $0x244] sm:$0xf0] }
 0x126   : > { %v14328_v26 = vld [vmem:[%s17726_s15 + $0x1cc0] sm:$0xf0]  ;;  %v11454_v24 = vld [vmem:[%s17726_s15 + $0x608] sm:$0xf] }
 0x127   : > { %v16379_v30 = vld [vmem:[%s17726_s15 + $0x1004] sm:$0xf]  ;;  %v14331_v37 = vor.u32 %v16779_v25, %v14328_v26  ;;  %6794 = vmatpush.bf16.msrb.mxu2 %v13819_v33  ;;  %v12543_v25 = vor.u32 %v16340_v16, %v12542_v15  ;;  %v16068_v26 = vld [vmem:[%s17726_s15 + $0x644] sm:$0xf0]  ;;  %v10943_v33 = vor.u32 %v15940_v23, %v10942_v20 }
 0x128   : > { %v12728_v31 = vld [vmem:[%s17726_s15 + $0x1040] sm:$0xf0]  ;;  %v16324_v32 = vld [vmem:[%s17726_s15 + $0xe44] sm:$0xf0] }
 0x129   : > { %v16507_v34 = vld [vmem:[%s17726_s15 + $0x1404] sm:$0xf]  ;;  %v12731_v48 = vor.u32 %v16379_v30, %v12728_v31  ;;  %6807 = vmatpush.bf16.msrb.mxu3 %v14331_v37  ;;  %v16196_v30 = vld [vmem:[%s17726_s15 + $0xa44] sm:$0xf0] }
 0x12a   : > { %v13240_v35 = vld [vmem:[%s17726_s15 + $0x1440] sm:$0xf0]  ;;  %v12478_v31 = vld [vmem:[%s17726_s15 + $0xe08] sm:$0xf] }
 0x12b   : > { %v16635_v36 = vld [vmem:[%s17726_s15 + $0x1804] sm:$0xf]  ;;  %v13243_v52 = vor.u32 %v16507_v34, %v13240_v35  ;;  %6769 = vmatpush.bf16.msrb.mxu0 %v12731_v48  ;;  %v11455_v34 = vor.u32 %v16068_v26, %v11454_v24  ;;  %v11967_v35 = vor.u32 %v16196_v30, %v11966_v29  ;;  %v15924_v37 = vld [vmem:[%s17726_s15 + $0x1c4] sm:$0xf0] }
 0x12c   : > { %v13752_v38 = vld [vmem:[%s17726_s15 + $0x1840] sm:$0xf0]  ;;  %v16180_v46 = vld [vmem:[%s17726_s15 + $0x9c4] sm:$0xf0] }
 0x12d   : > { %v16763_v40 = vld [vmem:[%s17726_s15 + $0x1c04] sm:$0xf]  ;;  %v13755_v53 = vor.u32 %v16635_v36, %v13752_v38  ;;  %6782 = vmatpush.bf16.msrb.mxu1 %v13243_v52  ;;  %v10878_v36 = vld [vmem:[%s17726_s15 + $0x188] sm:$0xf]  ;;  %v11903_v51 = vor.u32 %v16180_v46, %v11902_v44 }
 0x12e   : > { %v14264_v41 = vld [vmem:[%s17726_s15 + $0x1c40] sm:$0xf0]  ;;  %6770 = vmatmul.bf16.vlgmr.msrb.gmra.mxu0 %v17910_v42  ;;  %v11390_v38 = vld [vmem:[%s17726_s15 + $0x588] sm:$0xf]  ;;  %v10879_v49 = vor.u32 %v15924_v37, %v10878_v36 }
 0x12f   : > { %v14267_v56 = vor.u32 %v16763_v40, %v14264_v41  ;;  %6795 = vmatpush.bf16.msrb.mxu2 %v13755_v53  ;;  %6814 = vmatpush.bf16.msra.mxu0 %v11135_v57  ;;  %v12479_v40 = vor.u32 %v16324_v32, %v12478_v31  ;;  %v16052_v41 = vld [vmem:[%s17726_s15 + $0x5c4] sm:$0xf0] }
 0x130   : > { %6783 = vmatmul.bf16.vlgmr.msrb.gmra.mxu1 %v17914_v45  ;;  %v12414_v47 = vld [vmem:[%s17726_s15 + $0xd88] sm:$0xf]  ;;  %v11391_v50 = vor.u32 %v16052_v41, %v11390_v38 }
 0x131   : > { %6808 = vmatpush.bf16.msrb.mxu3 %v14267_v56  ;;  %6827 = vmatpush.bf16.msra.mxu1 %v11647_v58  ;;  %v16308_v48 = vld [vmem:[%s17726_s15 + $0xdc4] sm:$0xf0] }
 0x132   : > { %6796 = vmatmul.bf16.vlgmr.msrb.gmra.mxu2 %v17906_v39  ;;  %v10814_v52 = vld [vmem:[%s17726_s15 + $0x108] sm:$0xf]  ;;  %v12415_v55 = vor.u32 %v16308_v48, %v12414_v47 }
 0x133   : > { %6840 = vmatpush.bf16.msra.mxu2 %v12159_v59  ;;  %6815 = vmatpush.bf16.msra.mxu0 %v11071_v5  ;;  %v15908_v53 = vld [vmem:[%s17726_s15 + $0x144] sm:$0xf0] }
 0x134   : > { %6809 = vmatmul.bf16.vlgmr.msrb.gmra.mxu3 %v17912_v43  ;;  %v11326_v54 = vld [vmem:[%s17726_s15 + $0x508] sm:$0xf]  ;;  %v10815_v61 = vor.u32 %v15908_v53, %v10814_v52 }
 0x135   : > { %6853 = vmatpush.bf16.msra.mxu3 %v12671_v63  ;;  %6828 = vmatpush.bf16.msra.mxu1 %v11583_v6  ;;  %v16036_v56 = vld [vmem:[%s17726_s15 + $0x544] sm:$0xf0] }
 0x136   : > { %v11838_v57 = vld [vmem:[%s17726_s15 + $0x908] sm:$0xf]  ;;  %v11327_v62 = vor.u32 %v16036_v56, %v11326_v54 }
 0x137   : > { %6841 = vmatpush.bf16.msra.mxu2 %v12095_v7  ;;  %6816 = vmatpush.bf16.msra.mxu0 %v11007_v17  ;;  %v16164_v58 = vld [vmem:[%s17726_s15 + $0x944] sm:$0xf0] }
 0x138   : > { %v12350_v59 = vld [vmem:[%s17726_s15 + $0xd08] sm:$0xf]  ;;  %v11839_v63 = vor.u32 %v16164_v58, %v11838_v57 }
 0x139   : > { %6854 = vmatpush.bf16.msra.mxu3 %v12607_v11  ;;  %6829 = vmatpush.bf16.msra.mxu1 %v11519_v18  ;;  %v16292_v60 = vld [vmem:[%s17726_s15 + $0xd44] sm:$0xf0] }
 0x13a   : > { %v10750_v0 = vld [vmem:[%s17726_s15 + $0x88] sm:$0xf]  ;;  %v12351_v3 = vor.u32 %v16292_v60, %v12350_v59 }
 0x13b   : > { %6842 = vmatpush.bf16.msra.mxu2 %v12031_v19  ;;  %6817 = vmatpush.bf16.msra.mxu0 %v10943_v33  ;;  %v15892_v1 = vld [vmem:[%s17726_s15 + $0xc4] sm:$0xf0] }
 0x13c   : > { %v11262_v2 = vld [vmem:[%s17726_s15 + $0x488] sm:$0xf]  ;;  %v10751_v9 = vor.u32 %v15892_v1, %v10750_v0 }
 0x13d   : > { %6855 = vmatpush.bf16.msra.mxu3 %v12543_v25  ;;  %6830 = vmatpush.bf16.msra.mxu1 %v11455_v34  ;;  %v16020_v4 = vld [vmem:[%s17726_s15 + $0x4c4] sm:$0xf0] }
 0x13e   : > { %v11774_v5 = vld [vmem:[%s17726_s15 + $0x888] sm:$0xf]  ;;  %v11263_v12 = vor.u32 %v16020_v4, %v11262_v2 }
 0x13f   : > { %6843 = vmatpush.bf16.msra.mxu2 %v11967_v35  ;;  %6818 = vmatpush.bf16.msra.mxu0 %v10879_v49  ;;  %v16148_v6 = vld [vmem:[%s17726_s15 + $0x8c4] sm:$0xf0] }
 0x140   : > { %v12286_v7 = vld [vmem:[%s17726_s15 + $0xc88] sm:$0xf]  ;;  %v11775_v13 = vor.u32 %v16148_v6, %v11774_v5 }
 0x141   : > { %6856 = vmatpush.bf16.msra.mxu3 %v12479_v40  ;;  %6831 = vmatpush.bf16.msra.mxu1 %v11391_v50  ;;  %v16276_v8 = vld [vmem:[%s17726_s15 + $0xcc4] sm:$0xf0] }
 0x142   : > { %v10686_v10 = vld [vmem:[%s17726_s15 + $0x8] sm:$0xf]  ;;  %v12287_v17 = vor.u32 %v16276_v8, %v12286_v7 }
 0x143   : > { %6844 = vmatpush.bf16.msra.mxu2 %v11903_v51  ;;  %6819 = vmatpush.bf16.msra.mxu0 %v10815_v61  ;;  %v15876_v11 = vld [vmem:[%s17726_s15 + $0x44] sm:$0xf0] }
 0x144   : > { %v11198_v14 = vld [vmem:[%s17726_s15 + $0x408] sm:$0xf]  ;;  %v10687_v26 = vor.u32 %v15876_v11, %v10686_v10 }
 0x145   : > { %6857 = vmatpush.bf16.msra.mxu3 %v12415_v55  ;;  %6832 = vmatpush.bf16.msra.mxu1 %v11327_v62  ;;  %v16004_v15 = vld [vmem:[%s17726_s15 + $0x444] sm:$0xf0] }
 0x146   : > { %v11710_v16 = vld [vmem:[%s17726_s15 + $0x808] sm:$0xf]  ;;  %v11199_v32 = vor.u32 %v16004_v15, %v11198_v14 }
 0x147   : > { %6845 = vmatpush.bf16.msra.mxu2 %v11839_v63  ;;  %v16132_v18 = vld [vmem:[%s17726_s15 + $0x844] sm:$0xf0]  ;;  %6820 = vmatpush.bf16.msra.mxu0 %v10751_v9 }
 0x148   : > { %v12222_v19 = vld [vmem:[%s17726_s15 + $0xc08] sm:$0xf]  ;;  %v11711_v33 = vor.u32 %v16132_v18, %v11710_v16 }
 0x149   : > { %6858 = vmatpush.bf16.msra.mxu3 %v12351_v3  ;;  %v16260_v20 = vld [vmem:[%s17726_s15 + $0xc44] sm:$0xf0]  ;;  %6833 = vmatpush.bf16.msra.mxu1 %v11263_v12 }
 0x14a   : > { %v13182_v23 = vld [vmem:[%s17726_s15 + $0x1388] sm:$0xf]  ;;  %v12223_v36 = vor.u32 %v16260_v20, %v12222_v19 }
 0x14b   : > { %v16500_v24 = vld [vmem:[%s17726_s15 + $0x13c4] sm:$0xf0]  ;;  %6846 = vmatpush.bf16.msra.mxu2 %v11775_v13  ;;  %6821 = vmatpush.bf16.msra.mxu0 %v10687_v26 }
 0x14c   : > { %v13694_v25 = vld [vmem:[%s17726_s15 + $0x1788] sm:$0xf]  ;;  %v13183_v37 = vor.u32 %v16500_v24, %v13182_v23 }
 0x14d   : > { %v16628_v29 = vld [vmem:[%s17726_s15 + $0x17c4] sm:$0xf0]  ;;  %6859 = vmatpush.bf16.msra.mxu3 %v12287_v17  ;;  %6834 = vmatpush.bf16.msra.mxu1 %v11199_v32 }
 0x14e   : > { %v14206_v30 = vld [vmem:[%s17726_s15 + $0x1b88] sm:$0xf]  ;;  %v13695_v38 = vor.u32 %v16628_v29, %v13694_v25  ;;  %6822 = vmatmul.bf16.vlgmr.msra.gmra.mxu0 %v17853_v27 }
 0x14f   : > { %v16756_v31 = vld [vmem:[%s17726_s15 + $0x1bc4] sm:$0xf0]  ;;  %6847 = vmatpush.bf16.msra.mxu2 %v11711_v33  ;;  %6866 = vmatpush.bf16.msrb.mxu0 %v13183_v37 }
 0x150   : > { %v14718_v34 = vld [vmem:[%s17726_s15 + $0x1f88] sm:$0xf]  ;;  %v14207_v40 = vor.u32 %v16756_v31, %v14206_v30  ;;  %6835 = vmatmul.bf16.vlgmr.msra.gmra.mxu1 %v17855_v28 }
 0x151   : > { %v16884_v35 = vld [vmem:[%s17726_s15 + $0x1fc4] sm:$0xf0]  ;;  %6860 = vmatpush.bf16.msra.mxu3 %v12223_v36  ;;  %6879 = vmatpush.bf16.msrb.mxu1 %v13695_v38 }
 0x152   : > { %v13118_v41 = vld [vmem:[%s17726_s15 + $0x1308] sm:$0xf]  ;;  %v14719_v47 = vor.u32 %v16884_v35, %v14718_v34  ;;  %6848 = vmatmul.bf16.vlgmr.msra.gmra.mxu2 %v17846_v21 }
 0x153   : > { %v16484_v44 = vld [vmem:[%s17726_s15 + $0x1344] sm:$0xf0]  ;;  %6892 = vmatpush.bf16.msrb.mxu2 %v14207_v40 }
 0x154   : > { %v13630_v46 = vld [vmem:[%s17726_s15 + $0x1708] sm:$0xf]  ;;  %v13119_v53 = vor.u32 %v16484_v44, %v13118_v41  ;;  %6861 = vmatmul.bf16.vlgmr.msra.gmra.mxu3 %v17848_v22 }
 0x155   : > { %v16612_v48 = vld [vmem:[%s17726_s15 + $0x1744] sm:$0xf0]  ;;  %6905 = vmatpush.bf16.msrb.mxu3 %v14719_v47 }
 0x156   : > { %v14142_v49 = vld [vmem:[%s17726_s15 + $0x1b08] sm:$0xf]  ;;  %v13631_v54 = vor.u32 %v16612_v48, %v13630_v46  ;;  %6867 = vmatpush.bf16.msrb.mxu0 %v13119_v53  ;;  %v6615_v46 = vpop.f32.mrf.mxu0 }
 0x157   : > { %v16740_v50 = vld [vmem:[%s17726_s15 + $0x1b44] sm:$0xf0] }
 0x158   : > { %v14654_v51 = vld [vmem:[%s17726_s15 + $0x1f08] sm:$0xf]  ;;  %v14143_v55 = vor.u32 %v16740_v50, %v14142_v49  ;;  %6880 = vmatpush.bf16.msrb.mxu1 %v13631_v54 }
 0x159   : > { %v16868_v52 = vld [vmem:[%s17726_s15 + $0x1f44] sm:$0xf0] }
 0x15a   : > { %v13054_v56 = vld [vmem:[%s17726_s15 + $0x1288] sm:$0xf]  ;;  %v14655_v59 = vor.u32 %v16868_v52, %v14654_v51  ;;  %6893 = vmatpush.bf16.msrb.mxu2 %v14143_v55  ;;  %v6628_v52 = vpop.f32.mrf.mxu1 }
 0x15b   : > { %v16468_v57 = vld [vmem:[%s17726_s15 + $0x12c4] sm:$0xf0] }
 0x15c   : > { %v13566_v58 = vld [vmem:[%s17726_s15 + $0x1688] sm:$0xf]  ;;  %v13055_v1 = vor.u32 %v16468_v57, %v13054_v56  ;;  %6906 = vmatpush.bf16.msrb.mxu3 %v14655_v59 }
 0x15d   : > { %v16596_v60 = vld [vmem:[%s17726_s15 + $0x16c4] sm:$0xf0] }
 0x15e   : > { %v14078_v61 = vld [vmem:[%s17726_s15 + $0x1a88] sm:$0xf]  ;;  %v13567_v2 = vor.u32 %v16596_v60, %v13566_v58  ;;  %6868 = vmatpush.bf16.msrb.mxu0 %v13055_v1 }
 0x15f   : > { %v16724_v62 = vld [vmem:[%s17726_s15 + $0x1ac4] sm:$0xf0] }
 0x160   : > { %v14590_v63 = vld [vmem:[%s17726_s15 + $0x1e88] sm:$0xf]  ;;  %v14079_v3 = vor.u32 %v16724_v62, %v14078_v61  ;;  %6881 = vmatpush.bf16.msrb.mxu1 %v13567_v2 }
 0x161   : > { %v16852_v0 = vld [vmem:[%s17726_s15 + $0x1ec4] sm:$0xf0] }
 0x162   : > { %v12990_v4 = vld [vmem:[%s17726_s15 + $0x1208] sm:$0xf]  ;;  %v14591_v7 = vor.u32 %v16852_v0, %v14590_v63  ;;  %6894 = vmatpush.bf16.msrb.mxu2 %v14079_v3  ;;  %v6641_v3 = vpop.f32.mrf.mxu2 }
 0x163   : > { %v16452_v5 = vld [vmem:[%s17726_s15 + $0x1244] sm:$0xf0] }
 0x164   : > { %v13502_v6 = vld [vmem:[%s17726_s15 + $0x1608] sm:$0xf]  ;;  %v12991_v13 = vor.u32 %v16452_v5, %v12990_v4  ;;  %6907 = vmatpush.bf16.msrb.mxu3 %v14591_v7 }
 0x165   : > { %v16580_v8 = vld [vmem:[%s17726_s15 + $0x1644] sm:$0xf0] }
 0x166   : > { %v14014_v9 = vld [vmem:[%s17726_s15 + $0x1a08] sm:$0xf]  ;;  %v13503_v14 = vor.u32 %v16580_v8, %v13502_v6  ;;  %6869 = vmatpush.bf16.msrb.mxu0 %v12991_v13  ;;  %v18172_v8 = vpop.f32.mrf.mxu3  ;;  %v11648_v13 = vld [vmem:[%s17726_s15 + $0x7c8] sm:$0xf0] }
 0x167   : > { %v16708_v10 = vld [vmem:[%s17726_s15 + $0x1a44] sm:$0xf0] }
 0x168   : > { %v14526_v11 = vld [vmem:[%s17726_s15 + $0x1e08] sm:$0xf]  ;;  %v14015_v15 = vor.u32 %v16708_v10, %v14014_v9  ;;  %6882 = vmatpush.bf16.msrb.mxu1 %v13503_v14  ;;  %v15980_v9 = vld [vmem:[%s17726_s15 + $0x38c] sm:$0xf] }
 0x169   : > { %v16836_v12 = vld [vmem:[%s17726_s15 + $0x1e44] sm:$0xf0]  ;;  %v11136_v10 = vld [vmem:[%s17726_s15 + $0x3c8] sm:$0xf0] }
 0x16a   : > { %v12926_v16 = vld [vmem:[%s17726_s15 + $0x1188] sm:$0xf]  ;;  %v14527_v19 = vor.u32 %v16836_v12, %v14526_v11  ;;  %6895 = vmatpush.bf16.msrb.mxu2 %v14015_v15  ;;  %v16108_v11 = vld [vmem:[%s17726_s15 + $0x78c] sm:$0xf] }
 0x16b   : > { %v16436_v17 = vld [vmem:[%s17726_s15 + $0x11c4] sm:$0xf0]  ;;  %v16236_v14 = vld [vmem:[%s17726_s15 + $0xb8c] sm:$0xf] }
 0x16c   : > { %v13438_v18 = vld [vmem:[%s17726_s15 + $0x1588] sm:$0xf]  ;;  %v12927_v29 = vor.u32 %v16436_v17, %v12926_v16  ;;  %6908 = vmatpush.bf16.msrb.mxu3 %v14527_v19  ;;  %v12160_v15 = vld [vmem:[%s17726_s15 + $0xbc8] sm:$0xf0]  ;;  %v6617_v16 = vpop.f32.mrf.mxu0 }
 0x16d   : > { %v16564_v20 = vld [vmem:[%s17726_s15 + $0x15c4] sm:$0xf0]  ;;  %v16364_v19 = vld [vmem:[%s17726_s15 + $0xf8c] sm:$0xf] }
 0x16e   : > { %v13950_v23 = vld [vmem:[%s17726_s15 + $0x1988] sm:$0xf]  ;;  %v13439_v30 = vor.u32 %v16564_v20, %v13438_v18  ;;  %6870 = vmatpush.bf16.msrb.mxu0 %v12927_v29  ;;  %v12672_v20 = vld [vmem:[%s17726_s15 + $0xfc8] sm:$0xf0]  ;;  %v12163_v29 = vor.u32 %v16236_v14, %v12160_v15 }
 0x16f   : > { %v16692_v24 = vld [vmem:[%s17726_s15 + $0x19c4] sm:$0xf0]  ;;  %v16044_v14 = vld [vmem:[%s17726_s15 + $0x58c] sm:$0xf] }
 0x170   : > { %v14462_v25 = vld [vmem:[%s17726_s15 + $0x1d88] sm:$0xf]  ;;  %v13951_v31 = vor.u32 %v16692_v24, %v13950_v23  ;;  %6883 = vmatpush.bf16.msrb.mxu1 %v13439_v30  ;;  %v6630_v23 = vpop.f32.mrf.mxu1  ;;  %v6629_v30 = vadd.f32 %v6628_v52, %v6615_v46  ;;  %v6656_v46 = vpop.f32.mrf.mxu3  ;;  %v16076_v52 = vld [vmem:[%s17726_s15 + $0x68c] sm:$0xf] }
 0x171   : > { %v16820_v26 = vld [vmem:[%s17726_s15 + $0x1dc4] sm:$0xf0]  ;;  %v16300_v23 = vld [vmem:[%s17726_s15 + $0xd8c] sm:$0xf] }
 0x172   : > { %v12862_v32 = vld [vmem:[%s17726_s15 + $0x1108] sm:$0xf]  ;;  %v14463_v35 = vor.u32 %v16820_v26, %v14462_v25  ;;  %6896 = vmatpush.bf16.msrb.mxu2 %v13951_v31  ;;  %v11139_v25 = vor.u32 %v15980_v9, %v11136_v10  ;;  %v11651_v26 = vor.u32 %v16108_v11, %v11648_v13  ;;  %v15964_v31 = vld [vmem:[%s17726_s15 + $0x30c] sm:$0xf] }
 0x173   : > { %v16420_v33 = vld [vmem:[%s17726_s15 + $0x1144] sm:$0xf0]  ;;  %v10880_v13 = vld [vmem:[%s17726_s15 + $0x1c8] sm:$0xf0] }
 0x174   : > { %v13374_v34 = vld [vmem:[%s17726_s15 + $0x1508] sm:$0xf]  ;;  %v12863_v44 = vor.u32 %v16420_v33, %v12862_v32  ;;  %6909 = vmatpush.bf16.msrb.mxu3 %v14463_v35  ;;  %v11072_v32 = vld [vmem:[%s17726_s15 + $0x348] sm:$0xf0]  ;;  %v6667_v9 = vpop.f32.mrf.mxu0 }
 0x175   : > { %v16548_v36 = vld [vmem:[%s17726_s15 + $0x1544] sm:$0xf0]  ;;  %v16092_v33 = vld [vmem:[%s17726_s15 + $0x70c] sm:$0xf] }
 0x176   : > { %v13886_v37 = vld [vmem:[%s17726_s15 + $0x1908] sm:$0xf]  ;;  %v13375_v47 = vor.u32 %v16548_v36, %v13374_v34  ;;  %6871 = vmatpush.bf16.msrb.mxu0 %v12863_v44  ;;  %v12675_v34 = vor.u32 %v16364_v19, %v12672_v20  ;;  %v11584_v35 = vld [vmem:[%s17726_s15 + $0x748] sm:$0xf0]  ;;  %v11075_v44 = vor.u32 %v15964_v31, %v11072_v32 }
 0x177   : > { %v16676_v38 = vld [vmem:[%s17726_s15 + $0x1944] sm:$0xf0]  ;;  %v16220_v36 = vld [vmem:[%s17726_s15 + $0xb0c] sm:$0xf] }
 0x178   : > { %v14398_v40 = vld [vmem:[%s17726_s15 + $0x1d08] sm:$0xf]  ;;  %v13887_v48 = vor.u32 %v16676_v38, %v13886_v37  ;;  %6884 = vmatpush.bf16.msrb.mxu1 %v13375_v47  ;;  %v12096_v37 = vld [vmem:[%s17726_s15 + $0xb48] sm:$0xf0]  ;;  %v11587_v47 = vor.u32 %v16092_v33, %v11584_v35  ;;  %v6680_v16 = vpop.f32.mrf.mxu1 }
 0x179   : > { %v16804_v41 = vld [vmem:[%s17726_s15 + $0x1d44] sm:$0xf0]  ;;  %v16348_v38 = vld [vmem:[%s17726_s15 + $0xf0c] sm:$0xf] }
 0x17a   : > { %v12798_v49 = vld [vmem:[%s17726_s15 + $0x1088] sm:$0xf]  ;;  %v14399_v53 = vor.u32 %v16804_v41, %v14398_v40  ;;  %6897 = vmatpush.bf16.msrb.mxu2 %v13887_v48  ;;  %v12608_v40 = vld [vmem:[%s17726_s15 + $0xf48] sm:$0xf0]  ;;  %v6643_v41 = vpop.f32.mrf.mxu2  ;;  %v12099_v48 = vor.u32 %v16220_v36, %v12096_v37 }
 0x17b   : > { %v16404_v50 = vld [vmem:[%s17726_s15 + $0x10c4] sm:$0xf0]  ;;  %v16172_v19 = vld [vmem:[%s17726_s15 + $0x98c] sm:$0xf]  ;;  %v6706_v41 = vpop.f32.mrf.mxu3 }
 0x17c   : > { %v13310_v51 = vld [vmem:[%s17726_s15 + $0x1488] sm:$0xf]  ;;  %v12799_v59 = vor.u32 %v16404_v50, %v12798_v49  ;;  %6910 = vmatpush.bf16.msrb.mxu3 %v14399_v53  ;;  %v6642_v49 = vadd.f32 %v6641_v3, %v6629_v30  ;;  %v15948_v50 = vld [vmem:[%s17726_s15 + $0x28c] sm:$0xf]  ;;  %v12611_v53 = vor.u32 %v16348_v38, %v12608_v40 }
 0x17d   : > { %v16532_v54 = vld [vmem:[%s17726_s15 + $0x14c4] sm:$0xf0]  ;;  %v11456_v3 = vld [vmem:[%s17726_s15 + $0x648] sm:$0xf0] }
 0x17e   : > { %v13822_v55 = vld [vmem:[%s17726_s15 + $0x1888] sm:$0xf]  ;;  %v13311_v62 = vor.u32 %v16532_v54, %v13310_v51  ;;  %6872 = vmatpush.bf16.msrb.mxu0 %v12799_v59  ;;  %v11008_v51 = vld [vmem:[%s17726_s15 + $0x2c8] sm:$0xf0] }
 0x17f   : > { %v16660_v56 = vld [vmem:[%s17726_s15 + $0x18c4] sm:$0xf0]  ;;  %v11520_v54 = vld [vmem:[%s17726_s15 + $0x6c8] sm:$0xf0]  ;;  %v11011_v59 = vor.u32 %v15948_v50, %v11008_v51  ;;  %v6669_v50 = vpop.f32.mrf.mxu0 }
 0x180   : > { %v14334_v57 = vld [vmem:[%s17726_s15 + $0x1c88] sm:$0xf]  ;;  %v13823_v63 = vor.u32 %v16660_v56, %v13822_v55  ;;  %6885 = vmatpush.bf16.msrb.mxu1 %v13311_v62  ;;  %v16204_v55 = vld [vmem:[%s17726_s15 + $0xa8c] sm:$0xf] }
 0x181   : > { %v16788_v58 = vld [vmem:[%s17726_s15 + $0x1cc4] sm:$0xf0]  ;;  %v12032_v56 = vld [vmem:[%s17726_s15 + $0xac8] sm:$0xf0] }
 0x182   : > { %v12734_v60 = vld [vmem:[%s17726_s15 + $0x1008] sm:$0xf]  ;;  %v14335_v4 = vor.u32 %v16788_v58, %v14334_v57  ;;  %6898 = vmatpush.bf16.msrb.mxu2 %v13823_v63  ;;  %v16332_v57 = vld [vmem:[%s17726_s15 + $0xe8c] sm:$0xf]  ;;  %v12035_v62 = vor.u32 %v16204_v55, %v12032_v56  ;;  %v6682_v56 = vpop.f32.mrf.mxu1 }
 0x183   : > { %v16388_v61 = vld [vmem:[%s17726_s15 + $0x1044] sm:$0xf0]  ;;  %v12544_v58 = vld [vmem:[%s17726_s15 + $0xec8] sm:$0xf0] }
 0x184   : > { %v13246_v0 = vld [vmem:[%s17726_s15 + $0x1408] sm:$0xf]  ;;  %v12735_v12 = vor.u32 %v16388_v61, %v12734_v60  ;;  %6911 = vmatpush.bf16.msrb.mxu3 %v14335_v4  ;;  %v6655_v60 = vadd.f32 %v18172_v8, %v6642_v49  ;;  %v11523_v61 = vor.u32 %v16076_v52, %v11520_v54  ;;  %v15932_v63 = vld [vmem:[%s17726_s15 + $0x20c] sm:$0xf] }
 0x185   : > { %v16516_v1 = vld [vmem:[%s17726_s15 + $0x1444] sm:$0xf0]  ;;  %v16188_v4 = vld [vmem:[%s17726_s15 + $0xa0c] sm:$0xf] }
 0x186   : > { %v13758_v2 = vld [vmem:[%s17726_s15 + $0x1808] sm:$0xf]  ;;  %v13247_v17 = vor.u32 %v16516_v1, %v13246_v0  ;;  %6873 = vmatpush.bf16.msrb.mxu0 %v12735_v12  ;;  %v10944_v0 = vld [vmem:[%s17726_s15 + $0x248] sm:$0xf0]  ;;  %v6668_v15 = vadd.f32 %v6667_v9, %v6655_v60 }
 0x187   : > { %v16644_v5 = vld [vmem:[%s17726_s15 + $0x1844] sm:$0xf0]  ;;  %v16060_v1 = vld [vmem:[%s17726_s15 + $0x60c] sm:$0xf]  ;;  %v10947_v8 = vor.u32 %v15932_v63, %v10944_v0 }
 0x188   : > { %v14270_v6 = vld [vmem:[%s17726_s15 + $0x1c08] sm:$0xf]  ;;  %v13759_v18 = vor.u32 %v16644_v5, %v13758_v2  ;;  %6886 = vmatpush.bf16.msrb.mxu1 %v13247_v17  ;;  %v12547_v2 = vor.u32 %v16332_v57, %v12544_v58  ;;  %v11968_v5 = vld [vmem:[%s17726_s15 + $0xa48] sm:$0xf0]  ;;  %v11459_v10 = vor.u32 %v16060_v1, %v11456_v3 }
 0x189   : > { %v16772_v7 = vld [vmem:[%s17726_s15 + $0x1c44] sm:$0xf0]  ;;  %6874 = vmatmul.bf16.vlgmr.msrb.gmra.mxu0 %v17910_v42  ;;  %v11971_v11 = vor.u32 %v16188_v4, %v11968_v5  ;;  %v15916_v12 = vld [vmem:[%s17726_s15 + $0x18c] sm:$0xf] }
 0x18a   : > { %v14271_v24 = vor.u32 %v16772_v7, %v14270_v6  ;;  %6899 = vmatpush.bf16.msrb.mxu2 %v13759_v18  ;;  %6918 = vmatpush.bf16.msra.mxu0 %v11139_v25  ;;  %v16316_v6 = vld [vmem:[%s17726_s15 + $0xe0c] sm:$0xf]  ;;  %v6681_v25 = vadd.f32 %v6680_v16, %v6668_v15 }
 0x18b   : > { %6887 = vmatmul.bf16.vlgmr.msrb.gmra.mxu1 %v17914_v45  ;;  %v12480_v7 = vld [vmem:[%s17726_s15 + $0xe48] sm:$0xf0] }
 0x18c   : > { %6912 = vmatpush.bf16.msrb.mxu3 %v14271_v24  ;;  %6931 = vmatpush.bf16.msra.mxu1 %v11651_v26  ;;  %v12483_v17 = vor.u32 %v16316_v6, %v12480_v7  ;;  %v11392_v18 = vld [vmem:[%s17726_s15 + $0x5c8] sm:$0xf0]  ;;  %v10883_v26 = vor.u32 %v15916_v12, %v10880_v13  ;;  %v6708_v13 = vpop.f32.mrf.mxu3 }
 0x18d   : > { %6900 = vmatmul.bf16.vlgmr.msrb.gmra.mxu2 %v17906_v39  ;;  %v11904_v20 = vld [vmem:[%s17726_s15 + $0x9c8] sm:$0xf0]  ;;  %v18284_v13 = vpop.f32.mrf.mxu1 }
 0x18e   : > { %6944 = vmatpush.bf16.msra.mxu2 %v12163_v29  ;;  %6919 = vmatpush.bf16.msra.mxu0 %v11075_v44  ;;  %v12416_v24 = vld [vmem:[%s17726_s15 + $0xdc8] sm:$0xf0]  ;;  %v11395_v29 = vor.u32 %v16044_v14, %v11392_v18  ;;  %v11907_v30 = vor.u32 %v16172_v19, %v11904_v20 }
 0x18f   : > { %6913 = vmatmul.bf16.vlgmr.msrb.gmra.mxu3 %v17912_v43  ;;  %v15900_v31 = vld [vmem:[%s17726_s15 + $0x10c] sm:$0xf]  ;;  %v12419_v35 = vor.u32 %v16300_v23, %v12416_v24 }
 0x190   : > { %6957 = vmatpush.bf16.msra.mxu3 %v12675_v34  ;;  %6932 = vmatpush.bf16.msra.mxu1 %v11587_v47  ;;  %v10816_v32 = vld [vmem:[%s17726_s15 + $0x148] sm:$0xf0]  ;;  %v6693_v34 = vpop.f32.mrf.mxu2  ;;  %v418_v47 = vld [vmem:[#allocation2 + $0x30] sm:$0xff] }
 0x191   : > { %v16028_v33 = vld [vmem:[%s17726_s15 + $0x50c] sm:$0xf]  ;;  %v6694_v40 = vadd.f32 %v6693_v34, %v6681_v25 }
 0x192   : > { %6945 = vmatpush.bf16.msra.mxu2 %v12099_v48  ;;  %6920 = vmatpush.bf16.msra.mxu0 %v11011_v59  ;;  %v11328_v36 = vld [vmem:[%s17726_s15 + $0x548] sm:$0xf0]  ;;  %v10819_v48 = vor.u32 %v15900_v31, %v10816_v32 }
 0x193   : > { %v16156_v37 = vld [vmem:[%s17726_s15 + $0x90c] sm:$0xf]  ;;  %v6707_v49 = vadd.f32 %v6706_v41, %v6694_v40  ;;  %v11331_v51 = vor.u32 %v16028_v33, %v11328_v36 }
 0x194   : > { %6958 = vmatpush.bf16.msra.mxu3 %v12611_v53  ;;  %6933 = vmatpush.bf16.msra.mxu1 %v11523_v61  ;;  %v11840_v38 = vld [vmem:[%s17726_s15 + $0x948] sm:$0xf0] }
 0x195   : > { %v16284_v44 = vld [vmem:[%s17726_s15 + $0xd0c] sm:$0xf]  ;;  %v11843_v52 = vor.u32 %v16156_v37, %v11840_v38  ;;  %v8270_v58 = vadd.f32 %v6707_v49, %v418_v47 }
 0x196   : > { %6946 = vmatpush.bf16.msra.mxu2 %v12035_v62  ;;  %6921 = vmatpush.bf16.msra.mxu0 %v10947_v8  ;;  %v12352_v46 = vld [vmem:[%s17726_s15 + $0xd48] sm:$0xf0] }
 0x197   : > { %v15884_v53 = vld [vmem:[%s17726_s15 + $0x8c] sm:$0xf]  ;;  %v12355_v57 = vor.u32 %v16284_v44, %v12352_v46  ;;  %8286 = vst [vmem:[#allocation2 + $0x30] sm:$0xff] %v8270_v58 }
 0x198   : > { %6959 = vmatpush.bf16.msra.mxu3 %v12547_v2  ;;  %6934 = vmatpush.bf16.msra.mxu1 %v11459_v10  ;;  %v10752_v54 = vld [vmem:[%s17726_s15 + $0xc8] sm:$0xf0]  ;;  %v6695_v8 = vpop.f32.mrf.mxu2 }
 0x199   : > { %v16012_v55 = vld [vmem:[%s17726_s15 + $0x48c] sm:$0xf]  ;;  %v10755_v0 = vor.u32 %v15884_v53, %v10752_v54 }
 0x19a   : > { %6947 = vmatpush.bf16.msra.mxu2 %v11971_v11  ;;  %6922 = vmatpush.bf16.msra.mxu0 %v10883_v26  ;;  %v11264_v59 = vld [vmem:[%s17726_s15 + $0x4c8] sm:$0xf0] }
 0x19b   : > { %v16140_v60 = vld [vmem:[%s17726_s15 + $0x88c] sm:$0xf]  ;;  %v11267_v3 = vor.u32 %v16012_v55, %v11264_v59 }
 0x19c   : > { %6960 = vmatpush.bf16.msra.mxu3 %v12483_v17  ;;  %6935 = vmatpush.bf16.msra.mxu1 %v11395_v29  ;;  %v11776_v61 = vld [vmem:[%s17726_s15 + $0x8c8] sm:$0xf0] }
 0x19d   : > { %v16268_v62 = vld [vmem:[%s17726_s15 + $0xc8c] sm:$0xf]  ;;  %v11779_v4 = vor.u32 %v16140_v60, %v11776_v61 }
 0x19e   : > { %6948 = vmatpush.bf16.msra.mxu2 %v11907_v30  ;;  %v12288_v63 = vld [vmem:[%s17726_s15 + $0xcc8] sm:$0xf0]  ;;  %6923 = vmatpush.bf16.msra.mxu0 %v10819_v48 }
 0x19f   : > { %v15868_v1 = vld [vmem:[%s17726_s15 + $0xc] sm:$0xf]  ;;  %v12291_v9 = vor.u32 %v16268_v62, %v12288_v63 }
 0x1a0   : > { %6961 = vmatpush.bf16.msra.mxu3 %v12419_v35  ;;  %v10688_v2 = vld [vmem:[%s17726_s15 + $0x48] sm:$0xf0]  ;;  %6936 = vmatpush.bf16.msra.mxu1 %v11331_v51 }
 0x1a1   : > { %v15996_v5 = vld [vmem:[%s17726_s15 + $0x40c] sm:$0xf]  ;;  %v10691_v17 = vor.u32 %v15868_v1, %v10688_v2 }
 0x1a2   : > { %6949 = vmatpush.bf16.msra.mxu2 %v11843_v52  ;;  %v11200_v6 = vld [vmem:[%s17726_s15 + $0x448] sm:$0xf0]  ;;  %6924 = vmatpush.bf16.msra.mxu0 %v10755_v0 }
 0x1a3   : > { %v16124_v7 = vld [vmem:[%s17726_s15 + $0x80c] sm:$0xf]  ;;  %v11203_v23 = vor.u32 %v15996_v5, %v11200_v6 }
 0x1a4   : > { %6962 = vmatpush.bf16.msra.mxu3 %v12355_v57  ;;  %v11712_v10 = vld [vmem:[%s17726_s15 + $0x848] sm:$0xf0]  ;;  %6937 = vmatpush.bf16.msra.mxu1 %v11267_v3 }
 0x1a5   : > { %v16252_v11 = vld [vmem:[%s17726_s15 + $0xc0c] sm:$0xf]  ;;  %v11715_v24 = vor.u32 %v16124_v7, %v11712_v10  ;;  %v18279_v7 = vpop.f32.mrf.mxu0 }
 0x1a6   : > { %v12224_v12 = vld [vmem:[%s17726_s15 + $0xc48] sm:$0xf0]  ;;  %6950 = vmatpush.bf16.msra.mxu2 %v11779_v4  ;;  %6925 = vmatpush.bf16.msra.mxu0 %v10691_v17 }
 0x1a7   : > { %v16492_v14 = vld [vmem:[%s17726_s15 + $0x138c] sm:$0xf]  ;;  %v12227_v29 = vor.u32 %v16252_v11, %v12224_v12 }
 0x1a8   : > { %v13184_v15 = vld [vmem:[%s17726_s15 + $0x13c8] sm:$0xf0]  ;;  %6963 = vmatpush.bf16.msra.mxu3 %v12291_v9  ;;  %6938 = vmatpush.bf16.msra.mxu1 %v11203_v23 }
 0x1a9   : > { %v16620_v16 = vld [vmem:[%s17726_s15 + $0x178c] sm:$0xf]  ;;  %v13187_v30 = vor.u32 %v16492_v14, %v13184_v15  ;;  %6926 = vmatmul.bf16.vlgmr.msra.gmra.mxu0 %v17853_v27 }
 0x1aa   : > { %v13696_v18 = vld [vmem:[%s17726_s15 + $0x17c8] sm:$0xf0]  ;;  %6951 = vmatpush.bf16.msra.mxu2 %v11715_v24 }
 0x1ab   : > { %v16748_v19 = vld [vmem:[%s17726_s15 + $0x1b8c] sm:$0xf]  ;;  %v13699_v31 = vor.u32 %v16620_v16, %v13696_v18  ;;  %6970 = vmatpush.bf16.msrb.mxu0 %v13187_v30  ;;  %6939 = vmatmul.bf16.vlgmr.msra.gmra.mxu1 %v17855_v28  ;;  %v18294_v30 = vpop.f32.mrf.mxu2 }
 0x1ac   : > { %v14208_v20 = vld [vmem:[%s17726_s15 + $0x1bc8] sm:$0xf0]  ;;  %6964 = vmatpush.bf16.msra.mxu3 %v12227_v29 }
 0x1ad   : > { %v16876_v25 = vld [vmem:[%s17726_s15 + $0x1f8c] sm:$0xf]  ;;  %v14211_v32 = vor.u32 %v16748_v19, %v14208_v20  ;;  %6983 = vmatpush.bf16.msrb.mxu1 %v13699_v31  ;;  %6952 = vmatmul.bf16.vlgmr.msra.gmra.mxu2 %v17846_v21 }
 0x1ae   : > { %v14720_v26 = vld [vmem:[%s17726_s15 + $0x1fc8] sm:$0xf0] }
 0x1af   : > { %v16476_v33 = vld [vmem:[%s17726_s15 + $0x130c] sm:$0xf]  ;;  %v14723_v36 = vor.u32 %v16876_v25, %v14720_v26  ;;  %6996 = vmatpush.bf16.msrb.mxu2 %v14211_v32  ;;  %6965 = vmatmul.bf16.vlgmr.msra.gmra.mxu3 %v17848_v22 }
 0x1b0   : > { %v13120_v34 = vld [vmem:[%s17726_s15 + $0x1348] sm:$0xf0] }
 0x1b1   : > { %v16604_v35 = vld [vmem:[%s17726_s15 + $0x170c] sm:$0xf]  ;;  %v13123_v46 = vor.u32 %v16476_v33, %v13120_v34  ;;  %7009 = vmatpush.bf16.msrb.mxu3 %v14723_v36 }
 0x1b2   : > { %v13632_v37 = vld [vmem:[%s17726_s15 + $0x1748] sm:$0xf0] }
 0x1b3   : > { %v16732_v38 = vld [vmem:[%s17726_s15 + $0x1b0c] sm:$0xf]  ;;  %v13635_v47 = vor.u32 %v16604_v35, %v13632_v37  ;;  %6971 = vmatpush.bf16.msrb.mxu0 %v13123_v46  ;;  %v18299_v35 = vpop.f32.mrf.mxu3 }
 0x1b4   : > { %v14144_v40 = vld [vmem:[%s17726_s15 + $0x1b48] sm:$0xf0] }
 0x1b5   : > { %v16860_v41 = vld [vmem:[%s17726_s15 + $0x1f0c] sm:$0xf]  ;;  %v14147_v48 = vor.u32 %v16732_v38, %v14144_v40  ;;  %6984 = vmatpush.bf16.msrb.mxu1 %v13635_v47  ;;  %v6721_v40 = vpop.f32.mrf.mxu0 }
 0x1b6   : > { %v14656_v44 = vld [vmem:[%s17726_s15 + $0x1f48] sm:$0xf0] }
 0x1b7   : > { %v16460_v49 = vld [vmem:[%s17726_s15 + $0x128c] sm:$0xf]  ;;  %v14659_v52 = vor.u32 %v16860_v41, %v14656_v44  ;;  %6997 = vmatpush.bf16.msrb.mxu2 %v14147_v48 }
 0x1b8   : > { %v13056_v50 = vld [vmem:[%s17726_s15 + $0x12c8] sm:$0xf0] }
 0x1b9   : > { %v16588_v51 = vld [vmem:[%s17726_s15 + $0x168c] sm:$0xf]  ;;  %v13059_v58 = vor.u32 %v16460_v49, %v13056_v50  ;;  %7010 = vmatpush.bf16.msrb.mxu3 %v14659_v52  ;;  %v6734_v49 = vpop.f32.mrf.mxu1 }
 0x1ba   : > { %v13568_v53 = vld [vmem:[%s17726_s15 + $0x16c8] sm:$0xf0]  ;;  %v16085_v49 = vld [vmem:[%s17726_s15 + $0x6cc] sm:$0xf0] }
 0x1bb   : > { %v16716_v54 = vld [vmem:[%s17726_s15 + $0x1a8c] sm:$0xf]  ;;  %v13571_v59 = vor.u32 %v16588_v51, %v13568_v53  ;;  %6972 = vmatpush.bf16.msrb.mxu0 %v13059_v58 }
 0x1bc   : > { %v14080_v55 = vld [vmem:[%s17726_s15 + $0x1ac8] sm:$0xf0] }
 0x1bd   : > { %v16844_v56 = vld [vmem:[%s17726_s15 + $0x1e8c] sm:$0xf]  ;;  %v14083_v60 = vor.u32 %v16716_v54, %v14080_v55  ;;  %6985 = vmatpush.bf16.msrb.mxu1 %v13571_v59 }
 0x1be   : > { %v14592_v57 = vld [vmem:[%s17726_s15 + $0x1ec8] sm:$0xf0] }
 0x1bf   : > { %v16444_v61 = vld [vmem:[%s17726_s15 + $0x120c] sm:$0xf]  ;;  %v14595_v0 = vor.u32 %v16844_v56, %v14592_v57  ;;  %6998 = vmatpush.bf16.msrb.mxu2 %v14083_v60 }
 0x1c0   : > { %v12992_v62 = vld [vmem:[%s17726_s15 + $0x1248] sm:$0xf0] }
 0x1c1   : > { %v16572_v63 = vld [vmem:[%s17726_s15 + $0x160c] sm:$0xf]  ;;  %v12995_v6 = vor.u32 %v16444_v61, %v12992_v62  ;;  %7011 = vmatpush.bf16.msrb.mxu3 %v14595_v0  ;;  %v6747_v0 = vpop.f32.mrf.mxu2 }
 0x1c2   : > { %v13504_v1 = vld [vmem:[%s17726_s15 + $0x1648] sm:$0xf0]  ;;  %v12486_v0 = vld [vmem:[%s17726_s15 + $0xe10] sm:$0xf] }
 0x1c3   : > { %v16700_v2 = vld [vmem:[%s17726_s15 + $0x1a0c] sm:$0xf]  ;;  %v13507_v8 = vor.u32 %v16572_v63, %v13504_v1  ;;  %6973 = vmatpush.bf16.msrb.mxu0 %v12995_v6  ;;  %v11142_v6 = vld [vmem:[%s17726_s15 + $0x390] sm:$0xf] }
 0x1c4   : > { %v14016_v3 = vld [vmem:[%s17726_s15 + $0x1a48] sm:$0xf0] }
 0x1c5   : > { %v16828_v4 = vld [vmem:[%s17726_s15 + $0x1e0c] sm:$0xf]  ;;  %v14019_v9 = vor.u32 %v16700_v2, %v14016_v3  ;;  %6986 = vmatpush.bf16.msrb.mxu1 %v13507_v8  ;;  %v15989_v8 = vld [vmem:[%s17726_s15 + $0x3cc] sm:$0xf0] }
 0x1c6   : > { %v14528_v5 = vld [vmem:[%s17726_s15 + $0x1e48] sm:$0xf0] }
 0x1c7   : > { %v16428_v10 = vld [vmem:[%s17726_s15 + $0x118c] sm:$0xf]  ;;  %v14531_v14 = vor.u32 %v16828_v4, %v14528_v5  ;;  %6999 = vmatpush.bf16.msrb.mxu2 %v14019_v9  ;;  %v6760_v5 = vpop.f32.mrf.mxu3  ;;  %v11654_v9 = vld [vmem:[%s17726_s15 + $0x790] sm:$0xf] }
 0x1c8   : > { %v12928_v11 = vld [vmem:[%s17726_s15 + $0x11c8] sm:$0xf0]  ;;  %v10886_v5 = vld [vmem:[%s17726_s15 + $0x190] sm:$0xf] }
 0x1c9   : > { %v16556_v12 = vld [vmem:[%s17726_s15 + $0x158c] sm:$0xf]  ;;  %v12931_v20 = vor.u32 %v16428_v10, %v12928_v11  ;;  %7012 = vmatpush.bf16.msrb.mxu3 %v14531_v14  ;;  %v16117_v11 = vld [vmem:[%s17726_s15 + $0x7cc] sm:$0xf0] }
 0x1ca   : > { %v13440_v15 = vld [vmem:[%s17726_s15 + $0x15c8] sm:$0xf0]  ;;  %v16245_v14 = vld [vmem:[%s17726_s15 + $0xbcc] sm:$0xf0] }
 0x1cb   : > { %v16684_v16 = vld [vmem:[%s17726_s15 + $0x198c] sm:$0xf]  ;;  %v13443_v23 = vor.u32 %v16556_v12, %v13440_v15  ;;  %6974 = vmatpush.bf16.msrb.mxu0 %v12931_v20  ;;  %v12166_v12 = vld [vmem:[%s17726_s15 + $0xb90] sm:$0xf]  ;;  %v11143_v20 = vor.u32 %v15989_v8, %v11142_v6 }
 0x1cc   : > { %v13952_v17 = vld [vmem:[%s17726_s15 + $0x19c8] sm:$0xf0]  ;;  %v15925_v6 = vld [vmem:[%s17726_s15 + $0x1cc] sm:$0xf0] }
 0x1cd   : > { %v16812_v18 = vld [vmem:[%s17726_s15 + $0x1d8c] sm:$0xf]  ;;  %v13955_v24 = vor.u32 %v16684_v16, %v13952_v17  ;;  %6987 = vmatpush.bf16.msrb.mxu1 %v13443_v23  ;;  %v12678_v17 = vld [vmem:[%s17726_s15 + $0xf90] sm:$0xf]  ;;  %v11655_v23 = vor.u32 %v16117_v11, %v11654_v9 }
 0x1ce   : > { %v14464_v19 = vld [vmem:[%s17726_s15 + $0x1dc8] sm:$0xf0]  ;;  %v11398_v8 = vld [vmem:[%s17726_s15 + $0x590] sm:$0xf] }
 0x1cf   : > { %v16412_v25 = vld [vmem:[%s17726_s15 + $0x110c] sm:$0xf]  ;;  %v14467_v31 = vor.u32 %v16812_v18, %v14464_v19  ;;  %7000 = vmatpush.bf16.msrb.mxu2 %v13955_v24  ;;  %v16373_v18 = vld [vmem:[%s17726_s15 + $0xfcc] sm:$0xf0]  ;;  %v12167_v24 = vor.u32 %v16245_v14, %v12166_v12 }
 0x1d0   : > { %v12864_v26 = vld [vmem:[%s17726_s15 + $0x1148] sm:$0xf0]  ;;  %v16053_v12 = vld [vmem:[%s17726_s15 + $0x5cc] sm:$0xf0] }
 0x1d1   : > { %v16540_v29 = vld [vmem:[%s17726_s15 + $0x150c] sm:$0xf]  ;;  %v12867_v38 = vor.u32 %v16412_v25, %v12864_v26  ;;  %7013 = vmatpush.bf16.msrb.mxu3 %v14467_v31  ;;  %v6733_v25 = vadd.f32 %v18284_v13, %v18279_v7  ;;  %v11078_v26 = vld [vmem:[%s17726_s15 + $0x310] sm:$0xf] }
 0x1d2   : > { %v13376_v32 = vld [vmem:[%s17726_s15 + $0x1548] sm:$0xf0]  ;;  %v11590_v31 = vld [vmem:[%s17726_s15 + $0x710] sm:$0xf] }
 0x1d3   : > { %v16668_v33 = vld [vmem:[%s17726_s15 + $0x190c] sm:$0xf]  ;;  %v13379_v41 = vor.u32 %v16540_v29, %v13376_v32  ;;  %6975 = vmatpush.bf16.msrb.mxu0 %v12867_v38  ;;  %v15973_v29 = vld [vmem:[%s17726_s15 + $0x34c] sm:$0xf0]  ;;  %v12679_v32 = vor.u32 %v16373_v18, %v12678_v17 }
 0x1d4   : > { %v13888_v34 = vld [vmem:[%s17726_s15 + $0x1948] sm:$0xf0]  ;;  %v16357_v38 = vld [vmem:[%s17726_s15 + $0xf4c] sm:$0xf0]  ;;  %v11079_v7 = vor.u32 %v15973_v29, %v11078_v26  ;;  %v6797_v29 = vpop.f32.mrf.mxu2 }
 0x1d5   : > { %v16796_v36 = vld [vmem:[%s17726_s15 + $0x1d0c] sm:$0xf]  ;;  %v13891_v44 = vor.u32 %v16668_v33, %v13888_v34  ;;  %6988 = vmatpush.bf16.msrb.mxu1 %v13379_v41  ;;  %v16101_v33 = vld [vmem:[%s17726_s15 + $0x74c] sm:$0xf0]  ;;  %v6746_v41 = vadd.f32 %v18294_v30, %v6733_v25 }
 0x1d6   : > { %v14400_v37 = vld [vmem:[%s17726_s15 + $0x1d48] sm:$0xf0]  ;;  %v12102_v34 = vld [vmem:[%s17726_s15 + $0xb10] sm:$0xf]  ;;  %v11591_v13 = vor.u32 %v16101_v33, %v11590_v31 }
 0x1d7   : > { %v16396_v46 = vld [vmem:[%s17726_s15 + $0x108c] sm:$0xf]  ;;  %v14403_v50 = vor.u32 %v16796_v36, %v14400_v37  ;;  %7001 = vmatpush.bf16.msrb.mxu2 %v13891_v44  ;;  %v16229_v36 = vld [vmem:[%s17726_s15 + $0xb4c] sm:$0xf0] }
 0x1d8   : > { %v12800_v47 = vld [vmem:[%s17726_s15 + $0x10c8] sm:$0xf0]  ;;  %v12614_v37 = vld [vmem:[%s17726_s15 + $0xf10] sm:$0xf]  ;;  %v12103_v40 = vor.u32 %v16229_v36, %v12102_v34 }
 0x1d9   : > { %v16524_v48 = vld [vmem:[%s17726_s15 + $0x148c] sm:$0xf]  ;;  %v12803_v56 = vor.u32 %v16396_v46, %v12800_v47  ;;  %7014 = vmatpush.bf16.msrb.mxu3 %v14403_v50  ;;  %v11014_v44 = vld [vmem:[%s17726_s15 + $0x290] sm:$0xf] }
 0x1da   : > { %v13312_v51 = vld [vmem:[%s17726_s15 + $0x14c8] sm:$0xf0]  ;;  %v15957_v46 = vld [vmem:[%s17726_s15 + $0x2cc] sm:$0xf0] }
 0x1db   : > { %v16652_v52 = vld [vmem:[%s17726_s15 + $0x188c] sm:$0xf]  ;;  %v13315_v59 = vor.u32 %v16524_v48, %v13312_v51  ;;  %6976 = vmatpush.bf16.msrb.mxu0 %v12803_v56  ;;  %v11526_v47 = vld [vmem:[%s17726_s15 + $0x690] sm:$0xf]  ;;  %v12615_v48 = vor.u32 %v16357_v38, %v12614_v37  ;;  %v6810_v37 = vpop.f32.mrf.mxu3 }
 0x1dc   : > { %v13824_v53 = vld [vmem:[%s17726_s15 + $0x18c8] sm:$0xf0]  ;;  %v12038_v50 = vld [vmem:[%s17726_s15 + $0xa90] sm:$0xf] }
 0x1dd   : > { %v16780_v54 = vld [vmem:[%s17726_s15 + $0x1c8c] sm:$0xf]  ;;  %v13827_v60 = vor.u32 %v16652_v52, %v13824_v53  ;;  %6989 = vmatpush.bf16.msrb.mxu1 %v13315_v59  ;;  %v16213_v51 = vld [vmem:[%s17726_s15 + $0xacc] sm:$0xf0]  ;;  %v11015_v53 = vor.u32 %v15957_v46, %v11014_v44 }
 0x1de   : > { %v14336_v55 = vld [vmem:[%s17726_s15 + $0x1cc8] sm:$0xf0]  ;;  %v12550_v52 = vld [vmem:[%s17726_s15 + $0xe90] sm:$0xf]  ;;  %v12039_v56 = vor.u32 %v16213_v51, %v12038_v50 }
 0x1df   : > { %v16380_v57 = vld [vmem:[%s17726_s15 + $0x100c] sm:$0xf]  ;;  %v14339_v1 = vor.u32 %v16780_v54, %v14336_v55  ;;  %7002 = vmatpush.bf16.msrb.mxu2 %v13827_v60  ;;  %v16341_v30 = vld [vmem:[%s17726_s15 + $0xecc] sm:$0xf0]  ;;  %v6759_v54 = vadd.f32 %v18299_v35, %v6746_v41  ;;  %v11527_v55 = vor.u32 %v16085_v49, %v11526_v47 }
 0x1e0   : > { %v12736_v58 = vld [vmem:[%s17726_s15 + $0x1048] sm:$0xf0]  ;;  %v11462_v59 = vld [vmem:[%s17726_s15 + $0x610] sm:$0xf]  ;;  %v12551_v60 = vor.u32 %v16341_v30, %v12550_v52 }
 0x1e1   : > { %v16508_v61 = vld [vmem:[%s17726_s15 + $0x140c] sm:$0xf]  ;;  %v12739_v10 = vor.u32 %v16380_v57, %v12736_v58  ;;  %7015 = vmatpush.bf16.msrb.mxu3 %v14339_v1  ;;  %v10950_v57 = vld [vmem:[%s17726_s15 + $0x210] sm:$0xf] }
 0x1e2   : > { %v13248_v62 = vld [vmem:[%s17726_s15 + $0x1448] sm:$0xf0]  ;;  %v15941_v58 = vld [vmem:[%s17726_s15 + $0x24c] sm:$0xf0] }
 0x1e3   : > { %v16636_v63 = vld [vmem:[%s17726_s15 + $0x180c] sm:$0xf]  ;;  %v13251_v15 = vor.u32 %v16508_v61, %v13248_v62  ;;  %6977 = vmatpush.bf16.msrb.mxu0 %v12739_v10  ;;  %v16069_v61 = vld [vmem:[%s17726_s15 + $0x64c] sm:$0xf0]  ;;  %v10951_v35 = vor.u32 %v15941_v58, %v10950_v57  ;;  %v6784_v10 = vpop.f32.mrf.mxu1 }
 0x1e4   : > { %v13760_v2 = vld [vmem:[%s17726_s15 + $0x1848] sm:$0xf0]  ;;  %v11974_v62 = vld [vmem:[%s17726_s15 + $0xa10] sm:$0xf] }
 0x1e5   : > { %v16764_v3 = vld [vmem:[%s17726_s15 + $0x1c0c] sm:$0xf]  ;;  %v13763_v16 = vor.u32 %v16636_v63, %v13760_v2  ;;  %6990 = vmatpush.bf16.msrb.mxu1 %v13251_v15  ;;  %v16197_v63 = vld [vmem:[%s17726_s15 + $0xa4c] sm:$0xf0]  ;;  %v6771_v2 = vpop.f32.mrf.mxu0 }
 0x1e6   : > { %v14272_v4 = vld [vmem:[%s17726_s15 + $0x1c48] sm:$0xf0]  ;;  %6978 = vmatmul.bf16.vlgmr.msrb.gmra.mxu0 %v17910_v42  ;;  %v16325_v1 = vld [vmem:[%s17726_s15 + $0xe4c] sm:$0xf0]  ;;  %v6772_v9 = vadd.f32 %v6771_v2, %v6759_v54 }
 0x1e7   : > { %v14275_v19 = vor.u32 %v16764_v3, %v14272_v4  ;;  %7003 = vmatpush.bf16.msrb.mxu2 %v13763_v16  ;;  %7022 = vmatpush.bf16.msra.mxu0 %v11143_v20  ;;  %v11463_v3 = vor.u32 %v16069_v61, %v11462_v59  ;;  %v11975_v4 = vor.u32 %v16197_v63, %v11974_v62  ;;  %v11910_v14 = vld [vmem:[%s17726_s15 + $0x990] sm:$0xf] }
 0x1e8   : > { %6991 = vmatmul.bf16.vlgmr.msrb.gmra.mxu1 %v17914_v45  ;;  %v12487_v11 = vor.u32 %v16325_v1, %v12486_v0  ;;  %v16181_v15 = vld [vmem:[%s17726_s15 + $0x9cc] sm:$0xf0]  ;;  %v6785_v18 = vadd.f32 %v6784_v10, %v6772_v9  ;;  %v11399_v20 = vor.u32 %v16053_v12, %v11398_v8 }
 0x1e9   : > { %7016 = vmatpush.bf16.msrb.mxu3 %v14275_v19  ;;  %7035 = vmatpush.bf16.msra.mxu1 %v11655_v23  ;;  %v12422_v16 = vld [vmem:[%s17726_s15 + $0xd90] sm:$0xf]  ;;  %v10887_v19 = vor.u32 %v15925_v6, %v10886_v5  ;;  %v11911_v23 = vor.u32 %v16181_v15, %v11910_v14  ;;  %v6812_v6 = vpop.f32.mrf.mxu3 }
 0x1ea   : > { %7004 = vmatmul.bf16.vlgmr.msrb.gmra.mxu2 %v17906_v39  ;;  %v16309_v17 = vld [vmem:[%s17726_s15 + $0xdcc] sm:$0xf0]  ;;  %v6798_v36 = vadd.f32 %v6797_v29, %v6785_v18 }
 0x1eb   : > { %7048 = vmatpush.bf16.msra.mxu2 %v12167_v24  ;;  %7023 = vmatpush.bf16.msra.mxu0 %v11079_v7  ;;  %v10822_v24 = vld [vmem:[%s17726_s15 + $0x110] sm:$0xf]  ;;  %v12423_v31 = vor.u32 %v16309_v17, %v12422_v16  ;;  %v6786_v51 = vpop.f32.mrf.mxu1 }
 0x1ec   : > { %7017 = vmatmul.bf16.vlgmr.msrb.gmra.mxu3 %v17912_v43  ;;  %v15909_v25 = vld [vmem:[%s17726_s15 + $0x14c] sm:$0xf0]  ;;  %v6811_v41 = vadd.f32 %v6810_v37, %v6798_v36 }
 0x1ed   : > { %7061 = vmatpush.bf16.msra.mxu3 %v12679_v32  ;;  %7036 = vmatpush.bf16.msra.mxu1 %v11591_v13  ;;  %v11334_v26 = vld [vmem:[%s17726_s15 + $0x510] sm:$0xf]  ;;  %v419_v13 = vld [vmem:[#allocation2] sm:$0xff]  ;;  %v6773_v44 = vpop.f32.mrf.mxu0 }
 0x1ee   : > { %v16037_v32 = vld [vmem:[%s17726_s15 + $0x54c] sm:$0xf0]  ;;  %v8271_v30 = vadd.f32 %v6811_v41, %v419_v13 }
 0x1ef   : > { %7049 = vmatpush.bf16.msra.mxu2 %v12103_v40  ;;  %7024 = vmatpush.bf16.msra.mxu0 %v11015_v53  ;;  %v11846_v33 = vld [vmem:[%s17726_s15 + $0x910] sm:$0xf]  ;;  %v10823_v40 = vor.u32 %v15909_v25, %v10822_v24  ;;  %v11335_v46 = vor.u32 %v16037_v32, %v11334_v26 }
 0x1f0   : > { %v16165_v34 = vld [vmem:[%s17726_s15 + $0x94c] sm:$0xf0]  ;;  %8287 = vst [vmem:[#allocation2] sm:$0xff] %v8271_v30 }
 0x1f1   : > { %7062 = vmatpush.bf16.msra.mxu3 %v12615_v48  ;;  %7037 = vmatpush.bf16.msra.mxu1 %v11527_v55  ;;  %v12358_v38 = vld [vmem:[%s17726_s15 + $0xd10] sm:$0xf]  ;;  %v11847_v47 = vor.u32 %v16165_v34, %v11846_v33 }
 0x1f2   : > { %v16293_v7 = vld [vmem:[%s17726_s15 + $0xd4c] sm:$0xf0] }
 0x1f3   : > { %7050 = vmatpush.bf16.msra.mxu2 %v12039_v56  ;;  %7025 = vmatpush.bf16.msra.mxu0 %v10951_v35  ;;  %v10758_v48 = vld [vmem:[%s17726_s15 + $0x90] sm:$0xf]  ;;  %v12359_v52 = vor.u32 %v16293_v7, %v12358_v38  ;;  %v6799_v35 = vpop.f32.mrf.mxu2  ;;  %v18432_v6 = vpop.f32.mrf.mxu1 }
 0x1f4   : > { %v15893_v49 = vld [vmem:[%s17726_s15 + $0xcc] sm:$0xf0] }
 0x1f5   : > { %7063 = vmatpush.bf16.msra.mxu3 %v12551_v60  ;;  %7038 = vmatpush.bf16.msra.mxu1 %v11463_v3  ;;  %v11270_v50 = vld [vmem:[%s17726_s15 + $0x490] sm:$0xf]  ;;  %v10759_v58 = vor.u32 %v15893_v49, %v10758_v48 }
 0x1f6   : > { %v16021_v53 = vld [vmem:[%s17726_s15 + $0x4cc] sm:$0xf0] }
 0x1f7   : > { %7051 = vmatpush.bf16.msra.mxu2 %v11975_v4  ;;  %7026 = vmatpush.bf16.msra.mxu0 %v10887_v19  ;;  %v11782_v54 = vld [vmem:[%s17726_s15 + $0x890] sm:$0xf]  ;;  %v11271_v61 = vor.u32 %v16021_v53, %v11270_v50 }
 0x1f8   : > { %v16149_v55 = vld [vmem:[%s17726_s15 + $0x8cc] sm:$0xf0] }
 0x1f9   : > { %7064 = vmatpush.bf16.msra.mxu3 %v12487_v11  ;;  %7039 = vmatpush.bf16.msra.mxu1 %v11399_v20  ;;  %v12294_v56 = vld [vmem:[%s17726_s15 + $0xc90] sm:$0xf]  ;;  %v11783_v62 = vor.u32 %v16149_v55, %v11782_v54 }
 0x1fa   : > { %v16277_v57 = vld [vmem:[%s17726_s15 + $0xccc] sm:$0xf0] }
 0x1fb   : > { %7052 = vmatpush.bf16.msra.mxu2 %v11911_v23  ;;  %7027 = vmatpush.bf16.msra.mxu0 %v10823_v40  ;;  %v10694_v59 = vld [vmem:[%s17726_s15 + $0x10] sm:$0xf]  ;;  %v12295_v2 = vor.u32 %v16277_v57, %v12294_v56 }
 0x1fc   : > { %v15877_v60 = vld [vmem:[%s17726_s15 + $0x4c] sm:$0xf0] }
 0x1fd   : > { %7065 = vmatpush.bf16.msra.mxu3 %v12423_v31  ;;  %7040 = vmatpush.bf16.msra.mxu1 %v11335_v46  ;;  %v11206_v63 = vld [vmem:[%s17726_s15 + $0x410] sm:$0xf]  ;;  %v10695_v11 = vor.u32 %v15877_v60, %v10694_v59 }
 0x1fe   : > { %v16005_v0 = vld [vmem:[%s17726_s15 + $0x44c] sm:$0xf0] }
 0x1ff   : > { %7053 = vmatpush.bf16.msra.mxu2 %v11847_v47  ;;  %v11718_v1 = vld [vmem:[%s17726_s15 + $0x810] sm:$0xf]  ;;  %7028 = vmatpush.bf16.msra.mxu0 %v10759_v58  ;;  %v11207_v16 = vor.u32 %v16005_v0, %v11206_v63 }
 0x200   : > { %v16133_v3 = vld [vmem:[%s17726_s15 + $0x84c] sm:$0xf0] }
 0x201   : > { %7066 = vmatpush.bf16.msra.mxu3 %v12359_v52  ;;  %v12230_v4 = vld [vmem:[%s17726_s15 + $0xc10] sm:$0xf]  ;;  %7041 = vmatpush.bf16.msra.mxu1 %v11271_v61  ;;  %v11719_v17 = vor.u32 %v16133_v3, %v11718_v1  ;;  %v18427_v1 = vpop.f32.mrf.mxu0 }
 0x202   : > { %v16261_v5 = vld [vmem:[%s17726_s15 + $0xc4c] sm:$0xf0] }
 0x203   : > { %v13190_v8 = vld [vmem:[%s17726_s15 + $0x1390] sm:$0xf]  ;;  %7054 = vmatpush.bf16.msra.mxu2 %v11783_v62  ;;  %v12231_v20 = vor.u32 %v16261_v5, %v12230_v4  ;;  %7029 = vmatpush.bf16.msra.mxu0 %v10695_v11 }
 0x204   : > { %v16501_v9 = vld [vmem:[%s17726_s15 + $0x13cc] sm:$0xf0] }
 0x205   : > { %v13702_v10 = vld [vmem:[%s17726_s15 + $0x1790] sm:$0xf]  ;;  %7067 = vmatpush.bf16.msra.mxu3 %v12295_v2  ;;  %v13191_v23 = vor.u32 %v16501_v9, %v13190_v8  ;;  %7042 = vmatpush.bf16.msra.mxu1 %v11207_v16 }
 0x206   : > { %v16629_v12 = vld [vmem:[%s17726_s15 + $0x17cc] sm:$0xf0]  ;;  %7030 = vmatmul.bf16.vlgmr.msra.gmra.mxu0 %v17853_v27 }
 0x207   : > { %v14214_v14 = vld [vmem:[%s17726_s15 + $0x1b90] sm:$0xf]  ;;  %v13703_v24 = vor.u32 %v16629_v12, %v13702_v10  ;;  %7055 = vmatpush.bf16.msra.mxu2 %v11719_v17  ;;  %7074 = vmatpush.bf16.msrb.mxu0 %v13191_v23  ;;  %v18442_v23 = vpop.f32.mrf.mxu2 }
 0x208   : > { %v16757_v15 = vld [vmem:[%s17726_s15 + $0x1bcc] sm:$0xf0]  ;;  %7043 = vmatmul.bf16.vlgmr.msra.gmra.mxu1 %v17855_v28 }
 0x209   : > { %v14726_v18 = vld [vmem:[%s17726_s15 + $0x1f90] sm:$0xf]  ;;  %v14215_v25 = vor.u32 %v16757_v15, %v14214_v14  ;;  %7068 = vmatpush.bf16.msra.mxu3 %v12231_v20  ;;  %7087 = vmatpush.bf16.msrb.mxu1 %v13703_v24 }
 0x20a   : > { %v16885_v19 = vld [vmem:[%s17726_s15 + $0x1fcc] sm:$0xf0]  ;;  %7056 = vmatmul.bf16.vlgmr.msra.gmra.mxu2 %v17846_v21 }
 0x20b   : > { %v13126_v26 = vld [vmem:[%s17726_s15 + $0x1310] sm:$0xf]  ;;  %v14727_v32 = vor.u32 %v16885_v19, %v14726_v18  ;;  %7100 = vmatpush.bf16.msrb.mxu2 %v14215_v25 }
 0x20c   : > { %v16485_v29 = vld [vmem:[%s17726_s15 + $0x134c] sm:$0xf0]  ;;  %7069 = vmatmul.bf16.vlgmr.msra.gmra.mxu3 %v17848_v22 }
 0x20d   : > { %v13638_v31 = vld [vmem:[%s17726_s15 + $0x1710] sm:$0xf]  ;;  %v13127_v7 = vor.u32 %v16485_v29, %v13126_v26  ;;  %7113 = vmatpush.bf16.msrb.mxu3 %v14727_v32 }
 0x20e   : > { %v16613_v33 = vld [vmem:[%s17726_s15 + $0x174c] sm:$0xf0] }
 0x20f   : > { %v14150_v34 = vld [vmem:[%s17726_s15 + $0x1b10] sm:$0xf]  ;;  %v13639_v13 = vor.u32 %v16613_v33, %v13638_v31  ;;  %7075 = vmatpush.bf16.msrb.mxu0 %v13127_v7  ;;  %v18447_v31 = vpop.f32.mrf.mxu3 }
 0x210   : > { %v16741_v36 = vld [vmem:[%s17726_s15 + $0x1b4c] sm:$0xf0] }
 0x211   : > { %v14662_v37 = vld [vmem:[%s17726_s15 + $0x1f10] sm:$0xf]  ;;  %v14151_v40 = vor.u32 %v16741_v36, %v14150_v34  ;;  %7088 = vmatpush.bf16.msrb.mxu1 %v13639_v13  ;;  %v6825_v36 = vpop.f32.mrf.mxu0 }
 0x212   : > { %v16869_v38 = vld [vmem:[%s17726_s15 + $0x1f4c] sm:$0xf0] }
 0x213   : > { %v13062_v41 = vld [vmem:[%s17726_s15 + $0x1290] sm:$0xf]  ;;  %v14663_v47 = vor.u32 %v16869_v38, %v14662_v37  ;;  %7101 = vmatpush.bf16.msrb.mxu2 %v14151_v40 }
 0x214   : > { %v16469_v44 = vld [vmem:[%s17726_s15 + $0x12cc] sm:$0xf0] }
 0x215   : > { %v13574_v46 = vld [vmem:[%s17726_s15 + $0x1690] sm:$0xf]  ;;  %v13063_v30 = vor.u32 %v16469_v44, %v13062_v41  ;;  %7114 = vmatpush.bf16.msrb.mxu3 %v14663_v47  ;;  %v6838_v41 = vpop.f32.mrf.mxu1 }
 0x216   : > { %v16597_v48 = vld [vmem:[%s17726_s15 + $0x16cc] sm:$0xf0]  ;;  %v11528_v41 = vld [vmem:[%s17726_s15 + $0x6d0] sm:$0xf0] }
 0x217   : > { %v14086_v49 = vld [vmem:[%s17726_s15 + $0x1a90] sm:$0xf]  ;;  %v13575_v53 = vor.u32 %v16597_v48, %v13574_v46  ;;  %7076 = vmatpush.bf16.msrb.mxu0 %v13063_v30 }
 0x218   : > { %v16725_v50 = vld [vmem:[%s17726_s15 + $0x1acc] sm:$0xf0] }
 0x219   : > { %v14598_v51 = vld [vmem:[%s17726_s15 + $0x1e90] sm:$0xf]  ;;  %v14087_v54 = vor.u32 %v16725_v50, %v14086_v49  ;;  %7089 = vmatpush.bf16.msrb.mxu1 %v13575_v53 }
 0x21a   : > { %v16853_v52 = vld [vmem:[%s17726_s15 + $0x1ecc] sm:$0xf0] }
 0x21b   : > { %v12998_v55 = vld [vmem:[%s17726_s15 + $0x1210] sm:$0xf]  ;;  %v14599_v58 = vor.u32 %v16853_v52, %v14598_v51  ;;  %7102 = vmatpush.bf16.msrb.mxu2 %v14087_v54 }
 0x21c   : > { %v16453_v56 = vld [vmem:[%s17726_s15 + $0x124c] sm:$0xf0] }
 0x21d   : > { %v13510_v57 = vld [vmem:[%s17726_s15 + $0x1610] sm:$0xf]  ;;  %v12999_v0 = vor.u32 %v16453_v56, %v12998_v55  ;;  %7115 = vmatpush.bf16.msrb.mxu3 %v14599_v58  ;;  %v6851_v58 = vpop.f32.mrf.mxu2 }
 0x21e   : > { %v16581_v59 = vld [vmem:[%s17726_s15 + $0x164c] sm:$0xf0]  ;;  %v16317_v58 = vld [vmem:[%s17726_s15 + $0xe14] sm:$0xf] }
 0x21f   : > { %v14022_v60 = vld [vmem:[%s17726_s15 + $0x1a10] sm:$0xf]  ;;  %v13511_v35 = vor.u32 %v16581_v59, %v13510_v57  ;;  %7077 = vmatpush.bf16.msrb.mxu0 %v12999_v0  ;;  %v15981_v0 = vld [vmem:[%s17726_s15 + $0x394] sm:$0xf] }
 0x220   : > { %v16709_v61 = vld [vmem:[%s17726_s15 + $0x1a4c] sm:$0xf0] }
 0x221   : > { %v14534_v62 = vld [vmem:[%s17726_s15 + $0x1e10] sm:$0xf]  ;;  %v14023_v2 = vor.u32 %v16709_v61, %v14022_v60  ;;  %7090 = vmatpush.bf16.msrb.mxu1 %v13511_v35  ;;  %v11144_v35 = vld [vmem:[%s17726_s15 + $0x3d0] sm:$0xf0] }
 0x222   : > { %v16837_v63 = vld [vmem:[%s17726_s15 + $0x1e4c] sm:$0xf0] }
 0x223   : > { %v12934_v3 = vld [vmem:[%s17726_s15 + $0x1190] sm:$0xf]  ;;  %v14535_v8 = vor.u32 %v16837_v63, %v14534_v62  ;;  %7103 = vmatpush.bf16.msrb.mxu2 %v14023_v2  ;;  %v6864_v63 = vpop.f32.mrf.mxu3  ;;  %v16109_v2 = vld [vmem:[%s17726_s15 + $0x794] sm:$0xf] }
 0x224   : > { %v16437_v4 = vld [vmem:[%s17726_s15 + $0x11cc] sm:$0xf0]  ;;  %v15917_v63 = vld [vmem:[%s17726_s15 + $0x194] sm:$0xf] }
 0x225   : > { %v13446_v5 = vld [vmem:[%s17726_s15 + $0x1590] sm:$0xf]  ;;  %v12935_v15 = vor.u32 %v16437_v4, %v12934_v3  ;;  %7116 = vmatpush.bf16.msrb.mxu3 %v14535_v8  ;;  %v11656_v4 = vld [vmem:[%s17726_s15 + $0x7d0] sm:$0xf0] }
 0x226   : > { %v16565_v9 = vld [vmem:[%s17726_s15 + $0x15cc] sm:$0xf0]  ;;  %v12168_v8 = vld [vmem:[%s17726_s15 + $0xbd0] sm:$0xf0] }
 0x227   : > { %v13958_v10 = vld [vmem:[%s17726_s15 + $0x1990] sm:$0xf]  ;;  %v13447_v16 = vor.u32 %v16565_v9, %v13446_v5  ;;  %7078 = vmatpush.bf16.msrb.mxu0 %v12935_v15  ;;  %v16237_v5 = vld [vmem:[%s17726_s15 + $0xb94] sm:$0xf]  ;;  %v11147_v15 = vor.u32 %v15981_v0, %v11144_v35 }
 0x228   : > { %v16693_v11 = vld [vmem:[%s17726_s15 + $0x19cc] sm:$0xf0]  ;;  %v10888_v0 = vld [vmem:[%s17726_s15 + $0x1d0] sm:$0xf0] }
 0x229   : > { %v14470_v12 = vld [vmem:[%s17726_s15 + $0x1d90] sm:$0xf]  ;;  %v13959_v17 = vor.u32 %v16693_v11, %v13958_v10  ;;  %7091 = vmatpush.bf16.msrb.mxu1 %v13447_v16  ;;  %v16365_v11 = vld [vmem:[%s17726_s15 + $0xf94] sm:$0xf]  ;;  %v11659_v16 = vor.u32 %v16109_v2, %v11656_v4 }
 0x22a   : > { %v16821_v14 = vld [vmem:[%s17726_s15 + $0x1dcc] sm:$0xf0]  ;;  %v16045_v35 = vld [vmem:[%s17726_s15 + $0x594] sm:$0xf] }
 0x22b   : > { %v12870_v18 = vld [vmem:[%s17726_s15 + $0x1110] sm:$0xf]  ;;  %v14471_v24 = vor.u32 %v16821_v14, %v14470_v12  ;;  %7104 = vmatpush.bf16.msrb.mxu2 %v13959_v17  ;;  %v12680_v12 = vld [vmem:[%s17726_s15 + $0xfd0] sm:$0xf0]  ;;  %v12171_v17 = vor.u32 %v16237_v5, %v12168_v8 }
 0x22c   : > { %v16421_v19 = vld [vmem:[%s17726_s15 + $0x114c] sm:$0xf0]  ;;  %v11400_v5 = vld [vmem:[%s17726_s15 + $0x5d0] sm:$0xf0] }
 0x22d   : > { %v13382_v20 = vld [vmem:[%s17726_s15 + $0x1510] sm:$0xf]  ;;  %v12871_v34 = vor.u32 %v16421_v19, %v12870_v18  ;;  %7117 = vmatpush.bf16.msrb.mxu3 %v14471_v24  ;;  %v6837_v18 = vadd.f32 %v18432_v6, %v18427_v1  ;;  %v15965_v19 = vld [vmem:[%s17726_s15 + $0x314] sm:$0xf] }
 0x22e   : > { %v16549_v25 = vld [vmem:[%s17726_s15 + $0x154c] sm:$0xf0]  ;;  %v16093_v24 = vld [vmem:[%s17726_s15 + $0x714] sm:$0xf] }
 0x22f   : > { %v13894_v26 = vld [vmem:[%s17726_s15 + $0x1910] sm:$0xf]  ;;  %v13383_v37 = vor.u32 %v16549_v25, %v13382_v20  ;;  %7079 = vmatpush.bf16.msrb.mxu0 %v12871_v34  ;;  %v11080_v20 = vld [vmem:[%s17726_s15 + $0x350] sm:$0xf0]  ;;  %v12683_v25 = vor.u32 %v16365_v11, %v12680_v12 }
 0x230   : > { %v16677_v29 = vld [vmem:[%s17726_s15 + $0x194c] sm:$0xf0]  ;;  %v12616_v34 = vld [vmem:[%s17726_s15 + $0xf50] sm:$0xf0]  ;;  %v11083_v1 = vor.u32 %v15965_v19, %v11080_v20  ;;  %v6901_v20 = vpop.f32.mrf.mxu2 }
 0x231   : > { %v14406_v32 = vld [vmem:[%s17726_s15 + $0x1d10] sm:$0xf]  ;;  %v13895_v38 = vor.u32 %v16677_v29, %v13894_v26  ;;  %7092 = vmatpush.bf16.msrb.mxu1 %v13383_v37  ;;  %v11592_v26 = vld [vmem:[%s17726_s15 + $0x750] sm:$0xf0]  ;;  %v6850_v37 = vadd.f32 %v18442_v23, %v6837_v18 }
 0x232   : > { %v16805_v33 = vld [vmem:[%s17726_s15 + $0x1d4c] sm:$0xf0]  ;;  %v16221_v29 = vld [vmem:[%s17726_s15 + $0xb14] sm:$0xf]  ;;  %v11595_v6 = vor.u32 %v16093_v24, %v11592_v26 }
 0x233   : > { %v12806_v7 = vld [vmem:[%s17726_s15 + $0x1090] sm:$0xf]  ;;  %v14407_v44 = vor.u32 %v16805_v33, %v14406_v32  ;;  %7105 = vmatpush.bf16.msrb.mxu2 %v13895_v38  ;;  %v12104_v32 = vld [vmem:[%s17726_s15 + $0xb50] sm:$0xf0] }
 0x234   : > { %v16405_v13 = vld [vmem:[%s17726_s15 + $0x10cc] sm:$0xf0]  ;;  %v16349_v33 = vld [vmem:[%s17726_s15 + $0xf14] sm:$0xf]  ;;  %v12107_v36 = vor.u32 %v16221_v29, %v12104_v32 }
 0x235   : > { %v13318_v40 = vld [vmem:[%s17726_s15 + $0x1490] sm:$0xf]  ;;  %v12807_v51 = vor.u32 %v16405_v13, %v12806_v7  ;;  %7118 = vmatpush.bf16.msrb.mxu3 %v14407_v44  ;;  %v15949_v38 = vld [vmem:[%s17726_s15 + $0x294] sm:$0xf] }
 0x236   : > { %v16533_v46 = vld [vmem:[%s17726_s15 + $0x14cc] sm:$0xf0]  ;;  %v11016_v7 = vld [vmem:[%s17726_s15 + $0x2d0] sm:$0xf0] }
 0x237   : > { %v13830_v47 = vld [vmem:[%s17726_s15 + $0x1890] sm:$0xf]  ;;  %v13319_v53 = vor.u32 %v16533_v46, %v13318_v40  ;;  %7080 = vmatpush.bf16.msrb.mxu0 %v12807_v51  ;;  %v16077_v13 = vld [vmem:[%s17726_s15 + $0x694] sm:$0xf]  ;;  %v12619_v40 = vor.u32 %v16349_v33, %v12616_v34  ;;  %v6914_v33 = vpop.f32.mrf.mxu3 }
 0x238   : > { %v16661_v48 = vld [vmem:[%s17726_s15 + $0x18cc] sm:$0xf0]  ;;  %v16205_v44 = vld [vmem:[%s17726_s15 + $0xa94] sm:$0xf] }
 0x239   : > { %v14342_v49 = vld [vmem:[%s17726_s15 + $0x1c90] sm:$0xf]  ;;  %v13831_v54 = vor.u32 %v16661_v48, %v13830_v47  ;;  %7093 = vmatpush.bf16.msrb.mxu1 %v13319_v53  ;;  %v12040_v46 = vld [vmem:[%s17726_s15 + $0xad0] sm:$0xf0]  ;;  %v11019_v48 = vor.u32 %v15949_v38, %v11016_v7 }
 0x23a   : > { %v16789_v50 = vld [vmem:[%s17726_s15 + $0x1ccc] sm:$0xf0]  ;;  %v16333_v47 = vld [vmem:[%s17726_s15 + $0xe94] sm:$0xf]  ;;  %v12043_v51 = vor.u32 %v16205_v44, %v12040_v46 }
 0x23b   : > { %v12742_v52 = vld [vmem:[%s17726_s15 + $0x1010] sm:$0xf]  ;;  %v14343_v59 = vor.u32 %v16789_v50, %v14342_v49  ;;  %7106 = vmatpush.bf16.msrb.mxu2 %v13831_v54  ;;  %v12552_v23 = vld [vmem:[%s17726_s15 + $0xed0] sm:$0xf0]  ;;  %v6863_v49 = vadd.f32 %v18447_v31, %v6850_v37  ;;  %v11531_v50 = vor.u32 %v16077_v13, %v11528_v41 }
 0x23c   : > { %v16389_v30 = vld [vmem:[%s17726_s15 + $0x104c] sm:$0xf0]  ;;  %v16061_v53 = vld [vmem:[%s17726_s15 + $0x614] sm:$0xf]  ;;  %v12555_v54 = vor.u32 %v16333_v47, %v12552_v23 }
 0x23d   : > { %v13254_v55 = vld [vmem:[%s17726_s15 + $0x1410] sm:$0xf]  ;;  %v12743_v3 = vor.u32 %v16389_v30, %v12742_v52  ;;  %7119 = vmatpush.bf16.msrb.mxu3 %v14343_v59  ;;  %v15933_v52 = vld [vmem:[%s17726_s15 + $0x214] sm:$0xf] }
 0x23e   : > { %v16517_v56 = vld [vmem:[%s17726_s15 + $0x144c] sm:$0xf0]  ;;  %v10952_v30 = vld [vmem:[%s17726_s15 + $0x250] sm:$0xf0] }
 0x23f   : > { %v13766_v57 = vld [vmem:[%s17726_s15 + $0x1810] sm:$0xf]  ;;  %v13255_v9 = vor.u32 %v16517_v56, %v13254_v55  ;;  %7081 = vmatpush.bf16.msrb.mxu0 %v12743_v3  ;;  %v11464_v55 = vld [vmem:[%s17726_s15 + $0x650] sm:$0xf0]  ;;  %v10955_v31 = vor.u32 %v15933_v52, %v10952_v30  ;;  %v6888_v3 = vpop.f32.mrf.mxu1 }
 0x240   : > { %v16645_v60 = vld [vmem:[%s17726_s15 + $0x184c] sm:$0xf0]  ;;  %v16189_v56 = vld [vmem:[%s17726_s15 + $0xa14] sm:$0xf] }
 0x241   : > { %v14278_v61 = vld [vmem:[%s17726_s15 + $0x1c10] sm:$0xf]  ;;  %v13767_v10 = vor.u32 %v16645_v60, %v13766_v57  ;;  %7094 = vmatpush.bf16.msrb.mxu1 %v13255_v9  ;;  %v11976_v57 = vld [vmem:[%s17726_s15 + $0xa50] sm:$0xf0]  ;;  %v6875_v60 = vpop.f32.mrf.mxu0 }
 0x242   : > { %v16773_v62 = vld [vmem:[%s17726_s15 + $0x1c4c] sm:$0xf0]  ;;  %7082 = vmatmul.bf16.vlgmr.msrb.gmra.mxu0 %v17910_v42  ;;  %v12488_v59 = vld [vmem:[%s17726_s15 + $0xe50] sm:$0xf0]  ;;  %v6876_v2 = vadd.f32 %v6875_v60, %v6863_v49 }
 0x243   : > { %v14279_v14 = vor.u32 %v16773_v62, %v14278_v61  ;;  %7107 = vmatpush.bf16.msrb.mxu2 %v13767_v10  ;;  %7126 = vmatpush.bf16.msra.mxu0 %v11147_v15  ;;  %v11467_v61 = vor.u32 %v16061_v53, %v11464_v55  ;;  %v11979_v62 = vor.u32 %v16189_v56, %v11976_v57  ;;  %v16173_v8 = vld [vmem:[%s17726_s15 + $0x994] sm:$0xf] }
 0x244   : > { %7095 = vmatmul.bf16.vlgmr.msrb.gmra.mxu1 %v17914_v45  ;;  %v12491_v4 = vor.u32 %v16317_v58, %v12488_v59  ;;  %v11912_v9 = vld [vmem:[%s17726_s15 + $0x9d0] sm:$0xf0]  ;;  %v6889_v12 = vadd.f32 %v6888_v3, %v6876_v2  ;;  %v11403_v15 = vor.u32 %v16045_v35, %v11400_v5 }
 0x245   : > { %7120 = vmatpush.bf16.msrb.mxu3 %v14279_v14  ;;  %7139 = vmatpush.bf16.msra.mxu1 %v11659_v16  ;;  %v16301_v10 = vld [vmem:[%s17726_s15 + $0xd94] sm:$0xf]  ;;  %v10891_v14 = vor.u32 %v15917_v63, %v10888_v0  ;;  %v11915_v16 = vor.u32 %v16173_v8, %v11912_v9  ;;  %v6916_v0 = vpop.f32.mrf.mxu3 }
 0x246   : > { %7108 = vmatmul.bf16.vlgmr.msrb.gmra.mxu2 %v17906_v39  ;;  %v12424_v11 = vld [vmem:[%s17726_s15 + $0xdd0] sm:$0xf0]  ;;  %v6902_v32 = vadd.f32 %v6901_v20, %v6889_v12 }
 0x247   : > { %7152 = vmatpush.bf16.msra.mxu2 %v12171_v17  ;;  %7127 = vmatpush.bf16.msra.mxu0 %v11083_v1  ;;  %v15901_v17 = vld [vmem:[%s17726_s15 + $0x114] sm:$0xf]  ;;  %v12427_v24 = vor.u32 %v16301_v10, %v12424_v11  ;;  %v6890_v46 = vpop.f32.mrf.mxu1 }
 0x248   : > { %7121 = vmatmul.bf16.vlgmr.msrb.gmra.mxu3 %v17912_v43  ;;  %v10824_v18 = vld [vmem:[%s17726_s15 + $0x150] sm:$0xf0]  ;;  %v6915_v37 = vadd.f32 %v6914_v33, %v6902_v32 }
 0x249   : > { %7165 = vmatpush.bf16.msra.mxu3 %v12683_v25  ;;  %7140 = vmatpush.bf16.msra.mxu1 %v11595_v6  ;;  %v16029_v19 = vld [vmem:[%s17726_s15 + $0x514] sm:$0xf]  ;;  %v420_v6 = vld [vmem:[#allocation2 + $0x58] sm:$0xff]  ;;  %v6877_v38 = vpop.f32.mrf.mxu0 }
 0x24a   : > { %v11336_v25 = vld [vmem:[%s17726_s15 + $0x550] sm:$0xf0]  ;;  %v8272_v23 = vadd.f32 %v6915_v37, %v420_v6 }
 0x24b   : > { %7153 = vmatpush.bf16.msra.mxu2 %v12107_v36  ;;  %7128 = vmatpush.bf16.msra.mxu0 %v11019_v48  ;;  %v16157_v26 = vld [vmem:[%s17726_s15 + $0x914] sm:$0xf]  ;;  %v10827_v36 = vor.u32 %v15901_v17, %v10824_v18  ;;  %v11339_v7 = vor.u32 %v16029_v19, %v11336_v25 }
 0x24c   : > { %v11848_v29 = vld [vmem:[%s17726_s15 + $0x950] sm:$0xf0]  ;;  %8288 = vst [vmem:[#allocation2 + $0x58] sm:$0xff] %v8272_v23 }
 0x24d   : > { %7166 = vmatpush.bf16.msra.mxu3 %v12619_v40  ;;  %7141 = vmatpush.bf16.msra.mxu1 %v11531_v50  ;;  %v16285_v34 = vld [vmem:[%s17726_s15 + $0xd14] sm:$0xf]  ;;  %v11851_v13 = vor.u32 %v16157_v26, %v11848_v29 }
 0x24e   : > { %v12360_v1 = vld [vmem:[%s17726_s15 + $0xd50] sm:$0xf0] }
 0x24f   : > { %7154 = vmatpush.bf16.msra.mxu2 %v12043_v51  ;;  %7129 = vmatpush.bf16.msra.mxu0 %v10955_v31  ;;  %v15885_v40 = vld [vmem:[%s17726_s15 + $0x94] sm:$0xf]  ;;  %v12363_v47 = vor.u32 %v16285_v34, %v12360_v1  ;;  %v6903_v31 = vpop.f32.mrf.mxu2  ;;  %v18580_v0 = vpop.f32.mrf.mxu1 }
 0x250   : > { %v10760_v41 = vld [vmem:[%s17726_s15 + $0xd0] sm:$0xf0] }
 0x251   : > { %7167 = vmatpush.bf16.msra.mxu3 %v12555_v54  ;;  %7142 = vmatpush.bf16.msra.mxu1 %v11467_v61  ;;  %v16013_v44 = vld [vmem:[%s17726_s15 + $0x494] sm:$0xf]  ;;  %v10763_v30 = vor.u32 %v15885_v40, %v10760_v41 }
 0x252   : > { %v11272_v48 = vld [vmem:[%s17726_s15 + $0x4d0] sm:$0xf0] }
 0x253   : > { %7155 = vmatpush.bf16.msra.mxu2 %v11979_v62  ;;  %7130 = vmatpush.bf16.msra.mxu0 %v10891_v14  ;;  %v16141_v49 = vld [vmem:[%s17726_s15 + $0x894] sm:$0xf]  ;;  %v11275_v55 = vor.u32 %v16013_v44, %v11272_v48 }
 0x254   : > { %v11784_v50 = vld [vmem:[%s17726_s15 + $0x8d0] sm:$0xf0] }
 0x255   : > { %7168 = vmatpush.bf16.msra.mxu3 %v12491_v4  ;;  %7143 = vmatpush.bf16.msra.mxu1 %v11403_v15  ;;  %v16269_v51 = vld [vmem:[%s17726_s15 + $0xc94] sm:$0xf]  ;;  %v11787_v56 = vor.u32 %v16141_v49, %v11784_v50 }
 0x256   : > { %v12296_v52 = vld [vmem:[%s17726_s15 + $0xcd0] sm:$0xf0] }
 0x257   : > { %7156 = vmatpush.bf16.msra.mxu2 %v11915_v16  ;;  %7131 = vmatpush.bf16.msra.mxu0 %v10827_v36  ;;  %v15869_v53 = vld [vmem:[%s17726_s15 + $0x14] sm:$0xf]  ;;  %v12299_v60 = vor.u32 %v16269_v51, %v12296_v52 }
 0x258   : > { %v10696_v54 = vld [vmem:[%s17726_s15 + $0x50] sm:$0xf0] }
 0x259   : > { %7169 = vmatpush.bf16.msra.mxu3 %v12427_v24  ;;  %7144 = vmatpush.bf16.msra.mxu1 %v11339_v7  ;;  %v15997_v57 = vld [vmem:[%s17726_s15 + $0x414] sm:$0xf]  ;;  %v10699_v4 = vor.u32 %v15869_v53, %v10696_v54 }
 0x25a   : > { %v11208_v58 = vld [vmem:[%s17726_s15 + $0x450] sm:$0xf0] }
 0x25b   : > { %7157 = vmatpush.bf16.msra.mxu2 %v11851_v13  ;;  %v16125_v59 = vld [vmem:[%s17726_s15 + $0x814] sm:$0xf]  ;;  %7132 = vmatpush.bf16.msra.mxu0 %v10763_v30  ;;  %v11211_v10 = vor.u32 %v15997_v57, %v11208_v58 }
 0x25c   : > { %v11720_v61 = vld [vmem:[%s17726_s15 + $0x850] sm:$0xf0] }
 0x25d   : > { %7170 = vmatpush.bf16.msra.mxu3 %v12363_v47  ;;  %v16253_v62 = vld [vmem:[%s17726_s15 + $0xc14] sm:$0xf]  ;;  %7145 = vmatpush.bf16.msra.mxu1 %v11275_v55  ;;  %v11723_v11 = vor.u32 %v16125_v59, %v11720_v61  ;;  %v18575_v59 = vpop.f32.mrf.mxu0 }
 0x25e   : > { %v12232_v63 = vld [vmem:[%s17726_s15 + $0xc50] sm:$0xf0] }
 0x25f   : > { %v16493_v35 = vld [vmem:[%s17726_s15 + $0x1394] sm:$0xf]  ;;  %7158 = vmatpush.bf16.msra.mxu2 %v11787_v56  ;;  %v12235_v15 = vor.u32 %v16253_v62, %v12232_v63  ;;  %7133 = vmatpush.bf16.msra.mxu0 %v10699_v4 }
 0x260   : > { %v13192_v2 = vld [vmem:[%s17726_s15 + $0x13d0] sm:$0xf0] }
 0x261   : > { %v16621_v3 = vld [vmem:[%s17726_s15 + $0x1794] sm:$0xf]  ;;  %7171 = vmatpush.bf16.msra.mxu3 %v12299_v60  ;;  %v13195_v16 = vor.u32 %v16493_v35, %v13192_v2  ;;  %7146 = vmatpush.bf16.msra.mxu1 %v11211_v10 }
 0x262   : > { %v13704_v5 = vld [vmem:[%s17726_s15 + $0x17d0] sm:$0xf0]  ;;  %7134 = vmatmul.bf16.vlgmr.msra.gmra.mxu0 %v17853_v27 }
 0x263   : > { %v16749_v8 = vld [vmem:[%s17726_s15 + $0x1b94] sm:$0xf]  ;;  %v13707_v17 = vor.u32 %v16621_v3, %v13704_v5  ;;  %7159 = vmatpush.bf16.msra.mxu2 %v11723_v11  ;;  %7178 = vmatpush.bf16.msrb.mxu0 %v13195_v16  ;;  %v18590_v16 = vpop.f32.mrf.mxu2 }
 0x264   : > { %v14216_v9 = vld [vmem:[%s17726_s15 + $0x1bd0] sm:$0xf0]  ;;  %7147 = vmatmul.bf16.vlgmr.msra.gmra.mxu1 %v17855_v28 }
 0x265   : > { %v16877_v12 = vld [vmem:[%s17726_s15 + $0x1f94] sm:$0xf]  ;;  %v14219_v18 = vor.u32 %v16749_v8, %v14216_v9  ;;  %7172 = vmatpush.bf16.msra.mxu3 %v12235_v15  ;;  %7191 = vmatpush.bf16.msrb.mxu1 %v13707_v17 }
 0x266   : > { %v14728_v14 = vld [vmem:[%s17726_s15 + $0x1fd0] sm:$0xf0]  ;;  %7160 = vmatmul.bf16.vlgmr.msra.gmra.mxu2 %v17846_v21 }
 0x267   : > { %v16477_v19 = vld [vmem:[%s17726_s15 + $0x1314] sm:$0xf]  ;;  %v14731_v25 = vor.u32 %v16877_v12, %v14728_v14  ;;  %7204 = vmatpush.bf16.msrb.mxu2 %v14219_v18 }
 0x268   : > { %v13128_v20 = vld [vmem:[%s17726_s15 + $0x1350] sm:$0xf0]  ;;  %7173 = vmatmul.bf16.vlgmr.msra.gmra.mxu3 %v17848_v22 }
 0x269   : > { %v16605_v24 = vld [vmem:[%s17726_s15 + $0x1714] sm:$0xf]  ;;  %v13131_v1 = vor.u32 %v16477_v19, %v13128_v20  ;;  %7217 = vmatpush.bf16.msrb.mxu3 %v14731_v25 }
 0x26a   : > { %v13640_v26 = vld [vmem:[%s17726_s15 + $0x1750] sm:$0xf0] }
 0x26b   : > { %v16733_v29 = vld [vmem:[%s17726_s15 + $0x1b14] sm:$0xf]  ;;  %v13643_v6 = vor.u32 %v16605_v24, %v13640_v26  ;;  %7179 = vmatpush.bf16.msrb.mxu0 %v13131_v1  ;;  %v18595_v24 = vpop.f32.mrf.mxu3 }
 0x26c   : > { %v14152_v32 = vld [vmem:[%s17726_s15 + $0x1b50] sm:$0xf0] }
 0x26d   : > { %v16861_v33 = vld [vmem:[%s17726_s15 + $0x1f14] sm:$0xf]  ;;  %v14155_v36 = vor.u32 %v16733_v29, %v14152_v32  ;;  %7192 = vmatpush.bf16.msrb.mxu1 %v13643_v6  ;;  %v6929_v32 = vpop.f32.mrf.mxu0 }
 0x26e   : > { %v14664_v34 = vld [vmem:[%s17726_s15 + $0x1f50] sm:$0xf0] }
 0x26f   : > { %v16461_v37 = vld [vmem:[%s17726_s15 + $0x1294] sm:$0xf]  ;;  %v14667_v13 = vor.u32 %v16861_v33, %v14664_v34  ;;  %7205 = vmatpush.bf16.msrb.mxu2 %v14155_v36 }
 0x270   : > { %v13064_v38 = vld [vmem:[%s17726_s15 + $0x12d0] sm:$0xf0] }
 0x271   : > { %v16589_v7 = vld [vmem:[%s17726_s15 + $0x1694] sm:$0xf]  ;;  %v13067_v23 = vor.u32 %v16461_v37, %v13064_v38  ;;  %7218 = vmatpush.bf16.msrb.mxu3 %v14667_v13  ;;  %v6942_v37 = vpop.f32.mrf.mxu1 }
 0x272   : > { %v13576_v40 = vld [vmem:[%s17726_s15 + $0x16d0] sm:$0xf0]  ;;  %v16086_v37 = vld [vmem:[%s17726_s15 + $0x6d4] sm:$0xf0] }
 0x273   : > { %v16717_v41 = vld [vmem:[%s17726_s15 + $0x1a94] sm:$0xf]  ;;  %v13579_v48 = vor.u32 %v16589_v7, %v13576_v40  ;;  %7180 = vmatpush.bf16.msrb.mxu0 %v13067_v23 }
 0x274   : > { %v14088_v44 = vld [vmem:[%s17726_s15 + $0x1ad0] sm:$0xf0] }
 0x275   : > { %v16845_v46 = vld [vmem:[%s17726_s15 + $0x1e94] sm:$0xf]  ;;  %v14091_v49 = vor.u32 %v16717_v41, %v14088_v44  ;;  %7193 = vmatpush.bf16.msrb.mxu1 %v13579_v48 }
 0x276   : > { %v14600_v47 = vld [vmem:[%s17726_s15 + $0x1ed0] sm:$0xf0] }
 0x277   : > { %v16445_v50 = vld [vmem:[%s17726_s15 + $0x1214] sm:$0xf]  ;;  %v14603_v30 = vor.u32 %v16845_v46, %v14600_v47  ;;  %7206 = vmatpush.bf16.msrb.mxu2 %v14091_v49 }
 0x278   : > { %v13000_v51 = vld [vmem:[%s17726_s15 + $0x1250] sm:$0xf0] }
 0x279   : > { %v16573_v52 = vld [vmem:[%s17726_s15 + $0x1614] sm:$0xf]  ;;  %v13003_v58 = vor.u32 %v16445_v50, %v13000_v51  ;;  %7219 = vmatpush.bf16.msrb.mxu3 %v14603_v30  ;;  %v6955_v30 = vpop.f32.mrf.mxu2 }
 0x27a   : > { %v13512_v53 = vld [vmem:[%s17726_s15 + $0x1650] sm:$0xf0]  ;;  %v12494_v30 = vld [vmem:[%s17726_s15 + $0xe18] sm:$0xf] }
 0x27b   : > { %v16701_v54 = vld [vmem:[%s17726_s15 + $0x1a14] sm:$0xf]  ;;  %v13515_v31 = vor.u32 %v16573_v52, %v13512_v53  ;;  %7181 = vmatpush.bf16.msrb.mxu0 %v13003_v58  ;;  %v11150_v58 = vld [vmem:[%s17726_s15 + $0x398] sm:$0xf] }
 0x27c   : > { %v14024_v55 = vld [vmem:[%s17726_s15 + $0x1a50] sm:$0xf0] }
 0x27d   : > { %v16829_v56 = vld [vmem:[%s17726_s15 + $0x1e14] sm:$0xf]  ;;  %v14027_v60 = vor.u32 %v16701_v54, %v14024_v55  ;;  %7194 = vmatpush.bf16.msrb.mxu1 %v13515_v31  ;;  %v15990_v31 = vld [vmem:[%s17726_s15 + $0x3d4] sm:$0xf0] }
 0x27e   : > { %v14536_v57 = vld [vmem:[%s17726_s15 + $0x1e50] sm:$0xf0] }
 0x27f   : > { %v16429_v61 = vld [vmem:[%s17726_s15 + $0x1194] sm:$0xf]  ;;  %v14539_v35 = vor.u32 %v16829_v56, %v14536_v57  ;;  %7207 = vmatpush.bf16.msrb.mxu2 %v14027_v60  ;;  %v6968_v57 = vpop.f32.mrf.mxu3  ;;  %v11662_v60 = vld [vmem:[%s17726_s15 + $0x798] sm:$0xf] }
 0x280   : > { %v12936_v62 = vld [vmem:[%s17726_s15 + $0x11d0] sm:$0xf0]  ;;  %v10894_v57 = vld [vmem:[%s17726_s15 + $0x198] sm:$0xf] }
 0x281   : > { %v16557_v63 = vld [vmem:[%s17726_s15 + $0x1594] sm:$0xf]  ;;  %v12939_v9 = vor.u32 %v16429_v61, %v12936_v62  ;;  %7220 = vmatpush.bf16.msrb.mxu3 %v14539_v35  ;;  %v16118_v62 = vld [vmem:[%s17726_s15 + $0x7d4] sm:$0xf0] }
 0x282   : > { %v13448_v2 = vld [vmem:[%s17726_s15 + $0x15d0] sm:$0xf0]  ;;  %v16246_v35 = vld [vmem:[%s17726_s15 + $0xbd4] sm:$0xf0] }
 0x283   : > { %v16685_v3 = vld [vmem:[%s17726_s15 + $0x1994] sm:$0xf]  ;;  %v13451_v10 = vor.u32 %v16557_v63, %v13448_v2  ;;  %7182 = vmatpush.bf16.msrb.mxu0 %v12939_v9  ;;  %v12174_v63 = vld [vmem:[%s17726_s15 + $0xb98] sm:$0xf]  ;;  %v11151_v9 = vor.u32 %v15990_v31, %v11150_v58 }
 0x284   : > { %v13960_v4 = vld [vmem:[%s17726_s15 + $0x19d0] sm:$0xf0]  ;;  %v15926_v58 = vld [vmem:[%s17726_s15 + $0x1d4] sm:$0xf0] }
 0x285   : > { %v16813_v5 = vld [vmem:[%s17726_s15 + $0x1d94] sm:$0xf]  ;;  %v13963_v11 = vor.u32 %v16685_v3, %v13960_v4  ;;  %7195 = vmatpush.bf16.msrb.mxu1 %v13451_v10  ;;  %v12686_v4 = vld [vmem:[%s17726_s15 + $0xf98] sm:$0xf]  ;;  %v11663_v10 = vor.u32 %v16118_v62, %v11662_v60 }
 0x286   : > { %v14472_v8 = vld [vmem:[%s17726_s15 + $0x1dd0] sm:$0xf0]  ;;  %v11406_v31 = vld [vmem:[%s17726_s15 + $0x598] sm:$0xf] }
 0x287   : > { %v16413_v12 = vld [vmem:[%s17726_s15 + $0x1114] sm:$0xf]  ;;  %v14475_v17 = vor.u32 %v16813_v5, %v14472_v8  ;;  %7208 = vmatpush.bf16.msrb.mxu2 %v13963_v11  ;;  %v16374_v5 = vld [vmem:[%s17726_s15 + $0xfd4] sm:$0xf0]  ;;  %v12175_v11 = vor.u32 %v16246_v35, %v12174_v63 }
 0x288   : > { %v12872_v14 = vld [vmem:[%s17726_s15 + $0x1150] sm:$0xf0]  ;;  %v16054_v63 = vld [vmem:[%s17726_s15 + $0x5d4] sm:$0xf0] }
 0x289   : > { %v16541_v15 = vld [vmem:[%s17726_s15 + $0x1514] sm:$0xf]  ;;  %v12875_v29 = vor.u32 %v16413_v12, %v12872_v14  ;;  %7221 = vmatpush.bf16.msrb.mxu3 %v14475_v17  ;;  %v6941_v12 = vadd.f32 %v18580_v0, %v18575_v59  ;;  %v11086_v14 = vld [vmem:[%s17726_s15 + $0x318] sm:$0xf] }
 0x28a   : > { %v13384_v18 = vld [vmem:[%s17726_s15 + $0x1550] sm:$0xf0]  ;;  %v11598_v17 = vld [vmem:[%s17726_s15 + $0x718] sm:$0xf] }
 0x28b   : > { %v16669_v19 = vld [vmem:[%s17726_s15 + $0x1914] sm:$0xf]  ;;  %v13387_v33 = vor.u32 %v16541_v15, %v13384_v18  ;;  %7183 = vmatpush.bf16.msrb.mxu0 %v12875_v29  ;;  %v15974_v15 = vld [vmem:[%s17726_s15 + $0x354] sm:$0xf0]  ;;  %v12687_v18 = vor.u32 %v16374_v5, %v12686_v4 }
 0x28c   : > { %v13896_v20 = vld [vmem:[%s17726_s15 + $0x1950] sm:$0xf0]  ;;  %v16358_v29 = vld [vmem:[%s17726_s15 + $0xf54] sm:$0xf0]  ;;  %v11087_v59 = vor.u32 %v15974_v15, %v11086_v14  ;;  %v7005_v15 = vpop.f32.mrf.mxu2 }
 0x28d   : > { %v16797_v25 = vld [vmem:[%s17726_s15 + $0x1d14] sm:$0xf]  ;;  %v13899_v34 = vor.u32 %v16669_v19, %v13896_v20  ;;  %7196 = vmatpush.bf16.msrb.mxu1 %v13387_v33  ;;  %v16102_v19 = vld [vmem:[%s17726_s15 + $0x754] sm:$0xf0]  ;;  %v6954_v33 = vadd.f32 %v18590_v16, %v6941_v12 }
 0x28e   : > { %v14408_v26 = vld [vmem:[%s17726_s15 + $0x1d50] sm:$0xf0]  ;;  %v12110_v20 = vld [vmem:[%s17726_s15 + $0xb18] sm:$0xf]  ;;  %v11599_v0 = vor.u32 %v16102_v19, %v11598_v17 }
 0x28f   : > { %v16397_v1 = vld [vmem:[%s17726_s15 + $0x1094] sm:$0xf]  ;;  %v14411_v38 = vor.u32 %v16797_v25, %v14408_v26  ;;  %7209 = vmatpush.bf16.msrb.mxu2 %v13899_v34  ;;  %v16230_v25 = vld [vmem:[%s17726_s15 + $0xb54] sm:$0xf0] }
 0x290   : > { %v12808_v6 = vld [vmem:[%s17726_s15 + $0x10d0] sm:$0xf0]  ;;  %v12622_v26 = vld [vmem:[%s17726_s15 + $0xf18] sm:$0xf]  ;;  %v12111_v32 = vor.u32 %v16230_v25, %v12110_v20 }
 0x291   : > { %v16525_v36 = vld [vmem:[%s17726_s15 + $0x1494] sm:$0xf]  ;;  %v12811_v46 = vor.u32 %v16397_v1, %v12808_v6  ;;  %7222 = vmatpush.bf16.msrb.mxu3 %v14411_v38  ;;  %v11022_v34 = vld [vmem:[%s17726_s15 + $0x298] sm:$0xf] }
 0x292   : > { %v13320_v7 = vld [vmem:[%s17726_s15 + $0x14d0] sm:$0xf0]  ;;  %v15958_v1 = vld [vmem:[%s17726_s15 + $0x2d4] sm:$0xf0] }
 0x293   : > { %v16653_v13 = vld [vmem:[%s17726_s15 + $0x1894] sm:$0xf]  ;;  %v13323_v48 = vor.u32 %v16525_v36, %v13320_v7  ;;  %7184 = vmatpush.bf16.msrb.mxu0 %v12811_v46  ;;  %v11534_v6 = vld [vmem:[%s17726_s15 + $0x698] sm:$0xf]  ;;  %v12623_v36 = vor.u32 %v16358_v29, %v12622_v26  ;;  %v7018_v26 = vpop.f32.mrf.mxu3 }
 0x294   : > { %v13832_v40 = vld [vmem:[%s17726_s15 + $0x18d0] sm:$0xf0]  ;;  %v12046_v38 = vld [vmem:[%s17726_s15 + $0xa98] sm:$0xf] }
 0x295   : > { %v16781_v41 = vld [vmem:[%s17726_s15 + $0x1c94] sm:$0xf]  ;;  %v13835_v49 = vor.u32 %v16653_v13, %v13832_v40  ;;  %7197 = vmatpush.bf16.msrb.mxu1 %v13323_v48  ;;  %v16214_v7 = vld [vmem:[%s17726_s15 + $0xad4] sm:$0xf0]  ;;  %v11023_v40 = vor.u32 %v15958_v1, %v11022_v34 }
 0x296   : > { %v14344_v44 = vld [vmem:[%s17726_s15 + $0x1cd0] sm:$0xf0]  ;;  %v12558_v13 = vld [vmem:[%s17726_s15 + $0xe98] sm:$0xf]  ;;  %v12047_v46 = vor.u32 %v16214_v7, %v12046_v38 }
 0x297   : > { %v16381_v47 = vld [vmem:[%s17726_s15 + $0x1014] sm:$0xf]  ;;  %v14347_v53 = vor.u32 %v16781_v41, %v14344_v44  ;;  %7210 = vmatpush.bf16.msrb.mxu2 %v13835_v49  ;;  %v16342_v16 = vld [vmem:[%s17726_s15 + $0xed4] sm:$0xf0]  ;;  %v6967_v41 = vadd.f32 %v18595_v24, %v6954_v33  ;;  %v11535_v44 = vor.u32 %v16086_v37, %v11534_v6 }
 0x298   : > { %v12744_v23 = vld [vmem:[%s17726_s15 + $0x1050] sm:$0xf0]  ;;  %v11470_v48 = vld [vmem:[%s17726_s15 + $0x618] sm:$0xf]  ;;  %v12559_v49 = vor.u32 %v16342_v16, %v12558_v13 }
 0x299   : > { %v16509_v50 = vld [vmem:[%s17726_s15 + $0x1414] sm:$0xf]  ;;  %v12747_v61 = vor.u32 %v16381_v47, %v12744_v23  ;;  %7223 = vmatpush.bf16.msrb.mxu3 %v14347_v53  ;;  %v10958_v47 = vld [vmem:[%s17726_s15 + $0x218] sm:$0xf] }
 0x29a   : > { %v13256_v51 = vld [vmem:[%s17726_s15 + $0x1450] sm:$0xf0]  ;;  %v15942_v23 = vld [vmem:[%s17726_s15 + $0x254] sm:$0xf0] }
 0x29b   : > { %v16637_v52 = vld [vmem:[%s17726_s15 + $0x1814] sm:$0xf]  ;;  %v13259_v2 = vor.u32 %v16509_v50, %v13256_v51  ;;  %7185 = vmatpush.bf16.msrb.mxu0 %v12747_v61  ;;  %v16070_v50 = vld [vmem:[%s17726_s15 + $0x654] sm:$0xf0]  ;;  %v10959_v24 = vor.u32 %v15942_v23, %v10958_v47  ;;  %v6992_v61 = vpop.f32.mrf.mxu1 }
 0x29c   : > { %v13768_v54 = vld [vmem:[%s17726_s15 + $0x1850] sm:$0xf0]  ;;  %v11982_v51 = vld [vmem:[%s17726_s15 + $0xa18] sm:$0xf] }
 0x29d   : > { %v16765_v55 = vld [vmem:[%s17726_s15 + $0x1c14] sm:$0xf]  ;;  %v13771_v3 = vor.u32 %v16637_v52, %v13768_v54  ;;  %7198 = vmatpush.bf16.msrb.mxu1 %v13259_v2  ;;  %v16198_v52 = vld [vmem:[%s17726_s15 + $0xa54] sm:$0xf0]  ;;  %v6979_v54 = vpop.f32.mrf.mxu0 }
 0x29e   : > { %v14280_v56 = vld [vmem:[%s17726_s15 + $0x1c50] sm:$0xf0]  ;;  %7186 = vmatmul.bf16.vlgmr.msrb.gmra.mxu0 %v17910_v42  ;;  %v16326_v53 = vld [vmem:[%s17726_s15 + $0xe54] sm:$0xf0]  ;;  %v6980_v60 = vadd.f32 %v6979_v54, %v6967_v41 }
 0x29f   : > { %v14283_v8 = vor.u32 %v16765_v55, %v14280_v56  ;;  %7211 = vmatpush.bf16.msrb.mxu2 %v13771_v3  ;;  %7230 = vmatpush.bf16.msra.mxu0 %v11151_v9  ;;  %v11471_v55 = vor.u32 %v16070_v50, %v11470_v48  ;;  %v11983_v56 = vor.u32 %v16198_v52, %v11982_v51  ;;  %v11918_v35 = vld [vmem:[%s17726_s15 + $0x998] sm:$0xf] }
 0x2a0   : > { %7199 = vmatmul.bf16.vlgmr.msrb.gmra.mxu1 %v17914_v45  ;;  %v12495_v62 = vor.u32 %v16326_v53, %v12494_v30  ;;  %v16182_v2 = vld [vmem:[%s17726_s15 + $0x9d4] sm:$0xf0]  ;;  %v6993_v5 = vadd.f32 %v6992_v61, %v6980_v60  ;;  %v11407_v9 = vor.u32 %v16054_v63, %v11406_v31 }
 0x2a1   : > { %7224 = vmatpush.bf16.msrb.mxu3 %v14283_v8  ;;  %7243 = vmatpush.bf16.msra.mxu1 %v11663_v10  ;;  %v12430_v3 = vld [vmem:[%s17726_s15 + $0xd98] sm:$0xf]  ;;  %v10895_v8 = vor.u32 %v15926_v58, %v10894_v57  ;;  %v11919_v10 = vor.u32 %v16182_v2, %v11918_v35  ;;  %v7020_v58 = vpop.f32.mrf.mxu3 }
 0x2a2   : > { %7212 = vmatmul.bf16.vlgmr.msrb.gmra.mxu2 %v17906_v39  ;;  %v16310_v4 = vld [vmem:[%s17726_s15 + $0xdd4] sm:$0xf0]  ;;  %v7006_v25 = vadd.f32 %v7005_v15, %v6993_v5 }
 0x2a3   : > { %7256 = vmatpush.bf16.msra.mxu2 %v12175_v11  ;;  %7231 = vmatpush.bf16.msra.mxu0 %v11087_v59  ;;  %v10830_v11 = vld [vmem:[%s17726_s15 + $0x118] sm:$0xf]  ;;  %v12431_v17 = vor.u32 %v16310_v4, %v12430_v3  ;;  %v6994_v7 = vpop.f32.mrf.mxu1 }
 0x2a4   : > { %7225 = vmatmul.bf16.vlgmr.msrb.gmra.mxu3 %v17912_v43  ;;  %v15910_v12 = vld [vmem:[%s17726_s15 + $0x154] sm:$0xf0]  ;;  %v7019_v33 = vadd.f32 %v7018_v26, %v7006_v25 }
 0x2a5   : > { %7269 = vmatpush.bf16.msra.mxu3 %v12687_v18  ;;  %7244 = vmatpush.bf16.msra.mxu1 %v11599_v0  ;;  %v11342_v14 = vld [vmem:[%s17726_s15 + $0x518] sm:$0xf]  ;;  %v6981_v34 = vpop.f32.mrf.mxu0 }
 0x2a6   : > { %v16038_v18 = vld [vmem:[%s17726_s15 + $0x554] sm:$0xf0] }
 0x2a7   : > { %7257 = vmatpush.bf16.msra.mxu2 %v12111_v32  ;;  %7232 = vmatpush.bf16.msra.mxu0 %v11023_v40  ;;  %v11854_v19 = vld [vmem:[%s17726_s15 + $0x918] sm:$0xf]  ;;  %v10831_v32 = vor.u32 %v15910_v12, %v10830_v11  ;;  %v11343_v1 = vor.u32 %v16038_v18, %v11342_v14 }
 0x2a8   : > { %v16166_v20 = vld [vmem:[%s17726_s15 + $0x954] sm:$0xf0] }
 0x2a9   : > { %7270 = vmatpush.bf16.msra.mxu3 %v12623_v36  ;;  %7245 = vmatpush.bf16.msra.mxu1 %v11535_v44  ;;  %v12366_v29 = vld [vmem:[%s17726_s15 + $0xd18] sm:$0xf]  ;;  %v11855_v6 = vor.u32 %v16166_v20, %v11854_v19 }
 0x2aa   : > { %v16294_v59 = vld [vmem:[%s17726_s15 + $0xd54] sm:$0xf0] }
 0x2ab   : > { %7258 = vmatpush.bf16.msra.mxu2 %v12047_v46  ;;  %7233 = vmatpush.bf16.msra.mxu0 %v10959_v24  ;;  %v421_v0 = vld [vmem:[#allocation2 + $0x18] sm:$0xff]  ;;  %v12367_v13 = vor.u32 %v16294_v59, %v12366_v29  ;;  %v7007_v24 = vpop.f32.mrf.mxu2  ;;  %v18728_v58 = vpop.f32.mrf.mxu1 }
 0x2ac   : > { %v10766_v36 = vld [vmem:[%s17726_s15 + $0x98] sm:$0xf]  ;;  %v8273_v16 = vadd.f32 %v7019_v33, %v421_v0 }
 0x2ad   : > { %7271 = vmatpush.bf16.msra.mxu3 %v12559_v49  ;;  %7246 = vmatpush.bf16.msra.mxu1 %v11471_v55  ;;  %v15894_v37 = vld [vmem:[%s17726_s15 + $0xd4] sm:$0xf0] }
 0x2ae   : > { %v11278_v38 = vld [vmem:[%s17726_s15 + $0x498] sm:$0xf]  ;;  %8289 = vst [vmem:[#allocation2 + $0x18] sm:$0xff] %v8273_v16  ;;  %v10767_v23 = vor.u32 %v15894_v37, %v10766_v36 }
 0x2af   : > { %7259 = vmatpush.bf16.msra.mxu2 %v11983_v56  ;;  %7234 = vmatpush.bf16.msra.mxu0 %v10895_v8  ;;  %v16022_v40 = vld [vmem:[%s17726_s15 + $0x4d4] sm:$0xf0] }
 0x2b0   : > { %v11790_v41 = vld [vmem:[%s17726_s15 + $0x898] sm:$0xf]  ;;  %v11279_v50 = vor.u32 %v16022_v40, %v11278_v38 }
 0x2b1   : > { %7272 = vmatpush.bf16.msra.mxu3 %v12495_v62  ;;  %7247 = vmatpush.bf16.msra.mxu1 %v11407_v9  ;;  %v16150_v44 = vld [vmem:[%s17726_s15 + $0x8d4] sm:$0xf0] }
 0x2b2   : > { %v12302_v46 = vld [vmem:[%s17726_s15 + $0xc98] sm:$0xf]  ;;  %v11791_v51 = vor.u32 %v16150_v44, %v11790_v41 }
 0x2b3   : > { %7260 = vmatpush.bf16.msra.mxu2 %v11919_v10  ;;  %v16278_v47 = vld [vmem:[%s17726_s15 + $0xcd4] sm:$0xf0]  ;;  %7235 = vmatpush.bf16.msra.mxu0 %v10831_v32 }
 0x2b4   : > { %v10702_v48 = vld [vmem:[%s17726_s15 + $0x18] sm:$0xf]  ;;  %v12303_v54 = vor.u32 %v16278_v47, %v12302_v46 }
 0x2b5   : > { %7273 = vmatpush.bf16.msra.mxu3 %v12431_v17  ;;  %v15878_v49 = vld [vmem:[%s17726_s15 + $0x54] sm:$0xf0]  ;;  %7248 = vmatpush.bf16.msra.mxu1 %v11343_v1 }
 0x2b6   : > { %v11214_v52 = vld [vmem:[%s17726_s15 + $0x418] sm:$0xf]  ;;  %v10703_v62 = vor.u32 %v15878_v49, %v10702_v48 }
 0x2b7   : > { %7261 = vmatpush.bf16.msra.mxu2 %v11855_v6  ;;  %v16006_v30 = vld [vmem:[%s17726_s15 + $0x454] sm:$0xf0]  ;;  %7236 = vmatpush.bf16.msra.mxu0 %v10767_v23 }
 0x2b8   : > { %v11726_v53 = vld [vmem:[%s17726_s15 + $0x818] sm:$0xf]  ;;  %v11215_v3 = vor.u32 %v16006_v30, %v11214_v52 }
 0x2b9   : > { %7274 = vmatpush.bf16.msra.mxu3 %v12367_v13  ;;  %v16134_v55 = vld [vmem:[%s17726_s15 + $0x854] sm:$0xf0]  ;;  %7249 = vmatpush.bf16.msra.mxu1 %v11279_v50 }
 0x2ba   : > { %v12238_v56 = vld [vmem:[%s17726_s15 + $0xc18] sm:$0xf]  ;;  %v11727_v4 = vor.u32 %v16134_v55, %v11726_v53  ;;  %v18723_v53 = vpop.f32.mrf.mxu0 }
 0x2bb   : > { %v16262_v57 = vld [vmem:[%s17726_s15 + $0xc54] sm:$0xf0]  ;;  %7262 = vmatpush.bf16.msra.mxu2 %v11791_v51  ;;  %7237 = vmatpush.bf16.msra.mxu0 %v10703_v62 }
 0x2bc   : > { %v13198_v31 = vld [vmem:[%s17726_s15 + $0x1398] sm:$0xf]  ;;  %v12239_v9 = vor.u32 %v16262_v57, %v12238_v56 }
 0x2bd   : > { %v16502_v60 = vld [vmem:[%s17726_s15 + $0x13d4] sm:$0xf0]  ;;  %7275 = vmatpush.bf16.msra.mxu3 %v12303_v54  ;;  %7250 = vmatpush.bf16.msra.mxu1 %v11215_v3 }
 0x2be   : > { %v13710_v61 = vld [vmem:[%s17726_s15 + $0x1798] sm:$0xf]  ;;  %v13199_v10 = vor.u32 %v16502_v60, %v13198_v31  ;;  %7238 = vmatmul.bf16.vlgmr.msra.gmra.mxu0 %v17853_v27 }
 0x2bf   : > { %v16630_v63 = vld [vmem:[%s17726_s15 + $0x17d4] sm:$0xf0]  ;;  %7263 = vmatpush.bf16.msra.mxu2 %v11727_v4 }
 0x2c0   : > { %v14222_v35 = vld [vmem:[%s17726_s15 + $0x1b98] sm:$0xf]  ;;  %v13711_v11 = vor.u32 %v16630_v63, %v13710_v61  ;;  %7282 = vmatpush.bf16.msrb.mxu0 %v13199_v10  ;;  %7251 = vmatmul.bf16.vlgmr.msra.gmra.mxu1 %v17855_v28  ;;  %v18738_v10 = vpop.f32.mrf.mxu2 }
 0x2c1   : > { %v16758_v2 = vld [vmem:[%s17726_s15 + $0x1bd4] sm:$0xf0]  ;;  %7276 = vmatpush.bf16.msra.mxu3 %v12239_v9 }
 0x2c2   : > { %v14734_v5 = vld [vmem:[%s17726_s15 + $0x1f98] sm:$0xf]  ;;  %v14223_v12 = vor.u32 %v16758_v2, %v14222_v35  ;;  %7295 = vmatpush.bf16.msrb.mxu1 %v13711_v11  ;;  %7264 = vmatmul.bf16.vlgmr.msra.gmra.mxu2 %v17846_v21 }
 0x2c3   : > { %v16886_v8 = vld [vmem:[%s17726_s15 + $0x1fd4] sm:$0xf0] }
 0x2c4   : > { %v13134_v14 = vld [vmem:[%s17726_s15 + $0x1318] sm:$0xf]  ;;  %v14735_v18 = vor.u32 %v16886_v8, %v14734_v5  ;;  %7308 = vmatpush.bf16.msrb.mxu2 %v14223_v12  ;;  %7277 = vmatmul.bf16.vlgmr.msra.gmra.mxu3 %v17848_v22 }
 0x2c5   : > { %v16486_v15 = vld [vmem:[%s17726_s15 + $0x1354] sm:$0xf0] }
 0x2c6   : > { %v13646_v17 = vld [vmem:[%s17726_s15 + $0x1718] sm:$0xf]  ;;  %v13135_v59 = vor.u32 %v16486_v15, %v13134_v14  ;;  %7321 = vmatpush.bf16.msrb.mxu3 %v14735_v18 }
 0x2c7   : > { %v16614_v19 = vld [vmem:[%s17726_s15 + $0x1754] sm:$0xf0] }
 0x2c8   : > { %v14158_v20 = vld [vmem:[%s17726_s15 + $0x1b18] sm:$0xf]  ;;  %v13647_v0 = vor.u32 %v16614_v19, %v13646_v17  ;;  %7283 = vmatpush.bf16.msrb.mxu0 %v13135_v59  ;;  %v18743_v17 = vpop.f32.mrf.mxu3 }
 0x2c9   : > { %v16742_v25 = vld [vmem:[%s17726_s15 + $0x1b54] sm:$0xf0] }
 0x2ca   : > { %v14670_v26 = vld [vmem:[%s17726_s15 + $0x1f18] sm:$0xf]  ;;  %v14159_v32 = vor.u32 %v16742_v25, %v14158_v20  ;;  %7296 = vmatpush.bf16.msrb.mxu1 %v13647_v0  ;;  %v7033_v25 = vpop.f32.mrf.mxu0 }
 0x2cb   : > { %v16870_v29 = vld [vmem:[%s17726_s15 + $0x1f54] sm:$0xf0] }
 0x2cc   : > { %v13070_v33 = vld [vmem:[%s17726_s15 + $0x1298] sm:$0xf]  ;;  %v14671_v6 = vor.u32 %v16870_v29, %v14670_v26  ;;  %7309 = vmatpush.bf16.msrb.mxu2 %v14159_v32 }
 0x2cd   : > { %v16470_v34 = vld [vmem:[%s17726_s15 + $0x12d4] sm:$0xf0] }
 0x2ce   : > { %v13582_v1 = vld [vmem:[%s17726_s15 + $0x1698] sm:$0xf]  ;;  %v13071_v16 = vor.u32 %v16470_v34, %v13070_v33  ;;  %7322 = vmatpush.bf16.msrb.mxu3 %v14671_v6  ;;  %v7046_v33 = vpop.f32.mrf.mxu1 }
 0x2cf   : > { %v16598_v36 = vld [vmem:[%s17726_s15 + $0x16d4] sm:$0xf0]  ;;  %v11536_v33 = vld [vmem:[%s17726_s15 + $0x6d8] sm:$0xf0] }
 0x2d0   : > { %v14094_v37 = vld [vmem:[%s17726_s15 + $0x1a98] sm:$0xf]  ;;  %v13583_v40 = vor.u32 %v16598_v36, %v13582_v1  ;;  %7284 = vmatpush.bf16.msrb.mxu0 %v13071_v16 }
 0x2d1   : > { %v16726_v38 = vld [vmem:[%s17726_s15 + $0x1ad4] sm:$0xf0] }
 0x2d2   : > { %v14606_v7 = vld [vmem:[%s17726_s15 + $0x1e98] sm:$0xf]  ;;  %v14095_v41 = vor.u32 %v16726_v38, %v14094_v37  ;;  %7297 = vmatpush.bf16.msrb.mxu1 %v13583_v40 }
 0x2d3   : > { %v16854_v13 = vld [vmem:[%s17726_s15 + $0x1ed4] sm:$0xf0] }
 0x2d4   : > { %v13006_v44 = vld [vmem:[%s17726_s15 + $0x1218] sm:$0xf]  ;;  %v14607_v23 = vor.u32 %v16854_v13, %v14606_v7  ;;  %7310 = vmatpush.bf16.msrb.mxu2 %v14095_v41 }
 0x2d5   : > { %v16454_v46 = vld [vmem:[%s17726_s15 + $0x1254] sm:$0xf0] }
 0x2d6   : > { %v13518_v47 = vld [vmem:[%s17726_s15 + $0x1618] sm:$0xf]  ;;  %v13007_v30 = vor.u32 %v16454_v46, %v13006_v44  ;;  %7323 = vmatpush.bf16.msrb.mxu3 %v14607_v23  ;;  %v7059_v23 = vpop.f32.mrf.mxu2 }
 0x2d7   : > { %v16582_v48 = vld [vmem:[%s17726_s15 + $0x1654] sm:$0xf0]  ;;  %v16318_v23 = vld [vmem:[%s17726_s15 + $0xe1c] sm:$0xf] }
 0x2d8   : > { %v14030_v49 = vld [vmem:[%s17726_s15 + $0x1a18] sm:$0xf]  ;;  %v13519_v24 = vor.u32 %v16582_v48, %v13518_v47  ;;  %7285 = vmatpush.bf16.msrb.mxu0 %v13007_v30  ;;  %v15982_v30 = vld [vmem:[%s17726_s15 + $0x39c] sm:$0xf] }
 0x2d9   : > { %v16710_v50 = vld [vmem:[%s17726_s15 + $0x1a54] sm:$0xf0] }
 0x2da   : > { %v14542_v51 = vld [vmem:[%s17726_s15 + $0x1e18] sm:$0xf]  ;;  %v14031_v54 = vor.u32 %v16710_v50, %v14030_v49  ;;  %7298 = vmatpush.bf16.msrb.mxu1 %v13519_v24  ;;  %v11152_v24 = vld [vmem:[%s17726_s15 + $0x3d8] sm:$0xf0] }
 0x2db   : > { %v16838_v52 = vld [vmem:[%s17726_s15 + $0x1e54] sm:$0xf0] }
 0x2dc   : > { %v12942_v55 = vld [vmem:[%s17726_s15 + $0x1198] sm:$0xf]  ;;  %v14543_v31 = vor.u32 %v16838_v52, %v14542_v51  ;;  %7311 = vmatpush.bf16.msrb.mxu2 %v14031_v54  ;;  %v7072_v52 = vpop.f32.mrf.mxu3  ;;  %v16110_v54 = vld [vmem:[%s17726_s15 + $0x79c] sm:$0xf] }
 0x2dd   : > { %v16438_v56 = vld [vmem:[%s17726_s15 + $0x11d4] sm:$0xf0]  ;;  %v15918_v52 = vld [vmem:[%s17726_s15 + $0x19c] sm:$0xf] }
 0x2de   : > { %v13454_v57 = vld [vmem:[%s17726_s15 + $0x1598] sm:$0xf]  ;;  %v12943_v2 = vor.u32 %v16438_v56, %v12942_v55  ;;  %7324 = vmatpush.bf16.msrb.mxu3 %v14543_v31  ;;  %v11664_v56 = vld [vmem:[%s17726_s15 + $0x7d8] sm:$0xf0] }
 0x2df   : > { %v16566_v60 = vld [vmem:[%s17726_s15 + $0x15d4] sm:$0xf0]  ;;  %v12176_v31 = vld [vmem:[%s17726_s15 + $0xbd8] sm:$0xf0] }
 0x2e0   : > { %v13966_v61 = vld [vmem:[%s17726_s15 + $0x1998] sm:$0xf]  ;;  %v13455_v3 = vor.u32 %v16566_v60, %v13454_v57  ;;  %7286 = vmatpush.bf16.msrb.mxu0 %v12943_v2  ;;  %v16238_v57 = vld [vmem:[%s17726_s15 + $0xb9c] sm:$0xf]  ;;  %v11155_v2 = vor.u32 %v15982_v30, %v11152_v24 }
 0x2e1   : > { %v16694_v62 = vld [vmem:[%s17726_s15 + $0x19d4] sm:$0xf0]  ;;  %v10896_v30 = vld [vmem:[%s17726_s15 + $0x1d8] sm:$0xf0] }
 0x2e2   : > { %v14478_v63 = vld [vmem:[%s17726_s15 + $0x1d98] sm:$0xf]  ;;  %v13967_v4 = vor.u32 %v16694_v62, %v13966_v61  ;;  %7299 = vmatpush.bf16.msrb.mxu1 %v13455_v3  ;;  %v16366_v62 = vld [vmem:[%s17726_s15 + $0xf9c] sm:$0xf]  ;;  %v11667_v3 = vor.u32 %v16110_v54, %v11664_v56 }
 0x2e3   : > { %v16822_v35 = vld [vmem:[%s17726_s15 + $0x1dd4] sm:$0xf0]  ;;  %v16046_v24 = vld [vmem:[%s17726_s15 + $0x59c] sm:$0xf] }
 0x2e4   : > { %v12878_v5 = vld [vmem:[%s17726_s15 + $0x1118] sm:$0xf]  ;;  %v14479_v11 = vor.u32 %v16822_v35, %v14478_v63  ;;  %7312 = vmatpush.bf16.msrb.mxu2 %v13967_v4  ;;  %v12688_v63 = vld [vmem:[%s17726_s15 + $0xfd8] sm:$0xf0]  ;;  %v12179_v4 = vor.u32 %v16238_v57, %v12176_v31 }
 0x2e5   : > { %v16422_v8 = vld [vmem:[%s17726_s15 + $0x1154] sm:$0xf0]  ;;  %v11408_v57 = vld [vmem:[%s17726_s15 + $0x5d8] sm:$0xf0] }
 0x2e6   : > { %v13390_v9 = vld [vmem:[%s17726_s15 + $0x1518] sm:$0xf]  ;;  %v12879_v20 = vor.u32 %v16422_v8, %v12878_v5  ;;  %7325 = vmatpush.bf16.msrb.mxu3 %v14479_v11  ;;  %v7045_v5 = vadd.f32 %v18728_v58, %v18723_v53  ;;  %v15966_v8 = vld [vmem:[%s17726_s15 + $0x31c] sm:$0xf] }
 0x2e7   : > { %v16550_v12 = vld [vmem:[%s17726_s15 + $0x1554] sm:$0xf0]  ;;  %v16094_v11 = vld [vmem:[%s17726_s15 + $0x71c] sm:$0xf] }
 0x2e8   : > { %v13902_v14 = vld [vmem:[%s17726_s15 + $0x1918] sm:$0xf]  ;;  %v13391_v26 = vor.u32 %v16550_v12, %v13390_v9  ;;  %7287 = vmatpush.bf16.msrb.mxu0 %v12879_v20  ;;  %v11088_v9 = vld [vmem:[%s17726_s15 + $0x358] sm:$0xf0]  ;;  %v12691_v12 = vor.u32 %v16366_v62, %v12688_v63 }
 0x2e9   : > { %v16678_v15 = vld [vmem:[%s17726_s15 + $0x1954] sm:$0xf0]  ;;  %v12624_v20 = vld [vmem:[%s17726_s15 + $0xf58] sm:$0xf0]  ;;  %v11091_v53 = vor.u32 %v15966_v8, %v11088_v9  ;;  %v7109_v9 = vpop.f32.mrf.mxu2 }
 0x2ea   : > { %v14414_v18 = vld [vmem:[%s17726_s15 + $0x1d18] sm:$0xf]  ;;  %v13903_v29 = vor.u32 %v16678_v15, %v13902_v14  ;;  %7300 = vmatpush.bf16.msrb.mxu1 %v13391_v26  ;;  %v11600_v14 = vld [vmem:[%s17726_s15 + $0x758] sm:$0xf0]  ;;  %v7058_v26 = vadd.f32 %v18738_v10, %v7045_v5 }
 0x2eb   : > { %v16806_v19 = vld [vmem:[%s17726_s15 + $0x1d54] sm:$0xf0]  ;;  %v16222_v15 = vld [vmem:[%s17726_s15 + $0xb1c] sm:$0xf]  ;;  %v11603_v58 = vor.u32 %v16094_v11, %v11600_v14 }
 0x2ec   : > { %v12814_v59 = vld [vmem:[%s17726_s15 + $0x1098] sm:$0xf]  ;;  %v14415_v34 = vor.u32 %v16806_v19, %v14414_v18  ;;  %7313 = vmatpush.bf16.msrb.mxu2 %v13903_v29  ;;  %v12112_v18 = vld [vmem:[%s17726_s15 + $0xb58] sm:$0xf0] }
 0x2ed   : > { %v16406_v0 = vld [vmem:[%s17726_s15 + $0x10d4] sm:$0xf0]  ;;  %v16350_v19 = vld [vmem:[%s17726_s15 + $0xf1c] sm:$0xf]  ;;  %v12115_v25 = vor.u32 %v16222_v15, %v12112_v18 }
 0x2ee   : > { %v13326_v32 = vld [vmem:[%s17726_s15 + $0x1498] sm:$0xf]  ;;  %v12815_v7 = vor.u32 %v16406_v0, %v12814_v59  ;;  %7326 = vmatpush.bf16.msrb.mxu3 %v14415_v34  ;;  %v15950_v29 = vld [vmem:[%s17726_s15 + $0x29c] sm:$0xf] }
 0x2ef   : > { %v16534_v1 = vld [vmem:[%s17726_s15 + $0x14d4] sm:$0xf0]  ;;  %v11024_v59 = vld [vmem:[%s17726_s15 + $0x2d8] sm:$0xf0] }
 0x2f0   : > { %v13838_v6 = vld [vmem:[%s17726_s15 + $0x1898] sm:$0xf]  ;;  %v13327_v40 = vor.u32 %v16534_v1, %v13326_v32  ;;  %7288 = vmatpush.bf16.msrb.mxu0 %v12815_v7  ;;  %v16078_v0 = vld [vmem:[%s17726_s15 + $0x69c] sm:$0xf]  ;;  %v12627_v32 = vor.u32 %v16350_v19, %v12624_v20  ;;  %v7122_v19 = vpop.f32.mrf.mxu3 }
 0x2f1   : > { %v16662_v36 = vld [vmem:[%s17726_s15 + $0x18d4] sm:$0xf0]  ;;  %v16206_v34 = vld [vmem:[%s17726_s15 + $0xa9c] sm:$0xf] }
 0x2f2   : > { %v14350_v37 = vld [vmem:[%s17726_s15 + $0x1c98] sm:$0xf]  ;;  %v13839_v41 = vor.u32 %v16662_v36, %v13838_v6  ;;  %7301 = vmatpush.bf16.msrb.mxu1 %v13327_v40  ;;  %v12048_v1 = vld [vmem:[%s17726_s15 + $0xad8] sm:$0xf0]  ;;  %v11027_v36 = vor.u32 %v15950_v29, %v11024_v59 }
 0x2f3   : > { %v16790_v38 = vld [vmem:[%s17726_s15 + $0x1cd4] sm:$0xf0]  ;;  %v16334_v6 = vld [vmem:[%s17726_s15 + $0xe9c] sm:$0xf]  ;;  %v12051_v7 = vor.u32 %v16206_v34, %v12048_v1 }
 0x2f4   : > { %v12750_v13 = vld [vmem:[%s17726_s15 + $0x1018] sm:$0xf]  ;;  %v14351_v48 = vor.u32 %v16790_v38, %v14350_v37  ;;  %7314 = vmatpush.bf16.msrb.mxu2 %v13839_v41  ;;  %v12560_v10 = vld [vmem:[%s17726_s15 + $0xed8] sm:$0xf0]  ;;  %v7071_v37 = vadd.f32 %v18743_v17, %v7058_v26  ;;  %v11539_v38 = vor.u32 %v16078_v0, %v11536_v33 }
 0x2f5   : > { %v16390_v16 = vld [vmem:[%s17726_s15 + $0x1054] sm:$0xf0]  ;;  %v16062_v40 = vld [vmem:[%s17726_s15 + $0x61c] sm:$0xf]  ;;  %v12563_v41 = vor.u32 %v16334_v6, %v12560_v10 }
 0x2f6   : > { %v13262_v44 = vld [vmem:[%s17726_s15 + $0x1418] sm:$0xf]  ;;  %v12751_v55 = vor.u32 %v16390_v16, %v12750_v13  ;;  %7327 = vmatpush.bf16.msrb.mxu3 %v14351_v48  ;;  %v15934_v13 = vld [vmem:[%s17726_s15 + $0x21c] sm:$0xf] }
 0x2f7   : > { %v16518_v46 = vld [vmem:[%s17726_s15 + $0x1454] sm:$0xf0]  ;;  %v10960_v16 = vld [vmem:[%s17726_s15 + $0x258] sm:$0xf0] }
 0x2f8   : > { %v13774_v47 = vld [vmem:[%s17726_s15 + $0x1818] sm:$0xf]  ;;  %v13263_v60 = vor.u32 %v16518_v46, %v13262_v44  ;;  %7289 = vmatpush.bf16.msrb.mxu0 %v12751_v55  ;;  %v11472_v44 = vld [vmem:[%s17726_s15 + $0x658] sm:$0xf0]  ;;  %v10963_v17 = vor.u32 %v15934_v13, %v10960_v16  ;;  %v7096_v55 = vpop.f32.mrf.mxu1 }
 0x2f9   : > { %v16646_v49 = vld [vmem:[%s17726_s15 + $0x1854] sm:$0xf0]  ;;  %v16190_v46 = vld [vmem:[%s17726_s15 + $0xa1c] sm:$0xf] }
 0x2fa   : > { %v14286_v50 = vld [vmem:[%s17726_s15 + $0x1c18] sm:$0xf]  ;;  %v13775_v61 = vor.u32 %v16646_v49, %v13774_v47  ;;  %7302 = vmatpush.bf16.msrb.mxu1 %v13263_v60  ;;  %v11984_v47 = vld [vmem:[%s17726_s15 + $0xa58] sm:$0xf0]  ;;  %v7083_v49 = vpop.f32.mrf.mxu0 }
 0x2fb   : > { %v16774_v51 = vld [vmem:[%s17726_s15 + $0x1c54] sm:$0xf0]  ;;  %7290 = vmatmul.bf16.vlgmr.msrb.gmra.mxu0 %v17910_v42  ;;  %v12496_v48 = vld [vmem:[%s17726_s15 + $0xe58] sm:$0xf0]  ;;  %v7084_v54 = vadd.f32 %v7083_v49, %v7071_v37 }
 0x2fc   : > { %v14287_v35 = vor.u32 %v16774_v51, %v14286_v50  ;;  %7315 = vmatpush.bf16.msrb.mxu2 %v13775_v61  ;;  %7334 = vmatpush.bf16.msra.mxu0 %v11155_v2  ;;  %v11475_v50 = vor.u32 %v16062_v40, %v11472_v44  ;;  %v11987_v51 = vor.u32 %v16190_v46, %v11984_v47  ;;  %v16174_v31 = vld [vmem:[%s17726_s15 + $0x99c] sm:$0xf] }
 0x2fd   : > { %7303 = vmatmul.bf16.vlgmr.msrb.gmra.mxu1 %v17914_v45  ;;  %v12499_v56 = vor.u32 %v16318_v23, %v12496_v48  ;;  %v11920_v60 = vld [vmem:[%s17726_s15 + $0x9d8] sm:$0xf0]  ;;  %v7097_v63 = vadd.f32 %v7096_v55, %v7084_v54  ;;  %v11411_v2 = vor.u32 %v16046_v24, %v11408_v57 }
 0x2fe   : > { %7328 = vmatpush.bf16.msrb.mxu3 %v14287_v35  ;;  %7347 = vmatpush.bf16.msra.mxu1 %v11667_v3  ;;  %v16302_v61 = vld [vmem:[%s17726_s15 + $0xd9c] sm:$0xf]  ;;  %v10899_v35 = vor.u32 %v15918_v52, %v10896_v30  ;;  %v11923_v3 = vor.u32 %v16174_v31, %v11920_v60  ;;  %v7124_v30 = vpop.f32.mrf.mxu3 }
 0x2ff   : > { %7316 = vmatmul.bf16.vlgmr.msrb.gmra.mxu2 %v17906_v39  ;;  %v12432_v62 = vld [vmem:[%s17726_s15 + $0xdd8] sm:$0xf0]  ;;  %v7110_v18 = vadd.f32 %v7109_v9, %v7097_v63 }
 0x300   : > { %7360 = vmatpush.bf16.msra.mxu2 %v12179_v4  ;;  %7335 = vmatpush.bf16.msra.mxu0 %v11091_v53  ;;  %v15902_v4 = vld [vmem:[%s17726_s15 + $0x11c] sm:$0xf]  ;;  %v12435_v11 = vor.u32 %v16302_v61, %v12432_v62  ;;  %v7098_v1 = vpop.f32.mrf.mxu1 }
 0x301   : > { %7329 = vmatmul.bf16.vlgmr.msrb.gmra.mxu3 %v17912_v43  ;;  %v10832_v5 = vld [vmem:[%s17726_s15 + $0x158] sm:$0xf0]  ;;  %v7123_v26 = vadd.f32 %v7122_v19, %v7110_v18 }
 0x302   : > { %7373 = vmatpush.bf16.msra.mxu3 %v12691_v12  ;;  %7348 = vmatpush.bf16.msra.mxu1 %v11603_v58  ;;  %v16030_v8 = vld [vmem:[%s17726_s15 + $0x51c] sm:$0xf]  ;;  %v422_v58 = vld [vmem:[#allocation2 + $0x50] sm:$0xff]  ;;  %v7085_v29 = vpop.f32.mrf.mxu0 }
 0x303   : > { %v11344_v12 = vld [vmem:[%s17726_s15 + $0x558] sm:$0xf0]  ;;  %v8274_v10 = vadd.f32 %v7123_v26, %v422_v58 }
 0x304   : > { %7361 = vmatpush.bf16.msra.mxu2 %v12115_v25  ;;  %7336 = vmatpush.bf16.msra.mxu0 %v11027_v36  ;;  %v16158_v14 = vld [vmem:[%s17726_s15 + $0x91c] sm:$0xf]  ;;  %v10835_v25 = vor.u32 %v15902_v4, %v10832_v5  ;;  %v11347_v59 = vor.u32 %v16030_v8, %v11344_v12 }
 0x305   : > { %v11856_v15 = vld [vmem:[%s17726_s15 + $0x958] sm:$0xf0]  ;;  %8290 = vst [vmem:[#allocation2 + $0x50] sm:$0xff] %v8274_v10 }
 0x306   : > { %7374 = vmatpush.bf16.msra.mxu3 %v12627_v32  ;;  %7349 = vmatpush.bf16.msra.mxu1 %v11539_v38  ;;  %v16286_v20 = vld [vmem:[%s17726_s15 + $0xd1c] sm:$0xf]  ;;  %v11859_v0 = vor.u32 %v16158_v14, %v11856_v15 }
 0x307   : > { %v12368_v53 = vld [vmem:[%s17726_s15 + $0xd58] sm:$0xf0] }
 0x308   : > { %7362 = vmatpush.bf16.msra.mxu2 %v12051_v7  ;;  %7337 = vmatpush.bf16.msra.mxu0 %v10963_v17  ;;  %v15886_v32 = vld [vmem:[%s17726_s15 + $0x9c] sm:$0xf]  ;;  %v12371_v6 = vor.u32 %v16286_v20, %v12368_v53  ;;  %v7111_v17 = vpop.f32.mrf.mxu2  ;;  %v18876_v30 = vpop.f32.mrf.mxu1 }
 0x309   : > { %v10768_v33 = vld [vmem:[%s17726_s15 + $0xd8] sm:$0xf0] }
 0x30a   : > { %7375 = vmatpush.bf16.msra.mxu3 %v12563_v41  ;;  %7350 = vmatpush.bf16.msra.mxu1 %v11475_v50  ;;  %v16014_v34 = vld [vmem:[%s17726_s15 + $0x49c] sm:$0xf]  ;;  %v10771_v16 = vor.u32 %v15886_v32, %v10768_v33 }
 0x30b   : > { %v11280_v36 = vld [vmem:[%s17726_s15 + $0x4d8] sm:$0xf0] }
 0x30c   : > { %7363 = vmatpush.bf16.msra.mxu2 %v11987_v51  ;;  %7338 = vmatpush.bf16.msra.mxu0 %v10899_v35  ;;  %v16142_v37 = vld [vmem:[%s17726_s15 + $0x89c] sm:$0xf]  ;;  %v11283_v44 = vor.u32 %v16014_v34, %v11280_v36 }
 0x30d   : > { %v11792_v38 = vld [vmem:[%s17726_s15 + $0x8d8] sm:$0xf0] }
 0x30e   : > { %7376 = vmatpush.bf16.msra.mxu3 %v12499_v56  ;;  %7351 = vmatpush.bf16.msra.mxu1 %v11411_v2  ;;  %v16270_v7 = vld [vmem:[%s17726_s15 + $0xc9c] sm:$0xf]  ;;  %v11795_v46 = vor.u32 %v16142_v37, %v11792_v38 }
 0x30f   : > { %v12304_v13 = vld [vmem:[%s17726_s15 + $0xcd8] sm:$0xf0] }
 0x310   : > { %7364 = vmatpush.bf16.msra.mxu2 %v11923_v3  ;;  %7339 = vmatpush.bf16.msra.mxu0 %v10835_v25  ;;  %v15870_v40 = vld [vmem:[%s17726_s15 + $0x1c] sm:$0xf]  ;;  %v12307_v49 = vor.u32 %v16270_v7, %v12304_v13 }
 0x311   : > { %v10704_v41 = vld [vmem:[%s17726_s15 + $0x58] sm:$0xf0] }
 0x312   : > { %7377 = vmatpush.bf16.msra.mxu3 %v12435_v11  ;;  %7352 = vmatpush.bf16.msra.mxu1 %v11347_v59  ;;  %v15998_v47 = vld [vmem:[%s17726_s15 + $0x41c] sm:$0xf]  ;;  %v10707_v56 = vor.u32 %v15870_v40, %v10704_v41 }
 0x313   : > { %v11216_v23 = vld [vmem:[%s17726_s15 + $0x458] sm:$0xf0] }
 0x314   : > { %7365 = vmatpush.bf16.msra.mxu2 %v11859_v0  ;;  %v16126_v48 = vld [vmem:[%s17726_s15 + $0x81c] sm:$0xf]  ;;  %7340 = vmatpush.bf16.msra.mxu0 %v10771_v16  ;;  %v11219_v61 = vor.u32 %v15998_v47, %v11216_v23 }
 0x315   : > { %v11728_v50 = vld [vmem:[%s17726_s15 + $0x858] sm:$0xf0] }
 0x316   : > { %7378 = vmatpush.bf16.msra.mxu3 %v12371_v6  ;;  %v16254_v51 = vld [vmem:[%s17726_s15 + $0xc1c] sm:$0xf]  ;;  %7353 = vmatpush.bf16.msra.mxu1 %v11283_v44  ;;  %v11731_v62 = vor.u32 %v16126_v48, %v11728_v50  ;;  %v18871_v48 = vpop.f32.mrf.mxu0 }
 0x317   : > { %v12240_v52 = vld [vmem:[%s17726_s15 + $0xc58] sm:$0xf0] }
 0x318   : > { %v16494_v24 = vld [vmem:[%s17726_s15 + $0x139c] sm:$0xf]  ;;  %7366 = vmatpush.bf16.msra.mxu2 %v11795_v46  ;;  %v12243_v2 = vor.u32 %v16254_v51, %v12240_v52  ;;  %7341 = vmatpush.bf16.msra.mxu0 %v10707_v56 }
 0x319   : > { %v13200_v54 = vld [vmem:[%s17726_s15 + $0x13d8] sm:$0xf0] }
 0x31a   : > { %v16622_v55 = vld [vmem:[%s17726_s15 + $0x179c] sm:$0xf]  ;;  %7379 = vmatpush.bf16.msra.mxu3 %v12307_v49  ;;  %v13203_v3 = vor.u32 %v16494_v24, %v13200_v54  ;;  %7354 = vmatpush.bf16.msra.mxu1 %v11219_v61 }
 0x31b   : > { %v13712_v57 = vld [vmem:[%s17726_s15 + $0x17d8] sm:$0xf0]  ;;  %7342 = vmatmul.bf16.vlgmr.msra.gmra.mxu0 %v17853_v27 }
 0x31c   : > { %v16750_v31 = vld [vmem:[%s17726_s15 + $0x1b9c] sm:$0xf]  ;;  %v13715_v4 = vor.u32 %v16622_v55, %v13712_v57  ;;  %7367 = vmatpush.bf16.msra.mxu2 %v11731_v62  ;;  %7386 = vmatpush.bf16.msrb.mxu0 %v13203_v3  ;;  %v18886_v3 = vpop.f32.mrf.mxu2 }
 0x31d   : > { %v14224_v60 = vld [vmem:[%s17726_s15 + $0x1bd8] sm:$0xf0]  ;;  %7355 = vmatmul.bf16.vlgmr.msra.gmra.mxu1 %v17855_v28 }
 0x31e   : > { %v16878_v63 = vld [vmem:[%s17726_s15 + $0x1f9c] sm:$0xf]  ;;  %v14227_v5 = vor.u32 %v16750_v31, %v14224_v60  ;;  %7380 = vmatpush.bf16.msra.mxu3 %v12243_v2  ;;  %7399 = vmatpush.bf16.msrb.mxu1 %v13715_v4 }
 0x31f   : > { %v14736_v35 = vld [vmem:[%s17726_s15 + $0x1fd8] sm:$0xf0]  ;;  %7368 = vmatmul.bf16.vlgmr.msra.gmra.mxu2 %v17846_v21 }
 0x320   : > { %v16478_v8 = vld [vmem:[%s17726_s15 + $0x131c] sm:$0xf]  ;;  %v14739_v12 = vor.u32 %v16878_v63, %v14736_v35  ;;  %7412 = vmatpush.bf16.msrb.mxu2 %v14227_v5 }
 0x321   : > { %v13136_v9 = vld [vmem:[%s17726_s15 + $0x1358] sm:$0xf0]  ;;  %7381 = vmatmul.bf16.vlgmr.msra.gmra.mxu3 %v17848_v22 }
 0x322   : > { %v16606_v11 = vld [vmem:[%s17726_s15 + $0x171c] sm:$0xf]  ;;  %v13139_v53 = vor.u32 %v16478_v8, %v13136_v9  ;;  %7425 = vmatpush.bf16.msrb.mxu3 %v14739_v12 }
 0x323   : > { %v13648_v14 = vld [vmem:[%s17726_s15 + $0x1758] sm:$0xf0] }
 0x324   : > { %v16734_v15 = vld [vmem:[%s17726_s15 + $0x1b1c] sm:$0xf]  ;;  %v13651_v58 = vor.u32 %v16606_v11, %v13648_v14  ;;  %7387 = vmatpush.bf16.msrb.mxu0 %v13139_v53  ;;  %v18891_v11 = vpop.f32.mrf.mxu3 }
 0x325   : > { %v14160_v18 = vld [vmem:[%s17726_s15 + $0x1b58] sm:$0xf0] }
 0x326   : > { %v16862_v19 = vld [vmem:[%s17726_s15 + $0x1f1c] sm:$0xf]  ;;  %v14163_v25 = vor.u32 %v16734_v15, %v14160_v18  ;;  %7400 = vmatpush.bf16.msrb.mxu1 %v13651_v58  ;;  %v7137_v18 = vpop.f32.mrf.mxu0 }
 0x327   : > { %v14672_v20 = vld [vmem:[%s17726_s15 + $0x1f58] sm:$0xf0] }
 0x328   : > { %v16462_v26 = vld [vmem:[%s17726_s15 + $0x129c] sm:$0xf]  ;;  %v14675_v0 = vor.u32 %v16862_v19, %v14672_v20  ;;  %7413 = vmatpush.bf16.msrb.mxu2 %v14163_v25 }
 0x329   : > { %v13072_v29 = vld [vmem:[%s17726_s15 + $0x12d8] sm:$0xf0] }
 0x32a   : > { %v16590_v59 = vld [vmem:[%s17726_s15 + $0x169c] sm:$0xf]  ;;  %v13075_v10 = vor.u32 %v16462_v26, %v13072_v29  ;;  %7426 = vmatpush.bf16.msrb.mxu3 %v14675_v0  ;;  %v7150_v26 = vpop.f32.mrf.mxu1 }
 0x32b   : > { %v13584_v32 = vld [vmem:[%s17726_s15 + $0x16d8] sm:$0xf0]  ;;  %v16087_v26 = vld [vmem:[%s17726_s15 + $0x6dc] sm:$0xf0] }
 0x32c   : > { %v16718_v33 = vld [vmem:[%s17726_s15 + $0x1a9c] sm:$0xf]  ;;  %v13587_v36 = vor.u32 %v16590_v59, %v13584_v32  ;;  %7388 = vmatpush.bf16.msrb.mxu0 %v13075_v10 }
 0x32d   : > { %v14096_v34 = vld [vmem:[%s17726_s15 + $0x1ad8] sm:$0xf0] }
 0x32e   : > { %v16846_v1 = vld [vmem:[%s17726_s15 + $0x1e9c] sm:$0xf]  ;;  %v14099_v37 = vor.u32 %v16718_v33, %v14096_v34  ;;  %7401 = vmatpush.bf16.msrb.mxu1 %v13587_v36 }
 0x32f   : > { %v14608_v6 = vld [vmem:[%s17726_s15 + $0x1ed8] sm:$0xf0] }
 0x330   : > { %v16446_v38 = vld [vmem:[%s17726_s15 + $0x121c] sm:$0xf]  ;;  %v14611_v16 = vor.u32 %v16846_v1, %v14608_v6  ;;  %7414 = vmatpush.bf16.msrb.mxu2 %v14099_v37 }
 0x331   : > { %v13008_v7 = vld [vmem:[%s17726_s15 + $0x1258] sm:$0xf0] }
 0x332   : > { %v16574_v13 = vld [vmem:[%s17726_s15 + $0x161c] sm:$0xf]  ;;  %v13011_v23 = vor.u32 %v16446_v38, %v13008_v7  ;;  %7427 = vmatpush.bf16.msrb.mxu3 %v14611_v16  ;;  %v7163_v16 = vpop.f32.mrf.mxu2 }
 0x333   : > { %v13520_v40 = vld [vmem:[%s17726_s15 + $0x1658] sm:$0xf0]  ;;  %v12502_v16 = vld [vmem:[%s17726_s15 + $0xe20] sm:$0xf] }
 0x334   : > { %v16702_v41 = vld [vmem:[%s17726_s15 + $0x1a1c] sm:$0xf]  ;;  %v13523_v17 = vor.u32 %v16574_v13, %v13520_v40  ;;  %7389 = vmatpush.bf16.msrb.mxu0 %v13011_v23  ;;  %v11158_v23 = vld [vmem:[%s17726_s15 + $0x3a0] sm:$0xf] }
 0x335   : > { %v14032_v44 = vld [vmem:[%s17726_s15 + $0x1a58] sm:$0xf0] }
 0x336   : > { %v16830_v46 = vld [vmem:[%s17726_s15 + $0x1e1c] sm:$0xf]  ;;  %v14035_v49 = vor.u32 %v16702_v41, %v14032_v44  ;;  %7402 = vmatpush.bf16.msrb.mxu1 %v13523_v17  ;;  %v15991_v17 = vld [vmem:[%s17726_s15 + $0x3dc] sm:$0xf0] }
 0x337   : > { %v14544_v47 = vld [vmem:[%s17726_s15 + $0x1e58] sm:$0xf0] }
 0x338   : > { %v16430_v50 = vld [vmem:[%s17726_s15 + $0x119c] sm:$0xf]  ;;  %v14547_v24 = vor.u32 %v16830_v46, %v14544_v47  ;;  %7415 = vmatpush.bf16.msrb.mxu2 %v14035_v49  ;;  %v7176_v47 = vpop.f32.mrf.mxu3  ;;  %v11670_v49 = vld [vmem:[%s17726_s15 + $0x7a0] sm:$0xf] }
 0x339   : > { %v12944_v51 = vld [vmem:[%s17726_s15 + $0x11d8] sm:$0xf0]  ;;  %v10902_v47 = vld [vmem:[%s17726_s15 + $0x1a0] sm:$0xf] }
 0x33a   : > { %v16558_v52 = vld [vmem:[%s17726_s15 + $0x159c] sm:$0xf]  ;;  %v12947_v60 = vor.u32 %v16430_v50, %v12944_v51  ;;  %7428 = vmatpush.bf16.msrb.mxu3 %v14547_v24  ;;  %v16119_v51 = vld [vmem:[%s17726_s15 + $0x7dc] sm:$0xf0] }
 0x33b   : > { %v13456_v54 = vld [vmem:[%s17726_s15 + $0x15d8] sm:$0xf0]  ;;  %v16247_v24 = vld [vmem:[%s17726_s15 + $0xbdc] sm:$0xf0] }
 0x33c   : > { %v16686_v55 = vld [vmem:[%s17726_s15 + $0x199c] sm:$0xf]  ;;  %v13459_v61 = vor.u32 %v16558_v52, %v13456_v54  ;;  %7390 = vmatpush.bf16.msrb.mxu0 %v12947_v60  ;;  %v12182_v52 = vld [vmem:[%s17726_s15 + $0xba0] sm:$0xf]  ;;  %v11159_v60 = vor.u32 %v15991_v17, %v11158_v23 }
 0x33d   : > { %v13968_v56 = vld [vmem:[%s17726_s15 + $0x19d8] sm:$0xf0]  ;;  %v15927_v23 = vld [vmem:[%s17726_s15 + $0x1dc] sm:$0xf0] }
 0x33e   : > { %v16814_v57 = vld [vmem:[%s17726_s15 + $0x1d9c] sm:$0xf]  ;;  %v13971_v62 = vor.u32 %v16686_v55, %v13968_v56  ;;  %7403 = vmatpush.bf16.msrb.mxu1 %v13459_v61  ;;  %v12694_v56 = vld [vmem:[%s17726_s15 + $0xfa0] sm:$0xf]  ;;  %v11671_v61 = vor.u32 %v16119_v51, %v11670_v49 }
 0x33f   : > { %v14480_v31 = vld [vmem:[%s17726_s15 + $0x1dd8] sm:$0xf0]  ;;  %v11414_v17 = vld [vmem:[%s17726_s15 + $0x5a0] sm:$0xf] }
 0x340   : > { %v16414_v63 = vld [vmem:[%s17726_s15 + $0x111c] sm:$0xf]  ;;  %v14483_v4 = vor.u32 %v16814_v57, %v14480_v31  ;;  %7416 = vmatpush.bf16.msrb.mxu2 %v13971_v62  ;;  %v16375_v57 = vld [vmem:[%s17726_s15 + $0xfdc] sm:$0xf0]  ;;  %v12183_v62 = vor.u32 %v16247_v24, %v12182_v52 }
 0x341   : > { %v12880_v35 = vld [vmem:[%s17726_s15 + $0x1158] sm:$0xf0]  ;;  %v16055_v52 = vld [vmem:[%s17726_s15 + $0x5dc] sm:$0xf0] }
 0x342   : > { %v16542_v2 = vld [vmem:[%s17726_s15 + $0x151c] sm:$0xf]  ;;  %v12883_v15 = vor.u32 %v16414_v63, %v12880_v35  ;;  %7429 = vmatpush.bf16.msrb.mxu3 %v14483_v4  ;;  %v7149_v63 = vadd.f32 %v18876_v30, %v18871_v48  ;;  %v11094_v35 = vld [vmem:[%s17726_s15 + $0x320] sm:$0xf] }
 0x343   : > { %v13392_v5 = vld [vmem:[%s17726_s15 + $0x1558] sm:$0xf0]  ;;  %v11606_v4 = vld [vmem:[%s17726_s15 + $0x720] sm:$0xf] }
 0x344   : > { %v16670_v8 = vld [vmem:[%s17726_s15 + $0x191c] sm:$0xf]  ;;  %v13395_v19 = vor.u32 %v16542_v2, %v13392_v5  ;;  %7391 = vmatpush.bf16.msrb.mxu0 %v12883_v15  ;;  %v15975_v2 = vld [vmem:[%s17726_s15 + $0x35c] sm:$0xf0]  ;;  %v12695_v5 = vor.u32 %v16375_v57, %v12694_v56 }
 0x345   : > { %v13904_v9 = vld [vmem:[%s17726_s15 + $0x1958] sm:$0xf0]  ;;  %v16359_v15 = vld [vmem:[%s17726_s15 + $0xf5c] sm:$0xf0]  ;;  %v11095_v48 = vor.u32 %v15975_v2, %v11094_v35  ;;  %v7213_v2 = vpop.f32.mrf.mxu2 }
 0x346   : > { %v16798_v12 = vld [vmem:[%s17726_s15 + $0x1d1c] sm:$0xf]  ;;  %v13907_v20 = vor.u32 %v16670_v8, %v13904_v9  ;;  %7404 = vmatpush.bf16.msrb.mxu1 %v13395_v19  ;;  %v16103_v8 = vld [vmem:[%s17726_s15 + $0x75c] sm:$0xf0]  ;;  %v7162_v19 = vadd.f32 %v18886_v3, %v7149_v63 }
 0x347   : > { %v14416_v14 = vld [vmem:[%s17726_s15 + $0x1d58] sm:$0xf0]  ;;  %v12118_v9 = vld [vmem:[%s17726_s15 + $0xb20] sm:$0xf]  ;;  %v11607_v30 = vor.u32 %v16103_v8, %v11606_v4 }
 0x348   : > { %v16398_v53 = vld [vmem:[%s17726_s15 + $0x109c] sm:$0xf]  ;;  %v14419_v29 = vor.u32 %v16798_v12, %v14416_v14  ;;  %7417 = vmatpush.bf16.msrb.mxu2 %v13907_v20  ;;  %v16231_v12 = vld [vmem:[%s17726_s15 + $0xb5c] sm:$0xf0] }
 0x349   : > { %v12816_v58 = vld [vmem:[%s17726_s15 + $0x10d8] sm:$0xf0]  ;;  %v12630_v14 = vld [vmem:[%s17726_s15 + $0xf20] sm:$0xf]  ;;  %v12119_v18 = vor.u32 %v16231_v12, %v12118_v9 }
 0x34a   : > { %v16526_v25 = vld [vmem:[%s17726_s15 + $0x149c] sm:$0xf]  ;;  %v12819_v1 = vor.u32 %v16398_v53, %v12816_v58  ;;  %7430 = vmatpush.bf16.msrb.mxu3 %v14419_v29  ;;  %v11030_v20 = vld [vmem:[%s17726_s15 + $0x2a0] sm:$0xf] }
 0x34b   : > { %v13328_v59 = vld [vmem:[%s17726_s15 + $0x14d8] sm:$0xf0]  ;;  %v15959_v53 = vld [vmem:[%s17726_s15 + $0x2dc] sm:$0xf0] }
 0x34c   : > { %v16654_v0 = vld [vmem:[%s17726_s15 + $0x189c] sm:$0xf]  ;;  %v13331_v36 = vor.u32 %v16526_v25, %v13328_v59  ;;  %7392 = vmatpush.bf16.msrb.mxu0 %v12819_v1  ;;  %v11542_v58 = vld [vmem:[%s17726_s15 + $0x6a0] sm:$0xf]  ;;  %v12631_v25 = vor.u32 %v16359_v15, %v12630_v14  ;;  %v7226_v14 = vpop.f32.mrf.mxu3 }
 0x34d   : > { %v13840_v32 = vld [vmem:[%s17726_s15 + $0x18d8] sm:$0xf0]  ;;  %v12054_v29 = vld [vmem:[%s17726_s15 + $0xaa0] sm:$0xf] }
 0x34e   : > { %v16782_v33 = vld [vmem:[%s17726_s15 + $0x1c9c] sm:$0xf]  ;;  %v13843_v37 = vor.u32 %v16654_v0, %v13840_v32  ;;  %7405 = vmatpush.bf16.msrb.mxu1 %v13331_v36  ;;  %v16215_v59 = vld [vmem:[%s17726_s15 + $0xadc] sm:$0xf0]  ;;  %v11031_v32 = vor.u32 %v15959_v53, %v11030_v20 }
 0x34f   : > { %v14352_v34 = vld [vmem:[%s17726_s15 + $0x1cd8] sm:$0xf0]  ;;  %v12566_v0 = vld [vmem:[%s17726_s15 + $0xea0] sm:$0xf]  ;;  %v12055_v1 = vor.u32 %v16215_v59, %v12054_v29 }
 0x350   : > { %v16382_v6 = vld [vmem:[%s17726_s15 + $0x101c] sm:$0xf]  ;;  %v14355_v40 = vor.u32 %v16782_v33, %v14352_v34  ;;  %7418 = vmatpush.bf16.msrb.mxu2 %v13843_v37  ;;  %v16343_v3 = vld [vmem:[%s17726_s15 + $0xedc] sm:$0xf0]  ;;  %v7175_v33 = vadd.f32 %v18891_v11, %v7162_v19  ;;  %v11543_v34 = vor.u32 %v16087_v26, %v11542_v58 }
 0x351   : > { %v12752_v10 = vld [vmem:[%s17726_s15 + $0x1058] sm:$0xf0]  ;;  %v11478_v36 = vld [vmem:[%s17726_s15 + $0x620] sm:$0xf]  ;;  %v12567_v37 = vor.u32 %v16343_v3, %v12566_v0 }
 0x352   : > { %v16510_v38 = vld [vmem:[%s17726_s15 + $0x141c] sm:$0xf]  ;;  %v12755_v50 = vor.u32 %v16382_v6, %v12752_v10  ;;  %7431 = vmatpush.bf16.msrb.mxu3 %v14355_v40  ;;  %v10966_v6 = vld [vmem:[%s17726_s15 + $0x220] sm:$0xf] }
 0x353   : > { %v13264_v7 = vld [vmem:[%s17726_s15 + $0x1458] sm:$0xf0]  ;;  %v15943_v10 = vld [vmem:[%s17726_s15 + $0x25c] sm:$0xf0] }
 0x354   : > { %v16638_v13 = vld [vmem:[%s17726_s15 + $0x181c] sm:$0xf]  ;;  %v13267_v54 = vor.u32 %v16510_v38, %v13264_v7  ;;  %7393 = vmatpush.bf16.msrb.mxu0 %v12755_v50  ;;  %v16071_v38 = vld [vmem:[%s17726_s15 + $0x65c] sm:$0xf0]  ;;  %v10967_v11 = vor.u32 %v15943_v10, %v10966_v6  ;;  %v7200_v50 = vpop.f32.mrf.mxu1 }
 0x355   : > { %v13776_v41 = vld [vmem:[%s17726_s15 + $0x1858] sm:$0xf0]  ;;  %v11990_v7 = vld [vmem:[%s17726_s15 + $0xa20] sm:$0xf] }
 0x356   : > { %v16766_v44 = vld [vmem:[%s17726_s15 + $0x1c1c] sm:$0xf]  ;;  %v13779_v55 = vor.u32 %v16638_v13, %v13776_v41  ;;  %7406 = vmatpush.bf16.msrb.mxu1 %v13267_v54  ;;  %v16199_v13 = vld [vmem:[%s17726_s15 + $0xa5c] sm:$0xf0]  ;;  %v7187_v41 = vpop.f32.mrf.mxu0 }
 0x357   : > { %v14288_v46 = vld [vmem:[%s17726_s15 + $0x1c58] sm:$0xf0]  ;;  %7394 = vmatmul.bf16.vlgmr.msrb.gmra.mxu0 %v17910_v42  ;;  %v16327_v40 = vld [vmem:[%s17726_s15 + $0xe5c] sm:$0xf0]  ;;  %v7188_v49 = vadd.f32 %v7187_v41, %v7175_v33 }
 0x358   : > { %v14291_v31 = vor.u32 %v16766_v44, %v14288_v46  ;;  %7419 = vmatpush.bf16.msrb.mxu2 %v13779_v55  ;;  %7438 = vmatpush.bf16.msra.mxu0 %v11159_v60  ;;  %v11479_v44 = vor.u32 %v16071_v38, %v11478_v36  ;;  %v11991_v46 = vor.u32 %v16199_v13, %v11990_v7  ;;  %v11926_v24 = vld [vmem:[%s17726_s15 + $0x9a0] sm:$0xf] }
 0x359   : > { %7407 = vmatmul.bf16.vlgmr.msrb.gmra.mxu1 %v17914_v45  ;;  %v12503_v51 = vor.u32 %v16327_v40, %v12502_v16  ;;  %v16183_v54 = vld [vmem:[%s17726_s15 + $0x9dc] sm:$0xf0]  ;;  %v7201_v57 = vadd.f32 %v7200_v50, %v7188_v49  ;;  %v11415_v60 = vor.u32 %v16055_v52, %v11414_v17 }
 0x35a   : > { %7432 = vmatpush.bf16.msrb.mxu3 %v14291_v31  ;;  %7451 = vmatpush.bf16.msra.mxu1 %v11671_v61  ;;  %v12438_v55 = vld [vmem:[%s17726_s15 + $0xda0] sm:$0xf]  ;;  %v10903_v31 = vor.u32 %v15927_v23, %v10902_v47  ;;  %v11927_v61 = vor.u32 %v16183_v54, %v11926_v24  ;;  %v7228_v23 = vpop.f32.mrf.mxu3 }
 0x35b   : > { %7420 = vmatmul.bf16.vlgmr.msrb.gmra.mxu2 %v17906_v39  ;;  %v16311_v56 = vld [vmem:[%s17726_s15 + $0xddc] sm:$0xf0]  ;;  %v7214_v12 = vadd.f32 %v7213_v2, %v7201_v57 }
 0x35c   : > { %7464 = vmatpush.bf16.msra.mxu2 %v12183_v62  ;;  %7439 = vmatpush.bf16.msra.mxu0 %v11095_v48  ;;  %v10838_v62 = vld [vmem:[%s17726_s15 + $0x120] sm:$0xf]  ;;  %v12439_v4 = vor.u32 %v16311_v56, %v12438_v55  ;;  %v7202_v59 = vpop.f32.mrf.mxu1 }
 0x35d   : > { %7433 = vmatmul.bf16.vlgmr.msrb.gmra.mxu3 %v17912_v43  ;;  %v15911_v63 = vld [vmem:[%s17726_s15 + $0x15c] sm:$0xf0]  ;;  %v7227_v19 = vadd.f32 %v7226_v14, %v7214_v12 }
 0x35e   : > { %7477 = vmatpush.bf16.msra.mxu3 %v12695_v5  ;;  %7452 = vmatpush.bf16.msra.mxu1 %v11607_v30  ;;  %v11350_v35 = vld [vmem:[%s17726_s15 + $0x520] sm:$0xf]  ;;  %v423_v30 = vld [vmem:[#allocation2 + $0x68] sm:$0xff]  ;;  %v7189_v20 = vpop.f32.mrf.mxu0 }
 0x35f   : > { %v16039_v5 = vld [vmem:[%s17726_s15 + $0x55c] sm:$0xf0]  ;;  %v8275_v3 = vadd.f32 %v7227_v19, %v423_v30 }
 0x360   : > { %7465 = vmatpush.bf16.msra.mxu2 %v12119_v18  ;;  %7440 = vmatpush.bf16.msra.mxu0 %v11031_v32  ;;  %v11862_v8 = vld [vmem:[%s17726_s15 + $0x920] sm:$0xf]  ;;  %v10839_v18 = vor.u32 %v15911_v63, %v10838_v62  ;;  %v11351_v53 = vor.u32 %v16039_v5, %v11350_v35 }
 0x361   : > { %v16167_v9 = vld [vmem:[%s17726_s15 + $0x95c] sm:$0xf0]  ;;  %8291 = vst [vmem:[#allocation2 + $0x68] sm:$0xff] %v8275_v3 }
 0x362   : > { %7478 = vmatpush.bf16.msra.mxu3 %v12631_v25  ;;  %7453 = vmatpush.bf16.msra.mxu1 %v11543_v34  ;;  %v12374_v15 = vld [vmem:[%s17726_s15 + $0xd20] sm:$0xf]  ;;  %v11863_v58 = vor.u32 %v16167_v9, %v11862_v8 }
 0x363   : > { %v16295_v48 = vld [vmem:[%s17726_s15 + $0xd5c] sm:$0xf0] }
 0x364   : > { %7466 = vmatpush.bf16.msra.mxu2 %v12055_v1  ;;  %7441 = vmatpush.bf16.msra.mxu0 %v10967_v11  ;;  %v10774_v25 = vld [vmem:[%s17726_s15 + $0xa0] sm:$0xf]  ;;  %v12375_v0 = vor.u32 %v16295_v48, %v12374_v15  ;;  %v7215_v11 = vpop.f32.mrf.mxu2  ;;  %v19024_v23 = vpop.f32.mrf.mxu1 }
 0x365   : > { %v15895_v26 = vld [vmem:[%s17726_s15 + $0xdc] sm:$0xf0] }
 0x366   : > { %7479 = vmatpush.bf16.msra.mxu3 %v12567_v37  ;;  %7454 = vmatpush.bf16.msra.mxu1 %v11479_v44  ;;  %v11286_v29 = vld [vmem:[%s17726_s15 + $0x4a0] sm:$0xf]  ;;  %v10775_v10 = vor.u32 %v15895_v26, %v10774_v25 }
 0x367   : > { %v16023_v32 = vld [vmem:[%s17726_s15 + $0x4dc] sm:$0xf0] }
 0x368   : > { %7467 = vmatpush.bf16.msra.mxu2 %v11991_v46  ;;  %7442 = vmatpush.bf16.msra.mxu0 %v10903_v31  ;;  %v11798_v33 = vld [vmem:[%s17726_s15 + $0x8a0] sm:$0xf]  ;;  %v11287_v38 = vor.u32 %v16023_v32, %v11286_v29 }
 0x369   : > { %v16151_v34 = vld [vmem:[%s17726_s15 + $0x8dc] sm:$0xf0] }
 0x36a   : > { %7480 = vmatpush.bf16.msra.mxu3 %v12503_v51  ;;  %7455 = vmatpush.bf16.msra.mxu1 %v11415_v60  ;;  %v12310_v1 = vld [vmem:[%s17726_s15 + $0xca0] sm:$0xf]  ;;  %v11799_v7 = vor.u32 %v16151_v34, %v11798_v33 }
 0x36b   : > { %v16279_v6 = vld [vmem:[%s17726_s15 + $0xcdc] sm:$0xf0] }
 0x36c   : > { %7468 = vmatpush.bf16.msra.mxu2 %v11927_v61  ;;  %7443 = vmatpush.bf16.msra.mxu0 %v10839_v18  ;;  %v10710_v36 = vld [vmem:[%s17726_s15 + $0x20] sm:$0xf]  ;;  %v12311_v41 = vor.u32 %v16279_v6, %v12310_v1 }
 0x36d   : > { %v15879_v37 = vld [vmem:[%s17726_s15 + $0x5c] sm:$0xf0] }
 0x36e   : > { %7481 = vmatpush.bf16.msra.mxu3 %v12439_v4  ;;  %7456 = vmatpush.bf16.msra.mxu1 %v11351_v53  ;;  %v11222_v13 = vld [vmem:[%s17726_s15 + $0x420] sm:$0xf]  ;;  %v10711_v51 = vor.u32 %v15879_v37, %v10710_v36 }
 0x36f   : > { %v16007_v16 = vld [vmem:[%s17726_s15 + $0x45c] sm:$0xf0] }
 0x370   : > { %7469 = vmatpush.bf16.msra.mxu2 %v11863_v58  ;;  %v11734_v40 = vld [vmem:[%s17726_s15 + $0x820] sm:$0xf]  ;;  %7444 = vmatpush.bf16.msra.mxu0 %v10775_v10  ;;  %v11223_v55 = vor.u32 %v16007_v16, %v11222_v13 }
 0x371   : > { %v16135_v44 = vld [vmem:[%s17726_s15 + $0x85c] sm:$0xf0] }
 0x372   : > { %7482 = vmatpush.bf16.msra.mxu3 %v12375_v0  ;;  %v12246_v46 = vld [vmem:[%s17726_s15 + $0xc20] sm:$0xf]  ;;  %7457 = vmatpush.bf16.msra.mxu1 %v11287_v38  ;;  %v11735_v56 = vor.u32 %v16135_v44, %v11734_v40  ;;  %v19019_v40 = vpop.f32.mrf.mxu0 }
 0x373   : > { %v16263_v47 = vld [vmem:[%s17726_s15 + $0xc5c] sm:$0xf0] }
 0x374   : > { %v13206_v17 = vld [vmem:[%s17726_s15 + $0x13a0] sm:$0xf]  ;;  %7470 = vmatpush.bf16.msra.mxu2 %v11799_v7  ;;  %v12247_v60 = vor.u32 %v16263_v47, %v12246_v46  ;;  %7445 = vmatpush.bf16.msra.mxu0 %v10711_v51 }
 0x375   : > { %v16503_v49 = vld [vmem:[%s17726_s15 + $0x13dc] sm:$0xf0] }
 0x376   : > { %v13718_v50 = vld [vmem:[%s17726_s15 + $0x17a0] sm:$0xf]  ;;  %7483 = vmatpush.bf16.msra.mxu3 %v12311_v41  ;;  %v13207_v61 = vor.u32 %v16503_v49, %v13206_v17  ;;  %7458 = vmatpush.bf16.msra.mxu1 %v11223_v55 }
 0x377   : > { %v16631_v52 = vld [vmem:[%s17726_s15 + $0x17dc] sm:$0xf0]  ;;  %7446 = vmatmul.bf16.vlgmr.msra.gmra.mxu0 %v17853_v27 }
 0x378   : > { %v14230_v24 = vld [vmem:[%s17726_s15 + $0x1ba0] sm:$0xf]  ;;  %v13719_v62 = vor.u32 %v16631_v52, %v13718_v50  ;;  %7471 = vmatpush.bf16.msra.mxu2 %v11735_v56  ;;  %7490 = vmatpush.bf16.msrb.mxu0 %v13207_v61  ;;  %v19034_v61 = vpop.f32.mrf.mxu2 }
 0x379   : > { %v16759_v54 = vld [vmem:[%s17726_s15 + $0x1bdc] sm:$0xf0]  ;;  %7459 = vmatmul.bf16.vlgmr.msra.gmra.mxu1 %v17855_v28 }
 0x37a   : > { %v14742_v57 = vld [vmem:[%s17726_s15 + $0x1fa0] sm:$0xf]  ;;  %v14231_v63 = vor.u32 %v16759_v54, %v14230_v24  ;;  %7484 = vmatpush.bf16.msra.mxu3 %v12247_v60  ;;  %7503 = vmatpush.bf16.msrb.mxu1 %v13719_v62 }
 0x37b   : > { %v16887_v31 = vld [vmem:[%s17726_s15 + $0x1fdc] sm:$0xf0]  ;;  %7472 = vmatmul.bf16.vlgmr.msra.gmra.mxu2 %v17846_v21 }
 0x37c   : > { %v13142_v35 = vld [vmem:[%s17726_s15 + $0x1320] sm:$0xf]  ;;  %v14743_v5 = vor.u32 %v16887_v31, %v14742_v57  ;;  %7516 = vmatpush.bf16.msrb.mxu2 %v14231_v63 }
 0x37d   : > { %v16487_v2 = vld [vmem:[%s17726_s15 + $0x135c] sm:$0xf0]  ;;  %7485 = vmatmul.bf16.vlgmr.msra.gmra.mxu3 %v17848_v22 }
 0x37e   : > { %v13654_v4 = vld [vmem:[%s17726_s15 + $0x1720] sm:$0xf]  ;;  %v13143_v48 = vor.u32 %v16487_v2, %v13142_v35  ;;  %7529 = vmatpush.bf16.msrb.mxu3 %v14743_v5 }
 0x37f   : > { %v16615_v8 = vld [vmem:[%s17726_s15 + $0x175c] sm:$0xf0] }
 0x380   : > { %v14166_v9 = vld [vmem:[%s17726_s15 + $0x1b20] sm:$0xf]  ;;  %v13655_v30 = vor.u32 %v16615_v8, %v13654_v4  ;;  %7491 = vmatpush.bf16.msrb.mxu0 %v13143_v48  ;;  %v19039_v4 = vpop.f32.mrf.mxu3 }
 0x381   : > { %v16743_v12 = vld [vmem:[%s17726_s15 + $0x1b5c] sm:$0xf0] }
 0x382   : > { %v14678_v14 = vld [vmem:[%s17726_s15 + $0x1f20] sm:$0xf]  ;;  %v14167_v18 = vor.u32 %v16743_v12, %v14166_v9  ;;  %7504 = vmatpush.bf16.msrb.mxu1 %v13655_v30  ;;  %v7241_v12 = vpop.f32.mrf.mxu0 }
 0x383   : > { %v16871_v15 = vld [vmem:[%s17726_s15 + $0x1f5c] sm:$0xf0] }
 0x384   : > { %v13078_v19 = vld [vmem:[%s17726_s15 + $0x12a0] sm:$0xf]  ;;  %v14679_v58 = vor.u32 %v16871_v15, %v14678_v14  ;;  %7517 = vmatpush.bf16.msrb.mxu2 %v14167_v18 }
 0x385   : > { %v16471_v20 = vld [vmem:[%s17726_s15 + $0x12dc] sm:$0xf0] }
 0x386   : > { %v13590_v53 = vld [vmem:[%s17726_s15 + $0x16a0] sm:$0xf]  ;;  %v13079_v3 = vor.u32 %v16471_v20, %v13078_v19  ;;  %7530 = vmatpush.bf16.msrb.mxu3 %v14679_v58  ;;  %v7254_v19 = vpop.f32.mrf.mxu1 }
 0x387   : > { %v16599_v25 = vld [vmem:[%s17726_s15 + $0x16dc] sm:$0xf0]  ;;  %v11544_v19 = vld [vmem:[%s17726_s15 + $0x6e0] sm:$0xf0] }
 0x388   : > { %v14102_v26 = vld [vmem:[%s17726_s15 + $0x1aa0] sm:$0xf]  ;;  %v13591_v32 = vor.u32 %v16599_v25, %v13590_v53  ;;  %7492 = vmatpush.bf16.msrb.mxu0 %v13079_v3 }
 0x389   : > { %v16727_v29 = vld [vmem:[%s17726_s15 + $0x1adc] sm:$0xf0] }
 0x38a   : > { %v14614_v59 = vld [vmem:[%s17726_s15 + $0x1ea0] sm:$0xf]  ;;  %v14103_v33 = vor.u32 %v16727_v29, %v14102_v26  ;;  %7505 = vmatpush.bf16.msrb.mxu1 %v13591_v32 }
 0x38b   : > { %v16855_v0 = vld [vmem:[%s17726_s15 + $0x1edc] sm:$0xf0] }
 0x38c   : > { %v13014_v34 = vld [vmem:[%s17726_s15 + $0x1220] sm:$0xf]  ;;  %v14615_v10 = vor.u32 %v16855_v0, %v14614_v59  ;;  %7518 = vmatpush.bf16.msrb.mxu2 %v14103_v33 }
 0x38d   : > { %v16455_v1 = vld [vmem:[%s17726_s15 + $0x125c] sm:$0xf0] }
 0x38e   : > { %v13526_v6 = vld [vmem:[%s17726_s15 + $0x1620] sm:$0xf]  ;;  %v13015_v16 = vor.u32 %v16455_v1, %v13014_v34  ;;  %7531 = vmatpush.bf16.msrb.mxu3 %v14615_v10  ;;  %v7267_v10 = vpop.f32.mrf.mxu2 }
 0x38f   : > { %v16583_v36 = vld [vmem:[%s17726_s15 + $0x165c] sm:$0xf0]  ;;  %v16319_v10 = vld [vmem:[%s17726_s15 + $0xe24] sm:$0xf] }
 0x390   : > { %v14038_v37 = vld [vmem:[%s17726_s15 + $0x1a20] sm:$0xf]  ;;  %v13527_v11 = vor.u32 %v16583_v36, %v13526_v6  ;;  %7493 = vmatpush.bf16.msrb.mxu0 %v13015_v16  ;;  %v15983_v16 = vld [vmem:[%s17726_s15 + $0x3a4] sm:$0xf] }
 0x391   : > { %v16711_v38 = vld [vmem:[%s17726_s15 + $0x1a5c] sm:$0xf0] }
 0x392   : > { %v14550_v7 = vld [vmem:[%s17726_s15 + $0x1e20] sm:$0xf]  ;;  %v14039_v41 = vor.u32 %v16711_v38, %v14038_v37  ;;  %7506 = vmatpush.bf16.msrb.mxu1 %v13527_v11  ;;  %v11160_v11 = vld [vmem:[%s17726_s15 + $0x3e0] sm:$0xf0] }
 0x393   : > { %v16839_v13 = vld [vmem:[%s17726_s15 + $0x1e5c] sm:$0xf0] }
 0x394   : > { %v12950_v44 = vld [vmem:[%s17726_s15 + $0x11a0] sm:$0xf]  ;;  %v14551_v17 = vor.u32 %v16839_v13, %v14550_v7  ;;  %7519 = vmatpush.bf16.msrb.mxu2 %v14039_v41  ;;  %v7280_v13 = vpop.f32.mrf.mxu3  ;;  %v16111_v41 = vld [vmem:[%s17726_s15 + $0x7a4] sm:$0xf] }
 0x395   : > { %v16439_v46 = vld [vmem:[%s17726_s15 + $0x11dc] sm:$0xf0]  ;;  %v15919_v13 = vld [vmem:[%s17726_s15 + $0x1a4] sm:$0xf] }
 0x396   : > { %v13462_v47 = vld [vmem:[%s17726_s15 + $0x15a0] sm:$0xf]  ;;  %v12951_v54 = vor.u32 %v16439_v46, %v12950_v44  ;;  %7532 = vmatpush.bf16.msrb.mxu3 %v14551_v17  ;;  %v11672_v46 = vld [vmem:[%s17726_s15 + $0x7e0] sm:$0xf0] }
 0x397   : > { %v16567_v49 = vld [vmem:[%s17726_s15 + $0x15dc] sm:$0xf0]  ;;  %v12184_v17 = vld [vmem:[%s17726_s15 + $0xbe0] sm:$0xf0] }
 0x398   : > { %v13974_v50 = vld [vmem:[%s17726_s15 + $0x19a0] sm:$0xf]  ;;  %v13463_v55 = vor.u32 %v16567_v49, %v13462_v47  ;;  %7494 = vmatpush.bf16.msrb.mxu0 %v12951_v54  ;;  %v16239_v47 = vld [vmem:[%s17726_s15 + $0xba4] sm:$0xf]  ;;  %v11163_v54 = vor.u32 %v15983_v16, %v11160_v11 }
 0x399   : > { %v16695_v51 = vld [vmem:[%s17726_s15 + $0x19dc] sm:$0xf0]  ;;  %v10904_v16 = vld [vmem:[%s17726_s15 + $0x1e0] sm:$0xf0] }
 0x39a   : > { %v14486_v52 = vld [vmem:[%s17726_s15 + $0x1da0] sm:$0xf]  ;;  %v13975_v56 = vor.u32 %v16695_v51, %v13974_v50  ;;  %7507 = vmatpush.bf16.msrb.mxu1 %v13463_v55  ;;  %v16367_v51 = vld [vmem:[%s17726_s15 + $0xfa4] sm:$0xf]  ;;  %v11675_v55 = vor.u32 %v16111_v41, %v11672_v46 }
 0x39b   : > { %v16823_v24 = vld [vmem:[%s17726_s15 + $0x1ddc] sm:$0xf0]  ;;  %v16047_v11 = vld [vmem:[%s17726_s15 + $0x5a4] sm:$0xf] }
 0x39c   : > { %v12886_v57 = vld [vmem:[%s17726_s15 + $0x1120] sm:$0xf]  ;;  %v14487_v62 = vor.u32 %v16823_v24, %v14486_v52  ;;  %7520 = vmatpush.bf16.msrb.mxu2 %v13975_v56  ;;  %v12696_v52 = vld [vmem:[%s17726_s15 + $0xfe0] sm:$0xf0]  ;;  %v12187_v56 = vor.u32 %v16239_v47, %v12184_v17 }
 0x39d   : > { %v16423_v31 = vld [vmem:[%s17726_s15 + $0x115c] sm:$0xf0]  ;;  %v11416_v47 = vld [vmem:[%s17726_s15 + $0x5e0] sm:$0xf0] }
 0x39e   : > { %v13398_v60 = vld [vmem:[%s17726_s15 + $0x1520] sm:$0xf]  ;;  %v12887_v9 = vor.u32 %v16423_v31, %v12886_v57  ;;  %7533 = vmatpush.bf16.msrb.mxu3 %v14487_v62  ;;  %v7253_v57 = vadd.f32 %v19024_v23, %v19019_v40  ;;  %v15967_v31 = vld [vmem:[%s17726_s15 + $0x324] sm:$0xf] }
 0x39f   : > { %v16551_v63 = vld [vmem:[%s17726_s15 + $0x155c] sm:$0xf0]  ;;  %v16095_v62 = vld [vmem:[%s17726_s15 + $0x724] sm:$0xf] }
 0x3a0   : > { %v13910_v35 = vld [vmem:[%s17726_s15 + $0x1920] sm:$0xf]  ;;  %v13399_v14 = vor.u32 %v16551_v63, %v13398_v60  ;;  %7495 = vmatpush.bf16.msrb.mxu0 %v12887_v9  ;;  %v11096_v60 = vld [vmem:[%s17726_s15 + $0x360] sm:$0xf0]  ;;  %v12699_v63 = vor.u32 %v16367_v51, %v12696_v52 }
 0x3a1   : > { %v16679_v2 = vld [vmem:[%s17726_s15 + $0x195c] sm:$0xf0]  ;;  %v12632_v9 = vld [vmem:[%s17726_s15 + $0xf60] sm:$0xf0]  ;;  %v11099_v40 = vor.u32 %v15967_v31, %v11096_v60  ;;  %v7317_v60 = vpop.f32.mrf.mxu2 }
 0x3a2   : > { %v14422_v5 = vld [vmem:[%s17726_s15 + $0x1d20] sm:$0xf]  ;;  %v13911_v15 = vor.u32 %v16679_v2, %v13910_v35  ;;  %7508 = vmatpush.bf16.msrb.mxu1 %v13399_v14  ;;  %v11608_v35 = vld [vmem:[%s17726_s15 + $0x760] sm:$0xf0]  ;;  %v7266_v14 = vadd.f32 %v19034_v61, %v7253_v57 }
 0x3a3   : > { %v16807_v8 = vld [vmem:[%s17726_s15 + $0x1d5c] sm:$0xf0]  ;;  %v16223_v2 = vld [vmem:[%s17726_s15 + $0xb24] sm:$0xf]  ;;  %v11611_v23 = vor.u32 %v16095_v62, %v11608_v35 }
 0x3a4   : > { %v12822_v48 = vld [vmem:[%s17726_s15 + $0x10a0] sm:$0xf]  ;;  %v14423_v20 = vor.u32 %v16807_v8, %v14422_v5  ;;  %7521 = vmatpush.bf16.msrb.mxu2 %v13911_v15  ;;  %v12120_v5 = vld [vmem:[%s17726_s15 + $0xb60] sm:$0xf0] }
 0x3a5   : > { %v16407_v30 = vld [vmem:[%s17726_s15 + $0x10dc] sm:$0xf0]  ;;  %v16351_v8 = vld [vmem:[%s17726_s15 + $0xf24] sm:$0xf]  ;;  %v12123_v12 = vor.u32 %v16223_v2, %v12120_v5 }
 0x3a6   : > { %v13334_v18 = vld [vmem:[%s17726_s15 + $0x14a0] sm:$0xf]  ;;  %v12823_v59 = vor.u32 %v16407_v30, %v12822_v48  ;;  %7534 = vmatpush.bf16.msrb.mxu3 %v14423_v20  ;;  %v15951_v15 = vld [vmem:[%s17726_s15 + $0x2a4] sm:$0xf] }
 0x3a7   : > { %v16535_v53 = vld [vmem:[%s17726_s15 + $0x14dc] sm:$0xf0]  ;;  %v11032_v48 = vld [vmem:[%s17726_s15 + $0x2e0] sm:$0xf0] }
 0x3a8   : > { %v13846_v58 = vld [vmem:[%s17726_s15 + $0x18a0] sm:$0xf]  ;;  %v13335_v32 = vor.u32 %v16535_v53, %v13334_v18  ;;  %7496 = vmatpush.bf16.msrb.mxu0 %v12823_v59  ;;  %v16079_v30 = vld [vmem:[%s17726_s15 + $0x6a4] sm:$0xf]  ;;  %v12635_v18 = vor.u32 %v16351_v8, %v12632_v9  ;;  %v7330_v8 = vpop.f32.mrf.mxu3 }
 0x3a9   : > { %v16663_v25 = vld [vmem:[%s17726_s15 + $0x18dc] sm:$0xf0]  ;;  %v16207_v20 = vld [vmem:[%s17726_s15 + $0xaa4] sm:$0xf] }
 0x3aa   : > { %v14358_v26 = vld [vmem:[%s17726_s15 + $0x1ca0] sm:$0xf]  ;;  %v13847_v33 = vor.u32 %v16663_v25, %v13846_v58  ;;  %7509 = vmatpush.bf16.msrb.mxu1 %v13335_v32  ;;  %v12056_v53 = vld [vmem:[%s17726_s15 + $0xae0] sm:$0xf0]  ;;  %v11035_v25 = vor.u32 %v15951_v15, %v11032_v48 }
 0x3ab   : > { %v16791_v29 = vld [vmem:[%s17726_s15 + $0x1cdc] sm:$0xf0]  ;;  %v16335_v58 = vld [vmem:[%s17726_s15 + $0xea4] sm:$0xf]  ;;  %v12059_v59 = vor.u32 %v16207_v20, %v12056_v53 }
 0x3ac   : > { %v12758_v0 = vld [vmem:[%s17726_s15 + $0x1020] sm:$0xf]  ;;  %v14359_v36 = vor.u32 %v16791_v29, %v14358_v26  ;;  %7522 = vmatpush.bf16.msrb.mxu2 %v13847_v33  ;;  %v12568_v61 = vld [vmem:[%s17726_s15 + $0xee0] sm:$0xf0]  ;;  %v7279_v26 = vadd.f32 %v19039_v4, %v7266_v14  ;;  %v11547_v29 = vor.u32 %v16079_v30, %v11544_v19 }
 0x3ad   : > { %v16391_v3 = vld [vmem:[%s17726_s15 + $0x105c] sm:$0xf0]  ;;  %v16063_v32 = vld [vmem:[%s17726_s15 + $0x624] sm:$0xf]  ;;  %v12571_v33 = vor.u32 %v16335_v58, %v12568_v61 }
 0x3ae   : > { %v13270_v34 = vld [vmem:[%s17726_s15 + $0x1420] sm:$0xf]  ;;  %v12759_v44 = vor.u32 %v16391_v3, %v12758_v0  ;;  %7535 = vmatpush.bf16.msrb.mxu3 %v14359_v36  ;;  %v15935_v0 = vld [vmem:[%s17726_s15 + $0x224] sm:$0xf] }
 0x3af   : > { %v16519_v1 = vld [vmem:[%s17726_s15 + $0x145c] sm:$0xf0]  ;;  %v10968_v3 = vld [vmem:[%s17726_s15 + $0x260] sm:$0xf0] }
 0x3b0   : > { %v13782_v6 = vld [vmem:[%s17726_s15 + $0x1820] sm:$0xf]  ;;  %v13271_v49 = vor.u32 %v16519_v1, %v13270_v34  ;;  %7497 = vmatpush.bf16.msrb.mxu0 %v12759_v44  ;;  %v11480_v34 = vld [vmem:[%s17726_s15 + $0x660] sm:$0xf0]  ;;  %v10971_v4 = vor.u32 %v15935_v0, %v10968_v3  ;;  %v7304_v44 = vpop.f32.mrf.mxu1 }
 0x3b1   : > { %v16647_v37 = vld [vmem:[%s17726_s15 + $0x185c] sm:$0xf0]  ;;  %v16191_v1 = vld [vmem:[%s17726_s15 + $0xa24] sm:$0xf] }
 0x3b2   : > { %v14294_v38 = vld [vmem:[%s17726_s15 + $0x1c20] sm:$0xf]  ;;  %v13783_v50 = vor.u32 %v16647_v37, %v13782_v6  ;;  %7510 = vmatpush.bf16.msrb.mxu1 %v13271_v49  ;;  %v11992_v6 = vld [vmem:[%s17726_s15 + $0xa60] sm:$0xf0]  ;;  %v7291_v37 = vpop.f32.mrf.mxu0 }
 0x3b3   : > { %v16775_v7 = vld [vmem:[%s17726_s15 + $0x1c5c] sm:$0xf0]  ;;  %7498 = vmatmul.bf16.vlgmr.msrb.gmra.mxu0 %v17910_v42  ;;  %v12504_v36 = vld [vmem:[%s17726_s15 + $0xe60] sm:$0xf0]  ;;  %v7292_v41 = vadd.f32 %v7291_v37, %v7279_v26 }
 0x3b4   : > { %v14295_v24 = vor.u32 %v16775_v7, %v14294_v38  ;;  %7523 = vmatpush.bf16.msrb.mxu2 %v13783_v50  ;;  %7542 = vmatpush.bf16.msra.mxu0 %v11163_v54  ;;  %v11483_v38 = vor.u32 %v16063_v32, %v11480_v34  ;;  %v11995_v7 = vor.u32 %v16191_v1, %v11992_v6  ;;  %v16175_v17 = vld [vmem:[%s17726_s15 + $0x9a4] sm:$0xf] }
 0x3b5   : > { %7511 = vmatmul.bf16.vlgmr.msrb.gmra.mxu1 %v17914_v45  ;;  %v12507_v46 = vor.u32 %v16319_v10, %v12504_v36  ;;  %v11928_v49 = vld [vmem:[%s17726_s15 + $0x9e0] sm:$0xf0]  ;;  %v7305_v52 = vadd.f32 %v7304_v44, %v7292_v41  ;;  %v11419_v54 = vor.u32 %v16047_v11, %v11416_v47 }
 0x3b6   : > { %7536 = vmatpush.bf16.msrb.mxu3 %v14295_v24  ;;  %7555 = vmatpush.bf16.msra.mxu1 %v11675_v55  ;;  %v16303_v50 = vld [vmem:[%s17726_s15 + $0xda4] sm:$0xf]  ;;  %v10907_v24 = vor.u32 %v15919_v13, %v10904_v16  ;;  %v11931_v55 = vor.u32 %v16175_v17, %v11928_v49  ;;  %v7332_v16 = vpop.f32.mrf.mxu3 }
 0x3b7   : > { %7524 = vmatmul.bf16.vlgmr.msrb.gmra.mxu2 %v17906_v39  ;;  %v12440_v51 = vld [vmem:[%s17726_s15 + $0xde0] sm:$0xf0]  ;;  %v7318_v5 = vadd.f32 %v7317_v60, %v7305_v52 }
 0x3b8   : > { %7568 = vmatpush.bf16.msra.mxu2 %v12187_v56  ;;  %7543 = vmatpush.bf16.msra.mxu0 %v11099_v40  ;;  %v15903_v56 = vld [vmem:[%s17726_s15 + $0x124] sm:$0xf]  ;;  %v12443_v62 = vor.u32 %v16303_v50, %v12440_v51  ;;  %v7306_v53 = vpop.f32.mrf.mxu1 }
 0x3b9   : > { %7537 = vmatmul.bf16.vlgmr.msrb.gmra.mxu3 %v17912_v43  ;;  %v10840_v57 = vld [vmem:[%s17726_s15 + $0x160] sm:$0xf0]  ;;  %v7331_v14 = vadd.f32 %v7330_v8, %v7318_v5 }
 0x3ba   : > { %7581 = vmatpush.bf16.msra.mxu3 %v12699_v63  ;;  %7556 = vmatpush.bf16.msra.mxu1 %v11611_v23  ;;  %v16031_v31 = vld [vmem:[%s17726_s15 + $0x524] sm:$0xf]  ;;  %v424_v23 = vld [vmem:[#allocation2 + $0x8] sm:$0xff]  ;;  %v7293_v15 = vpop.f32.mrf.mxu0 }
 0x3bb   : > { %v11352_v63 = vld [vmem:[%s17726_s15 + $0x560] sm:$0xf0]  ;;  %v8276_v61 = vadd.f32 %v7331_v14, %v424_v23 }
 0x3bc   : > { %7569 = vmatpush.bf16.msra.mxu2 %v12123_v12  ;;  %7544 = vmatpush.bf16.msra.mxu0 %v11035_v25  ;;  %v16159_v35 = vld [vmem:[%s17726_s15 + $0x924] sm:$0xf]  ;;  %v10843_v12 = vor.u32 %v15903_v56, %v10840_v57  ;;  %v11355_v48 = vor.u32 %v16031_v31, %v11352_v63 }
 0x3bd   : > { %v11864_v2 = vld [vmem:[%s17726_s15 + $0x960] sm:$0xf0]  ;;  %8292 = vst [vmem:[#allocation2 + $0x8] sm:$0xff] %v8276_v61 }
 0x3be   : > { %7582 = vmatpush.bf16.msra.mxu3 %v12635_v18  ;;  %7557 = vmatpush.bf16.msra.mxu1 %v11547_v29  ;;  %v16287_v9 = vld [vmem:[%s17726_s15 + $0xd24] sm:$0xf]  ;;  %v11867_v30 = vor.u32 %v16159_v35, %v11864_v2 }
 0x3bf   : > { %v12376_v40 = vld [vmem:[%s17726_s15 + $0xd60] sm:$0xf0] }
 0x3c0   : > { %7570 = vmatpush.bf16.msra.mxu2 %v12059_v59  ;;  %7545 = vmatpush.bf16.msra.mxu0 %v10971_v4  ;;  %v15887_v18 = vld [vmem:[%s17726_s15 + $0xa4] sm:$0xf]  ;;  %v12379_v58 = vor.u32 %v16287_v9, %v12376_v40  ;;  %v7319_v4 = vpop.f32.mrf.mxu2  ;;  %v19172_v16 = vpop.f32.mrf.mxu1 }
 0x3c1   : > { %v10776_v19 = vld [vmem:[%s17726_s15 + $0xe0] sm:$0xf0] }
 0x3c2   : > { %7583 = vmatpush.bf16.msra.mxu3 %v12571_v33  ;;  %7558 = vmatpush.bf16.msra.mxu1 %v11483_v38  ;;  %v16015_v20 = vld [vmem:[%s17726_s15 + $0x4a4] sm:$0xf]  ;;  %v10779_v3 = vor.u32 %v15887_v18, %v10776_v19 }
 0x3c3   : > { %v11288_v25 = vld [vmem:[%s17726_s15 + $0x4e0] sm:$0xf0] }
 0x3c4   : > { %7571 = vmatpush.bf16.msra.mxu2 %v11995_v7  ;;  %7546 = vmatpush.bf16.msra.mxu0 %v10907_v24  ;;  %v16143_v26 = vld [vmem:[%s17726_s15 + $0x8a4] sm:$0xf]  ;;  %v11291_v34 = vor.u32 %v16015_v20, %v11288_v25 }
 0x3c5   : > { %v11800_v29 = vld [vmem:[%s17726_s15 + $0x8e0] sm:$0xf0] }
 0x3c6   : > { %7584 = vmatpush.bf16.msra.mxu3 %v12507_v46  ;;  %7559 = vmatpush.bf16.msra.mxu1 %v11419_v54  ;;  %v16271_v59 = vld [vmem:[%s17726_s15 + $0xca4] sm:$0xf]  ;;  %v11803_v1 = vor.u32 %v16143_v26, %v11800_v29 }
 0x3c7   : > { %v12312_v0 = vld [vmem:[%s17726_s15 + $0xce0] sm:$0xf0] }
 0x3c8   : > { %7572 = vmatpush.bf16.msra.mxu2 %v11931_v55  ;;  %7547 = vmatpush.bf16.msra.mxu0 %v10843_v12  ;;  %v15871_v32 = vld [vmem:[%s17726_s15 + $0x24] sm:$0xf]  ;;  %v12315_v37 = vor.u32 %v16271_v59, %v12312_v0 }
 0x3c9   : > { %v10712_v33 = vld [vmem:[%s17726_s15 + $0x60] sm:$0xf0] }
 0x3ca   : > { %7585 = vmatpush.bf16.msra.mxu3 %v12443_v62  ;;  %7560 = vmatpush.bf16.msra.mxu1 %v11355_v48  ;;  %v15999_v6 = vld [vmem:[%s17726_s15 + $0x424] sm:$0xf]  ;;  %v10715_v46 = vor.u32 %v15871_v32, %v10712_v33 }
 0x3cb   : > { %v11224_v10 = vld [vmem:[%s17726_s15 + $0x460] sm:$0xf0] }
 0x3cc   : > { %7573 = vmatpush.bf16.msra.mxu2 %v11867_v30  ;;  %v16127_v36 = vld [vmem:[%s17726_s15 + $0x824] sm:$0xf]  ;;  %7548 = vmatpush.bf16.msra.mxu0 %v10779_v3  ;;  %v11227_v50 = vor.u32 %v15999_v6, %v11224_v10 }
 0x3cd   : > { %v11736_v38 = vld [vmem:[%s17726_s15 + $0x860] sm:$0xf0] }
 0x3ce   : > { %7586 = vmatpush.bf16.msra.mxu3 %v12379_v58  ;;  %v16255_v7 = vld [vmem:[%s17726_s15 + $0xc24] sm:$0xf]  ;;  %7561 = vmatpush.bf16.msra.mxu1 %v11291_v34  ;;  %v11739_v51 = vor.u32 %v16127_v36, %v11736_v38  ;;  %v19167_v36 = vpop.f32.mrf.mxu0 }
 0x3cf   : > { %v12248_v13 = vld [vmem:[%s17726_s15 + $0xc60] sm:$0xf0] }
 0x3d0   : > { %v16495_v11 = vld [vmem:[%s17726_s15 + $0x13a4] sm:$0xf]  ;;  %7574 = vmatpush.bf16.msra.mxu2 %v11803_v1  ;;  %v12251_v54 = vor.u32 %v16255_v7, %v12248_v13  ;;  %7549 = vmatpush.bf16.msra.mxu0 %v10715_v46 }
 0x3d1   : > { %v13208_v41 = vld [vmem:[%s17726_s15 + $0x13e0] sm:$0xf0] }
 0x3d2   : > { %v16623_v44 = vld [vmem:[%s17726_s15 + $0x17a4] sm:$0xf]  ;;  %7587 = vmatpush.bf16.msra.mxu3 %v12315_v37  ;;  %v13211_v55 = vor.u32 %v16495_v11, %v13208_v41  ;;  %7562 = vmatpush.bf16.msra.mxu1 %v11227_v50 }
 0x3d3   : > { %v13720_v47 = vld [vmem:[%s17726_s15 + $0x17e0] sm:$0xf0]  ;;  %7550 = vmatmul.bf16.vlgmr.msra.gmra.mxu0 %v17853_v27 }
 0x3d4   : > { %v16751_v17 = vld [vmem:[%s17726_s15 + $0x1ba4] sm:$0xf]  ;;  %v13723_v56 = vor.u32 %v16623_v44, %v13720_v47  ;;  %7575 = vmatpush.bf16.msra.mxu2 %v11739_v51  ;;  %7594 = vmatpush.bf16.msrb.mxu0 %v13211_v55  ;;  %v19182_v55 = vpop.f32.mrf.mxu2 }
 0x3d5   : > { %v14232_v49 = vld [vmem:[%s17726_s15 + $0x1be0] sm:$0xf0]  ;;  %7563 = vmatmul.bf16.vlgmr.msra.gmra.mxu1 %v17855_v28 }
 0x3d6   : > { %v16879_v52 = vld [vmem:[%s17726_s15 + $0x1fa4] sm:$0xf]  ;;  %v14235_v57 = vor.u32 %v16751_v17, %v14232_v49  ;;  %7588 = vmatpush.bf16.msra.mxu3 %v12251_v54  ;;  %7607 = vmatpush.bf16.msrb.mxu1 %v13723_v56 }
 0x3d7   : > { %v14744_v24 = vld [vmem:[%s17726_s15 + $0x1fe0] sm:$0xf0]  ;;  %7576 = vmatmul.bf16.vlgmr.msra.gmra.mxu2 %v17846_v21 }
 0x3d8   : > { %v16479_v31 = vld [vmem:[%s17726_s15 + $0x1324] sm:$0xf]  ;;  %v14747_v63 = vor.u32 %v16879_v52, %v14744_v24  ;;  %7620 = vmatpush.bf16.msrb.mxu2 %v14235_v57 }
 0x3d9   : > { %v13144_v60 = vld [vmem:[%s17726_s15 + $0x1360] sm:$0xf0]  ;;  %7589 = vmatmul.bf16.vlgmr.msra.gmra.mxu3 %v17848_v22 }
 0x3da   : > { %v16607_v62 = vld [vmem:[%s17726_s15 + $0x1724] sm:$0xf]  ;;  %v13147_v40 = vor.u32 %v16479_v31, %v13144_v60  ;;  %7633 = vmatpush.bf16.msrb.mxu3 %v14747_v63 }
 0x3db   : > { %v13656_v35 = vld [vmem:[%s17726_s15 + $0x1760] sm:$0xf0] }
 0x3dc   : > { %v16735_v2 = vld [vmem:[%s17726_s15 + $0x1b24] sm:$0xf]  ;;  %v13659_v23 = vor.u32 %v16607_v62, %v13656_v35  ;;  %7595 = vmatpush.bf16.msrb.mxu0 %v13147_v40  ;;  %v19187_v62 = vpop.f32.mrf.mxu3 }
 0x3dd   : > { %v14168_v5 = vld [vmem:[%s17726_s15 + $0x1b60] sm:$0xf0] }
 0x3de   : > { %v16863_v8 = vld [vmem:[%s17726_s15 + $0x1f24] sm:$0xf]  ;;  %v14171_v12 = vor.u32 %v16735_v2, %v14168_v5  ;;  %7608 = vmatpush.bf16.msrb.mxu1 %v13659_v23  ;;  %v7345_v5 = vpop.f32.mrf.mxu0 }
 0x3df   : > { %v14680_v9 = vld [vmem:[%s17726_s15 + $0x1f60] sm:$0xf0] }
 0x3e0   : > { %v16463_v14 = vld [vmem:[%s17726_s15 + $0x12a4] sm:$0xf]  ;;  %v14683_v30 = vor.u32 %v16863_v8, %v14680_v9  ;;  %7621 = vmatpush.bf16.msrb.mxu2 %v14171_v12 }
 0x3e1   : > { %v13080_v15 = vld [vmem:[%s17726_s15 + $0x12e0] sm:$0xf0] }
 0x3e2   : > { %v16591_v48 = vld [vmem:[%s17726_s15 + $0x16a4] sm:$0xf]  ;;  %v13083_v61 = vor.u32 %v16463_v14, %v13080_v15  ;;  %7634 = vmatpush.bf16.msrb.mxu3 %v14683_v30  ;;  %v7358_v14 = vpop.f32.mrf.mxu1 }
 0x3e3   : > { %v13592_v18 = vld [vmem:[%s17726_s15 + $0x16e0] sm:$0xf0]  ;;  %v16088_v14 = vld [vmem:[%s17726_s15 + $0x6e4] sm:$0xf0] }
 0x3e4   : > { %v16719_v19 = vld [vmem:[%s17726_s15 + $0x1aa4] sm:$0xf]  ;;  %v13595_v25 = vor.u32 %v16591_v48, %v13592_v18  ;;  %7596 = vmatpush.bf16.msrb.mxu0 %v13083_v61 }
 0x3e5   : > { %v14104_v20 = vld [vmem:[%s17726_s15 + $0x1ae0] sm:$0xf0] }
 0x3e6   : > { %v16847_v53 = vld [vmem:[%s17726_s15 + $0x1ea4] sm:$0xf]  ;;  %v14107_v26 = vor.u32 %v16719_v19, %v14104_v20  ;;  %7609 = vmatpush.bf16.msrb.mxu1 %v13595_v25 }
 0x3e7   : > { %v14616_v58 = vld [vmem:[%s17726_s15 + $0x1ee0] sm:$0xf0] }
 0x3e8   : > { %v16447_v29 = vld [vmem:[%s17726_s15 + $0x1224] sm:$0xf]  ;;  %v14619_v3 = vor.u32 %v16847_v53, %v14616_v58  ;;  %7622 = vmatpush.bf16.msrb.mxu2 %v14107_v26 }
 0x3e9   : > { %v13016_v59 = vld [vmem:[%s17726_s15 + $0x1260] sm:$0xf0] }
 0x3ea   : > { %v16575_v0 = vld [vmem:[%s17726_s15 + $0x1624] sm:$0xf]  ;;  %v13019_v10 = vor.u32 %v16447_v29, %v13016_v59  ;;  %7635 = vmatpush.bf16.msrb.mxu3 %v14619_v3  ;;  %v7371_v3 = vpop.f32.mrf.mxu2 }
 0x3eb   : > { %v13528_v32 = vld [vmem:[%s17726_s15 + $0x1660] sm:$0xf0]  ;;  %v12510_v3 = vld [vmem:[%s17726_s15 + $0xe28] sm:$0xf] }
 0x3ec   : > { %v16703_v33 = vld [vmem:[%s17726_s15 + $0x1a24] sm:$0xf]  ;;  %v13531_v4 = vor.u32 %v16575_v0, %v13528_v32  ;;  %7597 = vmatpush.bf16.msrb.mxu0 %v13019_v10  ;;  %v11166_v10 = vld [vmem:[%s17726_s15 + $0x3a8] sm:$0xf] }
 0x3ed   : > { %v14040_v34 = vld [vmem:[%s17726_s15 + $0x1a60] sm:$0xf0] }
 0x3ee   : > { %v16831_v1 = vld [vmem:[%s17726_s15 + $0x1e24] sm:$0xf]  ;;  %v14043_v37 = vor.u32 %v16703_v33, %v14040_v34  ;;  %7610 = vmatpush.bf16.msrb.mxu1 %v13531_v4  ;;  %v15992_v4 = vld [vmem:[%s17726_s15 + $0x3e4] sm:$0xf0] }
 0x3ef   : > { %v14552_v6 = vld [vmem:[%s17726_s15 + $0x1e60] sm:$0xf0] }
 0x3f0   : > { %v16431_v38 = vld [vmem:[%s17726_s15 + $0x11a4] sm:$0xf]  ;;  %v14555_v11 = vor.u32 %v16831_v1, %v14552_v6  ;;  %7623 = vmatpush.bf16.msrb.mxu2 %v14043_v37  ;;  %v7384_v6 = vpop.f32.mrf.mxu3  ;;  %v11678_v37 = vld [vmem:[%s17726_s15 + $0x7a8] sm:$0xf] }
 0x3f1   : > { %v12952_v7 = vld [vmem:[%s17726_s15 + $0x11e0] sm:$0xf0]  ;;  %v10910_v6 = vld [vmem:[%s17726_s15 + $0x1a8] sm:$0xf] }
 0x3f2   : > { %v16559_v13 = vld [vmem:[%s17726_s15 + $0x15a4] sm:$0xf]  ;;  %v12955_v49 = vor.u32 %v16431_v38, %v12952_v7  ;;  %7636 = vmatpush.bf16.msrb.mxu3 %v14555_v11  ;;  %v16120_v7 = vld [vmem:[%s17726_s15 + $0x7e4] sm:$0xf0] }
 0x3f3   : > { %v13464_v41 = vld [vmem:[%s17726_s15 + $0x15e0] sm:$0xf0]  ;;  %v16248_v11 = vld [vmem:[%s17726_s15 + $0xbe4] sm:$0xf0] }
 0x3f4   : > { %v16687_v44 = vld [vmem:[%s17726_s15 + $0x19a4] sm:$0xf]  ;;  %v13467_v50 = vor.u32 %v16559_v13, %v13464_v41  ;;  %7598 = vmatpush.bf16.msrb.mxu0 %v12955_v49  ;;  %v12190_v13 = vld [vmem:[%s17726_s15 + $0xba8] sm:$0xf]  ;;  %v11167_v49 = vor.u32 %v15992_v4, %v11166_v10 }
 0x3f5   : > { %v13976_v46 = vld [vmem:[%s17726_s15 + $0x19e0] sm:$0xf0]  ;;  %v15928_v10 = vld [vmem:[%s17726_s15 + $0x1e4] sm:$0xf0] }
 0x3f6   : > { %v16815_v47 = vld [vmem:[%s17726_s15 + $0x1da4] sm:$0xf]  ;;  %v13979_v51 = vor.u32 %v16687_v44, %v13976_v46  ;;  %7611 = vmatpush.bf16.msrb.mxu1 %v13467_v50  ;;  %v12702_v46 = vld [vmem:[%s17726_s15 + $0xfa8] sm:$0xf]  ;;  %v11679_v50 = vor.u32 %v16120_v7, %v11678_v37 }
 0x3f7   : > { %v14488_v17 = vld [vmem:[%s17726_s15 + $0x1de0] sm:$0xf0]  ;;  %v11422_v4 = vld [vmem:[%s17726_s15 + $0x5a8] sm:$0xf] }
 0x3f8   : > { %v16415_v52 = vld [vmem:[%s17726_s15 + $0x1124] sm:$0xf]  ;;  %v14491_v56 = vor.u32 %v16815_v47, %v14488_v17  ;;  %7624 = vmatpush.bf16.msrb.mxu2 %v13979_v51  ;;  %v16376_v47 = vld [vmem:[%s17726_s15 + $0xfe4] sm:$0xf0]  ;;  %v12191_v51 = vor.u32 %v16248_v11, %v12190_v13 }
 0x3f9   : > { %v12888_v24 = vld [vmem:[%s17726_s15 + $0x1160] sm:$0xf0]  ;;  %v16056_v13 = vld [vmem:[%s17726_s15 + $0x5e4] sm:$0xf0] }
 0x3fa   : > { %v16543_v54 = vld [vmem:[%s17726_s15 + $0x1524] sm:$0xf]  ;;  %v12891_v2 = vor.u32 %v16415_v52, %v12888_v24  ;;  %7637 = vmatpush.bf16.msrb.mxu3 %v14491_v56  ;;  %v7357_v52 = vadd.f32 %v19172_v16, %v19167_v36  ;;  %v11102_v24 = vld [vmem:[%s17726_s15 + $0x328] sm:$0xf] }
 0x3fb   : > { %v13400_v57 = vld [vmem:[%s17726_s15 + $0x1560] sm:$0xf0]  ;;  %v11614_v56 = vld [vmem:[%s17726_s15 + $0x728] sm:$0xf] }
 0x3fc   : > { %v16671_v31 = vld [vmem:[%s17726_s15 + $0x1924] sm:$0xf]  ;;  %v13403_v8 = vor.u32 %v16543_v54, %v13400_v57  ;;  %7599 = vmatpush.bf16.msrb.mxu0 %v12891_v2  ;;  %v15976_v54 = vld [vmem:[%s17726_s15 + $0x364] sm:$0xf0]  ;;  %v12703_v57 = vor.u32 %v16376_v47, %v12702_v46 }
 0x3fd   : > { %v13912_v60 = vld [vmem:[%s17726_s15 + $0x1960] sm:$0xf0]  ;;  %v16360_v2 = vld [vmem:[%s17726_s15 + $0xf64] sm:$0xf0]  ;;  %v11103_v36 = vor.u32 %v15976_v54, %v11102_v24  ;;  %v7421_v54 = vpop.f32.mrf.mxu2 }
 0x3fe   : > { %v16799_v63 = vld [vmem:[%s17726_s15 + $0x1d24] sm:$0xf]  ;;  %v13915_v9 = vor.u32 %v16671_v31, %v13912_v60  ;;  %7612 = vmatpush.bf16.msrb.mxu1 %v13403_v8  ;;  %v16104_v31 = vld [vmem:[%s17726_s15 + $0x764] sm:$0xf0]  ;;  %v7370_v8 = vadd.f32 %v19182_v55, %v7357_v52 }
 0x3ff   : > { %v14424_v35 = vld [vmem:[%s17726_s15 + $0x1d60] sm:$0xf0]  ;;  %v12126_v60 = vld [vmem:[%s17726_s15 + $0xb28] sm:$0xf]  ;;  %v11615_v16 = vor.u32 %v16104_v31, %v11614_v56 }
 0x400   : > { %v16399_v40 = vld [vmem:[%s17726_s15 + $0x10a4] sm:$0xf]  ;;  %v14427_v15 = vor.u32 %v16799_v63, %v14424_v35  ;;  %7625 = vmatpush.bf16.msrb.mxu2 %v13915_v9  ;;  %v16232_v63 = vld [vmem:[%s17726_s15 + $0xb64] sm:$0xf0] }
 0x401   : > { %v12824_v23 = vld [vmem:[%s17726_s15 + $0x10e0] sm:$0xf0]  ;;  %v12638_v35 = vld [vmem:[%s17726_s15 + $0xf28] sm:$0xf]  ;;  %v12127_v5 = vor.u32 %v16232_v63, %v12126_v60 }
 0x402   : > { %v16527_v12 = vld [vmem:[%s17726_s15 + $0x14a4] sm:$0xf]  ;;  %v12827_v53 = vor.u32 %v16399_v40, %v12824_v23  ;;  %7638 = vmatpush.bf16.msrb.mxu3 %v14427_v15  ;;  %v11038_v9 = vld [vmem:[%s17726_s15 + $0x2a8] sm:$0xf] }
 0x403   : > { %v13336_v48 = vld [vmem:[%s17726_s15 + $0x14e0] sm:$0xf0]  ;;  %v15960_v40 = vld [vmem:[%s17726_s15 + $0x2e4] sm:$0xf0] }
 0x404   : > { %v16655_v30 = vld [vmem:[%s17726_s15 + $0x18a4] sm:$0xf]  ;;  %v13339_v25 = vor.u32 %v16527_v12, %v13336_v48  ;;  %7600 = vmatpush.bf16.msrb.mxu0 %v12827_v53  ;;  %v11550_v23 = vld [vmem:[%s17726_s15 + $0x6a8] sm:$0xf]  ;;  %v12639_v12 = vor.u32 %v16360_v2, %v12638_v35  ;;  %v7434_v35 = vpop.f32.mrf.mxu3 }
 0x405   : > { %v13848_v18 = vld [vmem:[%s17726_s15 + $0x18e0] sm:$0xf0]  ;;  %v12062_v15 = vld [vmem:[%s17726_s15 + $0xaa8] sm:$0xf] }
 0x406   : > { %v16783_v19 = vld [vmem:[%s17726_s15 + $0x1ca4] sm:$0xf]  ;;  %v13851_v26 = vor.u32 %v16655_v30, %v13848_v18  ;;  %7613 = vmatpush.bf16.msrb.mxu1 %v13339_v25  ;;  %v16216_v48 = vld [vmem:[%s17726_s15 + $0xae4] sm:$0xf0]  ;;  %v11039_v18 = vor.u32 %v15960_v40, %v11038_v9 }
 0x407   : > { %v14360_v20 = vld [vmem:[%s17726_s15 + $0x1ce0] sm:$0xf0]  ;;  %v12574_v30 = vld [vmem:[%s17726_s15 + $0xea8] sm:$0xf]  ;;  %v12063_v53 = vor.u32 %v16216_v48, %v12062_v15 }
 0x408   : > { %v16383_v58 = vld [vmem:[%s17726_s15 + $0x1024] sm:$0xf]  ;;  %v14363_v32 = vor.u32 %v16783_v19, %v14360_v20  ;;  %7626 = vmatpush.bf16.msrb.mxu2 %v13851_v26  ;;  %v16344_v55 = vld [vmem:[%s17726_s15 + $0xee4] sm:$0xf0]  ;;  %v7383_v19 = vadd.f32 %v19187_v62, %v7370_v8  ;;  %v11551_v20 = vor.u32 %v16088_v14, %v11550_v23 }
 0x409   : > { %v12760_v61 = vld [vmem:[%s17726_s15 + $0x1060] sm:$0xf0]  ;;  %v11486_v25 = vld [vmem:[%s17726_s15 + $0x628] sm:$0xf]  ;;  %v12575_v26 = vor.u32 %v16344_v55, %v12574_v30 }
 0x40a   : > { %v16511_v29 = vld [vmem:[%s17726_s15 + $0x1424] sm:$0xf]  ;;  %v12763_v38 = vor.u32 %v16383_v58, %v12760_v61  ;;  %7639 = vmatpush.bf16.msrb.mxu3 %v14363_v32  ;;  %v10974_v58 = vld [vmem:[%s17726_s15 + $0x228] sm:$0xf] }
 0x40b   : > { %v13272_v59 = vld [vmem:[%s17726_s15 + $0x1460] sm:$0xf0]  ;;  %v15944_v61 = vld [vmem:[%s17726_s15 + $0x264] sm:$0xf0] }
 0x40c   : > { %v16639_v0 = vld [vmem:[%s17726_s15 + $0x1824] sm:$0xf]  ;;  %v13275_v41 = vor.u32 %v16511_v29, %v13272_v59  ;;  %7601 = vmatpush.bf16.msrb.mxu0 %v12763_v38  ;;  %v16072_v29 = vld [vmem:[%s17726_s15 + $0x664] sm:$0xf0]  ;;  %v10975_v62 = vor.u32 %v15944_v61, %v10974_v58  ;;  %v7408_v38 = vpop.f32.mrf.mxu1 }
 0x40d   : > { %v13784_v33 = vld [vmem:[%s17726_s15 + $0x1860] sm:$0xf0]  ;;  %v11998_v59 = vld [vmem:[%s17726_s15 + $0xa28] sm:$0xf] }
 0x40e   : > { %v16767_v34 = vld [vmem:[%s17726_s15 + $0x1c24] sm:$0xf]  ;;  %v13787_v44 = vor.u32 %v16639_v0, %v13784_v33  ;;  %7614 = vmatpush.bf16.msrb.mxu1 %v13275_v41  ;;  %v16200_v0 = vld [vmem:[%s17726_s15 + $0xa64] sm:$0xf0]  ;;  %v7395_v33 = vpop.f32.mrf.mxu0 }
 0x40f   : > { %v14296_v1 = vld [vmem:[%s17726_s15 + $0x1c60] sm:$0xf0]  ;;  %7602 = vmatmul.bf16.vlgmr.msrb.gmra.mxu0 %v17910_v42  ;;  %v16328_v32 = vld [vmem:[%s17726_s15 + $0xe64] sm:$0xf0]  ;;  %v7396_v37 = vadd.f32 %v7395_v33, %v7383_v19 }
 0x410   : > { %v14299_v17 = vor.u32 %v16767_v34, %v14296_v1  ;;  %7627 = vmatpush.bf16.msrb.mxu2 %v13787_v44  ;;  %7646 = vmatpush.bf16.msra.mxu0 %v11167_v49  ;;  %v11487_v34 = vor.u32 %v16072_v29, %v11486_v25  ;;  %v11999_v1 = vor.u32 %v16200_v0, %v11998_v59  ;;  %v11934_v11 = vld [vmem:[%s17726_s15 + $0x9a8] sm:$0xf] }
 0x411   : > { %7615 = vmatmul.bf16.vlgmr.msrb.gmra.mxu1 %v17914_v45  ;;  %v12511_v7 = vor.u32 %v16328_v32, %v12510_v3  ;;  %v16184_v41 = vld [vmem:[%s17726_s15 + $0x9e4] sm:$0xf0]  ;;  %v7409_v47 = vadd.f32 %v7408_v38, %v7396_v37  ;;  %v11423_v49 = vor.u32 %v16056_v13, %v11422_v4 }
 0x412   : > { %7640 = vmatpush.bf16.msrb.mxu3 %v14299_v17  ;;  %7659 = vmatpush.bf16.msra.mxu1 %v11679_v50  ;;  %v12446_v44 = vld [vmem:[%s17726_s15 + $0xda8] sm:$0xf]  ;;  %v10911_v17 = vor.u32 %v15928_v10, %v10910_v6  ;;  %v11935_v50 = vor.u32 %v16184_v41, %v11934_v11  ;;  %v7436_v10 = vpop.f32.mrf.mxu3 }
 0x413   : > { %7628 = vmatmul.bf16.vlgmr.msrb.gmra.mxu2 %v17906_v39  ;;  %v16312_v46 = vld [vmem:[%s17726_s15 + $0xde4] sm:$0xf0]  ;;  %v7422_v63 = vadd.f32 %v7421_v54, %v7409_v47 }
 0x414   : > { %7672 = vmatpush.bf16.msra.mxu2 %v12191_v51  ;;  %7647 = vmatpush.bf16.msra.mxu0 %v11103_v36  ;;  %v10846_v51 = vld [vmem:[%s17726_s15 + $0x128] sm:$0xf]  ;;  %v12447_v56 = vor.u32 %v16312_v46, %v12446_v44  ;;  %v7410_v48 = vpop.f32.mrf.mxu1 }
 0x415   : > { %7641 = vmatmul.bf16.vlgmr.msrb.gmra.mxu3 %v17912_v43  ;;  %v15912_v52 = vld [vmem:[%s17726_s15 + $0x164] sm:$0xf0]  ;;  %v7435_v8 = vadd.f32 %v7434_v35, %v7422_v63 }
 0x416   : > { %7685 = vmatpush.bf16.msra.mxu3 %v12703_v57  ;;  %7660 = vmatpush.bf16.msra.mxu1 %v11615_v16  ;;  %v11358_v24 = vld [vmem:[%s17726_s15 + $0x528] sm:$0xf]  ;;  %v7397_v9 = vpop.f32.mrf.mxu0 }
 0x417   : > { %v16040_v57 = vld [vmem:[%s17726_s15 + $0x564] sm:$0xf0] }
 0x418   : > { %7673 = vmatpush.bf16.msra.mxu2 %v12127_v5  ;;  %7648 = vmatpush.bf16.msra.mxu0 %v11039_v18  ;;  %v11870_v31 = vld [vmem:[%s17726_s15 + $0x928] sm:$0xf]  ;;  %v10847_v5 = vor.u32 %v15912_v52, %v10846_v51  ;;  %v11359_v40 = vor.u32 %v16040_v57, %v11358_v24 }
 0x419   : > { %v16168_v60 = vld [vmem:[%s17726_s15 + $0x964] sm:$0xf0] }
 0x41a   : > { %7686 = vmatpush.bf16.msra.mxu3 %v12639_v12  ;;  %7661 = vmatpush.bf16.msra.mxu1 %v11551_v20  ;;  %v12382_v2 = vld [vmem:[%s17726_s15 + $0xd28] sm:$0xf]  ;;  %v11871_v23 = vor.u32 %v16168_v60, %v11870_v31 }
 0x41b   : > { %v16296_v36 = vld [vmem:[%s17726_s15 + $0xd64] sm:$0xf0] }
 0x41c   : > { %7674 = vmatpush.bf16.msra.mxu2 %v12063_v53  ;;  %7649 = vmatpush.bf16.msra.mxu0 %v10975_v62  ;;  %v425_v16 = vld [vmem:[#allocation2 + $0x48] sm:$0xff]  ;;  %v12383_v30 = vor.u32 %v16296_v36, %v12382_v2  ;;  %v7423_v62 = vpop.f32.mrf.mxu2  ;;  %v19320_v10 = vpop.f32.mrf.mxu1 }
 0x41d   : > { %v10782_v12 = vld [vmem:[%s17726_s15 + $0xa8] sm:$0xf]  ;;  %v8277_v55 = vadd.f32 %v7435_v8, %v425_v16 }
 0x41e   : > { %7687 = vmatpush.bf16.msra.mxu3 %v12575_v26  ;;  %7662 = vmatpush.bf16.msra.mxu1 %v11487_v34  ;;  %v15896_v14 = vld [vmem:[%s17726_s15 + $0xe4] sm:$0xf0] }
 0x41f   : > { %v11294_v15 = vld [vmem:[%s17726_s15 + $0x4a8] sm:$0xf]  ;;  %8293 = vst [vmem:[#allocation2 + $0x48] sm:$0xff] %v8277_v55  ;;  %v10783_v61 = vor.u32 %v15896_v14, %v10782_v12 }
 0x420   : > { %7675 = vmatpush.bf16.msra.mxu2 %v11999_v1  ;;  %7650 = vmatpush.bf16.msra.mxu0 %v10911_v17  ;;  %v16024_v18 = vld [vmem:[%s17726_s15 + $0x4e4] sm:$0xf0] }
 0x421   : > { %v11806_v19 = vld [vmem:[%s17726_s15 + $0x8a8] sm:$0xf]  ;;  %v11295_v29 = vor.u32 %v16024_v18, %v11294_v15 }
 0x422   : > { %7688 = vmatpush.bf16.msra.mxu3 %v12511_v7  ;;  %7663 = vmatpush.bf16.msra.mxu1 %v11423_v49  ;;  %v16152_v20 = vld [vmem:[%s17726_s15 + $0x8e4] sm:$0xf0] }
 0x423   : > { %v12318_v53 = vld [vmem:[%s17726_s15 + $0xca8] sm:$0xf]  ;;  %v11807_v59 = vor.u32 %v16152_v20, %v11806_v19 }
 0x424   : > { %7676 = vmatpush.bf16.msra.mxu2 %v11935_v50  ;;  %v16280_v58 = vld [vmem:[%s17726_s15 + $0xce4] sm:$0xf0]  ;;  %7651 = vmatpush.bf16.msra.mxu0 %v10847_v5 }
 0x425   : > { %v10718_v25 = vld [vmem:[%s17726_s15 + $0x28] sm:$0xf]  ;;  %v12319_v33 = vor.u32 %v16280_v58, %v12318_v53 }
 0x426   : > { %7689 = vmatpush.bf16.msra.mxu3 %v12447_v56  ;;  %v15880_v26 = vld [vmem:[%s17726_s15 + $0x64] sm:$0xf0]  ;;  %7664 = vmatpush.bf16.msra.mxu1 %v11359_v40 }
 0x427   : > { %v11230_v0 = vld [vmem:[%s17726_s15 + $0x428] sm:$0xf]  ;;  %v10719_v7 = vor.u32 %v15880_v26, %v10718_v25 }
 0x428   : > { %7677 = vmatpush.bf16.msra.mxu2 %v11871_v23  ;;  %v16008_v3 = vld [vmem:[%s17726_s15 + $0x464] sm:$0xf0]  ;;  %7652 = vmatpush.bf16.msra.mxu0 %v10783_v61 }
 0x429   : > { %v11742_v32 = vld [vmem:[%s17726_s15 + $0x828] sm:$0xf]  ;;  %v11231_v44 = vor.u32 %v16008_v3, %v11230_v0 }
 0x42a   : > { %7690 = vmatpush.bf16.msra.mxu3 %v12383_v30  ;;  %v16136_v34 = vld [vmem:[%s17726_s15 + $0x864] sm:$0xf0]  ;;  %7665 = vmatpush.bf16.msra.mxu1 %v11295_v29 }
 0x42b   : > { %v12254_v1 = vld [vmem:[%s17726_s15 + $0xc28] sm:$0xf]  ;;  %v11743_v46 = vor.u32 %v16136_v34, %v11742_v32  ;;  %v19315_v32 = vpop.f32.mrf.mxu0 }
 0x42c   : > { %v16264_v6 = vld [vmem:[%s17726_s15 + $0xc64] sm:$0xf0]  ;;  %7678 = vmatpush.bf16.msra.mxu2 %v11807_v59  ;;  %7653 = vmatpush.bf16.msra.mxu0 %v10719_v7 }
 0x42d   : > { %v13214_v4 = vld [vmem:[%s17726_s15 + $0x13a8] sm:$0xf]  ;;  %v12255_v49 = vor.u32 %v16264_v6, %v12254_v1 }
 0x42e   : > { %v16504_v37 = vld [vmem:[%s17726_s15 + $0x13e4] sm:$0xf0]  ;;  %7691 = vmatpush.bf16.msra.mxu3 %v12319_v33  ;;  %7666 = vmatpush.bf16.msra.mxu1 %v11231_v44 }
 0x42f   : > { %v13726_v38 = vld [vmem:[%s17726_s15 + $0x17a8] sm:$0xf]  ;;  %v13215_v50 = vor.u32 %v16504_v37, %v13214_v4  ;;  %7654 = vmatmul.bf16.vlgmr.msra.gmra.mxu0 %v17853_v27 }
 0x430   : > { %v16632_v13 = vld [vmem:[%s17726_s15 + $0x17e4] sm:$0xf0]  ;;  %7679 = vmatpush.bf16.msra.mxu2 %v11743_v46 }
 0x431   : > { %v14238_v11 = vld [vmem:[%s17726_s15 + $0x1ba8] sm:$0xf]  ;;  %v13727_v51 = vor.u32 %v16632_v13, %v13726_v38  ;;  %7698 = vmatpush.bf16.msrb.mxu0 %v13215_v50  ;;  %7667 = vmatmul.bf16.vlgmr.msra.gmra.mxu1 %v17855_v28  ;;  %v19330_v50 = vpop.f32.mrf.mxu2 }
 0x432   : > { %v16760_v41 = vld [vmem:[%s17726_s15 + $0x1be4] sm:$0xf0]  ;;  %7692 = vmatpush.bf16.msra.mxu3 %v12255_v49 }
 0x433   : > { %v14750_v47 = vld [vmem:[%s17726_s15 + $0x1fa8] sm:$0xf]  ;;  %v14239_v52 = vor.u32 %v16760_v41, %v14238_v11  ;;  %7711 = vmatpush.bf16.msrb.mxu1 %v13727_v51  ;;  %7680 = vmatmul.bf16.vlgmr.msra.gmra.mxu2 %v17846_v21 }
 0x434   : > { %v16888_v17 = vld [vmem:[%s17726_s15 + $0x1fe4] sm:$0xf0] }
 0x435   : > { %v13150_v24 = vld [vmem:[%s17726_s15 + $0x1328] sm:$0xf]  ;;  %v14751_v57 = vor.u32 %v16888_v17, %v14750_v47  ;;  %7724 = vmatpush.bf16.msrb.mxu2 %v14239_v52  ;;  %7693 = vmatmul.bf16.vlgmr.msra.gmra.mxu3 %v17848_v22 }
 0x436   : > { %v16488_v54 = vld [vmem:[%s17726_s15 + $0x1364] sm:$0xf0] }
 0x437   : > { %v13662_v56 = vld [vmem:[%s17726_s15 + $0x1728] sm:$0xf]  ;;  %v13151_v36 = vor.u32 %v16488_v54, %v13150_v24  ;;  %7737 = vmatpush.bf16.msrb.mxu3 %v14751_v57 }
 0x438   : > { %v16616_v31 = vld [vmem:[%s17726_s15 + $0x1764] sm:$0xf0] }
 0x439   : > { %v14174_v60 = vld [vmem:[%s17726_s15 + $0x1b28] sm:$0xf]  ;;  %v13663_v16 = vor.u32 %v16616_v31, %v13662_v56  ;;  %7699 = vmatpush.bf16.msrb.mxu0 %v13151_v36  ;;  %v19335_v56 = vpop.f32.mrf.mxu3 }
 0x43a   : > { %v16744_v63 = vld [vmem:[%s17726_s15 + $0x1b64] sm:$0xf0] }
 0x43b   : > { %v14686_v35 = vld [vmem:[%s17726_s15 + $0x1f28] sm:$0xf]  ;;  %v14175_v5 = vor.u32 %v16744_v63, %v14174_v60  ;;  %7712 = vmatpush.bf16.msrb.mxu1 %v13663_v16  ;;  %v7449_v63 = vpop.f32.mrf.mxu0 }
 0x43c   : > { %v16872_v2 = vld [vmem:[%s17726_s15 + $0x1f64] sm:$0xf0] }
 0x43d   : > { %v13086_v8 = vld [vmem:[%s17726_s15 + $0x12a8] sm:$0xf]  ;;  %v14687_v23 = vor.u32 %v16872_v2, %v14686_v35  ;;  %7725 = vmatpush.bf16.msrb.mxu2 %v14175_v5 }
 0x43e   : > { %v16472_v9 = vld [vmem:[%s17726_s15 + $0x12e4] sm:$0xf0] }
 0x43f   : > { %v13598_v40 = vld [vmem:[%s17726_s15 + $0x16a8] sm:$0xf]  ;;  %v13087_v55 = vor.u32 %v16472_v9, %v13086_v8  ;;  %7738 = vmatpush.bf16.msrb.mxu3 %v14687_v23  ;;  %v7462_v8 = vpop.f32.mrf.mxu1 }
 0x440   : > { %v16600_v12 = vld [vmem:[%s17726_s15 + $0x16e4] sm:$0xf0]  ;;  %v11552_v8 = vld [vmem:[%s17726_s15 + $0x6e8] sm:$0xf0] }
 0x441   : > { %v14110_v14 = vld [vmem:[%s17726_s15 + $0x1aa8] sm:$0xf]  ;;  %v13599_v18 = vor.u32 %v16600_v12, %v13598_v40  ;;  %7700 = vmatpush.bf16.msrb.mxu0 %v13087_v55 }
 0x442   : > { %v16728_v15 = vld [vmem:[%s17726_s15 + $0x1ae4] sm:$0xf0] }
 0x443   : > { %v14622_v48 = vld [vmem:[%s17726_s15 + $0x1ea8] sm:$0xf]  ;;  %v14111_v19 = vor.u32 %v16728_v15, %v14110_v14  ;;  %7713 = vmatpush.bf16.msrb.mxu1 %v13599_v18 }
 0x444   : > { %v16856_v30 = vld [vmem:[%s17726_s15 + $0x1ee4] sm:$0xf0] }
 0x445   : > { %v13022_v20 = vld [vmem:[%s17726_s15 + $0x1228] sm:$0xf]  ;;  %v14623_v61 = vor.u32 %v16856_v30, %v14622_v48  ;;  %7726 = vmatpush.bf16.msrb.mxu2 %v14111_v19 }
 0x446   : > { %v16456_v53 = vld [vmem:[%s17726_s15 + $0x1264] sm:$0xf0] }
 0x447   : > { %v13534_v58 = vld [vmem:[%s17726_s15 + $0x1628] sm:$0xf]  ;;  %v13023_v3 = vor.u32 %v16456_v53, %v13022_v20  ;;  %7739 = vmatpush.bf16.msrb.mxu3 %v14623_v61  ;;  %v7475_v61 = vpop.f32.mrf.mxu2 }
 0x448   : > { %v16584_v25 = vld [vmem:[%s17726_s15 + $0x1664] sm:$0xf0]  ;;  %v16320_v61 = vld [vmem:[%s17726_s15 + $0xe2c] sm:$0xf] }
 0x449   : > { %v14046_v26 = vld [vmem:[%s17726_s15 + $0x1a28] sm:$0xf]  ;;  %v13535_v62 = vor.u32 %v16584_v25, %v13534_v58  ;;  %7701 = vmatpush.bf16.msrb.mxu0 %v13023_v3  ;;  %v15984_v3 = vld [vmem:[%s17726_s15 + $0x3ac] sm:$0xf] }
 0x44a   : > { %v16712_v29 = vld [vmem:[%s17726_s15 + $0x1a64] sm:$0xf0] }
 0x44b   : > { %v14558_v59 = vld [vmem:[%s17726_s15 + $0x1e28] sm:$0xf]  ;;  %v14047_v33 = vor.u32 %v16712_v29, %v14046_v26  ;;  %7714 = vmatpush.bf16.msrb.mxu1 %v13535_v62  ;;  %v11168_v62 = vld [vmem:[%s17726_s15 + $0x3e8] sm:$0xf0] }
 0x44c   : > { %v16840_v0 = vld [vmem:[%s17726_s15 + $0x1e64] sm:$0xf0] }
 0x44d   : > { %v12958_v34 = vld [vmem:[%s17726_s15 + $0x11a8] sm:$0xf]  ;;  %v14559_v4 = vor.u32 %v16840_v0, %v14558_v59  ;;  %7727 = vmatpush.bf16.msrb.mxu2 %v14047_v33  ;;  %v7488_v0 = vpop.f32.mrf.mxu3  ;;  %v16112_v33 = vld [vmem:[%s17726_s15 + $0x7ac] sm:$0xf] }
 0x44e   : > { %v16440_v1 = vld [vmem:[%s17726_s15 + $0x11e4] sm:$0xf0]  ;;  %v15920_v0 = vld [vmem:[%s17726_s15 + $0x1ac] sm:$0xf] }
 0x44f   : > { %v13470_v6 = vld [vmem:[%s17726_s15 + $0x15a8] sm:$0xf]  ;;  %v12959_v41 = vor.u32 %v16440_v1, %v12958_v34  ;;  %7740 = vmatpush.bf16.msrb.mxu3 %v14559_v4  ;;  %v11680_v1 = vld [vmem:[%s17726_s15 + $0x7e8] sm:$0xf0] }
 0x450   : > { %v16568_v37 = vld [vmem:[%s17726_s15 + $0x15e4] sm:$0xf0]  ;;  %v12192_v4 = vld [vmem:[%s17726_s15 + $0xbe8] sm:$0xf0] }
 0x451   : > { %v13982_v38 = vld [vmem:[%s17726_s15 + $0x19a8] sm:$0xf]  ;;  %v13471_v44 = vor.u32 %v16568_v37, %v13470_v6  ;;  %7702 = vmatpush.bf16.msrb.mxu0 %v12959_v41  ;;  %v16240_v6 = vld [vmem:[%s17726_s15 + $0xbac] sm:$0xf]  ;;  %v11171_v41 = vor.u32 %v15984_v3, %v11168_v62 }
 0x452   : > { %v16696_v7 = vld [vmem:[%s17726_s15 + $0x19e4] sm:$0xf0]  ;;  %v10912_v3 = vld [vmem:[%s17726_s15 + $0x1e8] sm:$0xf0] }
 0x453   : > { %v14494_v13 = vld [vmem:[%s17726_s15 + $0x1da8] sm:$0xf]  ;;  %v13983_v46 = vor.u32 %v16696_v7, %v13982_v38  ;;  %7715 = vmatpush.bf16.msrb.mxu1 %v13471_v44  ;;  %v16368_v7 = vld [vmem:[%s17726_s15 + $0xfac] sm:$0xf]  ;;  %v11683_v44 = vor.u32 %v16112_v33, %v11680_v1 }
 0x454   : > { %v16824_v11 = vld [vmem:[%s17726_s15 + $0x1de4] sm:$0xf0]  ;;  %v16048_v62 = vld [vmem:[%s17726_s15 + $0x5ac] sm:$0xf] }
 0x455   : > { %v12894_v47 = vld [vmem:[%s17726_s15 + $0x1128] sm:$0xf]  ;;  %v14495_v51 = vor.u32 %v16824_v11, %v14494_v13  ;;  %7728 = vmatpush.bf16.msrb.mxu2 %v13983_v46  ;;  %v12704_v13 = vld [vmem:[%s17726_s15 + $0xfe8] sm:$0xf0]  ;;  %v12195_v46 = vor.u32 %v16240_v6, %v12192_v4 }
 0x456   : > { %v16424_v17 = vld [vmem:[%s17726_s15 + $0x1164] sm:$0xf0]  ;;  %v11424_v6 = vld [vmem:[%s17726_s15 + $0x5e8] sm:$0xf0] }
 0x457   : > { %v13406_v49 = vld [vmem:[%s17726_s15 + $0x1528] sm:$0xf]  ;;  %v12895_v60 = vor.u32 %v16424_v17, %v12894_v47  ;;  %7741 = vmatpush.bf16.msrb.mxu3 %v14495_v51  ;;  %v7461_v47 = vadd.f32 %v19320_v10, %v19315_v32  ;;  %v15968_v17 = vld [vmem:[%s17726_s15 + $0x32c] sm:$0xf] }
 0x458   : > { %v16552_v52 = vld [vmem:[%s17726_s15 + $0x1564] sm:$0xf0]  ;;  %v16096_v51 = vld [vmem:[%s17726_s15 + $0x72c] sm:$0xf] }
 0x459   : > { %v13918_v24 = vld [vmem:[%s17726_s15 + $0x1928] sm:$0xf]  ;;  %v13407_v35 = vor.u32 %v16552_v52, %v13406_v49  ;;  %7703 = vmatpush.bf16.msrb.mxu0 %v12895_v60  ;;  %v11104_v49 = vld [vmem:[%s17726_s15 + $0x368] sm:$0xf0]  ;;  %v12707_v52 = vor.u32 %v16368_v7, %v12704_v13 }
 0x45a   : > { %v16680_v54 = vld [vmem:[%s17726_s15 + $0x1964] sm:$0xf0]  ;;  %v12640_v60 = vld [vmem:[%s17726_s15 + $0xf68] sm:$0xf0]  ;;  %v11107_v32 = vor.u32 %v15968_v17, %v11104_v49  ;;  %v7525_v49 = vpop.f32.mrf.mxu2 }
 0x45b   : > { %v14430_v57 = vld [vmem:[%s17726_s15 + $0x1d28] sm:$0xf]  ;;  %v13919_v2 = vor.u32 %v16680_v54, %v13918_v24  ;;  %7716 = vmatpush.bf16.msrb.mxu1 %v13407_v35  ;;  %v11616_v24 = vld [vmem:[%s17726_s15 + $0x768] sm:$0xf0]  ;;  %v7474_v35 = vadd.f32 %v19330_v50, %v7461_v47 }
 0x45c   : > { %v16808_v31 = vld [vmem:[%s17726_s15 + $0x1d64] sm:$0xf0]  ;;  %v16224_v54 = vld [vmem:[%s17726_s15 + $0xb2c] sm:$0xf]  ;;  %v11619_v10 = vor.u32 %v16096_v51, %v11616_v24 }
 0x45d   : > { %v12830_v36 = vld [vmem:[%s17726_s15 + $0x10a8] sm:$0xf]  ;;  %v14431_v9 = vor.u32 %v16808_v31, %v14430_v57  ;;  %7729 = vmatpush.bf16.msrb.mxu2 %v13919_v2  ;;  %v12128_v57 = vld [vmem:[%s17726_s15 + $0xb68] sm:$0xf0] }
 0x45e   : > { %v16408_v16 = vld [vmem:[%s17726_s15 + $0x10e4] sm:$0xf0]  ;;  %v16352_v31 = vld [vmem:[%s17726_s15 + $0xf2c] sm:$0xf]  ;;  %v12131_v63 = vor.u32 %v16224_v54, %v12128_v57 }
 0x45f   : > { %v13342_v5 = vld [vmem:[%s17726_s15 + $0x14a8] sm:$0xf]  ;;  %v12831_v48 = vor.u32 %v16408_v16, %v12830_v36  ;;  %7742 = vmatpush.bf16.msrb.mxu3 %v14431_v9  ;;  %v15952_v2 = vld [vmem:[%s17726_s15 + $0x2ac] sm:$0xf] }
 0x460   : > { %v16536_v40 = vld [vmem:[%s17726_s15 + $0x14e4] sm:$0xf0]  ;;  %v11040_v36 = vld [vmem:[%s17726_s15 + $0x2e8] sm:$0xf0] }
 0x461   : > { %v13854_v23 = vld [vmem:[%s17726_s15 + $0x18a8] sm:$0xf]  ;;  %v13343_v18 = vor.u32 %v16536_v40, %v13342_v5  ;;  %7704 = vmatpush.bf16.msrb.mxu0 %v12831_v48  ;;  %v16080_v16 = vld [vmem:[%s17726_s15 + $0x6ac] sm:$0xf]  ;;  %v12643_v5 = vor.u32 %v16352_v31, %v12640_v60  ;;  %v7538_v31 = vpop.f32.mrf.mxu3 }
 0x462   : > { %v16664_v12 = vld [vmem:[%s17726_s15 + $0x18e4] sm:$0xf0]  ;;  %v16208_v9 = vld [vmem:[%s17726_s15 + $0xaac] sm:$0xf] }
 0x463   : > { %v14366_v14 = vld [vmem:[%s17726_s15 + $0x1ca8] sm:$0xf]  ;;  %v13855_v19 = vor.u32 %v16664_v12, %v13854_v23  ;;  %7717 = vmatpush.bf16.msrb.mxu1 %v13343_v18  ;;  %v12064_v40 = vld [vmem:[%s17726_s15 + $0xae8] sm:$0xf0]  ;;  %v11043_v12 = vor.u32 %v15952_v2, %v11040_v36 }
 0x464   : > { %v16792_v15 = vld [vmem:[%s17726_s15 + $0x1ce4] sm:$0xf0]  ;;  %v16336_v23 = vld [vmem:[%s17726_s15 + $0xeac] sm:$0xf]  ;;  %v12067_v48 = vor.u32 %v16208_v9, %v12064_v40 }
 0x465   : > { %v12766_v30 = vld [vmem:[%s17726_s15 + $0x1028] sm:$0xf]  ;;  %v14367_v25 = vor.u32 %v16792_v15, %v14366_v14  ;;  %7730 = vmatpush.bf16.msrb.mxu2 %v13855_v19  ;;  %v12576_v50 = vld [vmem:[%s17726_s15 + $0xee8] sm:$0xf0]  ;;  %v7487_v14 = vadd.f32 %v19335_v56, %v7474_v35  ;;  %v11555_v15 = vor.u32 %v16080_v16, %v11552_v8 }
 0x466   : > { %v16392_v55 = vld [vmem:[%s17726_s15 + $0x1064] sm:$0xf0]  ;;  %v16064_v18 = vld [vmem:[%s17726_s15 + $0x62c] sm:$0xf]  ;;  %v12579_v19 = vor.u32 %v16336_v23, %v12576_v50 }
 0x467   : > { %v13278_v20 = vld [vmem:[%s17726_s15 + $0x1428] sm:$0xf]  ;;  %v12767_v34 = vor.u32 %v16392_v55, %v12766_v30  ;;  %7743 = vmatpush.bf16.msrb.mxu3 %v14367_v25  ;;  %v15936_v30 = vld [vmem:[%s17726_s15 + $0x22c] sm:$0xf] }
 0x468   : > { %v16520_v53 = vld [vmem:[%s17726_s15 + $0x1464] sm:$0xf0]  ;;  %v10976_v55 = vld [vmem:[%s17726_s15 + $0x268] sm:$0xf0] }
 0x469   : > { %v13790_v58 = vld [vmem:[%s17726_s15 + $0x1828] sm:$0xf]  ;;  %v13279_v37 = vor.u32 %v16520_v53, %v13278_v20  ;;  %7705 = vmatpush.bf16.msrb.mxu0 %v12767_v34  ;;  %v11488_v20 = vld [vmem:[%s17726_s15 + $0x668] sm:$0xf0]  ;;  %v10979_v56 = vor.u32 %v15936_v30, %v10976_v55  ;;  %v7512_v34 = vpop.f32.mrf.mxu1 }
 0x46a   : > { %v16648_v26 = vld [vmem:[%s17726_s15 + $0x1864] sm:$0xf0]  ;;  %v16192_v53 = vld [vmem:[%s17726_s15 + $0xa2c] sm:$0xf] }
 0x46b   : > { %v14302_v29 = vld [vmem:[%s17726_s15 + $0x1c28] sm:$0xf]  ;;  %v13791_v38 = vor.u32 %v16648_v26, %v13790_v58  ;;  %7718 = vmatpush.bf16.msrb.mxu1 %v13279_v37  ;;  %v12000_v58 = vld [vmem:[%s17726_s15 + $0xa68] sm:$0xf0]  ;;  %v7499_v26 = vpop.f32.mrf.mxu0 }
 0x46c   : > { %v16776_v59 = vld [vmem:[%s17726_s15 + $0x1c64] sm:$0xf0]  ;;  %7706 = vmatmul.bf16.vlgmr.msrb.gmra.mxu0 %v17910_v42  ;;  %v12512_v25 = vld [vmem:[%s17726_s15 + $0xe68] sm:$0xf0]  ;;  %v7500_v33 = vadd.f32 %v7499_v26, %v7487_v14 }
 0x46d   : > { %v14303_v11 = vor.u32 %v16776_v59, %v14302_v29  ;;  %7731 = vmatpush.bf16.msrb.mxu2 %v13791_v38  ;;  %7750 = vmatpush.bf16.msra.mxu0 %v11171_v41  ;;  %v11491_v29 = vor.u32 %v16064_v18, %v11488_v20  ;;  %v12003_v59 = vor.u32 %v16192_v53, %v12000_v58  ;;  %v16176_v4 = vld [vmem:[%s17726_s15 + $0x9ac] sm:$0xf] }
 0x46e   : > { %7719 = vmatmul.bf16.vlgmr.msrb.gmra.mxu1 %v17914_v45  ;;  %v12515_v1 = vor.u32 %v16320_v61, %v12512_v25  ;;  %v11936_v37 = vld [vmem:[%s17726_s15 + $0x9e8] sm:$0xf0]  ;;  %v7513_v13 = vadd.f32 %v7512_v34, %v7500_v33  ;;  %v11427_v41 = vor.u32 %v16048_v62, %v11424_v6 }
 0x46f   : > { %7744 = vmatpush.bf16.msrb.mxu3 %v14303_v11  ;;  %7763 = vmatpush.bf16.msra.mxu1 %v11683_v44  ;;  %v16304_v38 = vld [vmem:[%s17726_s15 + $0xdac] sm:$0xf]  ;;  %v10915_v11 = vor.u32 %v15920_v0, %v10912_v3  ;;  %v11939_v44 = vor.u32 %v16176_v4, %v11936_v37  ;;  %v7540_v3 = vpop.f32.mrf.mxu3 }
 0x470   : > { %7732 = vmatmul.bf16.vlgmr.msrb.gmra.mxu2 %v17906_v39  ;;  %v12448_v7 = vld [vmem:[%s17726_s15 + $0xde8] sm:$0xf0]  ;;  %v7526_v57 = vadd.f32 %v7525_v49, %v7513_v13 }
 0x471   : > { %7776 = vmatpush.bf16.msra.mxu2 %v12195_v46  ;;  %7751 = vmatpush.bf16.msra.mxu0 %v11107_v32  ;;  %v15904_v46 = vld [vmem:[%s17726_s15 + $0x12c] sm:$0xf]  ;;  %v12451_v51 = vor.u32 %v16304_v38, %v12448_v7  ;;  %v7514_v40 = vpop.f32.mrf.mxu1 }
 0x472   : > { %7745 = vmatmul.bf16.vlgmr.msrb.gmra.mxu3 %v17912_v43  ;;  %v10848_v47 = vld [vmem:[%s17726_s15 + $0x168] sm:$0xf0]  ;;  %v7539_v35 = vadd.f32 %v7538_v31, %v7526_v57 }
 0x473   : > { %7789 = vmatpush.bf16.msra.mxu3 %v12707_v52  ;;  %7764 = vmatpush.bf16.msra.mxu1 %v11619_v10  ;;  %v16032_v17 = vld [vmem:[%s17726_s15 + $0x52c] sm:$0xf]  ;;  %v426_v10 = vld [vmem:[#allocation2 + $0x40] sm:$0xff]  ;;  %v7501_v2 = vpop.f32.mrf.mxu0 }
 0x474   : > { %v11360_v52 = vld [vmem:[%s17726_s15 + $0x568] sm:$0xf0]  ;;  %v8278_v50 = vadd.f32 %v7539_v35, %v426_v10 }
 0x475   : > { %7777 = vmatpush.bf16.msra.mxu2 %v12131_v63  ;;  %7752 = vmatpush.bf16.msra.mxu0 %v11043_v12  ;;  %v16160_v24 = vld [vmem:[%s17726_s15 + $0x92c] sm:$0xf]  ;;  %v10851_v63 = vor.u32 %v15904_v46, %v10848_v47  ;;  %v11363_v36 = vor.u32 %v16032_v17, %v11360_v52 }
 0x476   : > { %v11872_v54 = vld [vmem:[%s17726_s15 + $0x968] sm:$0xf0]  ;;  %8294 = vst [vmem:[#allocation2 + $0x40] sm:$0xff] %v8278_v50 }
 0x477   : > { %7790 = vmatpush.bf16.msra.mxu3 %v12643_v5  ;;  %7765 = vmatpush.bf16.msra.mxu1 %v11555_v15  ;;  %v16288_v60 = vld [vmem:[%s17726_s15 + $0xd2c] sm:$0xf]  ;;  %v11875_v16 = vor.u32 %v16160_v24, %v11872_v54 }
 0x478   : > { %v12384_v32 = vld [vmem:[%s17726_s15 + $0xd68] sm:$0xf0] }
 0x479   : > { %7778 = vmatpush.bf16.msra.mxu2 %v12067_v48  ;;  %7753 = vmatpush.bf16.msra.mxu0 %v10979_v56  ;;  %v15888_v5 = vld [vmem:[%s17726_s15 + $0xac] sm:$0xf]  ;;  %v12387_v23 = vor.u32 %v16288_v60, %v12384_v32  ;;  %v7527_v56 = vpop.f32.mrf.mxu2  ;;  %v19468_v3 = vpop.f32.mrf.mxu1 }
 0x47a   : > { %v10784_v8 = vld [vmem:[%s17726_s15 + $0xe8] sm:$0xf0] }
 0x47b   : > { %7791 = vmatpush.bf16.msra.mxu3 %v12579_v19  ;;  %7766 = vmatpush.bf16.msra.mxu1 %v11491_v29  ;;  %v16016_v9 = vld [vmem:[%s17726_s15 + $0x4ac] sm:$0xf]  ;;  %v10787_v55 = vor.u32 %v15888_v5, %v10784_v8 }
 0x47c   : > { %v11296_v12 = vld [vmem:[%s17726_s15 + $0x4e8] sm:$0xf0] }
 0x47d   : > { %7779 = vmatpush.bf16.msra.mxu2 %v12003_v59  ;;  %7754 = vmatpush.bf16.msra.mxu0 %v10915_v11  ;;  %v16144_v14 = vld [vmem:[%s17726_s15 + $0x8ac] sm:$0xf]  ;;  %v11299_v20 = vor.u32 %v16016_v9, %v11296_v12 }
 0x47e   : > { %v11808_v15 = vld [vmem:[%s17726_s15 + $0x8e8] sm:$0xf0] }
 0x47f   : > { %7792 = vmatpush.bf16.msra.mxu3 %v12515_v1  ;;  %7767 = vmatpush.bf16.msra.mxu1 %v11427_v41  ;;  %v16272_v48 = vld [vmem:[%s17726_s15 + $0xcac] sm:$0xf]  ;;  %v11811_v53 = vor.u32 %v16144_v14, %v11808_v15 }
 0x480   : > { %v12320_v30 = vld [vmem:[%s17726_s15 + $0xce8] sm:$0xf0] }
 0x481   : > { %7780 = vmatpush.bf16.msra.mxu2 %v11939_v44  ;;  %7755 = vmatpush.bf16.msra.mxu0 %v10851_v63  ;;  %v15872_v18 = vld [vmem:[%s17726_s15 + $0x2c] sm:$0xf]  ;;  %v12323_v26 = vor.u32 %v16272_v48, %v12320_v30 }
 0x482   : > { %v10720_v19 = vld [vmem:[%s17726_s15 + $0x68] sm:$0xf0] }
 0x483   : > { %7793 = vmatpush.bf16.msra.mxu3 %v12451_v51  ;;  %7768 = vmatpush.bf16.msra.mxu1 %v11363_v36  ;;  %v16000_v58 = vld [vmem:[%s17726_s15 + $0x42c] sm:$0xf]  ;;  %v10723_v1 = vor.u32 %v15872_v18, %v10720_v19 }
 0x484   : > { %v11232_v61 = vld [vmem:[%s17726_s15 + $0x468] sm:$0xf0] }
 0x485   : > { %7781 = vmatpush.bf16.msra.mxu2 %v11875_v16  ;;  %v16128_v25 = vld [vmem:[%s17726_s15 + $0x82c] sm:$0xf]  ;;  %7756 = vmatpush.bf16.msra.mxu0 %v10787_v55  ;;  %v11235_v38 = vor.u32 %v16000_v58, %v11232_v61 }
 0x486   : > { %v11744_v29 = vld [vmem:[%s17726_s15 + $0x868] sm:$0xf0] }
 0x487   : > { %7794 = vmatpush.bf16.msra.mxu3 %v12387_v23  ;;  %v16256_v59 = vld [vmem:[%s17726_s15 + $0xc2c] sm:$0xf]  ;;  %7769 = vmatpush.bf16.msra.mxu1 %v11299_v20  ;;  %v11747_v7 = vor.u32 %v16128_v25, %v11744_v29  ;;  %v19463_v25 = vpop.f32.mrf.mxu0 }
 0x488   : > { %v12256_v0 = vld [vmem:[%s17726_s15 + $0xc68] sm:$0xf0] }
 0x489   : > { %v16496_v62 = vld [vmem:[%s17726_s15 + $0x13ac] sm:$0xf]  ;;  %7782 = vmatpush.bf16.msra.mxu2 %v11811_v53  ;;  %v12259_v41 = vor.u32 %v16256_v59, %v12256_v0  ;;  %7757 = vmatpush.bf16.msra.mxu0 %v10723_v1 }
 0x48a   : > { %v13216_v33 = vld [vmem:[%s17726_s15 + $0x13e8] sm:$0xf0] }
 0x48b   : > { %v16624_v34 = vld [vmem:[%s17726_s15 + $0x17ac] sm:$0xf]  ;;  %7795 = vmatpush.bf16.msra.mxu3 %v12323_v26  ;;  %v13219_v44 = vor.u32 %v16496_v62, %v13216_v33  ;;  %7770 = vmatpush.bf16.msra.mxu1 %v11235_v38 }
 0x48c   : > { %v13728_v6 = vld [vmem:[%s17726_s15 + $0x17e8] sm:$0xf0]  ;;  %7758 = vmatmul.bf16.vlgmr.msra.gmra.mxu0 %v17853_v27 }
 0x48d   : > { %v16752_v4 = vld [vmem:[%s17726_s15 + $0x1bac] sm:$0xf]  ;;  %v13731_v46 = vor.u32 %v16624_v34, %v13728_v6  ;;  %7783 = vmatpush.bf16.msra.mxu2 %v11747_v7  ;;  %7802 = vmatpush.bf16.msrb.mxu0 %v13219_v44  ;;  %v19478_v44 = vpop.f32.mrf.mxu2 }
 0x48e   : > { %v14240_v37 = vld [vmem:[%s17726_s15 + $0x1be8] sm:$0xf0]  ;;  %7771 = vmatmul.bf16.vlgmr.msra.gmra.mxu1 %v17855_v28 }
 0x48f   : > { %v16880_v13 = vld [vmem:[%s17726_s15 + $0x1fac] sm:$0xf]  ;;  %v14243_v47 = vor.u32 %v16752_v4, %v14240_v37  ;;  %7796 = vmatpush.bf16.msra.mxu3 %v12259_v41  ;;  %7815 = vmatpush.bf16.msrb.mxu1 %v13731_v46 }
 0x490   : > { %v14752_v11 = vld [vmem:[%s17726_s15 + $0x1fe8] sm:$0xf0]  ;;  %7784 = vmatmul.bf16.vlgmr.msra.gmra.mxu2 %v17846_v21 }
 0x491   : > { %v16480_v17 = vld [vmem:[%s17726_s15 + $0x132c] sm:$0xf]  ;;  %v14755_v52 = vor.u32 %v16880_v13, %v14752_v11  ;;  %7828 = vmatpush.bf16.msrb.mxu2 %v14243_v47 }
 0x492   : > { %v13152_v49 = vld [vmem:[%s17726_s15 + $0x1368] sm:$0xf0]  ;;  %7797 = vmatmul.bf16.vlgmr.msra.gmra.mxu3 %v17848_v22 }
 0x493   : > { %v16608_v51 = vld [vmem:[%s17726_s15 + $0x172c] sm:$0xf]  ;;  %v13155_v32 = vor.u32 %v16480_v17, %v13152_v49  ;;  %7841 = vmatpush.bf16.msrb.mxu3 %v14755_v52 }
 0x494   : > { %v13664_v24 = vld [vmem:[%s17726_s15 + $0x1768] sm:$0xf0] }
 0x495   : > { %v16736_v54 = vld [vmem:[%s17726_s15 + $0x1b2c] sm:$0xf]  ;;  %v13667_v10 = vor.u32 %v16608_v51, %v13664_v24  ;;  %7803 = vmatpush.bf16.msrb.mxu0 %v13155_v32  ;;  %v19483_v51 = vpop.f32.mrf.mxu3 }
 0x496   : > { %v14176_v57 = vld [vmem:[%s17726_s15 + $0x1b68] sm:$0xf0] }
 0x497   : > { %v16864_v31 = vld [vmem:[%s17726_s15 + $0x1f2c] sm:$0xf]  ;;  %v14179_v63 = vor.u32 %v16736_v54, %v14176_v57  ;;  %7816 = vmatpush.bf16.msrb.mxu1 %v13667_v10  ;;  %v7553_v57 = vpop.f32.mrf.mxu0 }
 0x498   : > { %v14688_v60 = vld [vmem:[%s17726_s15 + $0x1f68] sm:$0xf0] }
 0x499   : > { %v16464_v35 = vld [vmem:[%s17726_s15 + $0x12ac] sm:$0xf]  ;;  %v14691_v16 = vor.u32 %v16864_v31, %v14688_v60  ;;  %7829 = vmatpush.bf16.msrb.mxu2 %v14179_v63 }
 0x49a   : > { %v13088_v2 = vld [vmem:[%s17726_s15 + $0x12e8] sm:$0xf0] }
 0x49b   : > { %v16592_v36 = vld [vmem:[%s17726_s15 + $0x16ac] sm:$0xf]  ;;  %v13091_v50 = vor.u32 %v16464_v35, %v13088_v2  ;;  %7842 = vmatpush.bf16.msrb.mxu3 %v14691_v16  ;;  %v7566_v35 = vpop.f32.mrf.mxu1 }
 0x49c   : > { %v13600_v5 = vld [vmem:[%s17726_s15 + $0x16e8] sm:$0xf0]  ;;  %v16089_v35 = vld [vmem:[%s17726_s15 + $0x6ec] sm:$0xf0] }
 0x49d   : > { %v16720_v8 = vld [vmem:[%s17726_s15 + $0x1aac] sm:$0xf]  ;;  %v13603_v12 = vor.u32 %v16592_v36, %v13600_v5  ;;  %7804 = vmatpush.bf16.msrb.mxu0 %v13091_v50 }
 0x49e   : > { %v14112_v9 = vld [vmem:[%s17726_s15 + $0x1ae8] sm:$0xf0] }
 0x49f   : > { %v16848_v40 = vld [vmem:[%s17726_s15 + $0x1eac] sm:$0xf]  ;;  %v14115_v14 = vor.u32 %v16720_v8, %v14112_v9  ;;  %7817 = vmatpush.bf16.msrb.mxu1 %v13603_v12 }
 0x4a0   : > { %v14624_v23 = vld [vmem:[%s17726_s15 + $0x1ee8] sm:$0xf0] }
 0x4a1   : > { %v16448_v15 = vld [vmem:[%s17726_s15 + $0x122c] sm:$0xf]  ;;  %v14627_v55 = vor.u32 %v16848_v40, %v14624_v23  ;;  %7830 = vmatpush.bf16.msrb.mxu2 %v14115_v14 }
 0x4a2   : > { %v13024_v48 = vld [vmem:[%s17726_s15 + $0x1268] sm:$0xf0] }
 0x4a3   : > { %v16576_v30 = vld [vmem:[%s17726_s15 + $0x162c] sm:$0xf]  ;;  %v13027_v61 = vor.u32 %v16448_v15, %v13024_v48  ;;  %7843 = vmatpush.bf16.msrb.mxu3 %v14627_v55  ;;  %v7579_v55 = vpop.f32.mrf.mxu2 }
 0x4a4   : > { %v13536_v18 = vld [vmem:[%s17726_s15 + $0x1668] sm:$0xf0]  ;;  %v12518_v55 = vld [vmem:[%s17726_s15 + $0xe30] sm:$0xf] }
 0x4a5   : > { %v16704_v19 = vld [vmem:[%s17726_s15 + $0x1a2c] sm:$0xf]  ;;  %v13539_v56 = vor.u32 %v16576_v30, %v13536_v18  ;;  %7805 = vmatpush.bf16.msrb.mxu0 %v13027_v61  ;;  %v11174_v61 = vld [vmem:[%s17726_s15 + $0x3b0] sm:$0xf] }
 0x4a6   : > { %v14048_v20 = vld [vmem:[%s17726_s15 + $0x1a68] sm:$0xf0] }
 0x4a7   : > { %v16832_v53 = vld [vmem:[%s17726_s15 + $0x1e2c] sm:$0xf]  ;;  %v14051_v26 = vor.u32 %v16704_v19, %v14048_v20  ;;  %7818 = vmatpush.bf16.msrb.mxu1 %v13539_v56  ;;  %v15993_v56 = vld [vmem:[%s17726_s15 + $0x3ec] sm:$0xf0] }
 0x4a8   : > { %v14560_v58 = vld [vmem:[%s17726_s15 + $0x1e68] sm:$0xf0] }
 0x4a9   : > { %v16432_v29 = vld [vmem:[%s17726_s15 + $0x11ac] sm:$0xf]  ;;  %v14563_v62 = vor.u32 %v16832_v53, %v14560_v58  ;;  %7831 = vmatpush.bf16.msrb.mxu2 %v14051_v26  ;;  %v7592_v58 = vpop.f32.mrf.mxu3  ;;  %v11686_v26 = vld [vmem:[%s17726_s15 + $0x7b0] sm:$0xf] }
 0x4aa   : > { %v12960_v59 = vld [vmem:[%s17726_s15 + $0x11e8] sm:$0xf0]  ;;  %v10918_v58 = vld [vmem:[%s17726_s15 + $0x1b0] sm:$0xf] }
 0x4ab   : > { %v16560_v0 = vld [vmem:[%s17726_s15 + $0x15ac] sm:$0xf]  ;;  %v12963_v37 = vor.u32 %v16432_v29, %v12960_v59  ;;  %7844 = vmatpush.bf16.msrb.mxu3 %v14563_v62  ;;  %v16121_v59 = vld [vmem:[%s17726_s15 + $0x7ec] sm:$0xf0] }
 0x4ac   : > { %v13472_v33 = vld [vmem:[%s17726_s15 + $0x15e8] sm:$0xf0]  ;;  %v16249_v62 = vld [vmem:[%s17726_s15 + $0xbec] sm:$0xf0] }
 0x4ad   : > { %v16688_v34 = vld [vmem:[%s17726_s15 + $0x19ac] sm:$0xf]  ;;  %v13475_v38 = vor.u32 %v16560_v0, %v13472_v33  ;;  %7806 = vmatpush.bf16.msrb.mxu0 %v12963_v37  ;;  %v12198_v0 = vld [vmem:[%s17726_s15 + $0xbb0] sm:$0xf]  ;;  %v11175_v37 = vor.u32 %v15993_v56, %v11174_v61 }
 0x4ae   : > { %v13984_v1 = vld [vmem:[%s17726_s15 + $0x19e8] sm:$0xf0]  ;;  %v15929_v61 = vld [vmem:[%s17726_s15 + $0x1ec] sm:$0xf0] }
 0x4af   : > { %v16816_v6 = vld [vmem:[%s17726_s15 + $0x1dac] sm:$0xf]  ;;  %v13987_v7 = vor.u32 %v16688_v34, %v13984_v1  ;;  %7819 = vmatpush.bf16.msrb.mxu1 %v13475_v38  ;;  %v12710_v1 = vld [vmem:[%s17726_s15 + $0xfb0] sm:$0xf]  ;;  %v11687_v38 = vor.u32 %v16121_v59, %v11686_v26 }
 0x4b0   : > { %v14496_v4 = vld [vmem:[%s17726_s15 + $0x1de8] sm:$0xf0]  ;;  %v11430_v56 = vld [vmem:[%s17726_s15 + $0x5b0] sm:$0xf] }
 0x4b1   : > { %v16416_v13 = vld [vmem:[%s17726_s15 + $0x112c] sm:$0xf]  ;;  %v14499_v46 = vor.u32 %v16816_v6, %v14496_v4  ;;  %7832 = vmatpush.bf16.msrb.mxu2 %v13987_v7  ;;  %v16377_v6 = vld [vmem:[%s17726_s15 + $0xfec] sm:$0xf0]  ;;  %v12199_v7 = vor.u32 %v16249_v62, %v12198_v0 }
 0x4b2   : > { %v12896_v11 = vld [vmem:[%s17726_s15 + $0x1168] sm:$0xf0]  ;;  %v16057_v0 = vld [vmem:[%s17726_s15 + $0x5ec] sm:$0xf0] }
 0x4b3   : > { %v16544_v41 = vld [vmem:[%s17726_s15 + $0x152c] sm:$0xf]  ;;  %v12899_v54 = vor.u32 %v16416_v13, %v12896_v11  ;;  %7845 = vmatpush.bf16.msrb.mxu3 %v14499_v46  ;;  %v7565_v13 = vadd.f32 %v19468_v3, %v19463_v25  ;;  %v11110_v11 = vld [vmem:[%s17726_s15 + $0x330] sm:$0xf] }
 0x4b4   : > { %v13408_v47 = vld [vmem:[%s17726_s15 + $0x1568] sm:$0xf0]  ;;  %v11622_v46 = vld [vmem:[%s17726_s15 + $0x730] sm:$0xf] }
 0x4b5   : > { %v16672_v17 = vld [vmem:[%s17726_s15 + $0x192c] sm:$0xf]  ;;  %v13411_v31 = vor.u32 %v16544_v41, %v13408_v47  ;;  %7807 = vmatpush.bf16.msrb.mxu0 %v12899_v54  ;;  %v15977_v41 = vld [vmem:[%s17726_s15 + $0x36c] sm:$0xf0]  ;;  %v12711_v47 = vor.u32 %v16377_v6, %v12710_v1 }
 0x4b6   : > { %v13920_v49 = vld [vmem:[%s17726_s15 + $0x1968] sm:$0xf0]  ;;  %v16361_v54 = vld [vmem:[%s17726_s15 + $0xf6c] sm:$0xf0]  ;;  %v11111_v25 = vor.u32 %v15977_v41, %v11110_v11  ;;  %v7629_v41 = vpop.f32.mrf.mxu2 }
 0x4b7   : > { %v16800_v52 = vld [vmem:[%s17726_s15 + $0x1d2c] sm:$0xf]  ;;  %v13923_v60 = vor.u32 %v16672_v17, %v13920_v49  ;;  %7820 = vmatpush.bf16.msrb.mxu1 %v13411_v31  ;;  %v16105_v17 = vld [vmem:[%s17726_s15 + $0x76c] sm:$0xf0]  ;;  %v7578_v31 = vadd.f32 %v19478_v44, %v7565_v13 }
 0x4b8   : > { %v14432_v24 = vld [vmem:[%s17726_s15 + $0x1d68] sm:$0xf0]  ;;  %v12134_v49 = vld [vmem:[%s17726_s15 + $0xb30] sm:$0xf]  ;;  %v11623_v3 = vor.u32 %v16105_v17, %v11622_v46 }
 0x4b9   : > { %v16400_v32 = vld [vmem:[%s17726_s15 + $0x10ac] sm:$0xf]  ;;  %v14435_v2 = vor.u32 %v16800_v52, %v14432_v24  ;;  %7833 = vmatpush.bf16.msrb.mxu2 %v13923_v60  ;;  %v16233_v52 = vld [vmem:[%s17726_s15 + $0xb6c] sm:$0xf0] }
 0x4ba   : > { %v12832_v10 = vld [vmem:[%s17726_s15 + $0x10e8] sm:$0xf0]  ;;  %v12646_v24 = vld [vmem:[%s17726_s15 + $0xf30] sm:$0xf]  ;;  %v12135_v57 = vor.u32 %v16233_v52, %v12134_v49 }
 0x4bb   : > { %v16528_v63 = vld [vmem:[%s17726_s15 + $0x14ac] sm:$0xf]  ;;  %v12835_v40 = vor.u32 %v16400_v32, %v12832_v10  ;;  %7846 = vmatpush.bf16.msrb.mxu3 %v14435_v2  ;;  %v11046_v60 = vld [vmem:[%s17726_s15 + $0x2b0] sm:$0xf] }
 0x4bc   : > { %v13344_v36 = vld [vmem:[%s17726_s15 + $0x14e8] sm:$0xf0]  ;;  %v15961_v32 = vld [vmem:[%s17726_s15 + $0x2ec] sm:$0xf0] }
 0x4bd   : > { %v16656_v16 = vld [vmem:[%s17726_s15 + $0x18ac] sm:$0xf]  ;;  %v13347_v12 = vor.u32 %v16528_v63, %v13344_v36  ;;  %7808 = vmatpush.bf16.msrb.mxu0 %v12835_v40  ;;  %v11558_v10 = vld [vmem:[%s17726_s15 + $0x6b0] sm:$0xf]  ;;  %v12647_v63 = vor.u32 %v16361_v54, %v12646_v24  ;;  %v7642_v24 = vpop.f32.mrf.mxu3 }
 0x4be   : > { %v13856_v5 = vld [vmem:[%s17726_s15 + $0x18e8] sm:$0xf0]  ;;  %v12070_v2 = vld [vmem:[%s17726_s15 + $0xab0] sm:$0xf] }
 0x4bf   : > { %v16784_v8 = vld [vmem:[%s17726_s15 + $0x1cac] sm:$0xf]  ;;  %v13859_v14 = vor.u32 %v16656_v16, %v13856_v5  ;;  %7821 = vmatpush.bf16.msrb.mxu1 %v13347_v12  ;;  %v16217_v36 = vld [vmem:[%s17726_s15 + $0xaec] sm:$0xf0]  ;;  %v11047_v5 = vor.u32 %v15961_v32, %v11046_v60 }
 0x4c0   : > { %v14368_v9 = vld [vmem:[%s17726_s15 + $0x1ce8] sm:$0xf0]  ;;  %v12582_v16 = vld [vmem:[%s17726_s15 + $0xeb0] sm:$0xf]  ;;  %v12071_v40 = vor.u32 %v16217_v36, %v12070_v2 }
 0x4c1   : > { %v16384_v23 = vld [vmem:[%s17726_s15 + $0x102c] sm:$0xf]  ;;  %v14371_v18 = vor.u32 %v16784_v8, %v14368_v9  ;;  %7834 = vmatpush.bf16.msrb.mxu2 %v13859_v14  ;;  %v16345_v44 = vld [vmem:[%s17726_s15 + $0xeec] sm:$0xf0]  ;;  %v7591_v8 = vadd.f32 %v19483_v51, %v7578_v31  ;;  %v11559_v9 = vor.u32 %v16089_v35, %v11558_v10 }
 0x4c2   : > { %v12768_v50 = vld [vmem:[%s17726_s15 + $0x1068] sm:$0xf0]  ;;  %v11494_v12 = vld [vmem:[%s17726_s15 + $0x630] sm:$0xf]  ;;  %v12583_v14 = vor.u32 %v16345_v44, %v12582_v16 }
 0x4c3   : > { %v16512_v15 = vld [vmem:[%s17726_s15 + $0x142c] sm:$0xf]  ;;  %v12771_v29 = vor.u32 %v16384_v23, %v12768_v50  ;;  %7847 = vmatpush.bf16.msrb.mxu3 %v14371_v18  ;;  %v10982_v23 = vld [vmem:[%s17726_s15 + $0x230] sm:$0xf] }
 0x4c4   : > { %v13280_v48 = vld [vmem:[%s17726_s15 + $0x1468] sm:$0xf0]  ;;  %v15945_v50 = vld [vmem:[%s17726_s15 + $0x26c] sm:$0xf0] }
 0x4c5   : > { %v16640_v30 = vld [vmem:[%s17726_s15 + $0x182c] sm:$0xf]  ;;  %v13283_v33 = vor.u32 %v16512_v15, %v13280_v48  ;;  %7809 = vmatpush.bf16.msrb.mxu0 %v12771_v29  ;;  %v16073_v15 = vld [vmem:[%s17726_s15 + $0x66c] sm:$0xf0]  ;;  %v10983_v51 = vor.u32 %v15945_v50, %v10982_v23  ;;  %v7616_v29 = vpop.f32.mrf.mxu1 }
 0x4c6   : > { %v13792_v19 = vld [vmem:[%s17726_s15 + $0x1868] sm:$0xf0]  ;;  %v12006_v48 = vld [vmem:[%s17726_s15 + $0xa30] sm:$0xf] }
 0x4c7   : > { %v16768_v20 = vld [vmem:[%s17726_s15 + $0x1c2c] sm:$0xf]  ;;  %v13795_v34 = vor.u32 %v16640_v30, %v13792_v19  ;;  %7822 = vmatpush.bf16.msrb.mxu1 %v13283_v33  ;;  %v16201_v30 = vld [vmem:[%s17726_s15 + $0xa6c] sm:$0xf0]  ;;  %v7603_v19 = vpop.f32.mrf.mxu0 }
 0x4c8   : > { %v14304_v53 = vld [vmem:[%s17726_s15 + $0x1c68] sm:$0xf0]  ;;  %7810 = vmatmul.bf16.vlgmr.msrb.gmra.mxu0 %v17910_v42  ;;  %v16329_v18 = vld [vmem:[%s17726_s15 + $0xe6c] sm:$0xf0]  ;;  %v7604_v26 = vadd.f32 %v7603_v19, %v7591_v8 }
 0x4c9   : > { %v14307_v4 = vor.u32 %v16768_v20, %v14304_v53  ;;  %7835 = vmatpush.bf16.msrb.mxu2 %v13795_v34  ;;  %7854 = vmatpush.bf16.msra.mxu0 %v11175_v37  ;;  %v11495_v20 = vor.u32 %v16073_v15, %v11494_v12  ;;  %v12007_v53 = vor.u32 %v16201_v30, %v12006_v48  ;;  %v11942_v62 = vld [vmem:[%s17726_s15 + $0x9b0] sm:$0xf] }
 0x4ca   : > { %7823 = vmatmul.bf16.vlgmr.msrb.gmra.mxu1 %v17914_v45  ;;  %v12519_v59 = vor.u32 %v16329_v18, %v12518_v55  ;;  %v16185_v33 = vld [vmem:[%s17726_s15 + $0x9ec] sm:$0xf0]  ;;  %v7617_v6 = vadd.f32 %v7616_v29, %v7604_v26  ;;  %v11431_v37 = vor.u32 %v16057_v0, %v11430_v56 }
 0x4cb   : > { %7848 = vmatpush.bf16.msrb.mxu3 %v14307_v4  ;;  %7867 = vmatpush.bf16.msra.mxu1 %v11687_v38  ;;  %v12454_v34 = vld [vmem:[%s17726_s15 + $0xdb0] sm:$0xf]  ;;  %v10919_v4 = vor.u32 %v15929_v61, %v10918_v58  ;;  %v11943_v38 = vor.u32 %v16185_v33, %v11942_v62  ;;  %v7644_v61 = vpop.f32.mrf.mxu3 }
 0x4cc   : > { %7836 = vmatmul.bf16.vlgmr.msrb.gmra.mxu2 %v17906_v39  ;;  %v16313_v1 = vld [vmem:[%s17726_s15 + $0xdec] sm:$0xf0]  ;;  %v7630_v52 = vadd.f32 %v7629_v41, %v7617_v6 }
 0x4cd   : > { %7880 = vmatpush.bf16.msra.mxu2 %v12199_v7  ;;  %7855 = vmatpush.bf16.msra.mxu0 %v11111_v25  ;;  %v10854_v7 = vld [vmem:[%s17726_s15 + $0x130] sm:$0xf]  ;;  %v12455_v46 = vor.u32 %v16313_v1, %v12454_v34  ;;  %v7618_v36 = vpop.f32.mrf.mxu1 }
 0x4ce   : > { %7849 = vmatmul.bf16.vlgmr.msrb.gmra.mxu3 %v17912_v43  ;;  %v15913_v13 = vld [vmem:[%s17726_s15 + $0x16c] sm:$0xf0]  ;;  %v7643_v31 = vadd.f32 %v7642_v24, %v7630_v52 }
 0x4cf   : > { %7893 = vmatpush.bf16.msra.mxu3 %v12711_v47  ;;  %7868 = vmatpush.bf16.msra.mxu1 %v11623_v3  ;;  %v11366_v11 = vld [vmem:[%s17726_s15 + $0x530] sm:$0xf]  ;;  %v427_v3 = vld [vmem:[#allocation2 + $0x20] sm:$0xff]  ;;  %v7605_v60 = vpop.f32.mrf.mxu0 }
 0x4d0   : > { %v16041_v47 = vld [vmem:[%s17726_s15 + $0x56c] sm:$0xf0]  ;;  %v8279_v44 = vadd.f32 %v7643_v31, %v427_v3 }
 0x4d1   : > { %7881 = vmatpush.bf16.msra.mxu2 %v12135_v57  ;;  %7856 = vmatpush.bf16.msra.mxu0 %v11047_v5  ;;  %v11878_v17 = vld [vmem:[%s17726_s15 + $0x930] sm:$0xf]  ;;  %v10855_v57 = vor.u32 %v15913_v13, %v10854_v7  ;;  %v11367_v32 = vor.u32 %v16041_v47, %v11366_v11 }
 0x4d2   : > { %v16169_v49 = vld [vmem:[%s17726_s15 + $0x96c] sm:$0xf0]  ;;  %8295 = vst [vmem:[#allocation2 + $0x20] sm:$0xff] %v8279_v44 }
 0x4d3   : > { %7894 = vmatpush.bf16.msra.mxu3 %v12647_v63  ;;  %7869 = vmatpush.bf16.msra.mxu1 %v11559_v9  ;;  %v12390_v54 = vld [vmem:[%s17726_s15 + $0xd30] sm:$0xf]  ;;  %v11879_v10 = vor.u32 %v16169_v49, %v11878_v17 }
 0x4d4   : > { %v16297_v25 = vld [vmem:[%s17726_s15 + $0xd6c] sm:$0xf0] }
 0x4d5   : > { %7882 = vmatpush.bf16.msra.mxu2 %v12071_v40  ;;  %7857 = vmatpush.bf16.msra.mxu0 %v10983_v51  ;;  %v10790_v63 = vld [vmem:[%s17726_s15 + $0xb0] sm:$0xf]  ;;  %v12391_v16 = vor.u32 %v16297_v25, %v12390_v54  ;;  %v7631_v51 = vpop.f32.mrf.mxu2  ;;  %v19616_v61 = vpop.f32.mrf.mxu1 }
 0x4d6   : > { %v15897_v35 = vld [vmem:[%s17726_s15 + $0xec] sm:$0xf0] }
 0x4d7   : > { %7895 = vmatpush.bf16.msra.mxu3 %v12583_v14  ;;  %7870 = vmatpush.bf16.msra.mxu1 %v11495_v20  ;;  %v11302_v2 = vld [vmem:[%s17726_s15 + $0x4b0] sm:$0xf]  ;;  %v10791_v50 = vor.u32 %v15897_v35, %v10790_v63 }
 0x4d8   : > { %v16025_v5 = vld [vmem:[%s17726_s15 + $0x4ec] sm:$0xf0] }
 0x4d9   : > { %7883 = vmatpush.bf16.msra.mxu2 %v12007_v53  ;;  %7858 = vmatpush.bf16.msra.mxu0 %v10919_v4  ;;  %v11814_v8 = vld [vmem:[%s17726_s15 + $0x8b0] sm:$0xf]  ;;  %v11303_v15 = vor.u32 %v16025_v5, %v11302_v2 }
 0x4da   : > { %v16153_v9 = vld [vmem:[%s17726_s15 + $0x8ec] sm:$0xf0] }
 0x4db   : > { %7896 = vmatpush.bf16.msra.mxu3 %v12519_v59  ;;  %7871 = vmatpush.bf16.msra.mxu1 %v11431_v37  ;;  %v12326_v40 = vld [vmem:[%s17726_s15 + $0xcb0] sm:$0xf]  ;;  %v11815_v48 = vor.u32 %v16153_v9, %v11814_v8 }
 0x4dc   : > { %v16281_v23 = vld [vmem:[%s17726_s15 + $0xcec] sm:$0xf0] }
 0x4dd   : > { %7884 = vmatpush.bf16.msra.mxu2 %v11943_v38  ;;  %7859 = vmatpush.bf16.msra.mxu0 %v10855_v57  ;;  %v10726_v12 = vld [vmem:[%s17726_s15 + $0x30] sm:$0xf]  ;;  %v12327_v19 = vor.u32 %v16281_v23, %v12326_v40 }
 0x4de   : > { %v15881_v14 = vld [vmem:[%s17726_s15 + $0x6c] sm:$0xf0] }
 0x4df   : > { %7897 = vmatpush.bf16.msra.mxu3 %v12455_v46  ;;  %7872 = vmatpush.bf16.msra.mxu1 %v11367_v32  ;;  %v11238_v30 = vld [vmem:[%s17726_s15 + $0x430] sm:$0xf]  ;;  %v10727_v59 = vor.u32 %v15881_v14, %v10726_v12 }
 0x4e0   : > { %v16009_v55 = vld [vmem:[%s17726_s15 + $0x46c] sm:$0xf0] }
 0x4e1   : > { %7885 = vmatpush.bf16.msra.mxu2 %v11879_v10  ;;  %v11750_v18 = vld [vmem:[%s17726_s15 + $0x830] sm:$0xf]  ;;  %7860 = vmatpush.bf16.msra.mxu0 %v10791_v50  ;;  %v11239_v34 = vor.u32 %v16009_v55, %v11238_v30 }
 0x4e2   : > { %v16137_v20 = vld [vmem:[%s17726_s15 + $0x86c] sm:$0xf0] }
 0x4e3   : > { %7898 = vmatpush.bf16.msra.mxu3 %v12391_v16  ;;  %v12262_v53 = vld [vmem:[%s17726_s15 + $0xc30] sm:$0xf]  ;;  %7873 = vmatpush.bf16.msra.mxu1 %v11303_v15  ;;  %v11751_v1 = vor.u32 %v16137_v20, %v11750_v18  ;;  %v19611_v18 = vpop.f32.mrf.mxu0 }
 0x4e4   : > { %v16265_v58 = vld [vmem:[%s17726_s15 + $0xc6c] sm:$0xf0] }
 0x4e5   : > { %v13222_v56 = vld [vmem:[%s17726_s15 + $0x13b0] sm:$0xf]  ;;  %7886 = vmatpush.bf16.msra.mxu2 %v11815_v48  ;;  %v12263_v37 = vor.u32 %v16265_v58, %v12262_v53  ;;  %7861 = vmatpush.bf16.msra.mxu0 %v10727_v59 }
 0x4e6   : > { %v16505_v26 = vld [vmem:[%s17726_s15 + $0x13ec] sm:$0xf0] }
 0x4e7   : > { %v13734_v29 = vld [vmem:[%s17726_s15 + $0x17b0] sm:$0xf]  ;;  %7899 = vmatpush.bf16.msra.mxu3 %v12327_v19  ;;  %v13223_v38 = vor.u32 %v16505_v26, %v13222_v56  ;;  %7874 = vmatpush.bf16.msra.mxu1 %v11239_v34 }
 0x4e8   : > { %v16633_v0 = vld [vmem:[%s17726_s15 + $0x17ec] sm:$0xf0]  ;;  %7862 = vmatmul.bf16.vlgmr.msra.gmra.mxu0 %v17853_v27 }
 0x4e9   : > { %v14246_v62 = vld [vmem:[%s17726_s15 + $0x1bb0] sm:$0xf]  ;;  %v13735_v7 = vor.u32 %v16633_v0, %v13734_v29  ;;  %7887 = vmatpush.bf16.msra.mxu2 %v11751_v1  ;;  %7906 = vmatpush.bf16.msrb.mxu0 %v13223_v38  ;;  %v19626_v38 = vpop.f32.mrf.mxu2 }
 0x4ea   : > { %v16761_v33 = vld [vmem:[%s17726_s15 + $0x1bec] sm:$0xf0]  ;;  %7875 = vmatmul.bf16.vlgmr.msra.gmra.mxu1 %v17855_v28 }
 0x4eb   : > { %v14758_v6 = vld [vmem:[%s17726_s15 + $0x1fb0] sm:$0xf]  ;;  %v14247_v13 = vor.u32 %v16761_v33, %v14246_v62  ;;  %7900 = vmatpush.bf16.msra.mxu3 %v12263_v37  ;;  %7919 = vmatpush.bf16.msrb.mxu1 %v13735_v7 }
 0x4ec   : > { %v16889_v4 = vld [vmem:[%s17726_s15 + $0x1fec] sm:$0xf0]  ;;  %7888 = vmatmul.bf16.vlgmr.msra.gmra.mxu2 %v17846_v21 }
 0x4ed   : > { %v13158_v11 = vld [vmem:[%s17726_s15 + $0x1330] sm:$0xf]  ;;  %v14759_v47 = vor.u32 %v16889_v4, %v14758_v6  ;;  %7932 = vmatpush.bf16.msrb.mxu2 %v14247_v13 }
 0x4ee   : > { %v16489_v41 = vld [vmem:[%s17726_s15 + $0x136c] sm:$0xf0]  ;;  %7901 = vmatmul.bf16.vlgmr.msra.gmra.mxu3 %v17848_v22 }
 0x4ef   : > { %v13670_v46 = vld [vmem:[%s17726_s15 + $0x1730] sm:$0xf]  ;;  %v13159_v25 = vor.u32 %v16489_v41, %v13158_v11  ;;  %7945 = vmatpush.bf16.msrb.mxu3 %v14759_v47 }
 0x4f0   : > { %v16617_v17 = vld [vmem:[%s17726_s15 + $0x176c] sm:$0xf0] }
 0x4f1   : > { %v14182_v49 = vld [vmem:[%s17726_s15 + $0x1b30] sm:$0xf]  ;;  %v13671_v3 = vor.u32 %v16617_v17, %v13670_v46  ;;  %7907 = vmatpush.bf16.msrb.mxu0 %v13159_v25  ;;  %v19631_v46 = vpop.f32.mrf.mxu3 }
 0x4f2   : > { %v16745_v52 = vld [vmem:[%s17726_s15 + $0x1b6c] sm:$0xf0] }
 0x4f3   : > { %v14694_v24 = vld [vmem:[%s17726_s15 + $0x1f30] sm:$0xf]  ;;  %v14183_v57 = vor.u32 %v16745_v52, %v14182_v49  ;;  %7920 = vmatpush.bf16.msrb.mxu1 %v13671_v3  ;;  %v7657_v52 = vpop.f32.mrf.mxu0 }
 0x4f4   : > { %v16873_v54 = vld [vmem:[%s17726_s15 + $0x1f6c] sm:$0xf0] }
 0x4f5   : > { %v13094_v31 = vld [vmem:[%s17726_s15 + $0x12b0] sm:$0xf]  ;;  %v14695_v10 = vor.u32 %v16873_v54, %v14694_v24  ;;  %7933 = vmatpush.bf16.msrb.mxu2 %v14183_v57 }
 0x4f6   : > { %v16473_v60 = vld [vmem:[%s17726_s15 + $0x12ec] sm:$0xf0] }
 0x4f7   : > { %v13606_v32 = vld [vmem:[%s17726_s15 + $0x16b0] sm:$0xf]  ;;  %v13095_v44 = vor.u32 %v16473_v60, %v13094_v31  ;;  %7946 = vmatpush.bf16.msrb.mxu3 %v14695_v10  ;;  %v7670_v31 = vpop.f32.mrf.mxu1 }
 0x4f8   : > { %v16601_v63 = vld [vmem:[%s17726_s15 + $0x16ec] sm:$0xf0]  ;;  %v11560_v31 = vld [vmem:[%s17726_s15 + $0x6f0] sm:$0xf0] }
 0x4f9   : > { %v14118_v35 = vld [vmem:[%s17726_s15 + $0x1ab0] sm:$0xf]  ;;  %v13607_v5 = vor.u32 %v16601_v63, %v13606_v32  ;;  %7908 = vmatpush.bf16.msrb.mxu0 %v13095_v44 }
 0x4fa   : > { %v16729_v2 = vld [vmem:[%s17726_s15 + $0x1aec] sm:$0xf0] }
 0x4fb   : > { %v14630_v36 = vld [vmem:[%s17726_s15 + $0x1eb0] sm:$0xf]  ;;  %v14119_v8 = vor.u32 %v16729_v2, %v14118_v35  ;;  %7921 = vmatpush.bf16.msrb.mxu1 %v13607_v5 }
 0x4fc   : > { %v16857_v16 = vld [vmem:[%s17726_s15 + $0x1eec] sm:$0xf0] }
 0x4fd   : > { %v13030_v9 = vld [vmem:[%s17726_s15 + $0x1230] sm:$0xf]  ;;  %v14631_v50 = vor.u32 %v16857_v16, %v14630_v36  ;;  %7934 = vmatpush.bf16.msrb.mxu2 %v14119_v8 }
 0x4fe   : > { %v16457_v40 = vld [vmem:[%s17726_s15 + $0x126c] sm:$0xf0] }
 0x4ff   : > { %v13542_v23 = vld [vmem:[%s17726_s15 + $0x1630] sm:$0xf]  ;;  %v13031_v55 = vor.u32 %v16457_v40, %v13030_v9  ;;  %7947 = vmatpush.bf16.msrb.mxu3 %v14631_v50  ;;  %v7683_v50 = vpop.f32.mrf.mxu2 }
 0x500   : > { %v16585_v12 = vld [vmem:[%s17726_s15 + $0x166c] sm:$0xf0]  ;;  %v16321_v50 = vld [vmem:[%s17726_s15 + $0xe34] sm:$0xf] }
 0x501   : > { %v14054_v14 = vld [vmem:[%s17726_s15 + $0x1a30] sm:$0xf]  ;;  %v13543_v51 = vor.u32 %v16585_v12, %v13542_v23  ;;  %7909 = vmatpush.bf16.msrb.mxu0 %v13031_v55  ;;  %v15985_v55 = vld [vmem:[%s17726_s15 + $0x3b4] sm:$0xf] }
 0x502   : > { %v16713_v15 = vld [vmem:[%s17726_s15 + $0x1a6c] sm:$0xf0] }
 0x503   : > { %v14566_v48 = vld [vmem:[%s17726_s15 + $0x1e30] sm:$0xf]  ;;  %v14055_v19 = vor.u32 %v16713_v15, %v14054_v14  ;;  %7922 = vmatpush.bf16.msrb.mxu1 %v13543_v51  ;;  %v11176_v51 = vld [vmem:[%s17726_s15 + $0x3f0] sm:$0xf0] }
 0x504   : > { %v16841_v30 = vld [vmem:[%s17726_s15 + $0x1e6c] sm:$0xf0] }
 0x505   : > { %v12966_v20 = vld [vmem:[%s17726_s15 + $0x11b0] sm:$0xf]  ;;  %v14567_v56 = vor.u32 %v16841_v30, %v14566_v48  ;;  %7935 = vmatpush.bf16.msrb.mxu2 %v14055_v19  ;;  %v7696_v30 = vpop.f32.mrf.mxu3  ;;  %v16113_v19 = vld [vmem:[%s17726_s15 + $0x7b4] sm:$0xf] }
 0x506   : > { %v16441_v53 = vld [vmem:[%s17726_s15 + $0x11ec] sm:$0xf0]  ;;  %v15921_v30 = vld [vmem:[%s17726_s15 + $0x1b4] sm:$0xf] }
 0x507   : > { %v13478_v58 = vld [vmem:[%s17726_s15 + $0x15b0] sm:$0xf]  ;;  %v12967_v33 = vor.u32 %v16441_v53, %v12966_v20  ;;  %7948 = vmatpush.bf16.msrb.mxu3 %v14567_v56  ;;  %v11688_v53 = vld [vmem:[%s17726_s15 + $0x7f0] sm:$0xf0] }
 0x508   : > { %v16569_v26 = vld [vmem:[%s17726_s15 + $0x15ec] sm:$0xf0]  ;;  %v12200_v56 = vld [vmem:[%s17726_s15 + $0xbf0] sm:$0xf0] }
 0x509   : > { %v13990_v29 = vld [vmem:[%s17726_s15 + $0x19b0] sm:$0xf]  ;;  %v13479_v34 = vor.u32 %v16569_v26, %v13478_v58  ;;  %7910 = vmatpush.bf16.msrb.mxu0 %v12967_v33  ;;  %v16241_v58 = vld [vmem:[%s17726_s15 + $0xbb4] sm:$0xf]  ;;  %v11179_v33 = vor.u32 %v15985_v55, %v11176_v51 }
 0x50a   : > { %v16697_v59 = vld [vmem:[%s17726_s15 + $0x19ec] sm:$0xf0]  ;;  %v10920_v55 = vld [vmem:[%s17726_s15 + $0x1f0] sm:$0xf0] }
 0x50b   : > { %v14502_v0 = vld [vmem:[%s17726_s15 + $0x1db0] sm:$0xf]  ;;  %v13991_v1 = vor.u32 %v16697_v59, %v13990_v29  ;;  %7923 = vmatpush.bf16.msrb.mxu1 %v13479_v34  ;;  %v16369_v59 = vld [vmem:[%s17726_s15 + $0xfb4] sm:$0xf]  ;;  %v11691_v34 = vor.u32 %v16113_v19, %v11688_v53 }
 0x50c   : > { %v16825_v62 = vld [vmem:[%s17726_s15 + $0x1dec] sm:$0xf0]  ;;  %v16049_v51 = vld [vmem:[%s17726_s15 + $0x5b4] sm:$0xf] }
 0x50d   : > { %v12902_v6 = vld [vmem:[%s17726_s15 + $0x1130] sm:$0xf]  ;;  %v14503_v7 = vor.u32 %v16825_v62, %v14502_v0  ;;  %7936 = vmatpush.bf16.msrb.mxu2 %v13991_v1  ;;  %v12712_v0 = vld [vmem:[%s17726_s15 + $0xff0] sm:$0xf0]  ;;  %v12203_v1 = vor.u32 %v16241_v58, %v12200_v56 }
 0x50e   : > { %v16425_v4 = vld [vmem:[%s17726_s15 + $0x116c] sm:$0xf0]  ;;  %v11432_v58 = vld [vmem:[%s17726_s15 + $0x5f0] sm:$0xf0] }
 0x50f   : > { %v13414_v37 = vld [vmem:[%s17726_s15 + $0x1530] sm:$0xf]  ;;  %v12903_v49 = vor.u32 %v16425_v4, %v12902_v6  ;;  %7949 = vmatpush.bf16.msrb.mxu3 %v14503_v7  ;;  %v7669_v6 = vadd.f32 %v19616_v61, %v19611_v18  ;;  %v15969_v4 = vld [vmem:[%s17726_s15 + $0x334] sm:$0xf] }
 0x510   : > { %v16553_v13 = vld [vmem:[%s17726_s15 + $0x156c] sm:$0xf0]  ;;  %v16097_v7 = vld [vmem:[%s17726_s15 + $0x734] sm:$0xf] }
 0x511   : > { %v13926_v11 = vld [vmem:[%s17726_s15 + $0x1930] sm:$0xf]  ;;  %v13415_v24 = vor.u32 %v16553_v13, %v13414_v37  ;;  %7911 = vmatpush.bf16.msrb.mxu0 %v12903_v49  ;;  %v11112_v37 = vld [vmem:[%s17726_s15 + $0x370] sm:$0xf0]  ;;  %v12715_v13 = vor.u32 %v16369_v59, %v12712_v0 }
 0x512   : > { %v16681_v41 = vld [vmem:[%s17726_s15 + $0x196c] sm:$0xf0]  ;;  %v12648_v49 = vld [vmem:[%s17726_s15 + $0xf70] sm:$0xf0]  ;;  %v11115_v18 = vor.u32 %v15969_v4, %v11112_v37  ;;  %v7733_v37 = vpop.f32.mrf.mxu2 }
 0x513   : > { %v14438_v47 = vld [vmem:[%s17726_s15 + $0x1d30] sm:$0xf]  ;;  %v13927_v54 = vor.u32 %v16681_v41, %v13926_v11  ;;  %7924 = vmatpush.bf16.msrb.mxu1 %v13415_v24  ;;  %v11624_v11 = vld [vmem:[%s17726_s15 + $0x770] sm:$0xf0]  ;;  %v7682_v24 = vadd.f32 %v19626_v38, %v7669_v6 }
 0x514   : > { %v16809_v17 = vld [vmem:[%s17726_s15 + $0x1d6c] sm:$0xf0]  ;;  %v16225_v41 = vld [vmem:[%s17726_s15 + $0xb34] sm:$0xf]  ;;  %v11627_v61 = vor.u32 %v16097_v7, %v11624_v11 }
 0x515   : > { %v12838_v25 = vld [vmem:[%s17726_s15 + $0x10b0] sm:$0xf]  ;;  %v14439_v60 = vor.u32 %v16809_v17, %v14438_v47  ;;  %7937 = vmatpush.bf16.msrb.mxu2 %v13927_v54  ;;  %v12136_v47 = vld [vmem:[%s17726_s15 + $0xb70] sm:$0xf0] }
 0x516   : > { %v16409_v3 = vld [vmem:[%s17726_s15 + $0x10ec] sm:$0xf0]  ;;  %v16353_v17 = vld [vmem:[%s17726_s15 + $0xf34] sm:$0xf]  ;;  %v12139_v52 = vor.u32 %v16225_v41, %v12136_v47 }
 0x517   : > { %v13350_v57 = vld [vmem:[%s17726_s15 + $0x14b0] sm:$0xf]  ;;  %v12839_v36 = vor.u32 %v16409_v3, %v12838_v25  ;;  %7950 = vmatpush.bf16.msrb.mxu3 %v14439_v60  ;;  %v15953_v54 = vld [vmem:[%s17726_s15 + $0x2b4] sm:$0xf] }
 0x518   : > { %v16537_v32 = vld [vmem:[%s17726_s15 + $0x14ec] sm:$0xf0]  ;;  %v11048_v25 = vld [vmem:[%s17726_s15 + $0x2f0] sm:$0xf0] }
 0x519   : > { %v13862_v10 = vld [vmem:[%s17726_s15 + $0x18b0] sm:$0xf]  ;;  %v13351_v5 = vor.u32 %v16537_v32, %v13350_v57  ;;  %7912 = vmatpush.bf16.msrb.mxu0 %v12839_v36  ;;  %v16081_v3 = vld [vmem:[%s17726_s15 + $0x6b4] sm:$0xf]  ;;  %v12651_v57 = vor.u32 %v16353_v17, %v12648_v49  ;;  %v7746_v17 = vpop.f32.mrf.mxu3 }
 0x51a   : > { %v16665_v63 = vld [vmem:[%s17726_s15 + $0x18ec] sm:$0xf0]  ;;  %v16209_v60 = vld [vmem:[%s17726_s15 + $0xab4] sm:$0xf] }
 0x51b   : > { %v14374_v35 = vld [vmem:[%s17726_s15 + $0x1cb0] sm:$0xf]  ;;  %v13863_v8 = vor.u32 %v16665_v63, %v13862_v10  ;;  %7925 = vmatpush.bf16.msrb.mxu1 %v13351_v5  ;;  %v12072_v32 = vld [vmem:[%s17726_s15 + $0xaf0] sm:$0xf0]  ;;  %v11051_v63 = vor.u32 %v15953_v54, %v11048_v25 }
 0x51c   : > { %v16793_v2 = vld [vmem:[%s17726_s15 + $0x1cec] sm:$0xf0]  ;;  %v16337_v10 = vld [vmem:[%s17726_s15 + $0xeb4] sm:$0xf]  ;;  %v12075_v36 = vor.u32 %v16209_v60, %v12072_v32 }
 0x51d   : > { %v12774_v16 = vld [vmem:[%s17726_s15 + $0x1030] sm:$0xf]  ;;  %v14375_v12 = vor.u32 %v16793_v2, %v14374_v35  ;;  %7938 = vmatpush.bf16.msrb.mxu2 %v13863_v8  ;;  %v12584_v38 = vld [vmem:[%s17726_s15 + $0xef0] sm:$0xf0]  ;;  %v7695_v35 = vadd.f32 %v19631_v46, %v7682_v24  ;;  %v11563_v2 = vor.u32 %v16081_v3, %v11560_v31 }
 0x51e   : > { %v16393_v44 = vld [vmem:[%s17726_s15 + $0x106c] sm:$0xf0]  ;;  %v16065_v5 = vld [vmem:[%s17726_s15 + $0x634] sm:$0xf]  ;;  %v12587_v8 = vor.u32 %v16337_v10, %v12584_v38 }
 0x51f   : > { %v13286_v9 = vld [vmem:[%s17726_s15 + $0x1430] sm:$0xf]  ;;  %v12775_v20 = vor.u32 %v16393_v44, %v12774_v16  ;;  %7951 = vmatpush.bf16.msrb.mxu3 %v14375_v12  ;;  %v15937_v16 = vld [vmem:[%s17726_s15 + $0x234] sm:$0xf] }
 0x520   : > { %v16521_v40 = vld [vmem:[%s17726_s15 + $0x146c] sm:$0xf0]  ;;  %v10984_v44 = vld [vmem:[%s17726_s15 + $0x270] sm:$0xf0] }
 0x521   : > { %v13798_v23 = vld [vmem:[%s17726_s15 + $0x1830] sm:$0xf]  ;;  %v13287_v26 = vor.u32 %v16521_v40, %v13286_v9  ;;  %7913 = vmatpush.bf16.msrb.mxu0 %v12775_v20  ;;  %v11496_v9 = vld [vmem:[%s17726_s15 + $0x670] sm:$0xf0]  ;;  %v10987_v46 = vor.u32 %v15937_v16, %v10984_v44  ;;  %v7720_v20 = vpop.f32.mrf.mxu1 }
 0x522   : > { %v16649_v14 = vld [vmem:[%s17726_s15 + $0x186c] sm:$0xf0]  ;;  %v16193_v40 = vld [vmem:[%s17726_s15 + $0xa34] sm:$0xf] }
 0x523   : > { %v14310_v15 = vld [vmem:[%s17726_s15 + $0x1c30] sm:$0xf]  ;;  %v13799_v29 = vor.u32 %v16649_v14, %v13798_v23  ;;  %7926 = vmatpush.bf16.msrb.mxu1 %v13287_v26  ;;  %v12008_v23 = vld [vmem:[%s17726_s15 + $0xa70] sm:$0xf0]  ;;  %v7707_v14 = vpop.f32.mrf.mxu0 }
 0x524   : > { %v16777_v48 = vld [vmem:[%s17726_s15 + $0x1c6c] sm:$0xf0]  ;;  %7914 = vmatmul.bf16.vlgmr.msrb.gmra.mxu0 %v17910_v42  ;;  %v12520_v12 = vld [vmem:[%s17726_s15 + $0xe70] sm:$0xf0]  ;;  %v7708_v19 = vadd.f32 %v7707_v14, %v7695_v35 }
 0x525   : > { %v14311_v62 = vor.u32 %v16777_v48, %v14310_v15  ;;  %7939 = vmatpush.bf16.msrb.mxu2 %v13799_v29  ;;  %7958 = vmatpush.bf16.msra.mxu0 %v11179_v33  ;;  %v11499_v15 = vor.u32 %v16065_v5, %v11496_v9  ;;  %v12011_v48 = vor.u32 %v16193_v40, %v12008_v23  ;;  %v16177_v56 = vld [vmem:[%s17726_s15 + $0x9b4] sm:$0xf] }
 0x526   : > { %7927 = vmatmul.bf16.vlgmr.msrb.gmra.mxu1 %v17914_v45  ;;  %v12523_v53 = vor.u32 %v16321_v50, %v12520_v12  ;;  %v11944_v26 = vld [vmem:[%s17726_s15 + $0x9f0] sm:$0xf0]  ;;  %v7721_v0 = vadd.f32 %v7720_v20, %v7708_v19  ;;  %v11435_v33 = vor.u32 %v16049_v51, %v11432_v58 }
 0x527   : > { %7952 = vmatpush.bf16.msrb.mxu3 %v14311_v62  ;;  %7971 = vmatpush.bf16.msra.mxu1 %v11691_v34  ;;  %v16305_v29 = vld [vmem:[%s17726_s15 + $0xdb4] sm:$0xf]  ;;  %v10923_v62 = vor.u32 %v15921_v30, %v10920_v55  ;;  %v11947_v34 = vor.u32 %v16177_v56, %v11944_v26  ;;  %v7748_v55 = vpop.f32.mrf.mxu3 }
 0x528   : > { %7940 = vmatmul.bf16.vlgmr.msrb.gmra.mxu2 %v17906_v39  ;;  %v12456_v59 = vld [vmem:[%s17726_s15 + $0xdf0] sm:$0xf0]  ;;  %v7734_v47 = vadd.f32 %v7733_v37, %v7721_v0 }
 0x529   : > { %7984 = vmatpush.bf16.msra.mxu2 %v12203_v1  ;;  %7959 = vmatpush.bf16.msra.mxu0 %v11115_v18  ;;  %v15905_v1 = vld [vmem:[%s17726_s15 + $0x134] sm:$0xf]  ;;  %v12459_v7 = vor.u32 %v16305_v29, %v12456_v59  ;;  %v7722_v32 = vpop.f32.mrf.mxu1 }
 0x52a   : > { %7953 = vmatmul.bf16.vlgmr.msrb.gmra.mxu3 %v17912_v43  ;;  %v10856_v6 = vld [vmem:[%s17726_s15 + $0x170] sm:$0xf0]  ;;  %v7747_v24 = vadd.f32 %v7746_v17, %v7734_v47 }
 0x52b   : > { %7997 = vmatpush.bf16.msra.mxu3 %v12715_v13  ;;  %7972 = vmatpush.bf16.msra.mxu1 %v11627_v61  ;;  %v16033_v4 = vld [vmem:[%s17726_s15 + $0x534] sm:$0xf]  ;;  %v7709_v54 = vpop.f32.mrf.mxu0 }
 0x52c   : > { %v11368_v13 = vld [vmem:[%s17726_s15 + $0x570] sm:$0xf0] }
 0x52d   : > { %7985 = vmatpush.bf16.msra.mxu2 %v12139_v52  ;;  %7960 = vmatpush.bf16.msra.mxu0 %v11051_v63  ;;  %v16161_v11 = vld [vmem:[%s17726_s15 + $0x934] sm:$0xf]  ;;  %v10859_v52 = vor.u32 %v15905_v1, %v10856_v6  ;;  %v11371_v25 = vor.u32 %v16033_v4, %v11368_v13 }
 0x52e   : > { %v11880_v41 = vld [vmem:[%s17726_s15 + $0x970] sm:$0xf0] }
 0x52f   : > { %7998 = vmatpush.bf16.msra.mxu3 %v12651_v57  ;;  %7973 = vmatpush.bf16.msra.mxu1 %v11563_v2  ;;  %v16289_v49 = vld [vmem:[%s17726_s15 + $0xd34] sm:$0xf]  ;;  %v11883_v3 = vor.u32 %v16161_v11, %v11880_v41 }
 0x530   : > { %v12392_v18 = vld [vmem:[%s17726_s15 + $0xd70] sm:$0xf0] }
 0x531   : > { %7986 = vmatpush.bf16.msra.mxu2 %v12075_v36  ;;  %7961 = vmatpush.bf16.msra.mxu0 %v10987_v46  ;;  %v428_v61 = vld [vmem:[#allocation2 + $0x10] sm:$0xff]  ;;  %v12395_v10 = vor.u32 %v16289_v49, %v12392_v18  ;;  %v7735_v46 = vpop.f32.mrf.mxu2  ;;  %v19764_v55 = vpop.f32.mrf.mxu1 }
 0x532   : > { %v15889_v57 = vld [vmem:[%s17726_s15 + $0xb4] sm:$0xf]  ;;  %v8280_v38 = vadd.f32 %v7747_v24, %v428_v61 }
 0x533   : > { %7999 = vmatpush.bf16.msra.mxu3 %v12587_v8  ;;  %7974 = vmatpush.bf16.msra.mxu1 %v11499_v15  ;;  %v10792_v31 = vld [vmem:[%s17726_s15 + $0xf0] sm:$0xf0] }
 0x534   : > { %v16017_v60 = vld [vmem:[%s17726_s15 + $0x4b4] sm:$0xf]  ;;  %8296 = vst [vmem:[#allocation2 + $0x10] sm:$0xff] %v8280_v38  ;;  %v10795_v44 = vor.u32 %v15889_v57, %v10792_v31 }
 0x535   : > { %7987 = vmatpush.bf16.msra.mxu2 %v12011_v48  ;;  %7962 = vmatpush.bf16.msra.mxu0 %v10923_v62  ;;  %v11304_v63 = vld [vmem:[%s17726_s15 + $0x4f0] sm:$0xf0] }
 0x536   : > { %v16145_v35 = vld [vmem:[%s17726_s15 + $0x8b4] sm:$0xf]  ;;  %v11307_v9 = vor.u32 %v16017_v60, %v11304_v63 }
 0x537   : > { %8000 = vmatpush.bf16.msra.mxu3 %v12523_v53  ;;  %7975 = vmatpush.bf16.msra.mxu1 %v11435_v33  ;;  %v11816_v2 = vld [vmem:[%s17726_s15 + $0x8f0] sm:$0xf0] }
 0x538   : > { %v16273_v36 = vld [vmem:[%s17726_s15 + $0xcb4] sm:$0xf]  ;;  %v11819_v40 = vor.u32 %v16145_v35, %v11816_v2 }
 0x539   : > { %7988 = vmatpush.bf16.msra.mxu2 %v11947_v34  ;;  %v12328_v16 = vld [vmem:[%s17726_s15 + $0xcf0] sm:$0xf0]  ;;  %7963 = vmatpush.bf16.msra.mxu0 %v10859_v52 }
 0x53a   : > { %v15873_v5 = vld [vmem:[%s17726_s15 + $0x34] sm:$0xf]  ;;  %v12331_v14 = vor.u32 %v16273_v36, %v12328_v16 }
 0x53b   : > { %8001 = vmatpush.bf16.msra.mxu3 %v12459_v7  ;;  %v10728_v8 = vld [vmem:[%s17726_s15 + $0x70] sm:$0xf0]  ;;  %7976 = vmatpush.bf16.msra.mxu1 %v11371_v25 }
 0x53c   : > { %v16001_v23 = vld [vmem:[%s17726_s15 + $0x434] sm:$0xf]  ;;  %v10731_v53 = vor.u32 %v15873_v5, %v10728_v8 }
 0x53d   : > { %7989 = vmatpush.bf16.msra.mxu2 %v11883_v3  ;;  %v11240_v50 = vld [vmem:[%s17726_s15 + $0x470] sm:$0xf0]  ;;  %7964 = vmatpush.bf16.msra.mxu0 %v10795_v44 }
 0x53e   : > { %v16129_v12 = vld [vmem:[%s17726_s15 + $0x834] sm:$0xf]  ;;  %v11243_v29 = vor.u32 %v16001_v23, %v11240_v50 }
 0x53f   : > { %8002 = vmatpush.bf16.msra.mxu3 %v12395_v10  ;;  %v11752_v15 = vld [vmem:[%s17726_s15 + $0x870] sm:$0xf0]  ;;  %7977 = vmatpush.bf16.msra.mxu1 %v11307_v9 }
 0x540   : > { %v16257_v48 = vld [vmem:[%s17726_s15 + $0xc34] sm:$0xf]  ;;  %v11755_v59 = vor.u32 %v16129_v12, %v11752_v15  ;;  %v19759_v12 = vpop.f32.mrf.mxu0 }
 0x541   : > { %v12264_v30 = vld [vmem:[%s17726_s15 + $0xc70] sm:$0xf0]  ;;  %7990 = vmatpush.bf16.msra.mxu2 %v11819_v40  ;;  %7965 = vmatpush.bf16.msra.mxu0 %v10731_v53 }
 0x542   : > { %v16497_v51 = vld [vmem:[%s17726_s15 + $0x13b4] sm:$0xf]  ;;  %v12267_v33 = vor.u32 %v16257_v48, %v12264_v30 }
 0x543   : > { %v13224_v19 = vld [vmem:[%s17726_s15 + $0x13f0] sm:$0xf0]  ;;  %8003 = vmatpush.bf16.msra.mxu3 %v12331_v14  ;;  %7978 = vmatpush.bf16.msra.mxu1 %v11243_v29 }
 0x544   : > { %v16625_v20 = vld [vmem:[%s17726_s15 + $0x17b4] sm:$0xf]  ;;  %v13227_v34 = vor.u32 %v16497_v51, %v13224_v19  ;;  %7966 = vmatmul.bf16.vlgmr.msra.gmra.mxu0 %v17853_v27 }
 0x545   : > { %v13736_v58 = vld [vmem:[%s17726_s15 + $0x17f0] sm:$0xf0]  ;;  %7991 = vmatpush.bf16.msra.mxu2 %v11755_v59 }
 0x546   : > { %v16753_v56 = vld [vmem:[%s17726_s15 + $0x1bb4] sm:$0xf]  ;;  %v13739_v1 = vor.u32 %v16625_v20, %v13736_v58  ;;  %8010 = vmatpush.bf16.msrb.mxu0 %v13227_v34  ;;  %7979 = vmatmul.bf16.vlgmr.msra.gmra.mxu1 %v17855_v28  ;;  %v19774_v34 = vpop.f32.mrf.mxu2 }
 0x547   : > { %v14248_v26 = vld [vmem:[%s17726_s15 + $0x1bf0] sm:$0xf0]  ;;  %8004 = vmatpush.bf16.msra.mxu3 %v12267_v33 }
 0x548   : > { %v16881_v0 = vld [vmem:[%s17726_s15 + $0x1fb4] sm:$0xf]  ;;  %v14251_v6 = vor.u32 %v16753_v56, %v14248_v26  ;;  %8023 = vmatpush.bf16.msrb.mxu1 %v13739_v1  ;;  %7992 = vmatmul.bf16.vlgmr.msra.gmra.mxu2 %v17846_v21 }
 0x549   : > { %v14760_v62 = vld [vmem:[%s17726_s15 + $0x1ff0] sm:$0xf0] }
 0x54a   : > { %v16481_v4 = vld [vmem:[%s17726_s15 + $0x1334] sm:$0xf]  ;;  %v14763_v13 = vor.u32 %v16881_v0, %v14760_v62  ;;  %8036 = vmatpush.bf16.msrb.mxu2 %v14251_v6  ;;  %8005 = vmatmul.bf16.vlgmr.msra.gmra.mxu3 %v17848_v22 }
 0x54b   : > { %v13160_v37 = vld [vmem:[%s17726_s15 + $0x1370] sm:$0xf0] }
 0x54c   : > { %v16609_v7 = vld [vmem:[%s17726_s15 + $0x1734] sm:$0xf]  ;;  %v13163_v18 = vor.u32 %v16481_v4, %v13160_v37  ;;  %8049 = vmatpush.bf16.msrb.mxu3 %v14763_v13 }
 0x54d   : > { %v13672_v11 = vld [vmem:[%s17726_s15 + $0x1770] sm:$0xf0] }
 0x54e   : > { %v16737_v41 = vld [vmem:[%s17726_s15 + $0x1b34] sm:$0xf]  ;;  %v13675_v61 = vor.u32 %v16609_v7, %v13672_v11  ;;  %8011 = vmatpush.bf16.msrb.mxu0 %v13163_v18  ;;  %v19779_v7 = vpop.f32.mrf.mxu3 }
 0x54f   : > { %v14184_v47 = vld [vmem:[%s17726_s15 + $0x1b70] sm:$0xf0] }
 0x550   : > { %v16865_v17 = vld [vmem:[%s17726_s15 + $0x1f34] sm:$0xf]  ;;  %v14187_v52 = vor.u32 %v16737_v41, %v14184_v47  ;;  %8024 = vmatpush.bf16.msrb.mxu1 %v13675_v61  ;;  %v7761_v47 = vpop.f32.mrf.mxu0 }
 0x551   : > { %v14696_v49 = vld [vmem:[%s17726_s15 + $0x1f70] sm:$0xf0] }
 0x552   : > { %v16465_v24 = vld [vmem:[%s17726_s15 + $0x12b4] sm:$0xf]  ;;  %v14699_v3 = vor.u32 %v16865_v17, %v14696_v49  ;;  %8037 = vmatpush.bf16.msrb.mxu2 %v14187_v52 }
 0x553   : > { %v13096_v54 = vld [vmem:[%s17726_s15 + $0x12f0] sm:$0xf0] }
 0x554   : > { %v16593_v25 = vld [vmem:[%s17726_s15 + $0x16b4] sm:$0xf]  ;;  %v13099_v38 = vor.u32 %v16465_v24, %v13096_v54  ;;  %8050 = vmatpush.bf16.msrb.mxu3 %v14699_v3  ;;  %v7774_v24 = vpop.f32.mrf.mxu1 }
 0x555   : > { %v13608_v57 = vld [vmem:[%s17726_s15 + $0x16f0] sm:$0xf0]  ;;  %v16090_v24 = vld [vmem:[%s17726_s15 + $0x6f4] sm:$0xf0] }
 0x556   : > { %v16721_v31 = vld [vmem:[%s17726_s15 + $0x1ab4] sm:$0xf]  ;;  %v13611_v63 = vor.u32 %v16593_v25, %v13608_v57  ;;  %8012 = vmatpush.bf16.msrb.mxu0 %v13099_v38 }
 0x557   : > { %v14120_v60 = vld [vmem:[%s17726_s15 + $0x1af0] sm:$0xf0] }
 0x558   : > { %v16849_v32 = vld [vmem:[%s17726_s15 + $0x1eb4] sm:$0xf]  ;;  %v14123_v35 = vor.u32 %v16721_v31, %v14120_v60  ;;  %8025 = vmatpush.bf16.msrb.mxu1 %v13611_v63 }
 0x559   : > { %v14632_v10 = vld [vmem:[%s17726_s15 + $0x1ef0] sm:$0xf0] }
 0x55a   : > { %v16449_v2 = vld [vmem:[%s17726_s15 + $0x1234] sm:$0xf]  ;;  %v14635_v44 = vor.u32 %v16849_v32, %v14632_v10  ;;  %8038 = vmatpush.bf16.msrb.mxu2 %v14123_v35 }
 0x55b   : > { %v13032_v36 = vld [vmem:[%s17726_s15 + $0x1270] sm:$0xf0] }
 0x55c   : > { %v16577_v16 = vld [vmem:[%s17726_s15 + $0x1634] sm:$0xf]  ;;  %v13035_v50 = vor.u32 %v16449_v2, %v13032_v36  ;;  %8051 = vmatpush.bf16.msrb.mxu3 %v14635_v44  ;;  %v7787_v44 = vpop.f32.mrf.mxu2 }
 0x55d   : > { %v13544_v5 = vld [vmem:[%s17726_s15 + $0x1670] sm:$0xf0]  ;;  %v12526_v44 = vld [vmem:[%s17726_s15 + $0xe38] sm:$0xf] }
 0x55e   : > { %v16705_v8 = vld [vmem:[%s17726_s15 + $0x1a34] sm:$0xf]  ;;  %v13547_v46 = vor.u32 %v16577_v16, %v13544_v5  ;;  %8013 = vmatpush.bf16.msrb.mxu0 %v13035_v50  ;;  %v11182_v50 = vld [vmem:[%s17726_s15 + $0x3b8] sm:$0xf] }
 0x55f   : > { %v14056_v9 = vld [vmem:[%s17726_s15 + $0x1a70] sm:$0xf0] }
 0x560   : > { %v16833_v40 = vld [vmem:[%s17726_s15 + $0x1e34] sm:$0xf]  ;;  %v14059_v14 = vor.u32 %v16705_v8, %v14056_v9  ;;  %8026 = vmatpush.bf16.msrb.mxu1 %v13547_v46  ;;  %v15994_v46 = vld [vmem:[%s17726_s15 + $0x3f4] sm:$0xf0] }
 0x561   : > { %v14568_v23 = vld [vmem:[%s17726_s15 + $0x1e70] sm:$0xf0] }
 0x562   : > { %v16433_v15 = vld [vmem:[%s17726_s15 + $0x11b4] sm:$0xf]  ;;  %v14571_v51 = vor.u32 %v16833_v40, %v14568_v23  ;;  %8039 = vmatpush.bf16.msrb.mxu2 %v14059_v14  ;;  %v7800_v23 = vpop.f32.mrf.mxu3  ;;  %v11694_v14 = vld [vmem:[%s17726_s15 + $0x7b8] sm:$0xf] }
 0x563   : > { %v12968_v48 = vld [vmem:[%s17726_s15 + $0x11f0] sm:$0xf0]  ;;  %v10926_v23 = vld [vmem:[%s17726_s15 + $0x1b8] sm:$0xf] }
 0x564   : > { %v16561_v30 = vld [vmem:[%s17726_s15 + $0x15b4] sm:$0xf]  ;;  %v12971_v26 = vor.u32 %v16433_v15, %v12968_v48  ;;  %8052 = vmatpush.bf16.msrb.mxu3 %v14571_v51  ;;  %v16122_v48 = vld [vmem:[%s17726_s15 + $0x7f4] sm:$0xf0] }
 0x565   : > { %v13480_v19 = vld [vmem:[%s17726_s15 + $0x15f0] sm:$0xf0]  ;;  %v16250_v51 = vld [vmem:[%s17726_s15 + $0xbf4] sm:$0xf0] }
 0x566   : > { %v16689_v20 = vld [vmem:[%s17726_s15 + $0x19b4] sm:$0xf]  ;;  %v13483_v29 = vor.u32 %v16561_v30, %v13480_v19  ;;  %8014 = vmatpush.bf16.msrb.mxu0 %v12971_v26  ;;  %v12206_v30 = vld [vmem:[%s17726_s15 + $0xbb8] sm:$0xf]  ;;  %v11183_v26 = vor.u32 %v15994_v46, %v11182_v50 }
 0x567   : > { %v13992_v53 = vld [vmem:[%s17726_s15 + $0x19f0] sm:$0xf0]  ;;  %v15930_v50 = vld [vmem:[%s17726_s15 + $0x1f4] sm:$0xf0] }
 0x568   : > { %v16817_v58 = vld [vmem:[%s17726_s15 + $0x1db4] sm:$0xf]  ;;  %v13995_v59 = vor.u32 %v16689_v20, %v13992_v53  ;;  %8027 = vmatpush.bf16.msrb.mxu1 %v13483_v29  ;;  %v12718_v53 = vld [vmem:[%s17726_s15 + $0xfb8] sm:$0xf]  ;;  %v11695_v29 = vor.u32 %v16122_v48, %v11694_v14 }
 0x569   : > { %v14504_v56 = vld [vmem:[%s17726_s15 + $0x1df0] sm:$0xf0]  ;;  %v11438_v46 = vld [vmem:[%s17726_s15 + $0x5b8] sm:$0xf] }
 0x56a   : > { %v16417_v0 = vld [vmem:[%s17726_s15 + $0x1134] sm:$0xf]  ;;  %v14507_v1 = vor.u32 %v16817_v58, %v14504_v56  ;;  %8040 = vmatpush.bf16.msrb.mxu2 %v13995_v59  ;;  %v16378_v58 = vld [vmem:[%s17726_s15 + $0xff4] sm:$0xf0]  ;;  %v12207_v59 = vor.u32 %v16250_v51, %v12206_v30 }
 0x56b   : > { %v12904_v62 = vld [vmem:[%s17726_s15 + $0x1170] sm:$0xf0]  ;;  %v16058_v30 = vld [vmem:[%s17726_s15 + $0x5f4] sm:$0xf0] }
 0x56c   : > { %v16545_v33 = vld [vmem:[%s17726_s15 + $0x1534] sm:$0xf]  ;;  %v12907_v41 = vor.u32 %v16417_v0, %v12904_v62  ;;  %8053 = vmatpush.bf16.msrb.mxu3 %v14507_v1  ;;  %v7773_v0 = vadd.f32 %v19764_v55, %v19759_v12  ;;  %v11118_v62 = vld [vmem:[%s17726_s15 + $0x338] sm:$0xf] }
 0x56d   : > { %v13416_v6 = vld [vmem:[%s17726_s15 + $0x1570] sm:$0xf0]  ;;  %v11630_v1 = vld [vmem:[%s17726_s15 + $0x738] sm:$0xf] }
 0x56e   : > { %v16673_v4 = vld [vmem:[%s17726_s15 + $0x1934] sm:$0xf]  ;;  %v13419_v17 = vor.u32 %v16545_v33, %v13416_v6  ;;  %8015 = vmatpush.bf16.msrb.mxu0 %v12907_v41  ;;  %v15978_v33 = vld [vmem:[%s17726_s15 + $0x374] sm:$0xf0]  ;;  %v12719_v6 = vor.u32 %v16378_v58, %v12718_v53 }
 0x56f   : > { %v13928_v37 = vld [vmem:[%s17726_s15 + $0x1970] sm:$0xf0]  ;;  %v16362_v41 = vld [vmem:[%s17726_s15 + $0xf74] sm:$0xf0]  ;;  %v11119_v12 = vor.u32 %v15978_v33, %v11118_v62  ;;  %v7837_v33 = vpop.f32.mrf.mxu2 }
 0x570   : > { %v16801_v13 = vld [vmem:[%s17726_s15 + $0x1d34] sm:$0xf]  ;;  %v13931_v49 = vor.u32 %v16673_v4, %v13928_v37  ;;  %8028 = vmatpush.bf16.msrb.mxu1 %v13419_v17  ;;  %v16106_v4 = vld [vmem:[%s17726_s15 + $0x774] sm:$0xf0]  ;;  %v7786_v17 = vadd.f32 %v19774_v34, %v7773_v0 }
 0x571   : > { %v14440_v11 = vld [vmem:[%s17726_s15 + $0x1d70] sm:$0xf0]  ;;  %v12142_v37 = vld [vmem:[%s17726_s15 + $0xb38] sm:$0xf]  ;;  %v11631_v55 = vor.u32 %v16106_v4, %v11630_v1 }
 0x572   : > { %v16401_v18 = vld [vmem:[%s17726_s15 + $0x10b4] sm:$0xf]  ;;  %v14443_v54 = vor.u32 %v16801_v13, %v14440_v11  ;;  %8041 = vmatpush.bf16.msrb.mxu2 %v13931_v49  ;;  %v16234_v13 = vld [vmem:[%s17726_s15 + $0xb74] sm:$0xf0] }
 0x573   : > { %v12840_v61 = vld [vmem:[%s17726_s15 + $0x10f0] sm:$0xf0]  ;;  %v12654_v11 = vld [vmem:[%s17726_s15 + $0xf38] sm:$0xf]  ;;  %v12143_v47 = vor.u32 %v16234_v13, %v12142_v37 }
 0x574   : > { %v16529_v52 = vld [vmem:[%s17726_s15 + $0x14b4] sm:$0xf]  ;;  %v12843_v32 = vor.u32 %v16401_v18, %v12840_v61  ;;  %8054 = vmatpush.bf16.msrb.mxu3 %v14443_v54  ;;  %v11054_v49 = vld [vmem:[%s17726_s15 + $0x2b8] sm:$0xf] }
 0x575   : > { %v13352_v25 = vld [vmem:[%s17726_s15 + $0x14f0] sm:$0xf0]  ;;  %v15962_v18 = vld [vmem:[%s17726_s15 + $0x2f4] sm:$0xf0] }
 0x576   : > { %v16657_v3 = vld [vmem:[%s17726_s15 + $0x18b4] sm:$0xf]  ;;  %v13355_v63 = vor.u32 %v16529_v52, %v13352_v25  ;;  %8016 = vmatpush.bf16.msrb.mxu0 %v12843_v32  ;;  %v11566_v61 = vld [vmem:[%s17726_s15 + $0x6b8] sm:$0xf]  ;;  %v12655_v52 = vor.u32 %v16362_v41, %v12654_v11  ;;  %v7850_v11 = vpop.f32.mrf.mxu3 }
 0x577   : > { %v13864_v57 = vld [vmem:[%s17726_s15 + $0x18f0] sm:$0xf0]  ;;  %v12078_v54 = vld [vmem:[%s17726_s15 + $0xab8] sm:$0xf] }
 0x578   : > { %v16785_v31 = vld [vmem:[%s17726_s15 + $0x1cb4] sm:$0xf]  ;;  %v13867_v35 = vor.u32 %v16657_v3, %v13864_v57  ;;  %8029 = vmatpush.bf16.msrb.mxu1 %v13355_v63  ;;  %v16218_v25 = vld [vmem:[%s17726_s15 + $0xaf4] sm:$0xf0]  ;;  %v11055_v57 = vor.u32 %v15962_v18, %v11054_v49 }
 0x579   : > { %v14376_v60 = vld [vmem:[%s17726_s15 + $0x1cf0] sm:$0xf0]  ;;  %v12590_v3 = vld [vmem:[%s17726_s15 + $0xeb8] sm:$0xf]  ;;  %v12079_v32 = vor.u32 %v16218_v25, %v12078_v54 }
 0x57a   : > { %v16385_v10 = vld [vmem:[%s17726_s15 + $0x1034] sm:$0xf]  ;;  %v14379_v5 = vor.u32 %v16785_v31, %v14376_v60  ;;  %8042 = vmatpush.bf16.msrb.mxu2 %v13867_v35  ;;  %v16346_v34 = vld [vmem:[%s17726_s15 + $0xef4] sm:$0xf0]  ;;  %v7799_v31 = vadd.f32 %v19779_v7, %v7786_v17  ;;  %v11567_v60 = vor.u32 %v16090_v24, %v11566_v61 }
 0x57b   : > { %v12776_v38 = vld [vmem:[%s17726_s15 + $0x1070] sm:$0xf0]  ;;  %v11502_v63 = vld [vmem:[%s17726_s15 + $0x638] sm:$0xf]  ;;  %v12591_v35 = vor.u32 %v16346_v34, %v12590_v3 }
 0x57c   : > { %v16513_v2 = vld [vmem:[%s17726_s15 + $0x1434] sm:$0xf]  ;;  %v12779_v15 = vor.u32 %v16385_v10, %v12776_v38  ;;  %8055 = vmatpush.bf16.msrb.mxu3 %v14379_v5  ;;  %v10990_v10 = vld [vmem:[%s17726_s15 + $0x238] sm:$0xf] }
 0x57d   : > { %v13288_v36 = vld [vmem:[%s17726_s15 + $0x1470] sm:$0xf0]  ;;  %v15946_v38 = vld [vmem:[%s17726_s15 + $0x274] sm:$0xf0] }
 0x57e   : > { %v16641_v16 = vld [vmem:[%s17726_s15 + $0x1834] sm:$0xf]  ;;  %v13291_v19 = vor.u32 %v16513_v2, %v13288_v36  ;;  %8017 = vmatpush.bf16.msrb.mxu0 %v12779_v15  ;;  %v16074_v2 = vld [vmem:[%s17726_s15 + $0x674] sm:$0xf0]  ;;  %v10991_v7 = vor.u32 %v15946_v38, %v10990_v10  ;;  %v7824_v15 = vpop.f32.mrf.mxu1 }
 0x57f   : > { %v13800_v8 = vld [vmem:[%s17726_s15 + $0x1870] sm:$0xf0]  ;;  %v12014_v36 = vld [vmem:[%s17726_s15 + $0xa38] sm:$0xf] }
 0x580   : > { %v16769_v9 = vld [vmem:[%s17726_s15 + $0x1c34] sm:$0xf]  ;;  %v13803_v20 = vor.u32 %v16641_v16, %v13800_v8  ;;  %8030 = vmatpush.bf16.msrb.mxu1 %v13291_v19  ;;  %v16202_v16 = vld [vmem:[%s17726_s15 + $0xa74] sm:$0xf0]  ;;  %v7811_v8 = vpop.f32.mrf.mxu0 }
 0x581   : > { %v14312_v40 = vld [vmem:[%s17726_s15 + $0x1c70] sm:$0xf0]  ;;  %8018 = vmatmul.bf16.vlgmr.msrb.gmra.mxu0 %v17910_v42  ;;  %v16330_v5 = vld [vmem:[%s17726_s15 + $0xe74] sm:$0xf0]  ;;  %v7812_v14 = vadd.f32 %v7811_v8, %v7799_v31 }
 0x582   : > { %v14315_v56 = vor.u32 %v16769_v9, %v14312_v40  ;;  %8043 = vmatpush.bf16.msrb.mxu2 %v13803_v20  ;;  %8062 = vmatpush.bf16.msra.mxu0 %v11183_v26  ;;  %v11503_v9 = vor.u32 %v16074_v2, %v11502_v63  ;;  %v12015_v40 = vor.u32 %v16202_v16, %v12014_v36  ;;  %v11950_v51 = vld [vmem:[%s17726_s15 + $0x9b8] sm:$0xf] }
 0x583   : > { %8031 = vmatmul.bf16.vlgmr.msrb.gmra.mxu1 %v17914_v45  ;;  %v12527_v48 = vor.u32 %v16330_v5, %v12526_v44  ;;  %v16186_v19 = vld [vmem:[%s17726_s15 + $0x9f4] sm:$0xf0]  ;;  %v7825_v58 = vadd.f32 %v7824_v15, %v7812_v14  ;;  %v11439_v26 = vor.u32 %v16058_v30, %v11438_v46 }
 0x584   : > { %8056 = vmatpush.bf16.msrb.mxu3 %v14315_v56  ;;  %8075 = vmatpush.bf16.msra.mxu1 %v11695_v29  ;;  %v12462_v20 = vld [vmem:[%s17726_s15 + $0xdb8] sm:$0xf]  ;;  %v10927_v56 = vor.u32 %v15930_v50, %v10926_v23  ;;  %v11951_v29 = vor.u32 %v16186_v19, %v11950_v51  ;;  %v7852_v50 = vpop.f32.mrf.mxu3 }
 0x585   : > { %8044 = vmatmul.bf16.vlgmr.msrb.gmra.mxu2 %v17906_v39  ;;  %v16314_v53 = vld [vmem:[%s17726_s15 + $0xdf4] sm:$0xf0]  ;;  %v7838_v13 = vadd.f32 %v7837_v33, %v7825_v58 }
 0x586   : > { %8088 = vmatpush.bf16.msra.mxu2 %v12207_v59  ;;  %8063 = vmatpush.bf16.msra.mxu0 %v11119_v12  ;;  %v10862_v59 = vld [vmem:[%s17726_s15 + $0x138] sm:$0xf]  ;;  %v12463_v1 = vor.u32 %v16314_v53, %v12462_v20  ;;  %v7826_v25 = vpop.f32.mrf.mxu1 }
 0x587   : > { %8057 = vmatmul.bf16.vlgmr.msrb.gmra.mxu3 %v17912_v43  ;;  %v15914_v0 = vld [vmem:[%s17726_s15 + $0x174] sm:$0xf0]  ;;  %v7851_v17 = vadd.f32 %v7850_v11, %v7838_v13 }
 0x588   : > { %8101 = vmatpush.bf16.msra.mxu3 %v12719_v6  ;;  %8076 = vmatpush.bf16.msra.mxu1 %v11631_v55  ;;  %v11374_v62 = vld [vmem:[%s17726_s15 + $0x538] sm:$0xf]  ;;  %v7813_v49 = vpop.f32.mrf.mxu0 }
 0x589   : > { %v16042_v6 = vld [vmem:[%s17726_s15 + $0x574] sm:$0xf0] }
 0x58a   : > { %8089 = vmatpush.bf16.msra.mxu2 %v12143_v47  ;;  %8064 = vmatpush.bf16.msra.mxu0 %v11055_v57  ;;  %v11886_v4 = vld [vmem:[%s17726_s15 + $0x938] sm:$0xf]  ;;  %v10863_v47 = vor.u32 %v15914_v0, %v10862_v59  ;;  %v11375_v18 = vor.u32 %v16042_v6, %v11374_v62 }
 0x58b   : > { %v16170_v37 = vld [vmem:[%s17726_s15 + $0x974] sm:$0xf0] }
 0x58c   : > { %8102 = vmatpush.bf16.msra.mxu3 %v12655_v52  ;;  %8077 = vmatpush.bf16.msra.mxu1 %v11567_v60  ;;  %v12398_v41 = vld [vmem:[%s17726_s15 + $0xd38] sm:$0xf]  ;;  %v11887_v61 = vor.u32 %v16170_v37, %v11886_v4 }
 0x58d   : > { %v16298_v12 = vld [vmem:[%s17726_s15 + $0xd74] sm:$0xf0] }
 0x58e   : > { %8090 = vmatpush.bf16.msra.mxu2 %v12079_v32  ;;  %8065 = vmatpush.bf16.msra.mxu0 %v10991_v7  ;;  %v429_v55 = vld [vmem:[#allocation2 + $0x38] sm:$0xff]  ;;  %v12399_v3 = vor.u32 %v16298_v12, %v12398_v41  ;;  %v7839_v7 = vpop.f32.mrf.mxu2  ;;  %v19912_v50 = vpop.f32.mrf.mxu1 }
 0x58f   : > { %v10798_v52 = vld [vmem:[%s17726_s15 + $0xb8] sm:$0xf]  ;;  %v8281_v34 = vadd.f32 %v7851_v17, %v429_v55 }
 0x590   : > { %8103 = vmatpush.bf16.msra.mxu3 %v12591_v35  ;;  %8078 = vmatpush.bf16.msra.mxu1 %v11503_v9  ;;  %v15898_v24 = vld [vmem:[%s17726_s15 + $0xf4] sm:$0xf0] }
 0x591   : > { %v11310_v54 = vld [vmem:[%s17726_s15 + $0x4b8] sm:$0xf]  ;;  %8297 = vst [vmem:[#allocation2 + $0x38] sm:$0xff] %v8281_v34  ;;  %v10799_v38 = vor.u32 %v15898_v24, %v10798_v52 }
 0x592   : > { %8091 = vmatpush.bf16.msra.mxu2 %v12015_v40  ;;  %8066 = vmatpush.bf16.msra.mxu0 %v10927_v56  ;;  %v16026_v57 = vld [vmem:[%s17726_s15 + $0x4f4] sm:$0xf0] }
 0x593   : > { %v11822_v31 = vld [vmem:[%s17726_s15 + $0x8b8] sm:$0xf]  ;;  %v11311_v2 = vor.u32 %v16026_v57, %v11310_v54 }
 0x594   : > { %8104 = vmatpush.bf16.msra.mxu3 %v12527_v48  ;;  %8079 = vmatpush.bf16.msra.mxu1 %v11439_v26  ;;  %v16154_v60 = vld [vmem:[%s17726_s15 + $0x8f4] sm:$0xf0] }
 0x595   : > { %v12334_v32 = vld [vmem:[%s17726_s15 + $0xcb8] sm:$0xf]  ;;  %v11823_v36 = vor.u32 %v16154_v60, %v11822_v31 }
 0x596   : > { %8092 = vmatpush.bf16.msra.mxu2 %v11951_v29  ;;  %v16282_v10 = vld [vmem:[%s17726_s15 + $0xcf4] sm:$0xf0]  ;;  %8067 = vmatpush.bf16.msra.mxu0 %v10863_v47 }
 0x597   : > { %v10734_v63 = vld [vmem:[%s17726_s15 + $0x38] sm:$0xf]  ;;  %v12335_v8 = vor.u32 %v16282_v10, %v12334_v32 }
 0x598   : > { %8105 = vmatpush.bf16.msra.mxu3 %v12463_v1  ;;  %v15882_v35 = vld [vmem:[%s17726_s15 + $0x74] sm:$0xf0]  ;;  %8080 = vmatpush.bf16.msra.mxu1 %v11375_v18 }
 0x599   : > { %v11246_v16 = vld [vmem:[%s17726_s15 + $0x438] sm:$0xf]  ;;  %v10735_v48 = vor.u32 %v15882_v35, %v10734_v63 }
 0x59a   : > { %8093 = vmatpush.bf16.msra.mxu2 %v11887_v61  ;;  %v16010_v44 = vld [vmem:[%s17726_s15 + $0x474] sm:$0xf0]  ;;  %8068 = vmatpush.bf16.msra.mxu0 %v10799_v38 }
 0x59b   : > { %v11758_v5 = vld [vmem:[%s17726_s15 + $0x838] sm:$0xf]  ;;  %v11247_v20 = vor.u32 %v16010_v44, %v11246_v16 }
 0x59c   : > { %8106 = vmatpush.bf16.msra.mxu3 %v12399_v3  ;;  %v16138_v9 = vld [vmem:[%s17726_s15 + $0x874] sm:$0xf0]  ;;  %8081 = vmatpush.bf16.msra.mxu1 %v11311_v2 }
 0x59d   : > { %v12270_v40 = vld [vmem:[%s17726_s15 + $0xc38] sm:$0xf]  ;;  %v11759_v53 = vor.u32 %v16138_v9, %v11758_v5  ;;  %v19907_v5 = vpop.f32.mrf.mxu0 }
 0x59e   : > { %v16266_v23 = vld [vmem:[%s17726_s15 + $0xc74] sm:$0xf0]  ;;  %8094 = vmatpush.bf16.msra.mxu2 %v11823_v36  ;;  %8069 = vmatpush.bf16.msra.mxu0 %v10735_v48 }
 0x59f   : > { %v13230_v46 = vld [vmem:[%s17726_s15 + $0x13b8] sm:$0xf]  ;;  %v12271_v26 = vor.u32 %v16266_v23, %v12270_v40 }
 0x5a0   : > { %v16506_v14 = vld [vmem:[%s17726_s15 + $0x13f4] sm:$0xf0]  ;;  %8107 = vmatpush.bf16.msra.mxu3 %v12335_v8  ;;  %8082 = vmatpush.bf16.msra.mxu1 %v11247_v20 }
 0x5a1   : > { %v13742_v15 = vld [vmem:[%s17726_s15 + $0x17b8] sm:$0xf]  ;;  %v13231_v29 = vor.u32 %v16506_v14, %v13230_v46  ;;  %8070 = vmatmul.bf16.vlgmr.msra.gmra.mxu0 %v17853_v27 }
 0x5a2   : > { %v16634_v30 = vld [vmem:[%s17726_s15 + $0x17f4] sm:$0xf0]  ;;  %8095 = vmatpush.bf16.msra.mxu2 %v11759_v53 }
 0x5a3   : > { %v14254_v51 = vld [vmem:[%s17726_s15 + $0x1bb8] sm:$0xf]  ;;  %v13743_v59 = vor.u32 %v16634_v30, %v13742_v15  ;;  %8114 = vmatpush.bf16.msrb.mxu0 %v13231_v29  ;;  %8083 = vmatmul.bf16.vlgmr.msra.gmra.mxu1 %v17855_v28  ;;  %v19922_v29 = vpop.f32.mrf.mxu2 }
 0x5a4   : > { %v16762_v19 = vld [vmem:[%s17726_s15 + $0x1bf4] sm:$0xf0]  ;;  %8108 = vmatpush.bf16.msra.mxu3 %v12271_v26 }
 0x5a5   : > { %v14766_v58 = vld [vmem:[%s17726_s15 + $0x1fb8] sm:$0xf]  ;;  %v14255_v0 = vor.u32 %v16762_v19, %v14254_v51  ;;  %8127 = vmatpush.bf16.msrb.mxu1 %v13743_v59  ;;  %8096 = vmatmul.bf16.vlgmr.msra.gmra.mxu2 %v17846_v21 }
 0x5a6   : > { %v16890_v56 = vld [vmem:[%s17726_s15 + $0x1ff4] sm:$0xf0] }
 0x5a7   : > { %v13166_v62 = vld [vmem:[%s17726_s15 + $0x1338] sm:$0xf]  ;;  %v14767_v6 = vor.u32 %v16890_v56, %v14766_v58  ;;  %8140 = vmatpush.bf16.msrb.mxu2 %v14255_v0  ;;  %8109 = vmatmul.bf16.vlgmr.msra.gmra.mxu3 %v17848_v22 }
 0x5a8   : > { %v16490_v33 = vld [vmem:[%s17726_s15 + $0x1374] sm:$0xf0] }
 0x5a9   : > { %v13678_v1 = vld [vmem:[%s17726_s15 + $0x1738] sm:$0xf]  ;;  %v13167_v12 = vor.u32 %v16490_v33, %v13166_v62  ;;  %8153 = vmatpush.bf16.msrb.mxu3 %v14767_v6 }
 0x5aa   : > { %v16618_v4 = vld [vmem:[%s17726_s15 + $0x1774] sm:$0xf0] }
 0x5ab   : > { %v14190_v37 = vld [vmem:[%s17726_s15 + $0x1b38] sm:$0xf]  ;;  %v13679_v55 = vor.u32 %v16618_v4, %v13678_v1  ;;  %8115 = vmatpush.bf16.msrb.mxu0 %v13167_v12  ;;  %v19927_v1 = vpop.f32.mrf.mxu3 }
 0x5ac   : > { %v16746_v13 = vld [vmem:[%s17726_s15 + $0x1b74] sm:$0xf0] }
 0x5ad   : > { %v14702_v11 = vld [vmem:[%s17726_s15 + $0x1f38] sm:$0xf]  ;;  %v14191_v47 = vor.u32 %v16746_v13, %v14190_v37  ;;  %8128 = vmatpush.bf16.msrb.mxu1 %v13679_v55  ;;  %v7865_v13 = vpop.f32.mrf.mxu0 }
 0x5ae   : > { %v16874_v41 = vld [vmem:[%s17726_s15 + $0x1f74] sm:$0xf0] }
 0x5af   : > { %v13102_v17 = vld [vmem:[%s17726_s15 + $0x12b8] sm:$0xf]  ;;  %v14703_v61 = vor.u32 %v16874_v41, %v14702_v11  ;;  %8141 = vmatpush.bf16.msrb.mxu2 %v14191_v47 }
 0x5b0   : > { %v16474_v49 = vld [vmem:[%s17726_s15 + $0x12f4] sm:$0xf0] }
 0x5b1   : > { %v13614_v18 = vld [vmem:[%s17726_s15 + $0x16b8] sm:$0xf]  ;;  %v13103_v34 = vor.u32 %v16474_v49, %v13102_v17  ;;  %8154 = vmatpush.bf16.msrb.mxu3 %v14703_v61  ;;  %v7878_v17 = vpop.f32.mrf.mxu1 }
 0x5b2   : > { %v16602_v52 = vld [vmem:[%s17726_s15 + $0x16f4] sm:$0xf0]  ;;  %v11568_v17 = vld [vmem:[%s17726_s15 + $0x6f8] sm:$0xf0] }
 0x5b3   : > { %v14126_v24 = vld [vmem:[%s17726_s15 + $0x1ab8] sm:$0xf]  ;;  %v13615_v57 = vor.u32 %v16602_v52, %v13614_v18  ;;  %8116 = vmatpush.bf16.msrb.mxu0 %v13103_v34 }
 0x5b4   : > { %v16730_v54 = vld [vmem:[%s17726_s15 + $0x1af4] sm:$0xf0] }
 0x5b5   : > { %v14638_v25 = vld [vmem:[%s17726_s15 + $0x1eb8] sm:$0xf]  ;;  %v14127_v31 = vor.u32 %v16730_v54, %v14126_v24  ;;  %8129 = vmatpush.bf16.msrb.mxu1 %v13615_v57 }
 0x5b6   : > { %v16858_v3 = vld [vmem:[%s17726_s15 + $0x1ef4] sm:$0xf0] }
 0x5b7   : > { %v13038_v60 = vld [vmem:[%s17726_s15 + $0x1238] sm:$0xf]  ;;  %v14639_v38 = vor.u32 %v16858_v3, %v14638_v25  ;;  %8142 = vmatpush.bf16.msrb.mxu2 %v14127_v31 }
 0x5b8   : > { %v16458_v32 = vld [vmem:[%s17726_s15 + $0x1274] sm:$0xf0] }
 0x5b9   : > { %v13550_v10 = vld [vmem:[%s17726_s15 + $0x1638] sm:$0xf]  ;;  %v13039_v44 = vor.u32 %v16458_v32, %v13038_v60  ;;  %8155 = vmatpush.bf16.msrb.mxu3 %v14639_v38  ;;  %v7891_v38 = vpop.f32.mrf.mxu2 }
 0x5ba   : > { %v16586_v63 = vld [vmem:[%s17726_s15 + $0x1674] sm:$0xf0]  ;;  %v16322_v38 = vld [vmem:[%s17726_s15 + $0xe3c] sm:$0xf] }
 0x5bb   : > { %v14062_v35 = vld [vmem:[%s17726_s15 + $0x1a38] sm:$0xf]  ;;  %v13551_v7 = vor.u32 %v16586_v63, %v13550_v10  ;;  %8117 = vmatpush.bf16.msrb.mxu0 %v13039_v44  ;;  %v15986_v44 = vld [vmem:[%s17726_s15 + $0x3bc] sm:$0xf] }
 0x5bc   : > { %v16714_v2 = vld [vmem:[%s17726_s15 + $0x1a74] sm:$0xf0] }
 0x5bd   : > { %v14574_v36 = vld [vmem:[%s17726_s15 + $0x1e38] sm:$0xf]  ;;  %v14063_v8 = vor.u32 %v16714_v2, %v14062_v35  ;;  %8130 = vmatpush.bf16.msrb.mxu1 %v13551_v7  ;;  %v11184_v7 = vld [vmem:[%s17726_s15 + $0x3f8] sm:$0xf0] }
 0x5be   : > { %v16842_v16 = vld [vmem:[%s17726_s15 + $0x1e74] sm:$0xf0] }
 0x5bf   : > { %v12974_v9 = vld [vmem:[%s17726_s15 + $0x11b8] sm:$0xf]  ;;  %v14575_v46 = vor.u32 %v16842_v16, %v14574_v36  ;;  %8143 = vmatpush.bf16.msrb.mxu2 %v14063_v8  ;;  %v7904_v16 = vpop.f32.mrf.mxu3  ;;  %v16114_v8 = vld [vmem:[%s17726_s15 + $0x7bc] sm:$0xf] }
 0x5c0   : > { %v16442_v40 = vld [vmem:[%s17726_s15 + $0x11f4] sm:$0xf0]  ;;  %v15922_v16 = vld [vmem:[%s17726_s15 + $0x1bc] sm:$0xf] }
 0x5c1   : > { %v13486_v23 = vld [vmem:[%s17726_s15 + $0x15b8] sm:$0xf]  ;;  %v12975_v19 = vor.u32 %v16442_v40, %v12974_v9  ;;  %8156 = vmatpush.bf16.msrb.mxu3 %v14575_v46  ;;  %v11696_v40 = vld [vmem:[%s17726_s15 + $0x7f8] sm:$0xf0] }
 0x5c2   : > { %v16570_v14 = vld [vmem:[%s17726_s15 + $0x15f4] sm:$0xf0]  ;;  %v12208_v46 = vld [vmem:[%s17726_s15 + $0xbf8] sm:$0xf0] }
 0x5c3   : > { %v13998_v15 = vld [vmem:[%s17726_s15 + $0x19b8] sm:$0xf]  ;;  %v13487_v20 = vor.u32 %v16570_v14, %v13486_v23  ;;  %8118 = vmatpush.bf16.msrb.mxu0 %v12975_v19  ;;  %v16242_v23 = vld [vmem:[%s17726_s15 + $0xbbc] sm:$0xf]  ;;  %v11187_v19 = vor.u32 %v15986_v44, %v11184_v7 }
 0x5c4   : > { %v16698_v48 = vld [vmem:[%s17726_s15 + $0x19f4] sm:$0xf0]  ;;  %v10928_v44 = vld [vmem:[%s17726_s15 + $0x1f8] sm:$0xf0] }
 0x5c5   : > { %v14510_v30 = vld [vmem:[%s17726_s15 + $0x1db8] sm:$0xf]  ;;  %v13999_v53 = vor.u32 %v16698_v48, %v13998_v15  ;;  %8131 = vmatpush.bf16.msrb.mxu1 %v13487_v20  ;;  %v16370_v48 = vld [vmem:[%s17726_s15 + $0xfbc] sm:$0xf]  ;;  %v11699_v20 = vor.u32 %v16114_v8, %v11696_v40 }
 0x5c6   : > { %v16826_v51 = vld [vmem:[%s17726_s15 + $0x1df4] sm:$0xf0]  ;;  %v16050_v7 = vld [vmem:[%s17726_s15 + $0x5bc] sm:$0xf] }
 0x5c7   : > { %v12910_v58 = vld [vmem:[%s17726_s15 + $0x1138] sm:$0xf]  ;;  %v14511_v59 = vor.u32 %v16826_v51, %v14510_v30  ;;  %8144 = vmatpush.bf16.msrb.mxu2 %v13999_v53  ;;  %v12720_v30 = vld [vmem:[%s17726_s15 + $0xff8] sm:$0xf0]  ;;  %v12211_v53 = vor.u32 %v16242_v23, %v12208_v46 }
 0x5c8   : > { %v16426_v56 = vld [vmem:[%s17726_s15 + $0x1174] sm:$0xf0]  ;;  %v11440_v23 = vld [vmem:[%s17726_s15 + $0x5f8] sm:$0xf0] }
 0x5c9   : > { %v13422_v26 = vld [vmem:[%s17726_s15 + $0x1538] sm:$0xf]  ;;  %v12911_v37 = vor.u32 %v16426_v56, %v12910_v58  ;;  %8157 = vmatpush.bf16.msrb.mxu3 %v14511_v59  ;;  %v7877_v58 = vadd.f32 %v19912_v50, %v19907_v5  ;;  %v15970_v56 = vld [vmem:[%s17726_s15 + $0x33c] sm:$0xf] }
 0x5ca   : > { %v16554_v0 = vld [vmem:[%s17726_s15 + $0x1574] sm:$0xf0]  ;;  %v16098_v59 = vld [vmem:[%s17726_s15 + $0x73c] sm:$0xf] }
 0x5cb   : > { %v13934_v62 = vld [vmem:[%s17726_s15 + $0x1938] sm:$0xf]  ;;  %v13423_v11 = vor.u32 %v16554_v0, %v13422_v26  ;;  %8119 = vmatpush.bf16.msrb.mxu0 %v12911_v37  ;;  %v11120_v26 = vld [vmem:[%s17726_s15 + $0x378] sm:$0xf0]  ;;  %v12723_v0 = vor.u32 %v16370_v48, %v12720_v30 }
 0x5cc   : > { %v16682_v33 = vld [vmem:[%s17726_s15 + $0x1974] sm:$0xf0]  ;;  %v12656_v37 = vld [vmem:[%s17726_s15 + $0xf78] sm:$0xf0]  ;;  %v11123_v5 = vor.u32 %v15970_v56, %v11120_v26  ;;  %v7941_v26 = vpop.f32.mrf.mxu2 }
 0x5cd   : > { %v14446_v6 = vld [vmem:[%s17726_s15 + $0x1d38] sm:$0xf]  ;;  %v13935_v41 = vor.u32 %v16682_v33, %v13934_v62  ;;  %8132 = vmatpush.bf16.msrb.mxu1 %v13423_v11  ;;  %v11632_v62 = vld [vmem:[%s17726_s15 + $0x778] sm:$0xf0]  ;;  %v7890_v11 = vadd.f32 %v19922_v29, %v7877_v58 }
 0x5ce   : > { %v16810_v4 = vld [vmem:[%s17726_s15 + $0x1d74] sm:$0xf0]  ;;  %v16226_v33 = vld [vmem:[%s17726_s15 + $0xb3c] sm:$0xf]  ;;  %v11635_v50 = vor.u32 %v16098_v59, %v11632_v62 }
 0x5cf   : > { %v12846_v12 = vld [vmem:[%s17726_s15 + $0x10b8] sm:$0xf]  ;;  %v14447_v49 = vor.u32 %v16810_v4, %v14446_v6  ;;  %8145 = vmatpush.bf16.msrb.mxu2 %v13935_v41  ;;  %v12144_v6 = vld [vmem:[%s17726_s15 + $0xb78] sm:$0xf0] }
 0x5d0   : > { %v16410_v55 = vld [vmem:[%s17726_s15 + $0x10f4] sm:$0xf0]  ;;  %v16354_v4 = vld [vmem:[%s17726_s15 + $0xf3c] sm:$0xf]  ;;  %v12147_v13 = vor.u32 %v16226_v33, %v12144_v6 }
 0x5d1   : > { %v13358_v47 = vld [vmem:[%s17726_s15 + $0x14b8] sm:$0xf]  ;;  %v12847_v25 = vor.u32 %v16410_v55, %v12846_v12  ;;  %8158 = vmatpush.bf16.msrb.mxu3 %v14447_v49  ;;  %v15954_v41 = vld [vmem:[%s17726_s15 + $0x2bc] sm:$0xf] }
 0x5d2   : > { %v16538_v18 = vld [vmem:[%s17726_s15 + $0x14f4] sm:$0xf0]  ;;  %v11056_v12 = vld [vmem:[%s17726_s15 + $0x2f8] sm:$0xf0] }
 0x5d3   : > { %v13870_v61 = vld [vmem:[%s17726_s15 + $0x18b8] sm:$0xf]  ;;  %v13359_v57 = vor.u32 %v16538_v18, %v13358_v47  ;;  %8120 = vmatpush.bf16.msrb.mxu0 %v12847_v25  ;;  %v16082_v55 = vld [vmem:[%s17726_s15 + $0x6bc] sm:$0xf]  ;;  %v12659_v47 = vor.u32 %v16354_v4, %v12656_v37  ;;  %v7954_v4 = vpop.f32.mrf.mxu3 }
 0x5d4   : > { %v16666_v52 = vld [vmem:[%s17726_s15 + $0x18f4] sm:$0xf0]  ;;  %v16210_v49 = vld [vmem:[%s17726_s15 + $0xabc] sm:$0xf] }
 0x5d5   : > { %v14382_v24 = vld [vmem:[%s17726_s15 + $0x1cb8] sm:$0xf]  ;;  %v13871_v31 = vor.u32 %v16666_v52, %v13870_v61  ;;  %8133 = vmatpush.bf16.msrb.mxu1 %v13359_v57  ;;  %v12080_v18 = vld [vmem:[%s17726_s15 + $0xaf8] sm:$0xf0]  ;;  %v11059_v52 = vor.u32 %v15954_v41, %v11056_v12 }
 0x5d6   : > { %v16794_v54 = vld [vmem:[%s17726_s15 + $0x1cf4] sm:$0xf0]  ;;  %v16338_v61 = vld [vmem:[%s17726_s15 + $0xebc] sm:$0xf]  ;;  %v12083_v25 = vor.u32 %v16210_v49, %v12080_v18 }
 0x5d7   : > { %v12782_v3 = vld [vmem:[%s17726_s15 + $0x1038] sm:$0xf]  ;;  %v14383_v63 = vor.u32 %v16794_v54, %v14382_v24  ;;  %8146 = vmatpush.bf16.msrb.mxu2 %v13871_v31  ;;  %v12592_v29 = vld [vmem:[%s17726_s15 + $0xef8] sm:$0xf0]  ;;  %v7903_v24 = vadd.f32 %v19927_v1, %v7890_v11  ;;  %v11571_v54 = vor.u32 %v16082_v55, %v11568_v17 }
 0x5d8   : > { %v16394_v34 = vld [vmem:[%s17726_s15 + $0x1074] sm:$0xf0]  ;;  %v16066_v57 = vld [vmem:[%s17726_s15 + $0x63c] sm:$0xf]  ;;  %v12595_v31 = vor.u32 %v16338_v61, %v12592_v29 }
 0x5d9   : > { %v13294_v60 = vld [vmem:[%s17726_s15 + $0x1438] sm:$0xf]  ;;  %v12783_v9 = vor.u32 %v16394_v34, %v12782_v3  ;;  %8159 = vmatpush.bf16.msrb.mxu3 %v14383_v63  ;;  %v15938_v3 = vld [vmem:[%s17726_s15 + $0x23c] sm:$0xf] }
 0x5da   : > { %v16522_v32 = vld [vmem:[%s17726_s15 + $0x1474] sm:$0xf0]  ;;  %v10992_v34 = vld [vmem:[%s17726_s15 + $0x278] sm:$0xf0] }
 0x5db   : > { %v13806_v10 = vld [vmem:[%s17726_s15 + $0x1838] sm:$0xf]  ;;  %v13295_v14 = vor.u32 %v16522_v32, %v13294_v60  ;;  %8121 = vmatpush.bf16.msrb.mxu0 %v12783_v9  ;;  %v11504_v60 = vld [vmem:[%s17726_s15 + $0x678] sm:$0xf0]  ;;  %v10995_v1 = vor.u32 %v15938_v3, %v10992_v34  ;;  %v7928_v9 = vpop.f32.mrf.mxu1 }
 0x5dc   : > { %v16650_v35 = vld [vmem:[%s17726_s15 + $0x1874] sm:$0xf0]  ;;  %v16194_v32 = vld [vmem:[%s17726_s15 + $0xa3c] sm:$0xf] }
 0x5dd   : > { %v14318_v2 = vld [vmem:[%s17726_s15 + $0x1c38] sm:$0xf]  ;;  %v13807_v15 = vor.u32 %v16650_v35, %v13806_v10  ;;  %8134 = vmatpush.bf16.msrb.mxu1 %v13295_v14  ;;  %v12016_v10 = vld [vmem:[%s17726_s15 + $0xa78] sm:$0xf0]  ;;  %v7915_v35 = vpop.f32.mrf.mxu0 }
 0x5de   : > { %v16778_v36 = vld [vmem:[%s17726_s15 + $0x1c74] sm:$0xf0]  ;;  %8122 = vmatmul.bf16.vlgmr.msrb.gmra.mxu0 %v17910_v42  ;;  %v12528_v63 = vld [vmem:[%s17726_s15 + $0xe78] sm:$0xf0]  ;;  %v7916_v8 = vadd.f32 %v7915_v35, %v7903_v24 }
 0x5df   : > { %v14319_v51 = vor.u32 %v16778_v36, %v14318_v2  ;;  %8147 = vmatpush.bf16.msrb.mxu2 %v13807_v15  ;;  %8166 = vmatpush.bf16.msra.mxu0 %v11187_v19  ;;  %v11507_v2 = vor.u32 %v16066_v57, %v11504_v60  ;;  %v12019_v36 = vor.u32 %v16194_v32, %v12016_v10  ;;  %v16178_v46 = vld [vmem:[%s17726_s15 + $0x9bc] sm:$0xf] }
 0x5e0   : > { %8135 = vmatmul.bf16.vlgmr.msrb.gmra.mxu1 %v17914_v45  ;;  %v12531_v40 = vor.u32 %v16322_v38, %v12528_v63  ;;  %v11952_v14 = vld [vmem:[%s17726_s15 + $0x9f8] sm:$0xf0]  ;;  %v7929_v30 = vadd.f32 %v7928_v9, %v7916_v8  ;;  %v11443_v19 = vor.u32 %v16050_v7, %v11440_v23 }
 0x5e1   : > { %8160 = vmatpush.bf16.msrb.mxu3 %v14319_v51  ;;  %8179 = vmatpush.bf16.msra.mxu1 %v11699_v20  ;;  %v16306_v15 = vld [vmem:[%s17726_s15 + $0xdbc] sm:$0xf]  ;;  %v10931_v51 = vor.u32 %v15922_v16, %v10928_v44  ;;  %v11955_v20 = vor.u32 %v16178_v46, %v11952_v14  ;;  %v7956_v44 = vpop.f32.mrf.mxu3 }
 0x5e2   : > { %8148 = vmatmul.bf16.vlgmr.msrb.gmra.mxu2 %v17906_v39  ;;  %v12464_v48 = vld [vmem:[%s17726_s15 + $0xdf8] sm:$0xf0]  ;;  %v7942_v6 = vadd.f32 %v7941_v26, %v7929_v30 }
 0x5e3   : > { %8192 = vmatpush.bf16.msra.mxu2 %v12211_v53  ;;  %8167 = vmatpush.bf16.msra.mxu0 %v11123_v5  ;;  %v15906_v53 = vld [vmem:[%s17726_s15 + $0x13c] sm:$0xf]  ;;  %v12467_v59 = vor.u32 %v16306_v15, %v12464_v48  ;;  %v7930_v18 = vpop.f32.mrf.mxu1 }
 0x5e4   : > { %8161 = vmatmul.bf16.vlgmr.msrb.gmra.mxu3 %v17912_v43  ;;  %v10864_v58 = vld [vmem:[%s17726_s15 + $0x178] sm:$0xf0]  ;;  %v7955_v11 = vadd.f32 %v7954_v4, %v7942_v6 }
 0x5e5   : > { %8205 = vmatpush.bf16.msra.mxu3 %v12723_v0  ;;  %8180 = vmatpush.bf16.msra.mxu1 %v11635_v50  ;;  %v16034_v56 = vld [vmem:[%s17726_s15 + $0x53c] sm:$0xf]  ;;  %v430_v50 = vld [vmem:[#allocation2 + $0x60] sm:$0xff]  ;;  %v7917_v41 = vpop.f32.mrf.mxu0 }
 0x5e6   : > { %v11376_v0 = vld [vmem:[%s17726_s15 + $0x578] sm:$0xf0]  ;;  %v8282_v29 = vadd.f32 %v7955_v11, %v430_v50 }
 0x5e7   : > { %8193 = vmatpush.bf16.msra.mxu2 %v12147_v13  ;;  %8168 = vmatpush.bf16.msra.mxu0 %v11059_v52  ;;  %v16162_v62 = vld [vmem:[%s17726_s15 + $0x93c] sm:$0xf]  ;;  %v10867_v13 = vor.u32 %v15906_v53, %v10864_v58  ;;  %v11379_v12 = vor.u32 %v16034_v56, %v11376_v0 }
 0x5e8   : > { %v11888_v33 = vld [vmem:[%s17726_s15 + $0x978] sm:$0xf0]  ;;  %8298 = vst [vmem:[#allocation2 + $0x60] sm:$0xff] %v8282_v29 }
 0x5e9   : > { %8206 = vmatpush.bf16.msra.mxu3 %v12659_v47  ;;  %8181 = vmatpush.bf16.msra.mxu1 %v11571_v54  ;;  %v16290_v37 = vld [vmem:[%s17726_s15 + $0xd3c] sm:$0xf]  ;;  %v11891_v55 = vor.u32 %v16162_v62, %v11888_v33 }
 0x5ea   : > { %v12400_v5 = vld [vmem:[%s17726_s15 + $0xd78] sm:$0xf0] }
 0x5eb   : > { %8194 = vmatpush.bf16.msra.mxu2 %v12083_v25  ;;  %8169 = vmatpush.bf16.msra.mxu0 %v10995_v1  ;;  %v15890_v47 = vld [vmem:[%s17726_s15 + $0xbc] sm:$0xf]  ;;  %v12403_v61 = vor.u32 %v16290_v37, %v12400_v5  ;;  %v7943_v1 = vpop.f32.mrf.mxu2 }
 0x5ec   : > { %v10800_v17 = vld [vmem:[%s17726_s15 + $0xf8] sm:$0xf0] }
 0x5ed   : > { %8207 = vmatpush.bf16.msra.mxu3 %v12595_v31  ;;  %8182 = vmatpush.bf16.msra.mxu1 %v11507_v2  ;;  %v16018_v49 = vld [vmem:[%s17726_s15 + $0x4bc] sm:$0xf]  ;;  %v10803_v34 = vor.u32 %v15890_v47, %v10800_v17 }
 0x5ee   : > { %v11312_v52 = vld [vmem:[%s17726_s15 + $0x4f8] sm:$0xf0] }
 0x5ef   : > { %8195 = vmatpush.bf16.msra.mxu2 %v12019_v36  ;;  %8170 = vmatpush.bf16.msra.mxu0 %v10931_v51  ;;  %v16146_v24 = vld [vmem:[%s17726_s15 + $0x8bc] sm:$0xf]  ;;  %v11315_v60 = vor.u32 %v16018_v49, %v11312_v52 }
 0x5f0   : > { %v11824_v54 = vld [vmem:[%s17726_s15 + $0x8f8] sm:$0xf0] }
 0x5f1   : > { %8208 = vmatpush.bf16.msra.mxu3 %v12531_v40  ;;  %8183 = vmatpush.bf16.msra.mxu1 %v11443_v19  ;;  %v16274_v25 = vld [vmem:[%s17726_s15 + $0xcbc] sm:$0xf]  ;;  %v11827_v32 = vor.u32 %v16146_v24, %v11824_v54 }
 0x5f2   : > { %v12336_v3 = vld [vmem:[%s17726_s15 + $0xcf8] sm:$0xf0] }
 0x5f3   : > { %8196 = vmatpush.bf16.msra.mxu2 %v11955_v20  ;;  %8171 = vmatpush.bf16.msra.mxu0 %v10867_v13  ;;  %v15874_v57 = vld [vmem:[%s17726_s15 + $0x3c] sm:$0xf]  ;;  %v12339_v35 = vor.u32 %v16274_v25, %v12336_v3 }
 0x5f4   : > { %v10736_v31 = vld [vmem:[%s17726_s15 + $0x78] sm:$0xf0] }
 0x5f5   : > { %8209 = vmatpush.bf16.msra.mxu3 %v12467_v59  ;;  %8184 = vmatpush.bf16.msra.mxu1 %v11379_v12  ;;  %v16002_v10 = vld [vmem:[%s17726_s15 + $0x43c] sm:$0xf]  ;;  %v10739_v40 = vor.u32 %v15874_v57, %v10736_v31 }
 0x5f6   : > { %v11248_v38 = vld [vmem:[%s17726_s15 + $0x478] sm:$0xf0] }
 0x5f7   : > { %8197 = vmatpush.bf16.msra.mxu2 %v11891_v55  ;;  %v16130_v63 = vld [vmem:[%s17726_s15 + $0x83c] sm:$0xf]  ;;  %8172 = vmatpush.bf16.msra.mxu0 %v10803_v34  ;;  %v11251_v15 = vor.u32 %v16002_v10, %v11248_v38 }
 0x5f8   : > { %v11760_v2 = vld [vmem:[%s17726_s15 + $0x878] sm:$0xf0] }
 0x5f9   : > { %8210 = vmatpush.bf16.msra.mxu3 %v12403_v61  ;;  %v16258_v36 = vld [vmem:[%s17726_s15 + $0xc3c] sm:$0xf]  ;;  %8185 = vmatpush.bf16.msra.mxu1 %v11315_v60  ;;  %v11763_v48 = vor.u32 %v16130_v63, %v11760_v2  ;;  %v20055_v60 = vpop.f32.mrf.mxu0 }
 0x5fa   : > { %v12272_v16 = vld [vmem:[%s17726_s15 + $0xc78] sm:$0xf0] }
 0x5fb   : > { %v16498_v7 = vld [vmem:[%s17726_s15 + $0x13bc] sm:$0xf]  ;;  %8198 = vmatpush.bf16.msra.mxu2 %v11827_v32  ;;  %v12275_v19 = vor.u32 %v16258_v36, %v12272_v16  ;;  %8173 = vmatpush.bf16.msra.mxu0 %v10739_v40 }
 0x5fc   : > { %v13232_v8 = vld [vmem:[%s17726_s15 + $0x13f8] sm:$0xf0] }
 0x5fd   : > { %v16626_v9 = vld [vmem:[%s17726_s15 + $0x17bc] sm:$0xf]  ;;  %8211 = vmatpush.bf16.msra.mxu3 %v12339_v35  ;;  %v13235_v20 = vor.u32 %v16498_v7, %v13232_v8  ;;  %8186 = vmatpush.bf16.msra.mxu1 %v11251_v15  ;;  %v20060_v35 = vpop.f32.mrf.mxu1 }
 0x5fe   : > { %v13744_v23 = vld [vmem:[%s17726_s15 + $0x17f8] sm:$0xf0]  ;;  %8174 = vmatmul.bf16.vlgmr.msra.gmra.mxu0 %v17853_v27 }
 0x5ff   : > { %v16754_v46 = vld [vmem:[%s17726_s15 + $0x1bbc] sm:$0xf]  ;;  %v13747_v53 = vor.u32 %v16626_v9, %v13744_v23  ;;  %8199 = vmatpush.bf16.msra.mxu2 %v11763_v48  ;;  %8218 = vmatpush.bf16.msrb.mxu0 %v13235_v20  ;;  %v7993_v48 = vpop.f32.mrf.mxu2 }
 0x600   : > { %v14256_v14 = vld [vmem:[%s17726_s15 + $0x1bf8] sm:$0xf0]  ;;  %8187 = vmatmul.bf16.vlgmr.msra.gmra.mxu1 %v17855_v28 }
 0x601   : > { %v16882_v30 = vld [vmem:[%s17726_s15 + $0x1fbc] sm:$0xf]  ;;  %v14259_v58 = vor.u32 %v16754_v46, %v14256_v14  ;;  %8212 = vmatpush.bf16.msra.mxu3 %v12275_v19  ;;  %8231 = vmatpush.bf16.msrb.mxu1 %v13747_v53  ;;  %v8006_v53 = vpop.f32.mrf.mxu3 }
 0x602   : > { %v14768_v51 = vld [vmem:[%s17726_s15 + $0x1ff8] sm:$0xf0]  ;;  %8200 = vmatmul.bf16.vlgmr.msra.gmra.mxu2 %v17846_v21 }
 0x603   : > { %v16482_v56 = vld [vmem:[%s17726_s15 + $0x133c] sm:$0xf]  ;;  %v14771_v0 = vor.u32 %v16882_v30, %v14768_v51  ;;  %8244 = vmatpush.bf16.msrb.mxu2 %v14259_v58 }
 0x604   : > { %v13168_v26 = vld [vmem:[%s17726_s15 + $0x1378] sm:$0xf0]  ;;  %8213 = vmatmul.bf16.vlgmr.msra.gmra.mxu3 %v17848_v22 }
 0x605   : > { %v16610_v59 = vld [vmem:[%s17726_s15 + $0x173c] sm:$0xf]  ;;  %v13171_v5 = vor.u32 %v16482_v56, %v13168_v26  ;;  %8257 = vmatpush.bf16.msrb.mxu3 %v14771_v0 }
 0x606   : > { %v13680_v62 = vld [vmem:[%s17726_s15 + $0x1778] sm:$0xf0] }
 0x607   : > { %v16738_v33 = vld [vmem:[%s17726_s15 + $0x1b3c] sm:$0xf]  ;;  %v13683_v50 = vor.u32 %v16610_v59, %v13680_v62  ;;  %8219 = vmatpush.bf16.msrb.mxu0 %v13171_v5  ;;  %v7969_v59 = vpop.f32.mrf.mxu0 }
 0x608   : > { %v14192_v6 = vld [vmem:[%s17726_s15 + $0x1b78] sm:$0xf0] }
 0x609   : > { %v16866_v4 = vld [vmem:[%s17726_s15 + $0x1f3c] sm:$0xf]  ;;  %v14195_v13 = vor.u32 %v16738_v33, %v14192_v6  ;;  %8232 = vmatpush.bf16.msrb.mxu1 %v13683_v50 }
 0x60a   : > { %v14704_v37 = vld [vmem:[%s17726_s15 + $0x1f78] sm:$0xf0] }
 0x60b   : > { %v16466_v11 = vld [vmem:[%s17726_s15 + $0x12bc] sm:$0xf]  ;;  %v14707_v55 = vor.u32 %v16866_v4, %v14704_v37  ;;  %8245 = vmatpush.bf16.msrb.mxu2 %v14195_v13  ;;  %v7982_v37 = vpop.f32.mrf.mxu1 }
 0x60c   : > { %v13104_v41 = vld [vmem:[%s17726_s15 + $0x12f8] sm:$0xf0] }
 0x60d   : > { %v16594_v12 = vld [vmem:[%s17726_s15 + $0x16bc] sm:$0xf]  ;;  %v13107_v29 = vor.u32 %v16466_v11, %v13104_v41  ;;  %8258 = vmatpush.bf16.msrb.mxu3 %v14707_v55 }
 0x60e   : > { %v13616_v47 = vld [vmem:[%s17726_s15 + $0x16f8] sm:$0xf0] }
 0x60f   : > { %v16722_v17 = vld [vmem:[%s17726_s15 + $0x1abc] sm:$0xf]  ;;  %v13619_v21 = vor.u32 %v16594_v12, %v13616_v47  ;;  %8220 = vmatpush.bf16.msrb.mxu0 %v13107_v29  ;;  %v7995_v29 = vpop.f32.mrf.mxu2 }
 0x610   : > { %v14128_v49 = vld [vmem:[%s17726_s15 + $0x1af8] sm:$0xf0] }
 0x611   : > { %v16850_v18 = vld [vmem:[%s17726_s15 + $0x1ebc] sm:$0xf]  ;;  %v14131_v52 = vor.u32 %v16722_v17, %v14128_v49  ;;  %8233 = vmatpush.bf16.msrb.mxu1 %v13619_v21 }
 0x612   : > { %v14640_v61 = vld [vmem:[%s17726_s15 + $0x1ef8] sm:$0xf0] }
 0x613   : > { %v16450_v24 = vld [vmem:[%s17726_s15 + $0x123c] sm:$0xf]  ;;  %v14643_v25 = vor.u32 %v16850_v18, %v14640_v61  ;;  %8246 = vmatpush.bf16.msrb.mxu2 %v14131_v52 }
 0x614   : > { %v13040_v54 = vld [vmem:[%s17726_s15 + $0x1278] sm:$0xf0] }
 0x615   : > { %v16578_v22 = vld [vmem:[%s17726_s15 + $0x163c] sm:$0xf]  ;;  %v13043_v28 = vor.u32 %v16450_v24, %v13040_v54  ;;  %8259 = vmatpush.bf16.msrb.mxu3 %v14643_v25 }
 0x616   : > { %v13552_v3 = vld [vmem:[%s17726_s15 + $0x1678] sm:$0xf0] }
 0x617   : > { %v16706_v27 = vld [vmem:[%s17726_s15 + $0x1a3c] sm:$0xf]  ;;  %v13555_v32 = vor.u32 %v16578_v22, %v13552_v3  ;;  %8221 = vmatpush.bf16.msrb.mxu0 %v13043_v28  ;;  %v8008_v22 = vpop.f32.mrf.mxu3  ;;  %v7981_v28 = vadd.f32 %v20060_v35, %v20055_v60 }
 0x618   : > { %v14064_v34 = vld [vmem:[%s17726_s15 + $0x1a78] sm:$0xf0] }
 0x619   : > { %v16834_v57 = vld [vmem:[%s17726_s15 + $0x1e3c] sm:$0xf]  ;;  %v14067_v10 = vor.u32 %v16706_v27, %v14064_v34  ;;  %8234 = vmatpush.bf16.msrb.mxu1 %v13555_v32  ;;  %v7994_v32 = vadd.f32 %v7993_v48, %v7981_v28 }
 0x61a   : > { %v14576_v31 = vld [vmem:[%s17726_s15 + $0x1e78] sm:$0xf0] }
 0x61b   : > { %v16434_v38 = vld [vmem:[%s17726_s15 + $0x11bc] sm:$0xf]  ;;  %v14579_v2 = vor.u32 %v16834_v57, %v14576_v31  ;;  %8247 = vmatpush.bf16.msrb.mxu2 %v14067_v10  ;;  %v8007_v10 = vadd.f32 %v8006_v53, %v7994_v32 }
 0x61c   : > { %v12976_v63 = vld [vmem:[%s17726_s15 + $0x11f8] sm:$0xf0] }
 0x61d   : > { %v16562_v1 = vld [vmem:[%s17726_s15 + $0x15bc] sm:$0xf]  ;;  %v12979_v9 = vor.u32 %v16434_v38, %v12976_v63  ;;  %8260 = vmatpush.bf16.msrb.mxu3 %v14579_v2  ;;  %v8019_v38 = vpop.f32.mrf.mxu0 }
 0x61e   : > { %v13488_v36 = vld [vmem:[%s17726_s15 + $0x15f8] sm:$0xf0]  ;;  %v8020_v63 = vadd.f32 %v8019_v38, %v8007_v10 }
 0x61f   : > { %v16690_v16 = vld [vmem:[%s17726_s15 + $0x19bc] sm:$0xf]  ;;  %v13491_v40 = vor.u32 %v16562_v1, %v13488_v36  ;;  %8222 = vmatpush.bf16.msrb.mxu0 %v12979_v9  ;;  %v8032_v1 = vpop.f32.mrf.mxu1  ;;  %v8045_v36 = vpop.f32.mrf.mxu2 }
 0x620   : > { %v14000_v44 = vld [vmem:[%s17726_s15 + $0x19f8] sm:$0xf0]  ;;  %v8033_v2 = vadd.f32 %v8032_v1, %v8020_v63  ;;  %v8058_v35 = vpop.f32.mrf.mxu3 }
 0x621   : > { %v16818_v7 = vld [vmem:[%s17726_s15 + $0x1dbc] sm:$0xf]  ;;  %v14003_v23 = vor.u32 %v16690_v16, %v14000_v44  ;;  %8235 = vmatpush.bf16.msrb.mxu1 %v13491_v40  ;;  %v431_v16 = vld [vmem:[#allocation2 + $0x70] sm:$0xff] }
 0x622   : > { %v14512_v8 = vld [vmem:[%s17726_s15 + $0x1df8] sm:$0xf0]  ;;  %v8046_v60 = vadd.f32 %v8045_v36, %v8033_v2 }
 0x623   : > { %v16418_v46 = vld [vmem:[%s17726_s15 + $0x113c] sm:$0xf]  ;;  %v14515_v30 = vor.u32 %v16818_v7, %v14512_v8  ;;  %8248 = vmatpush.bf16.msrb.mxu2 %v14003_v23 }
 0x624   : > { %v12912_v14 = vld [vmem:[%s17726_s15 + $0x1178] sm:$0xf0]  ;;  %v8059_v44 = vadd.f32 %v8058_v35, %v8046_v60 }
 0x625   : > { %v16546_v15 = vld [vmem:[%s17726_s15 + $0x153c] sm:$0xf]  ;;  %v12915_v26 = vor.u32 %v16418_v46, %v12912_v14  ;;  %8261 = vmatpush.bf16.msrb.mxu3 %v14515_v30  ;;  %v8021_v7 = vpop.f32.mrf.mxu0 }
 0x626   : > { %v13424_v51 = vld [vmem:[%s17726_s15 + $0x1578] sm:$0xf0] }
 0x627   : > { %v16674_v19 = vld [vmem:[%s17726_s15 + $0x193c] sm:$0xf]  ;;  %v13427_v0 = vor.u32 %v16546_v15, %v13424_v51  ;;  %8223 = vmatpush.bf16.msrb.mxu0 %v12915_v26  ;;  %v8034_v8 = vpop.f32.mrf.mxu1  ;;  %v8047_v9 = vpop.f32.mrf.mxu2 }
 0x628   : > { %v13936_v20 = vld [vmem:[%s17726_s15 + $0x1978] sm:$0xf0] }
 0x629   : > { %v16802_v58 = vld [vmem:[%s17726_s15 + $0x1d3c] sm:$0xf]  ;;  %v13939_v62 = vor.u32 %v16674_v19, %v13936_v20  ;;  %8236 = vmatpush.bf16.msrb.mxu1 %v13427_v0 }
 0x62a   : > { %v14448_v56 = vld [vmem:[%s17726_s15 + $0x1d78] sm:$0xf0] }
 0x62b   : > { %v16402_v33 = vld [vmem:[%s17726_s15 + $0x10bc] sm:$0xf]  ;;  %v14451_v5 = vor.u32 %v16802_v58, %v14448_v56  ;;  %8249 = vmatpush.bf16.msrb.mxu2 %v13939_v62 }
 0x62c   : > { %v12848_v6 = vld [vmem:[%s17726_s15 + $0x10f8] sm:$0xf0] }
 0x62d   : > { %v16530_v4 = vld [vmem:[%s17726_s15 + $0x14bc] sm:$0xf]  ;;  %v12851_v55 = vor.u32 %v16402_v33, %v12848_v6  ;;  %8262 = vmatpush.bf16.msrb.mxu3 %v14451_v5  ;;  %v8071_v40 = vpop.f32.mrf.mxu0 }
 0x62e   : > { %v13360_v50 = vld [vmem:[%s17726_s15 + $0x14f8] sm:$0xf0] }
 0x62f   : > { %v16658_v13 = vld [vmem:[%s17726_s15 + $0x18bc] sm:$0xf]  ;;  %v13363_v47 = vor.u32 %v16530_v4, %v13360_v50  ;;  %8224 = vmatpush.bf16.msrb.mxu0 %v12851_v55  ;;  %v8097_v23 = vpop.f32.mrf.mxu2 }
 0x630   : > { %v13872_v11 = vld [vmem:[%s17726_s15 + $0x18f8] sm:$0xf0] }
 0x631   : > { %v16786_v41 = vld [vmem:[%s17726_s15 + $0x1cbc] sm:$0xf]  ;;  %v13875_v17 = vor.u32 %v16658_v13, %v13872_v11  ;;  %8237 = vmatpush.bf16.msrb.mxu1 %v13363_v47 }
 0x632   : > { %v14384_v12 = vld [vmem:[%s17726_s15 + $0x1cf8] sm:$0xf0] }
 0x633   : > { %v16386_v49 = vld [vmem:[%s17726_s15 + $0x103c] sm:$0xf]  ;;  %v14387_v21 = vor.u32 %v16786_v41, %v14384_v12  ;;  %8250 = vmatpush.bf16.msrb.mxu2 %v13875_v17 }
 0x634   : > { %v12784_v18 = vld [vmem:[%s17726_s15 + $0x1078] sm:$0xf0] }
 0x635   : > { %v16514_v61 = vld [vmem:[%s17726_s15 + $0x143c] sm:$0xf]  ;;  %v12787_v27 = vor.u32 %v16386_v49, %v12784_v18  ;;  %8263 = vmatpush.bf16.msrb.mxu3 %v14387_v21  ;;  %v8073_v46 = vpop.f32.mrf.mxu0 }
 0x636   : > { %v13296_v52 = vld [vmem:[%s17726_s15 + $0x1478] sm:$0xf0] }
 0x637   : > { %v16642_v24 = vld [vmem:[%s17726_s15 + $0x183c] sm:$0xf]  ;;  %v13299_v34 = vor.u32 %v16514_v61, %v13296_v52  ;;  %8225 = vmatpush.bf16.msrb.mxu0 %v12787_v27  ;;  %v8099_v15 = vpop.f32.mrf.mxu2 }
 0x638   : > { %v13808_v54 = vld [vmem:[%s17726_s15 + $0x1878] sm:$0xf0] }
 0x639   : > { %v16770_v25 = vld [vmem:[%s17726_s15 + $0x1c3c] sm:$0xf]  ;;  %v13811_v57 = vor.u32 %v16642_v24, %v13808_v54  ;;  %8238 = vmatpush.bf16.msrb.mxu1 %v13299_v34  ;;  %v433_v34 = vld [vmem:[#allocation2 + $0x28] sm:$0xff] }
 0x63a   : > { %v14320_v3 = vld [vmem:[%s17726_s15 + $0x1c78] sm:$0xf0]  ;;  %8226 = vmatmul.bf16.vlgmr.msrb.gmra.mxu0 %v17910_v42  ;;  %v8283_v42 = vadd.f32 %v8059_v44, %v431_v16 }
 0x63b   : > { %v14323_v31 = vor.u32 %v16770_v25, %v14320_v3  ;;  %8251 = vmatpush.bf16.msrb.mxu2 %v13811_v57  ;;  %v432_v62 = vld [vmem:[#allocation2 + $0x78] sm:$0xff] }
 0x63c   : > { %8239 = vmatmul.bf16.vlgmr.msrb.gmra.mxu1 %v17914_v45  ;;  %8299 = vst [vmem:[#allocation2 + $0x70] sm:$0xff] %v8283_v42  ;;  %v8060_v45 = vpop.f32.mrf.mxu3 }
 0x63d   : > { %8264 = vmatpush.bf16.msrb.mxu3 %v14323_v31 }
 0x63e   : > { %8252 = vmatmul.bf16.vlgmr.msrb.gmra.mxu2 %v17906_v39  ;;  %v8084_v39 = vpop.f32.mrf.mxu1 }
 0x63f   : > { %v8085_v30 = vadd.f32 %v8084_v39, %v8071_v40 }
 0x640   : > { %8265 = vmatmul.bf16.vlgmr.msrb.gmra.mxu3 %v17912_v43 }
 0x641   : > { %v8098_v51 = vadd.f32 %v8097_v23, %v8085_v30 }
 0x644   : > { %v8110_v43 = vpop.f32.mrf.mxu3 }
 0x645   : > { %v8111_v19 = vadd.f32 %v8110_v43, %v8098_v51 }
 0x646   : > { %v8086_v14 = vpop.f32.mrf.mxu1 }
 0x64c   : > { %v8112_v48 = vpop.f32.mrf.mxu3 }
 0x65b   : > { %v8123_v20 = vpop.f32.mrf.mxu0 }
 0x65c   : > { %v8124_v53 = vadd.f32 %v8123_v20, %v8111_v19 }
 0x65d   : > { %v8136_v58 = vpop.f32.mrf.mxu1 }
 0x65e   : > { %v8137_v56 = vadd.f32 %v8136_v58, %v8124_v53 }
 0x663   : > { %v8125_v6 = vpop.f32.mrf.mxu0 }
 0x665   : > { %v8149_v26 = vpop.f32.mrf.mxu2  ;;  %v8138_v4 = vpop.f32.mrf.mxu1 }
 0x666   : > { %v8150_v59 = vadd.f32 %v8149_v26, %v8137_v56 }
 0x667   : > { %v8162_v0 = vpop.f32.mrf.mxu3 }
 0x668   : > { %v8163_v33 = vadd.f32 %v8162_v0, %v8150_v59 }
 0x66a   : > { %v8284_v37 = vadd.f32 %v8163_v33, %v432_v62 }
 0x66c   : > { %8300 = vst [vmem:[#allocation2 + $0x78] sm:$0xff] %v8284_v37 }
 0x66d   : > { %v8151_v5 = vpop.f32.mrf.mxu2 }
 0x66f   : > { %v8164_v50 = vpop.f32.mrf.mxu3 }
 0x67b   : > { %v8175_v13 = vpop.f32.mrf.mxu0 }
 0x67d   : > { %v8188_v11 = vpop.f32.mrf.mxu1 }
 0x67e   : > { %v8189_v18 = vadd.f32 %v8188_v11, %v8175_v13 }
 0x683   : > { %v8177_v55 = vpop.f32.mrf.mxu0 }
 0x685   : > { %v8201_v41 = vpop.f32.mrf.mxu2  ;;  %v8190_v47 = vpop.f32.mrf.mxu1 }
 0x686   : > { %v8202_v61 = vadd.f32 %v8201_v41, %v8189_v18 }
 0x687   : > { %v8214_v12 = vpop.f32.mrf.mxu3 }
 0x688   : > { %v8215_v29 = vadd.f32 %v8214_v12, %v8202_v61 }
 0x68d   : > { %v8203_v17 = vpop.f32.mrf.mxu2 }
 0x68f   : > { %v8216_v49 = vpop.f32.mrf.mxu3 }
 0x6b7   : > { %v8227_v21 = vpop.f32.mrf.mxu0 }
 0x6b8   : > { %v8228_v24 = vadd.f32 %v8227_v21, %v8215_v29 }
 0x6b9   : > { %v8240_v52 = vpop.f32.mrf.mxu1 }
 0x6ba   : > { %v8241_v54 = vadd.f32 %v8240_v52, %v8228_v24 }
 0x6bf   : > { %v8229_v27 = vpop.f32.mrf.mxu0 }
 0x6c1   : > { %v8253_v22 = vpop.f32.mrf.mxu2  ;;  %v8242_v57 = vpop.f32.mrf.mxu1 }
 0x6c2   : > { %v8254_v25 = vadd.f32 %v8253_v22, %v8241_v54 }
 0x6c3   : > { %v8266_v3 = vpop.f32.mrf.mxu3 }
 0x6c4   : > { %v8267_v31 = vadd.f32 %v8266_v3, %v8254_v25 }
 0x6c6   : > { %v8285_v28 = vadd.f32 %v8267_v31, %v433_v34 }
 0x6c7   : > { %8305 = sbr.rel (%p14772_p1) target bundleno = 2274 (0x8e2), region = 80 }
 0x6c8   : > { %8301 = vst [vmem:[#allocation2 + $0x28] sm:$0xff] %v8285_v28 }
 0x6c9   : > { %v8255_v32 = vpop.f32.mrf.mxu2 }
 0x6cb   : > { %v8268_v10 = vpop.f32.mrf.mxu3 }
 0x6cc   : > { %v14831_v38 = vld [vmem:[#allocation9 + $0x70] sm:$0xf]  ;;  %v16906_v63 = vld [vmem:[#allocation9 + $0x74] sm:$0xf0]  ;;  %v14823_v42 = vld [vmem:[#allocation9 + $0x60] sm:$0xf] }
 0x6cd   : > { %v14895_v1 = vld [vmem:[#allocation9 + $0xf0] sm:$0xf]  ;;  %v14832_v2 = vor.u32 %v16906_v63, %v14831_v38  ;;  %v16922_v36 = vld [vmem:[#allocation9 + $0xf4] sm:$0xf0]  ;;  %v16904_v45 = vld [vmem:[#allocation9 + $0x64] sm:$0xf0] }
 0x6ce   : > { %v14959_v60 = vld [vmem:[#allocation9 + $0x170] sm:$0xf]  ;;  %v16938_v35 = vld [vmem:[#allocation9 + $0x174] sm:$0xf0]  ;;  %v14896_v16 = vor.u32 %v16922_v36, %v14895_v1  ;;  %v14887_v40 = vld [vmem:[#allocation9 + $0xe0] sm:$0xf]  ;;  %v14824_v23 = vor.u32 %v16904_v45, %v14823_v42 }
 0x6cf   : > { %v14960_v44 = vor.u32 %v16938_v35, %v14959_v60  ;;  %v15023_v7 = vld [vmem:[#allocation9 + $0x1f0] sm:$0xf]  ;;  %v16954_v8 = vld [vmem:[#allocation9 + $0x1f4] sm:$0xf0]  ;;  %9948 = vmatpush.bf16.msra.mxu0 %v14832_v2  ;;  %v16920_v39 = vld [vmem:[#allocation9 + $0xe4] sm:$0xf0] }
 0x6d0   : > { %v15024_v9 = vor.u32 %v16954_v8, %v15023_v7  ;;  %9961 = vmatpush.bf16.msra.mxu1 %v14896_v16  ;;  %v14888_v43 = vor.u32 %v16920_v39, %v14887_v40  ;;  %v14951_v46 = vld [vmem:[#allocation9 + $0x160] sm:$0xf]  ;;  %v16936_v14 = vld [vmem:[#allocation9 + $0x164] sm:$0xf0]  ;;  %v14815_v51 = vld [vmem:[#allocation9 + $0x50] sm:$0xf] }
 0x6d1   : > { %9974 = vmatpush.bf16.msra.mxu2 %v14960_v44  ;;  %v15015_v15 = vld [vmem:[#allocation9 + $0x1e0] sm:$0xf]  ;;  %v14952_v48 = vor.u32 %v16936_v14, %v14951_v46  ;;  %v16952_v30 = vld [vmem:[#allocation9 + $0x1e4] sm:$0xf0]  ;;  %v16902_v19 = vld [vmem:[#allocation9 + $0x54] sm:$0xf0] }
 0x6d2   : > { %9987 = vmatpush.bf16.msra.mxu3 %v15024_v9  ;;  %v15016_v20 = vor.u32 %v16952_v30, %v15015_v15  ;;  %v14879_v53 = vld [vmem:[#allocation9 + $0xd0] sm:$0xf]  ;;  %v16918_v58 = vld [vmem:[#allocation9 + $0xd4] sm:$0xf0]  ;;  %v14816_v26 = vor.u32 %v16902_v19, %v14815_v51  ;;  %v14807_v4 = vld [vmem:[#allocation9 + $0x40] sm:$0xf] }
 0x6d3   : > { %v14943_v56 = vld [vmem:[#allocation9 + $0x150] sm:$0xf]  ;;  %9949 = vmatpush.bf16.msra.mxu0 %v14824_v23  ;;  %v16934_v59 = vld [vmem:[#allocation9 + $0x154] sm:$0xf0]  ;;  %v14880_v33 = vor.u32 %v16918_v58, %v14879_v53  ;;  %v16900_v37 = vld [vmem:[#allocation9 + $0x44] sm:$0xf0] }
 0x6d4   : > { %v15007_v0 = vld [vmem:[#allocation9 + $0x1d0] sm:$0xf]  ;;  %v16950_v62 = vld [vmem:[#allocation9 + $0x1d4] sm:$0xf0]  ;;  %9962 = vmatpush.bf16.msra.mxu1 %v14888_v43  ;;  %v14944_v6 = vor.u32 %v16934_v59, %v14943_v56  ;;  %v14871_v5 = vld [vmem:[#allocation9 + $0xc0] sm:$0xf]  ;;  %v14808_v47 = vor.u32 %v16900_v37, %v14807_v4 }
 0x6d5   : > { %9975 = vmatpush.bf16.msra.mxu2 %v14952_v48  ;;  %v15008_v50 = vor.u32 %v16950_v62, %v15007_v0  ;;  %v16916_v13 = vld [vmem:[#allocation9 + $0xc4] sm:$0xf0]  ;;  %v14935_v11 = vld [vmem:[#allocation9 + $0x140] sm:$0xf]  ;;  %v14799_v18 = vld [vmem:[#allocation9 + $0x30] sm:$0xf] }
 0x6d6   : > { %9988 = vmatpush.bf16.msra.mxu3 %v15016_v20  ;;  %v16932_v41 = vld [vmem:[#allocation9 + $0x144] sm:$0xf0]  ;;  %v14999_v12 = vld [vmem:[#allocation9 + $0x1c0] sm:$0xf]  ;;  %v14872_v17 = vor.u32 %v16916_v13, %v14871_v5  ;;  %v16898_v61 = vld [vmem:[#allocation9 + $0x34] sm:$0xf0] }
 0x6d7   : > { %v16948_v55 = vld [vmem:[#allocation9 + $0x1c4] sm:$0xf0]  ;;  %9950 = vmatpush.bf16.msra.mxu0 %v14816_v26  ;;  %v14936_v49 = vor.u32 %v16932_v41, %v14935_v11  ;;  %v14863_v29 = vld [vmem:[#allocation9 + $0xb0] sm:$0xf]  ;;  %v16914_v52 = vld [vmem:[#allocation9 + $0xb4] sm:$0xf0]  ;;  %v14800_v3 = vor.u32 %v16898_v61, %v14799_v18 }
 0x6d8   : > { %9963 = vmatpush.bf16.msra.mxu1 %v14880_v33  ;;  %v15000_v21 = vor.u32 %v16948_v55, %v14999_v12  ;;  %v14927_v24 = vld [vmem:[#allocation9 + $0x130] sm:$0xf]  ;;  %v16930_v54 = vld [vmem:[#allocation9 + $0x134] sm:$0xf0]  ;;  %v14864_v27 = vor.u32 %v16914_v52, %v14863_v29  ;;  %v14791_v57 = vld [vmem:[#allocation9 + $0x20] sm:$0xf] }
 0x6d9   : > { %9976 = vmatpush.bf16.msra.mxu2 %v14944_v6  ;;  %v14991_v22 = vld [vmem:[#allocation9 + $0x1b0] sm:$0xf]  ;;  %v16946_v25 = vld [vmem:[#allocation9 + $0x1b4] sm:$0xf0]  ;;  %v14928_v34 = vor.u32 %v16930_v54, %v14927_v24  ;;  %v16896_v31 = vld [vmem:[#allocation9 + $0x24] sm:$0xf0] }
 0x6da   : > { %9989 = vmatpush.bf16.msra.mxu3 %v15008_v50  ;;  %v14855_v28 = vld [vmem:[#allocation9 + $0xa0] sm:$0xf]  ;;  %v14992_v32 = vor.u32 %v16946_v25, %v14991_v22  ;;  %v16912_v10 = vld [vmem:[#allocation9 + $0xa4] sm:$0xf0]  ;;  %v14792_v36 = vor.u32 %v16896_v31, %v14791_v57  ;;  %v14783_v16 = vld [vmem:[#allocation9 + $0x10] sm:$0xf] }
 0x6db   : > { %9951 = vmatpush.bf16.msra.mxu0 %v14808_v47  ;;  %v14919_v38 = vld [vmem:[#allocation9 + $0x120] sm:$0xf]  ;;  %v16928_v63 = vld [vmem:[#allocation9 + $0x124] sm:$0xf0]  ;;  %v14856_v60 = vor.u32 %v16912_v10, %v14855_v28  ;;  %v16894_v44 = vld [vmem:[#allocation9 + $0x14] sm:$0xf0] }
 0x6dc   : > { %9964 = vmatpush.bf16.msra.mxu1 %v14872_v17  ;;  %v14983_v1 = vld [vmem:[#allocation9 + $0x1a0] sm:$0xf]  ;;  %v16944_v2 = vld [vmem:[#allocation9 + $0x1a4] sm:$0xf0]  ;;  %v14920_v35 = vor.u32 %v16928_v63, %v14919_v38  ;;  %v14847_v7 = vld [vmem:[#allocation9 + $0x90] sm:$0xf]  ;;  %v14784_v23 = vor.u32 %v16894_v44, %v14783_v16 }
 0x6dd   : > { %9977 = vmatpush.bf16.msra.mxu2 %v14936_v49  ;;  %v14984_v8 = vor.u32 %v16944_v2, %v14983_v1  ;;  %v16910_v42 = vld [vmem:[#allocation9 + $0x94] sm:$0xf0]  ;;  %v14911_v9 = vld [vmem:[#allocation9 + $0x110] sm:$0xf]  ;;  %v14775_v43 = vld [vmem:[#allocation9] sm:$0xf] }
 0x6de   : > { %9990 = vmatpush.bf16.msra.mxu3 %v15000_v21  ;;  %v16926_v45 = vld [vmem:[#allocation9 + $0x114] sm:$0xf0]  ;;  %v14975_v40 = vld [vmem:[#allocation9 + $0x190] sm:$0xf]  ;;  %v16892_v46 = vld [vmem:[#allocation9 + $0x4] sm:$0xf0]  ;;  %v14848_v14 = vor.u32 %v16910_v42, %v14847_v7 }
 0x6df   : > { %9952 = vmatpush.bf16.msra.mxu0 %v14800_v3  ;;  %v16942_v39 = vld [vmem:[#allocation9 + $0x194] sm:$0xf0]  ;;  %v14912_v15 = vor.u32 %v16926_v45, %v14911_v9  ;;  %v14839_v48 = vld [vmem:[#allocation9 + $0x80] sm:$0xf]  ;;  %v16908_v30 = vld [vmem:[#allocation9 + $0x84] sm:$0xf0]  ;;  %v14776_v0 = vor.u32 %v16892_v46, %v14775_v43 }
 0x6e0   : > { %9965 = vmatpush.bf16.msra.mxu1 %v14864_v27  ;;  %v14903_v51 = vld [vmem:[#allocation9 + $0x100] sm:$0xf]  ;;  %v14976_v19 = vor.u32 %v16942_v39, %v14975_v40  ;;  %v16924_v20 = vld [vmem:[#allocation9 + $0x104] sm:$0xf0]  ;;  %v15087_v56 = vld [vmem:[#allocation9 + $0x270] sm:$0xf]  ;;  %v14840_v4 = vor.u32 %v16908_v30, %v14839_v48 }
 0x6e1   : > { %9978 = vmatpush.bf16.msra.mxu2 %v14928_v34  ;;  %v14967_v53 = vld [vmem:[#allocation9 + $0x180] sm:$0xf]  ;;  %v16940_v58 = vld [vmem:[#allocation9 + $0x184] sm:$0xf0]  ;;  %v16970_v26 = vld [vmem:[#allocation9 + $0x274] sm:$0xf0]  ;;  %v14904_v37 = vor.u32 %v16924_v20, %v14903_v51 }
 0x6e2   : > { %9991 = vmatpush.bf16.msra.mxu3 %v14992_v32  ;;  %v15151_v59 = vld [vmem:[#allocation9 + $0x2f0] sm:$0xf]  ;;  %v16986_v62 = vld [vmem:[#allocation9 + $0x2f4] sm:$0xf0]  ;;  %v14968_v13 = vor.u32 %v16940_v58, %v14967_v53  ;;  %v15088_v11 = vor.u32 %v16970_v26, %v15087_v56  ;;  %v15079_v55 = vld [vmem:[#allocation9 + $0x260] sm:$0xf] }
 0x6e3   : > { %9953 = vmatpush.bf16.msra.mxu0 %v14792_v36  ;;  %v15215_v33 = vld [vmem:[#allocation9 + $0x370] sm:$0xf]  ;;  %v17002_v6 = vld [vmem:[#allocation9 + $0x374] sm:$0xf0]  ;;  %v15152_v41 = vor.u32 %v16986_v62, %v15151_v59  ;;  %v16968_v47 = vld [vmem:[#allocation9 + $0x264] sm:$0xf0] }
 0x6e4   : > { %9966 = vmatpush.bf16.msra.mxu1 %v14856_v60  ;;  %v15279_v5 = vld [vmem:[#allocation9 + $0x3f0] sm:$0xf]  ;;  %v17018_v50 = vld [vmem:[#allocation9 + $0x3f4] sm:$0xf0]  ;;  %v15216_v12 = vor.u32 %v17002_v6, %v15215_v33  ;;  %v15143_v17 = vld [vmem:[#allocation9 + $0x2e0] sm:$0xf]  ;;  %v15080_v24 = vor.u32 %v16968_v47, %v15079_v55 }
 0x6e5   : > { %9979 = vmatpush.bf16.msra.mxu2 %v14920_v35  ;;  %v15280_v49 = vor.u32 %v17018_v50, %v15279_v5  ;;  %v16984_v18 = vld [vmem:[#allocation9 + $0x2e4] sm:$0xf0]  ;;  %v15207_v61 = vld [vmem:[#allocation9 + $0x360] sm:$0xf]  ;;  %v15071_v54 = vld [vmem:[#allocation9 + $0x250] sm:$0xf] }
 0x6e6   : > { %9992 = vmatpush.bf16.msra.mxu3 %v14984_v8  ;;  %v17000_v29 = vld [vmem:[#allocation9 + $0x364] sm:$0xf0]  ;;  %v15271_v21 = vld [vmem:[#allocation9 + $0x3e0] sm:$0xf]  ;;  %v16966_v22 = vld [vmem:[#allocation9 + $0x254] sm:$0xf0]  ;;  %v15144_v25 = vor.u32 %v16984_v18, %v15143_v17 }
 0x6e7   : > { %9954 = vmatpush.bf16.msra.mxu0 %v14784_v23  ;;  %v17016_v52 = vld [vmem:[#allocation9 + $0x3e4] sm:$0xf0]  ;;  %v15208_v3 = vor.u32 %v17000_v29, %v15207_v61  ;;  %v15135_v27 = vld [vmem:[#allocation9 + $0x2d0] sm:$0xf]  ;;  %v16982_v34 = vld [vmem:[#allocation9 + $0x2d4] sm:$0xf0]  ;;  %v15072_v2 = vor.u32 %v16966_v22, %v15071_v54 }
 0x6e8   : > { %9967 = vmatpush.bf16.msra.mxu1 %v14848_v14  ;;  %v15199_v57 = vld [vmem:[#allocation9 + $0x350] sm:$0xf]  ;;  %v15272_v31 = vor.u32 %v17016_v52, %v15271_v21  ;;  %v16998_v28 = vld [vmem:[#allocation9 + $0x354] sm:$0xf0]  ;;  %v15063_v38 = vld [vmem:[#allocation9 + $0x240] sm:$0xf]  ;;  %v15136_v36 = vor.u32 %v16982_v34, %v15135_v27 }
 0x6e9   : > { %9980 = vmatpush.bf16.msra.mxu2 %v14912_v15  ;;  %v15263_v32 = vld [vmem:[#allocation9 + $0x3d0] sm:$0xf]  ;;  %v17014_v10 = vld [vmem:[#allocation9 + $0x3d4] sm:$0xf0]  ;;  %v16964_v63 = vld [vmem:[#allocation9 + $0x244] sm:$0xf0]  ;;  %v15200_v44 = vor.u32 %v16998_v28, %v15199_v57 }
 0x6ea   : > { %9993 = vmatpush.bf16.msra.mxu3 %v14976_v19  ;;  %v15127_v1 = vld [vmem:[#allocation9 + $0x2c0] sm:$0xf]  ;;  %v16980_v60 = vld [vmem:[#allocation9 + $0x2c4] sm:$0xf0]  ;;  %v20098_v16 = vld [vmem:[#allocation8] sm:$0xff]  ;;  %v15264_v40 = vor.u32 %v17014_v10, %v15263_v32  ;;  %v15064_v51 = vor.u32 %v16964_v63, %v15063_v38  ;;  %vm10526_vm0 = vcmask 326656  }
 0x6eb   : > { %9955 = vmatpush.bf16.msra.mxu0 %v14776_v0  ;;  %v8308_v35 = vld [vmem:[#allocation2 + $0x58] sm:$0xff]  ;;  %v8328_v7 = vperm.slane %v20098_v16, 2  ;;  %v8306_v8 = vld [vmem:[#allocation2 + $0x30] sm:$0xff]  ;;  %v8326_v42 = vperm.slane %v20098_v16, 0  ;;  %v8329_v45 = vperm.slane %v20098_v16, 3  ;;  %v8307_v30 = vld [vmem:[#allocation2] sm:$0xff]  ;;  %v15128_v19 = vor.u32 %v16980_v60, %v15127_v1 }
 0x6ec   : > { %9968 = vmatpush.bf16.msra.mxu1 %v14840_v4  ;;  %v8309_v9 = vld [vmem:[#allocation2 + $0x18] sm:$0xff]  ;;  %v15191_v39 = vld [vmem:[#allocation9 + $0x340] sm:$0xf]  ;;  %v15055_v20 = vld [vmem:[#allocation9 + $0x230] sm:$0xf]  ;;  %v8327_v58 = vperm.slane %v20098_v16, 1 }
 0x6ed   : > { %9981 = vmatpush.bf16.msra.mxu2 %v14904_v37  ;;  %v16996_v23 = vld [vmem:[#allocation9 + $0x344] sm:$0xf0]  ;;  %v15255_v43 = vld [vmem:[#allocation9 + $0x3c0] sm:$0xf]  ;;  %v8360_v14 = vadd.f32 %v8328_v7, %v8308_v35  ;;  %v8358_v15 = vadd.f32 %v8326_v42, %v8306_v8  ;;  %v8361_v48 = vadd.f32 %v8329_v45, %v8309_v9  ;;  %v16962_v53 = vld [vmem:[#allocation9 + $0x234] sm:$0xf0] }
 0x6ee   : > { %9994 = vmatpush.bf16.msra.mxu3 %v14968_v13  ;;  %v17012_v46 = vld [vmem:[#allocation9 + $0x3c4] sm:$0xf0]  ;;  %v15192_v56 = vor.u32 %v16996_v23, %v15191_v39  ;;  %v15119_v26 = vld [vmem:[#allocation9 + $0x2b0] sm:$0xf]  ;;  %v16978_v6 = vld [vmem:[#allocation9 + $0x2b4] sm:$0xf0]  ;;  %v8359_v5 = vadd.f32 %v8327_v58, %v8307_v30  ;;  %v15056_v55 = vor.u32 %v16962_v53, %v15055_v20 }
 0x6ef   : > { %10000 = vmatpush.bf16.msrb.mxu0 %v15088_v11  ;;  %v8376_v59 = vmax.f32 %v8360_v14, 0.0  ;;  %v8374_v0 = vmax.f32 %v8358_v15, 0.0  ;;  %v8377_v62 = vmax.f32 %v8361_v48, 0.0  ;;  %v15256_v33 = vor.u32 %v17012_v46, %v15255_v43  ;;  %v15183_v4 = vld [vmem:[#allocation9 + $0x330] sm:$0xf]  ;;  %v8312_v1 = vld [vmem:[#allocation2 + $0x8] sm:$0xff] }
 0x6f0   : > { %10013 = vmatpush.bf16.msrb.mxu1 %v15152_v41  ;;  %v16994_v37 = vld [vmem:[#allocation9 + $0x334] sm:$0xf0]  ;;  %v15247_v50 = vld [vmem:[#allocation9 + $0x3b0] sm:$0xf]  ;;  %v8375_v47 = vmax.f32 %v8359_v5, 0.0  ;;  %v15120_v17 = vor.u32 %v16978_v6, %v15119_v26  ;;  %v8332_v28 = vperm.slane %v20098_v16, 6 }
 0x6f1   : > { %10026 = vmatpush.bf16.msrb.mxu2 %v15216_v12  ;;  %v17010_v13 = vld [vmem:[#allocation9 + $0x3b4] sm:$0xf0]  ;;  %v20104_v11 = vpack.c.bf16 %v8376_v59, %v8376_v59  ;;  %v20106_v41 = vpack.c.bf16 %v8374_v0, %v8374_v0  ;;  %v20108_v12 = vpack.c.bf16 %v8377_v62, %v8377_v62  ;;  %v15047_v18 = vld [vmem:[#allocation9 + $0x220] sm:$0xf]  ;;  %v16960_v61 = vld [vmem:[#allocation9 + $0x224] sm:$0xf0] }
 0x6f2   : > { %10039 = vmatpush.bf16.msrb.mxu3 %v15280_v49  ;;  %v15184_v49 = vor.u32 %v16994_v37, %v15183_v4  ;;  %v15111_v29 = vld [vmem:[#allocation9 + $0x2a0] sm:$0xf]  ;;  %v15248_v21 = vor.u32 %v17010_v13, %v15247_v50  ;;  %v16976_v52 = vld [vmem:[#allocation9 + $0x2a4] sm:$0xf0]  ;;  %v20111_v22 = vpack.c.bf16 %v8375_v47, %v8375_v47  ;;  %v15039_v27 = vld [vmem:[#allocation9 + $0x210] sm:$0xf]  ;;  %v15048_v34 = vor.u32 %v16960_v61, %v15047_v18 }
 0x6f3   : > { %10001 = vmatpush.bf16.msrb.mxu0 %v15080_v24  ;;  %v15175_v24 = vld [vmem:[#allocation9 + $0x320] sm:$0xf]  ;;  %v16992_v54 = vld [vmem:[#allocation9 + $0x324] sm:$0xf0]  ;;  %9982 = vmatmul.bf16.vlgmr.msra.gmra.mxu2 %v20104_v11  ;;  %v16958_v57 = vld [vmem:[#allocation9 + $0x214] sm:$0xf0]  ;;  %v15112_v32 = vor.u32 %v16976_v52, %v15111_v29  ;;  %v8364_v43 = vadd.f32 %v8332_v28, %v8312_v1 }
 0x6f4   : > { %10014 = vmatpush.bf16.msrb.mxu1 %v15144_v25  ;;  %v15239_v25 = vld [vmem:[#allocation9 + $0x3a0] sm:$0xf]  ;;  %9956 = vmatmul.bf16.vlgmr.msra.gmra.mxu0 %v20106_v41  ;;  %v15176_v10 = vor.u32 %v16992_v54, %v15175_v24  ;;  %v16974_v38 = vld [vmem:[#allocation9 + $0x294] sm:$0xf0]  ;;  %v15167_v63 = vld [vmem:[#allocation9 + $0x310] sm:$0xf]  ;;  %v15040_v9 = vor.u32 %v16958_v57, %v15039_v27 }
 0x6f5   : > { %10027 = vmatpush.bf16.msrb.mxu2 %v15208_v3  ;;  %v17008_v3 = vld [vmem:[#allocation9 + $0x3a4] sm:$0xf0]  ;;  %9995 = vmatmul.bf16.vlgmr.msra.gmra.mxu3 %v20108_v12  ;;  %v15231_v60 = vld [vmem:[#allocation9 + $0x390] sm:$0xf]  ;;  %v8310_v35 = vld [vmem:[#allocation2 + $0x50] sm:$0xff]  ;;  %v8333_v30 = vperm.slane %v20098_v16, 7 }
 0x6f6   : > { %10040 = vmatpush.bf16.msrb.mxu3 %v15272_v31  ;;  %v15103_v31 = vld [vmem:[#allocation9 + $0x290] sm:$0xf]  ;;  %9969 = vmatmul.bf16.vlgmr.msra.gmra.mxu1 %v20111_v22  ;;  %v17006_v7 = vld [vmem:[#allocation9 + $0x394] sm:$0xf0]  ;;  %v15031_v8 = vld [vmem:[#allocation9 + $0x200] sm:$0xf] }
 0x6f7   : > { %10002 = vmatpush.bf16.msrb.mxu0 %v15072_v2  ;;  %v15240_v2 = vor.u32 %v17008_v3, %v15239_v25  ;;  %v16956_v42 = vld [vmem:[#allocation9 + $0x204] sm:$0xf0]  ;;  %v15104_v45 = vor.u32 %v16974_v38, %v15103_v31  ;;  %v15159_v23 = vld [vmem:[#allocation9 + $0x300] sm:$0xf]  ;;  %v8313_v48 = vld [vmem:[#allocation2 + $0x48] sm:$0xff]  ;;  %v15232_v20 = vor.u32 %v17006_v7, %v15231_v60  ;;  %v8380_v5 = vmax.f32 %v8364_v43, 0.0 }
 0x6f8   : > { %10015 = vmatpush.bf16.msrb.mxu1 %v15136_v36  ;;  %v16990_v36 = vld [vmem:[#allocation9 + $0x314] sm:$0xf0]  ;;  %v16972_v39 = vld [vmem:[#allocation9 + $0x284] sm:$0xf0]  ;;  %v15223_v53 = vld [vmem:[#allocation9 + $0x380] sm:$0xf]  ;;  %v8365_v62 = vadd.f32 %v8333_v30, %v8313_v48  ;;  %v15032_v6 = vor.u32 %v16956_v42, %v15031_v8 }
 0x6f9   : > { %10028 = vmatpush.bf16.msrb.mxu2 %v15200_v44  ;;  %v8330_v44 = vperm.slane %v20098_v16, 4  ;;  %v15168_v46 = vor.u32 %v16990_v36, %v15167_v63  ;;  %v16988_v14 = vld [vmem:[#allocation9 + $0x304] sm:$0xf0]  ;;  %v17034_v26 = vld [vmem:[#allocation9 + $0x474] sm:$0xf0]  ;;  %v20120_v57 = vpack.c.bf16 %v8380_v5, %v8380_v5 }
 0x6fa   : > { %10041 = vmatpush.bf16.msrb.mxu3 %v15264_v40  ;;  %v15095_v40 = vld [vmem:[#allocation9 + $0x280] sm:$0xf]  ;;  %v17004_v58 = vld [vmem:[#allocation9 + $0x384] sm:$0xf0]  ;;  %v15407_v59 = vld [vmem:[#allocation9 + $0x4f0] sm:$0xf]  ;;  %v15160_v13 = vor.u32 %v16988_v14, %v15159_v23 }
 0x6fb   : > { %10003 = vmatpush.bf16.msrb.mxu0 %v15064_v51  ;;  %v8362_v15 = vadd.f32 %v8330_v44, %v8310_v35  ;;  %v8311_v51 = vld [vmem:[#allocation2 + $0x68] sm:$0xff]  ;;  %v15471_v4 = vld [vmem:[#allocation9 + $0x570] sm:$0xf]  ;;  %v15096_v50 = vor.u32 %v16972_v39, %v15095_v40  ;;  %v15335_v52 = vld [vmem:[#allocation9 + $0x460] sm:$0xf] }
 0x6fc   : > { %10016 = vmatpush.bf16.msrb.mxu1 %v15128_v19  ;;  %v8331_v19 = vperm.slane %v20098_v16, 5  ;;  %v17050_v0 = vld [vmem:[#allocation9 + $0x4f4] sm:$0xf0]  ;;  %v15535_v16 = vld [vmem:[#allocation9 + $0x5f0] sm:$0xf] }
 0x6fd   : > { %10029 = vmatpush.bf16.msrb.mxu2 %v15192_v56  ;;  %v15343_v56 = vld [vmem:[#allocation9 + $0x470] sm:$0xf]  ;;  %v17066_v37 = vld [vmem:[#allocation9 + $0x574] sm:$0xf0]  ;;  %v8378_v47 = vmax.f32 %v8362_v15, 0.0  ;;  %v15408_v29 = vor.u32 %v17050_v0, %v15407_v59 }
 0x6fe   : > { %10042 = vmatpush.bf16.msrb.mxu3 %v15256_v33  ;;  %v8363_v33 = vadd.f32 %v8331_v19, %v8311_v51  ;;  %v15344_v18 = vor.u32 %v17034_v26, %v15343_v56  ;;  %v17032_v24 = vld [vmem:[#allocation9 + $0x464] sm:$0xf0]  ;;  %v15399_v54 = vld [vmem:[#allocation9 + $0x4e0] sm:$0xf]  ;;  %v15327_v36 = vld [vmem:[#allocation9 + $0x450] sm:$0xf] }
 0x6ff   : > { %10004 = vmatpush.bf16.msrb.mxu0 %v15056_v55  ;;  %v17082_v55 = vld [vmem:[#allocation9 + $0x5f4] sm:$0xf0]  ;;  %v17048_v3 = vld [vmem:[#allocation9 + $0x4e4] sm:$0xf0]  ;;  %v15463_v27 = vld [vmem:[#allocation9 + $0x560] sm:$0xf]  ;;  %v15336_v38 = vor.u32 %v17032_v24, %v15335_v52 }
 0x700   : > { %10017 = vmatpush.bf16.msrb.mxu1 %v15120_v17  ;;  %v8381_v17 = vmax.f32 %v8365_v62, 0.0  ;;  %v8379_v61 = vmax.f32 %v8363_v33, 0.0  ;;  %v15536_v25 = vor.u32 %v17082_v55, %v15535_v16  ;;  %v15527_v31 = vld [vmem:[#allocation9 + $0x5e0] sm:$0xf]  ;;  %v17080_v28 = vld [vmem:[#allocation9 + $0x5e4] sm:$0xf0]  ;;  %v15400_v1 = vor.u32 %v17048_v3, %v15399_v54 }
 0x701   : > { %10030 = vmatpush.bf16.msrb.mxu2 %v15184_v49  ;;  %v15224_v49 = vor.u32 %v17004_v58, %v15223_v53  ;;  %v17030_v60 = vld [vmem:[#allocation9 + $0x454] sm:$0xf0]  ;;  %v15391_v35 = vld [vmem:[#allocation9 + $0x4d0] sm:$0xf]  ;;  %v15528_v44 = vor.u32 %v17080_v28, %v15527_v31  ;;  %v15319_v43 = vld [vmem:[#allocation9 + $0x440] sm:$0xf] }
 0x702   : > { %10043 = vmatpush.bf16.msrb.mxu3 %v15248_v21  ;;  %v15472_v21 = vor.u32 %v17066_v37, %v15471_v4  ;;  %v20126_v63 = vpack.c.bf16 %v8379_v61, %v8379_v61  ;;  %v17046_v7 = vld [vmem:[#allocation9 + $0x4d4] sm:$0xf0]  ;;  %v15455_v8 = vld [vmem:[#allocation9 + $0x550] sm:$0xf]  ;;  %v15328_v40 = vor.u32 %v17030_v60, %v15327_v36  ;;  %v15383_v14 = vld [vmem:[#allocation9 + $0x4c0] sm:$0xf] }
 0x703   : > { %10005 = vmatpush.bf16.msrb.mxu0 %v15048_v34  ;;  %v17064_v34 = vld [vmem:[#allocation9 + $0x564] sm:$0xf0]  ;;  %v17062_v42 = vld [vmem:[#allocation9 + $0x554] sm:$0xf0]  ;;  %v15392_v39 = vor.u32 %v17046_v7, %v15391_v35  ;;  %v15447_v30 = vld [vmem:[#allocation9 + $0x540] sm:$0xf] }
 0x704   : > { %10018 = vmatpush.bf16.msrb.mxu1 %v15112_v32  ;;  %v20122_v32 = vpack.c.bf16 %v8378_v47, %v8378_v47  ;;  %v15456_v23 = vor.u32 %v17062_v42, %v15455_v8  ;;  %v17044_v48 = vld [vmem:[#allocation9 + $0x4c4] sm:$0xf0]  ;;  %v15511_v19 = vld [vmem:[#allocation9 + $0x5c0] sm:$0xf]  ;;  %v15311_v26 = vld [vmem:[#allocation9 + $0x430] sm:$0xf] }
 0x705   : > { %10031 = vmatpush.bf16.msrb.mxu2 %v15176_v10  ;;  %v20124_v10 = vpack.c.bf16 %v8381_v17, %v8381_v17  ;;  %v17060_v51 = vld [vmem:[#allocation9 + $0x544] sm:$0xf0]  ;;  %v15384_v58 = vor.u32 %v17044_v48, %v15383_v14  ;;  %v17026_v59 = vld [vmem:[#allocation9 + $0x434] sm:$0xf0]  ;;  %v15375_v0 = vld [vmem:[#allocation9 + $0x4b0] sm:$0xf] }
 0x706   : > { %10044 = vmatpush.bf16.msrb.mxu3 %v15240_v2  ;;  %v15464_v2 = vor.u32 %v17064_v34, %v15463_v27  ;;  %v15448_v56 = vor.u32 %v17060_v51, %v15447_v30  ;;  %v17042_v33 = vld [vmem:[#allocation9 + $0x4b4] sm:$0xf0]  ;;  %v15503_v37 = vld [vmem:[#allocation9 + $0x5b0] sm:$0xf]  ;;  %v17024_v16 = vld [vmem:[#allocation9 + $0x424] sm:$0xf0] }
 0x707   : > { %10006 = vmatpush.bf16.msrb.mxu0 %v15040_v9  ;;  %v15519_v9 = vld [vmem:[#allocation9 + $0x5d0] sm:$0xf]  ;;  %v17058_v4 = vld [vmem:[#allocation9 + $0x534] sm:$0xf0]  ;;  %v15376_v55 = vor.u32 %v17042_v33, %v15375_v0  ;;  %v15367_v17 = vld [vmem:[#allocation9 + $0x4a0] sm:$0xf] }
 0x708   : > { %10019 = vmatpush.bf16.msrb.mxu1 %v15104_v45  ;;  %v17078_v45 = vld [vmem:[#allocation9 + $0x5d4] sm:$0xf0]  ;;  %v15495_v52 = vld [vmem:[#allocation9 + $0x5a0] sm:$0xf]  ;;  %v17072_v24 = vld [vmem:[#allocation9 + $0x5a4] sm:$0xf0] }
 0x709   : > { %10032 = vmatpush.bf16.msrb.mxu2 %v15168_v46  ;;  %v17028_v46 = vld [vmem:[#allocation9 + $0x444] sm:$0xf0]  ;;  %v15520_v15 = vor.u32 %v17078_v45, %v15519_v9  ;;  %v17074_v5 = vld [vmem:[#allocation9 + $0x5b4] sm:$0xf0]  ;;  %v15295_v54 = vld [vmem:[#allocation9 + $0x410] sm:$0xf]  ;;  %v15496_v35 = vor.u32 %v17072_v24, %v15495_v52 }
 0x70a   : > { %10045 = vmatpush.bf16.msrb.mxu3 %v15232_v20  ;;  %v17076_v20 = vld [vmem:[#allocation9 + $0x5c4] sm:$0xf0]  ;;  %v15320_v53 = vor.u32 %v17028_v46, %v15319_v43  ;;  %v15504_v61 = vor.u32 %v17074_v5, %v15503_v37  ;;  %v15359_v27 = vld [vmem:[#allocation9 + $0x490] sm:$0xf]  ;;  %v17038_v34 = vld [vmem:[#allocation9 + $0x494] sm:$0xf0] }
 0x70b   : > { %10007 = vmatpush.bf16.msrb.mxu0 %v15032_v6  ;;  %v15512_v62 = vor.u32 %v17076_v20, %v15511_v19  ;;  %v15439_v6 = vld [vmem:[#allocation9 + $0x530] sm:$0xf]  ;;  %v8316_v7 = vld [vmem:[#allocation2 + $0x10] sm:$0xff]  ;;  %v17070_v45 = vld [vmem:[#allocation9 + $0x594] sm:$0xf0] }
 0x70c   : > { %10020 = vmatpush.bf16.msrb.mxu1 %v15096_v50  ;;  %v15312_v50 = vor.u32 %v17026_v59, %v15311_v26  ;;  %v15440_v47 = vor.u32 %v17058_v4, %v15439_v6  ;;  %v8315_v8 = vld [vmem:[#allocation2 + $0x20] sm:$0xff]  ;;  %v15287_v43 = vld [vmem:[#allocation9 + $0x400] sm:$0xf]  ;;  %v17020_v46 = vld [vmem:[#allocation9 + $0x404] sm:$0xf0] }
 0x70d   : > { %10033 = vmatpush.bf16.msrb.mxu2 %v15160_v13  ;;  %v15303_v13 = vld [vmem:[#allocation9 + $0x420] sm:$0xf]  ;;  %v15487_v9 = vld [vmem:[#allocation9 + $0x590] sm:$0xf]  ;;  %v17036_v30 = vld [vmem:[#allocation9 + $0x484] sm:$0xf0]  ;;  %v15288_v4 = vor.u32 %v17020_v46, %v15287_v43 }
 0x70e   : > { %10046 = vmatpush.bf16.msrb.mxu3 %v15224_v49  ;;  %10008 = vmatmul.bf16.vlgmr.msrb.gmra.mxu0 %v20122_v32  ;;  %v17040_v49 = vld [vmem:[#allocation9 + $0x4a4] sm:$0xf0]  ;;  %v15304_v3 = vor.u32 %v17024_v16, %v15303_v13  ;;  %v15351_v14 = vld [vmem:[#allocation9 + $0x480] sm:$0xf]  ;;  %v15599_v59 = vld [vmem:[#allocation9 + $0x670] sm:$0xf] }
 0x70f   : > { %10052 = vmatpush.bf16.msra.mxu0 %v15344_v18  ;;  %10021 = vmatmul.bf16.vlgmr.msrb.gmra.mxu1 %v20126_v63  ;;  %v20132_v18 = vld [vmem:[#allocation8 + $0x8] sm:$0xff]  ;;  %v15368_v28 = vor.u32 %v17040_v49, %v15367_v17  ;;  %v15415_v51 = vld [vmem:[#allocation9 + $0x500] sm:$0xf]  ;;  %v17052_v19 = vld [vmem:[#allocation9 + $0x504] sm:$0xf0]  ;;  %v15352_v13 = vor.u32 %v17036_v30, %v15351_v14 }
 0x710   : > { %10065 = vmatpush.bf16.msra.mxu1 %v15408_v29  ;;  %10034 = vmatmul.bf16.vlgmr.msrb.gmra.mxu2 %v20120_v57  ;;  %v15431_v29 = vld [vmem:[#allocation9 + $0x520] sm:$0xf]  ;;  %v8334_v31 = vperm.slane %v20132_v18, 0  ;;  %v8336_v36 = vperm.slane %v20132_v18, 2  ;;  %v8335_v60 = vperm.slane %v20132_v18, 1  ;;  %v8337_v42 = vperm.slane %v20132_v18, 3 }
 0x711   : > { %10078 = vmatpush.bf16.msra.mxu2 %v15472_v21  ;;  %10047 = vmatmul.bf16.vlgmr.msrb.gmra.mxu3 %v20124_v10  ;;  %v17056_v21 = vld [vmem:[#allocation9 + $0x524] sm:$0xf0]  ;;  %v15663_v33 = vld [vmem:[#allocation9 + $0x6f0] sm:$0xf]  ;;  %v17114_v6 = vld [vmem:[#allocation9 + $0x6f4] sm:$0xf0]  ;;  %v15416_v16 = vor.u32 %v17052_v19, %v15415_v51 }
 0x712   : > { %10091 = vmatpush.bf16.msra.mxu3 %v15536_v25  ;;  %v17022_v25 = vld [vmem:[#allocation9 + $0x414] sm:$0xf0]  ;;  %v8368_v20 = vadd.f32 %v8336_v36, %v8316_v7  ;;  %v17068_v26 = vld [vmem:[#allocation9 + $0x584] sm:$0xf0]  ;;  %v15727_v37 = vld [vmem:[#allocation9 + $0x770] sm:$0xf]  ;;  %v15664_v52 = vor.u32 %v17114_v6, %v15663_v33 }
 0x713   : > { %10053 = vmatpush.bf16.msra.mxu0 %v15336_v38  ;;  %v15432_v38 = vor.u32 %v17056_v21, %v15431_v29  ;;  %v17130_v5 = vld [vmem:[#allocation9 + $0x774] sm:$0xf0]  ;;  %v15783_v36 = vld [vmem:[#allocation9 + $0x7e0] sm:$0xf]  ;;  %v15775_v46 = vld [vmem:[#allocation9 + $0x7d0] sm:$0xf] }
 0x714   : > { %10066 = vmatpush.bf16.msra.mxu1 %v15400_v1  ;;  %v15423_v1 = vld [vmem:[#allocation9 + $0x510] sm:$0xf]  ;;  %v8384_v17 = vmax.f32 %v8368_v20, 0.0  ;;  %v15728_v24 = vor.u32 %v17130_v5, %v15727_v37  ;;  %v17126_v43 = vld [vmem:[#allocation9 + $0x754] sm:$0xf0] }
 0x715   : > { %10079 = vmatpush.bf16.msra.mxu2 %v15464_v2  ;;  %v8314_v2 = vld [vmem:[#allocation2 + $0x40] sm:$0xff]  ;;  %v17142_v14 = vld [vmem:[#allocation9 + $0x7d4] sm:$0xf0]  ;;  %v15575_v51 = vld [vmem:[#allocation9 + $0x640] sm:$0xf] }
 0x716   : > { %10092 = vmatpush.bf16.msra.mxu3 %v15528_v44  ;;  %v17054_v44 = vld [vmem:[#allocation9 + $0x514] sm:$0xf0]  ;;  %v17092_v19 = vld [vmem:[#allocation9 + $0x644] sm:$0xf0]  ;;  %v15639_v20 = vld [vmem:[#allocation9 + $0x6c0] sm:$0xf] }
 0x717   : > { %10054 = vmatpush.bf16.msra.mxu0 %v15328_v40  ;;  %v8317_v40 = vld [vmem:[#allocation2 + $0x38] sm:$0xff]  ;;  %v15424_v48 = vor.u32 %v17054_v44, %v15423_v1  ;;  %v20140_v1 = vpack.c.bf16 %v8384_v17, %v8384_v17  ;;  %v17090_v37 = vld [vmem:[#allocation9 + $0x634] sm:$0xf0]  ;;  %v15631_v5 = vld [vmem:[#allocation9 + $0x6b0] sm:$0xf] }
 0x718   : > { %10067 = vmatpush.bf16.msra.mxu1 %v15392_v39  ;;  %v15296_v39 = vor.u32 %v17022_v25, %v15295_v54  ;;  %v8369_v0 = vadd.f32 %v8337_v42, %v8317_v40  ;;  %v15591_v54 = vld [vmem:[#allocation9 + $0x660] sm:$0xf]  ;;  %v17096_v25 = vld [vmem:[#allocation9 + $0x664] sm:$0xf0]  ;;  %v15583_v42 = vld [vmem:[#allocation9 + $0x650] sm:$0xf] }
 0x719   : > { %10080 = vmatpush.bf16.msra.mxu2 %v15456_v23  ;;  %v15360_v23 = vor.u32 %v17038_v34, %v15359_v27  ;;  %v15592_v44 = vor.u32 %v17096_v25, %v15591_v54  ;;  %v17138_v17 = vld [vmem:[#allocation9 + $0x7b4] sm:$0xf0]  ;;  %v17104_v54 = vld [vmem:[#allocation9 + $0x6a4] sm:$0xf0]  ;;  %v15687_v25 = vld [vmem:[#allocation9 + $0x720] sm:$0xf] }
 0x71a   : > { %10093 = vmatpush.bf16.msra.mxu3 %v15520_v15  ;;  %v8366_v15 = vadd.f32 %v8334_v31, %v8314_v2  ;;  %v8385_v21 = vmax.f32 %v8369_v0, 0.0  ;;  %v17112_v31 = vld [vmem:[#allocation9 + $0x6e4] sm:$0xf0] }
 0x71b   : > { %10055 = vmatpush.bf16.msra.mxu0 %v15320_v53  ;;  %v8367_v53 = vadd.f32 %v8335_v60, %v8315_v8  ;;  %v17144_v60 = vld [vmem:[#allocation9 + $0x7e4] sm:$0xf0] }
 0x71c   : > { %10068 = vmatpush.bf16.msra.mxu1 %v15384_v58  ;;  %v15488_v58 = vor.u32 %v17070_v45, %v15487_v9  ;;  %v17094_v9 = vld [vmem:[#allocation9 + $0x654] sm:$0xf0]  ;;  %v15647_v45 = vld [vmem:[#allocation9 + $0x6d0] sm:$0xf]  ;;  %v15784_v40 = vor.u32 %v17144_v60, %v15783_v36  ;;  %v17140_v0 = vld [vmem:[#allocation9 + $0x7c4] sm:$0xf0] }
 0x71d   : > { %10081 = vmatpush.bf16.msra.mxu2 %v15448_v56  ;;  %v15479_v56 = vld [vmem:[#allocation9 + $0x580] sm:$0xf]  ;;  %v8383_v49 = vmax.f32 %v8367_v53, 0.0  ;;  %v15776_v53 = vor.u32 %v17142_v14, %v15775_v46  ;;  %v17086_v36 = vld [vmem:[#allocation9 + $0x614] sm:$0xf0]  ;;  %v8320_v14 = vld [vmem:[#allocation2 + $0x78] sm:$0xff] }
 0x71e   : > { %10094 = vmatpush.bf16.msra.mxu3 %v15512_v62  ;;  %v17098_v62 = vld [vmem:[#allocation9 + $0x674] sm:$0xf0] }
 0x71f   : > { %10056 = vmatpush.bf16.msra.mxu0 %v15312_v50  ;;  %v8382_v50 = vmax.f32 %v8366_v15, 0.0  ;;  %v15600_v29 = vor.u32 %v17098_v62, %v15599_v59  ;;  %v20142_v2 = vpack.c.bf16 %v8383_v49, %v8383_v49  ;;  %v15584_v15 = vor.u32 %v17094_v9, %v15583_v42  ;;  %v15767_v59 = vld [vmem:[#allocation9 + $0x7c0] sm:$0xf]  ;;  %v17118_v46 = vld [vmem:[#allocation9 + $0x714] sm:$0xf0] }
 0x720   : > { %10069 = vmatpush.bf16.msra.mxu1 %v15376_v55  ;;  %v15791_v55 = vld [vmem:[#allocation9 + $0x7f0] sm:$0xf]  ;;  %v15576_v62 = vor.u32 %v17092_v19, %v15575_v51  ;;  %v17134_v51 = vld [vmem:[#allocation9 + $0x794] sm:$0xf0] }
 0x721   : > { %10082 = vmatpush.bf16.msra.mxu2 %v15440_v47  ;;  %v17146_v47 = vld [vmem:[#allocation9 + $0x7f4] sm:$0xf0]  ;;  %v20138_v34 = vpack.c.bf16 %v8382_v50, %v8382_v50  ;;  %v15768_v50 = vor.u32 %v17140_v0, %v15767_v59 }
 0x722   : > { %10095 = vmatpush.bf16.msra.mxu3 %v15504_v61  ;;  %v15480_v61 = vor.u32 %v17068_v26, %v15479_v56  ;;  %v15792_v27 = vor.u32 %v17146_v47, %v15791_v55  ;;  %v15703_v56 = vld [vmem:[#allocation9 + $0x740] sm:$0xf]  ;;  %v17124_v26 = vld [vmem:[#allocation9 + $0x744] sm:$0xf0]  ;;  %v17122_v55 = vld [vmem:[#allocation9 + $0x734] sm:$0xf0] }
 0x723   : > { %10057 = vmatpush.bf16.msra.mxu0 %v15304_v3  ;;  %v15655_v3 = vld [vmem:[#allocation9 + $0x6e0] sm:$0xf]  ;;  %v15704_v6 = vor.u32 %v17124_v26, %v15703_v56  ;;  %v15759_v47 = vld [vmem:[#allocation9 + $0x7b0] sm:$0xf]  ;;  %v8321_v19 = vld [vmem:[#allocation2 + $0x28] sm:$0xff] }
 0x724   : > { %10070 = vmatpush.bf16.msra.mxu1 %v15368_v28  ;;  %v15719_v28 = vld [vmem:[#allocation9 + $0x760] sm:$0xf]  ;;  %v15656_v7 = vor.u32 %v17112_v31, %v15655_v3  ;;  %v15760_v3 = vor.u32 %v17138_v17, %v15759_v47  ;;  %v17084_v56 = vld [vmem:[#allocation9 + $0x604] sm:$0xf0]  ;;  %v16921_v47 = vld [vmem:[#allocation9 + $0xf4] sm:$0xf] }
 0x725   : > { %10083 = vmatpush.bf16.msra.mxu2 %v15432_v38  ;;  %v17128_v38 = vld [vmem:[#allocation9 + $0x764] sm:$0xf0]  ;;  %v15751_v31 = vld [vmem:[#allocation9 + $0x7a0] sm:$0xf]  ;;  %v14897_v17 = vld [vmem:[#allocation9 + $0xf8] sm:$0xf0] }
 0x726   : > { %10096 = vmatpush.bf16.msra.mxu3 %v15496_v35  ;;  %v20144_v35 = vpack.c.bf16 %v8385_v21, %v8385_v21  ;;  %v15720_v8 = vor.u32 %v17128_v38, %v15719_v28  ;;  %v17136_v28 = vld [vmem:[#allocation9 + $0x7a4] sm:$0xf0]  ;;  %v15551_v38 = vld [vmem:[#allocation9 + $0x610] sm:$0xf]  ;;  %v15607_v26 = vld [vmem:[#allocation9 + $0x680] sm:$0xf] }
 0x727   : > { %10058 = vmatpush.bf16.msra.mxu0 %v15296_v39  ;;  %v17110_v39 = vld [vmem:[#allocation9 + $0x6d4] sm:$0xf0] }
 0x728   : > { %10071 = vmatpush.bf16.msra.mxu1 %v15360_v23  ;;  %v15711_v23 = vld [vmem:[#allocation9 + $0x750] sm:$0xf] }
 0x729   : > { %10084 = vmatpush.bf16.msra.mxu2 %v15424_v48  ;;  %v15648_v48 = vor.u32 %v17110_v39, %v15647_v45  ;;  %v15712_v30 = vor.u32 %v17126_v43, %v15711_v23  ;;  %v15679_v45 = vld [vmem:[#allocation9 + $0x710] sm:$0xf]  ;;  %v8340_v39 = vperm.slane %v20132_v18, 6  ;;  %v8339_v23 = vperm.slane %v20132_v18, 5 }
 0x72a   : > { %10097 = vmatpush.bf16.msra.mxu3 %v15488_v58  ;;  %v17108_v58 = vld [vmem:[#allocation9 + $0x6c4] sm:$0xf0]  ;;  %v15752_v43 = vor.u32 %v17136_v28, %v15751_v31  ;;  %v15680_v0 = vor.u32 %v17118_v46, %v15679_v45  ;;  %v14889_v45 = vld [vmem:[#allocation9 + $0xe8] sm:$0xf0]  ;;  %v16951_v46 = vld [vmem:[#allocation9 + $0x1e4] sm:$0xf] }
 0x72b   : > { %10059 = vmatpush.bf16.msra.mxu0 %v15288_v4  ;;  %v15640_v33 = vor.u32 %v17108_v58, %v15639_v20  ;;  %v15567_v4 = vld [vmem:[#allocation9 + $0x630] sm:$0xf]  ;;  %v15552_v20 = vor.u32 %v17086_v36, %v15551_v38  ;;  %v15543_v58 = vld [vmem:[#allocation9 + $0x600] sm:$0xf]  ;;  %v14900_v36 = vor.u32 %v16921_v47, %v14897_v17  ;;  %v16947_v47 = vld [vmem:[#allocation9 + $0x1c4] sm:$0xf] }
 0x72c   : > { %10072 = vmatpush.bf16.msra.mxu1 %v15352_v13  ;;  %v17106_v13 = vld [vmem:[#allocation9 + $0x6b4] sm:$0xf0]  ;;  %v15568_v49 = vor.u32 %v17090_v37, %v15567_v4  ;;  %v8372_v4 = vadd.f32 %v8340_v39, %v8320_v14  ;;  %v14953_v39 = vld [vmem:[#allocation9 + $0x168] sm:$0xf0] }
 0x72d   : > { %10085 = vmatpush.bf16.msra.mxu2 %v15416_v16  ;;  %v15695_v16 = vld [vmem:[#allocation9 + $0x730] sm:$0xf]  ;;  %v15632_v21 = vor.u32 %v17106_v13, %v15631_v5  ;;  %v15735_v5 = vld [vmem:[#allocation9 + $0x780] sm:$0xf]  ;;  %v16905_v13 = vld [vmem:[#allocation9 + $0x74] sm:$0xf] }
 0x72e   : > { %10098 = vmatpush.bf16.msra.mxu3 %v15480_v61  ;;  %10060 = vmatmul.bf16.vlgmr.msra.gmra.mxu0 %v20138_v34  ;;  %v15559_v61 = vld [vmem:[#allocation9 + $0x620] sm:$0xf]  ;;  %v15017_v14 = vld [vmem:[#allocation9 + $0x1e8] sm:$0xf0] }
 0x72f   : > { %10104 = vmatpush.bf16.msrb.mxu0 %v15600_v29  ;;  %10073 = vmatmul.bf16.vlgmr.msra.gmra.mxu1 %v20142_v2  ;;  %v17088_v29 = vld [vmem:[#allocation9 + $0x624] sm:$0xf0]  ;;  %v15001_v17 = vld [vmem:[#allocation9 + $0x1c8] sm:$0xf0] }
 0x730   : > { %10117 = vmatpush.bf16.msrb.mxu1 %v15664_v52  ;;  %10086 = vmatmul.bf16.vlgmr.msra.gmra.mxu2 %v20140_v1  ;;  %v15696_v52 = vor.u32 %v17122_v55, %v15695_v16  ;;  %v15560_v60 = vor.u32 %v17088_v29, %v15559_v61  ;;  %v14833_v55 = vld [vmem:[#allocation9 + $0x78] sm:$0xf0]  ;;  %v16937_v61 = vld [vmem:[#allocation9 + $0x174] sm:$0xf] }
 0x731   : > { %10130 = vmatpush.bf16.msrb.mxu2 %v15728_v24  ;;  %10099 = vmatmul.bf16.vlgmr.msra.gmra.mxu3 %v20144_v35  ;;  %v15623_v24 = vld [vmem:[#allocation9 + $0x6a0] sm:$0xf]  ;;  %v14961_v29 = vld [vmem:[#allocation9 + $0x178] sm:$0xf0]  ;;  %v14836_v28 = vor.u32 %v16905_v13, %v14833_v55  ;;  %v14873_v13 = vld [vmem:[#allocation9 + $0xc8] sm:$0xf0] }
 0x732   : > { %10143 = vmatpush.bf16.msrb.mxu3 %v15792_v27  ;;  %v17120_v27 = vld [vmem:[#allocation9 + $0x724] sm:$0xf0]  ;;  %v15624_v42 = vor.u32 %v17104_v54, %v15623_v24  ;;  %v16953_v54 = vld [vmem:[#allocation9 + $0x1f4] sm:$0xf]  ;;  %v14937_v55 = vld [vmem:[#allocation9 + $0x148] sm:$0xf0] }
 0x733   : > { %10105 = vmatpush.bf16.msrb.mxu0 %v15592_v44  ;;  %v15615_v44 = vld [vmem:[#allocation9 + $0x690] sm:$0xf]  ;;  %v15688_v9 = vor.u32 %v17120_v27, %v15687_v25  ;;  %v15025_v25 = vld [vmem:[#allocation9 + $0x1f8] sm:$0xf0] }
 0x734   : > { %10118 = vmatpush.bf16.msrb.mxu1 %v15656_v7  ;;  %v17102_v7 = vld [vmem:[#allocation9 + $0x694] sm:$0xf0] }
 0x735   : > { %10131 = vmatpush.bf16.msrb.mxu2 %v15720_v8  ;;  %v8338_v8 = vperm.slane %v20132_v18, 4 }
 0x736   : > { %10144 = vmatpush.bf16.msrb.mxu3 %v15784_v40  ;;  %v8318_v40 = vld [vmem:[#allocation2 + $0x60] sm:$0xff] }
 0x737   : > { %10106 = vmatpush.bf16.msrb.mxu0 %v15584_v15  ;;  %v8319_v15 = vld [vmem:[#allocation2 + $0x70] sm:$0xff]  ;;  %v8370_v59 = vadd.f32 %v8338_v8, %v8318_v40 }
 0x738   : > { %10119 = vmatpush.bf16.msrb.mxu1 %v15648_v48  ;;  %v8341_v48 = vperm.slane %v20132_v18, 7  ;;  %v8371_v37 = vadd.f32 %v8339_v23, %v8319_v15  ;;  %v16919_v8 = vld [vmem:[#allocation9 + $0xe4] sm:$0xf] }
 0x739   : > { %10132 = vmatpush.bf16.msrb.mxu2 %v15712_v30  ;;  %v15743_v30 = vld [vmem:[#allocation9 + $0x790] sm:$0xf]  ;;  %v16935_v40 = vld [vmem:[#allocation9 + $0x164] sm:$0xf] }
 0x73a   : > { %10145 = vmatpush.bf16.msrb.mxu3 %v15776_v53  ;;  %v15616_v53 = vor.u32 %v17102_v7, %v15615_v44  ;;  %v15744_v18 = vor.u32 %v17134_v51, %v15743_v30  ;;  %v8373_v16 = vadd.f32 %v8341_v48, %v8321_v19  ;;  %v8387_v27 = vmax.f32 %v8371_v37, 0.0  ;;  %v16903_v44 = vld [vmem:[#allocation9 + $0x64] sm:$0xf]  ;;  %v14825_v7 = vld [vmem:[#allocation9 + $0x68] sm:$0xf0] }
 0x73b   : > { %10107 = vmatpush.bf16.msrb.mxu0 %v15576_v62  ;;  %v17100_v62 = vld [vmem:[#allocation9 + $0x684] sm:$0xf0]  ;;  %v14828_v48 = vor.u32 %v16903_v44, %v14825_v7  ;;  %v14892_v30 = vor.u32 %v16919_v8, %v14889_v45  ;;  %v14956_v51 = vor.u32 %v16935_v40, %v14953_v39  ;;  %v16901_v19 = vld [vmem:[#allocation9 + $0x54] sm:$0xf]  ;;  %v16899_v37 = vld [vmem:[#allocation9 + $0x44] sm:$0xf] }
 0x73c   : > { %10120 = vmatpush.bf16.msrb.mxu1 %v15640_v33  ;;  %v15671_v33 = vld [vmem:[#allocation9 + $0x700] sm:$0xf]  ;;  %v8389_v38 = vmax.f32 %v8373_v16, 0.0  ;;  %v16931_v16 = vld [vmem:[#allocation9 + $0x144] sm:$0xf] }
 0x73d   : > { %10133 = vmatpush.bf16.msrb.mxu2 %v15704_v6  ;;  %v17116_v6 = vld [vmem:[#allocation9 + $0x704] sm:$0xf0]  ;;  %v16895_v44 = vld [vmem:[#allocation9 + $0x24] sm:$0xf]  ;;  %v14793_v7 = vld [vmem:[#allocation9 + $0x28] sm:$0xf0] }
 0x73e   : > { %10146 = vmatpush.bf16.msrb.mxu3 %v15768_v50  ;;  %v17132_v50 = vld [vmem:[#allocation9 + $0x784] sm:$0xf0]  ;;  %v15672_v24 = vor.u32 %v17116_v6, %v15671_v33  ;;  %v20160_v15 = vpack.c.bf16 %v8389_v38, %v8389_v38  ;;  %v16911_v8 = vld [vmem:[#allocation9 + $0xa4] sm:$0xf]  ;;  %v14857_v45 = vld [vmem:[#allocation9 + $0xa8] sm:$0xf0] }
 0x73f   : > { %10108 = vmatpush.bf16.msrb.mxu0 %v15568_v49  ;;  %v15544_v49 = vor.u32 %v17084_v56, %v15543_v58  ;;  %v15736_v31 = vor.u32 %v17132_v50, %v15735_v5  ;;  %v15020_v58 = vor.u32 %v16951_v46, %v15017_v14  ;;  %v14881_v56 = vld [vmem:[#allocation9 + $0xd8] sm:$0xf0]  ;;  %v16915_v5 = vld [vmem:[#allocation9 + $0xc4] sm:$0xf]  ;;  %v14921_v39 = vld [vmem:[#allocation9 + $0x128] sm:$0xf0] }
 0x740   : > { %10121 = vmatpush.bf16.msrb.mxu1 %v15632_v21  ;;  %v8386_v21 = vmax.f32 %v8370_v59, 0.0  ;;  %v14945_v59 = vld [vmem:[#allocation9 + $0x158] sm:$0xf0]  ;;  %v16927_v40 = vld [vmem:[#allocation9 + $0x124] sm:$0xf] }
 0x741   : > { %10134 = vmatpush.bf16.msrb.mxu2 %v15696_v52  ;;  %v15608_v52 = vor.u32 %v17100_v62, %v15607_v26  ;;  %v16933_v26 = vld [vmem:[#allocation9 + $0x154] sm:$0xf]  ;;  %v15009_v62 = vld [vmem:[#allocation9 + $0x1d8] sm:$0xf0]  ;;  %v16943_v46 = vld [vmem:[#allocation9 + $0x1a4] sm:$0xf] }
 0x742   : > { %10147 = vmatpush.bf16.msrb.mxu3 %v15760_v3  ;;  %v8388_v3 = vmax.f32 %v8372_v4, 0.0  ;;  %v14948_v4 = vor.u32 %v16933_v26, %v14945_v59  ;;  %v14985_v14 = vld [vmem:[#allocation9 + $0x1a8] sm:$0xf0]  ;;  %v16925_v26 = vld [vmem:[#allocation9 + $0x114] sm:$0xf] }
 0x743   : > { %10109 = vmatpush.bf16.msrb.mxu0 %v15560_v60  ;;  %v14964_v60 = vor.u32 %v16937_v61, %v14961_v29  ;;  %v14876_v61 = vor.u32 %v16915_v5, %v14873_v13  ;;  %v14940_v29 = vor.u32 %v16931_v16, %v14937_v55  ;;  %v14913_v59 = vld [vmem:[#allocation9 + $0x118] sm:$0xf0]  ;;  %v16907_v5 = vld [vmem:[#allocation9 + $0x84] sm:$0xf]  ;;  %v14905_v55 = vld [vmem:[#allocation9 + $0x108] sm:$0xf0] }
 0x744   : > { %10122 = vmatpush.bf16.msrb.mxu1 %v15624_v42  ;;  %v15028_v42 = vor.u32 %v16953_v54, %v15025_v25  ;;  %v20156_v23 = vpack.c.bf16 %v8388_v3, %v8388_v3  ;;  %v15004_v54 = vor.u32 %v16947_v47, %v15001_v17  ;;  %v14865_v25 = vld [vmem:[#allocation9 + $0xb8] sm:$0xf0]  ;;  %v16929_v3 = vld [vmem:[#allocation9 + $0x134] sm:$0xf]  ;;  %v16923_v13 = vld [vmem:[#allocation9 + $0x104] sm:$0xf] }
 0x745   : > { %10135 = vmatpush.bf16.msrb.mxu2 %v15688_v9  ;;  %v20154_v9 = vpack.c.bf16 %v8386_v21, %v8386_v21  ;;  %v16897_v21 = vld [vmem:[#allocation9 + $0x34] sm:$0xf]  ;;  %v16939_v47 = vld [vmem:[#allocation9 + $0x184] sm:$0xf]  ;;  %v14969_v17 = vld [vmem:[#allocation9 + $0x188] sm:$0xf0] }
 0x746   : > { %10148 = vmatpush.bf16.msrb.mxu3 %v15752_v43  ;;  %v20158_v43 = vpack.c.bf16 %v8387_v27, %v8387_v27  ;;  %v14929_v27 = vld [vmem:[#allocation9 + $0x138] sm:$0xf0] }
 0x747   : > { %10110 = vmatpush.bf16.msrb.mxu0 %v15552_v20  ;;  %v14817_v20 = vld [vmem:[#allocation9 + $0x58] sm:$0xf0] }
 0x748   : > { %10123 = vmatpush.bf16.msrb.mxu1 %v15616_v53  ;;  %v16917_v53 = vld [vmem:[#allocation9 + $0xd4] sm:$0xf]  ;;  %v14820_v33 = vor.u32 %v16901_v19, %v14817_v20  ;;  %v14785_v20 = vld [vmem:[#allocation9 + $0x18] sm:$0xf0] }
 0x749   : > { %10136 = vmatpush.bf16.msrb.mxu2 %v15680_v0  ;;  %v16949_v0 = vld [vmem:[#allocation9 + $0x1d4] sm:$0xf]  ;;  %v14884_v6 = vor.u32 %v16917_v53, %v14881_v56  ;;  %v14849_v56 = vld [vmem:[#allocation9 + $0x98] sm:$0xf0] }
 0x74a   : > { %10149 = vmatpush.bf16.msrb.mxu3 %v15744_v18  ;;  %v14809_v18 = vld [vmem:[#allocation9 + $0x48] sm:$0xf0]  ;;  %v15012_v50 = vor.u32 %v16949_v0, %v15009_v62  ;;  %v16893_v19 = vld [vmem:[#allocation9 + $0x14] sm:$0xf]  ;;  %v14977_v62 = vld [vmem:[#allocation9 + $0x198] sm:$0xf0] }
 0x74b   : > { %10111 = vmatpush.bf16.msrb.mxu0 %v15544_v49  ;;  %v14812_v49 = vor.u32 %v16899_v37, %v14809_v18  ;;  %v16909_v53 = vld [vmem:[#allocation9 + $0x94] sm:$0xf]  ;;  %v14916_v18 = vor.u32 %v16925_v26, %v14913_v59  ;;  %v15201_v59 = vld [vmem:[#allocation9 + $0x358] sm:$0xf0] }
 0x74c   : > { %10124 = vmatpush.bf16.msrb.mxu1 %v15608_v52  ;;  %v14801_v52 = vld [vmem:[#allocation9 + $0x38] sm:$0xf0]  ;;  %v16941_v0 = vld [vmem:[#allocation9 + $0x194] sm:$0xf]  ;;  %v14852_v37 = vor.u32 %v16909_v53, %v14849_v56 }
 0x74d   : > { %10137 = vmatpush.bf16.msrb.mxu2 %v15672_v24  ;;  %v16913_v24 = vld [vmem:[#allocation9 + $0xb4] sm:$0xf]  ;;  %v14804_v38 = vor.u32 %v16897_v21, %v14801_v52  ;;  %v14980_v16 = vor.u32 %v16941_v0, %v14977_v62  ;;  %v15153_v52 = vld [vmem:[#allocation9 + $0x2f8] sm:$0xf0] }
 0x74e   : > { %10150 = vmatpush.bf16.msrb.mxu3 %v15736_v31  ;;  %10112 = vmatmul.bf16.vlgmr.msrb.gmra.mxu0 %v20154_v9  ;;  %v16945_v31 = vld [vmem:[#allocation9 + $0x1b4] sm:$0xf]  ;;  %v15137_v56 = vld [vmem:[#allocation9 + $0x2d8] sm:$0xf0] }
 0x74f   : > { %10156 = vmatpush.bf16.msra.mxu0 %v14836_v28  ;;  %10125 = vmatmul.bf16.vlgmr.msrb.gmra.mxu1 %v20158_v43  ;;  %v14993_v28 = vld [vmem:[#allocation9 + $0x1b8] sm:$0xf0]  ;;  %v16981_v53 = vld [vmem:[#allocation9 + $0x2d4] sm:$0xf] }
 0x750   : > { %10169 = vmatpush.bf16.msra.mxu1 %v14900_v36  ;;  %10138 = vmatmul.bf16.vlgmr.msrb.gmra.mxu2 %v20156_v23  ;;  %v14868_v36 = vor.u32 %v16913_v24, %v14865_v25  ;;  %v17001_v24 = vld [vmem:[#allocation9 + $0x374] sm:$0xf]  ;;  %v15265_v62 = vld [vmem:[#allocation9 + $0x3d8] sm:$0xf0] }
 0x751   : > { %10182 = vmatpush.bf16.msra.mxu2 %v14964_v60  ;;  %10151 = vmatmul.bf16.vlgmr.msrb.gmra.mxu3 %v20160_v15  ;;  %v14932_v60 = vor.u32 %v16929_v3, %v14929_v27  ;;  %v14908_v3 = vor.u32 %v16923_v13, %v14905_v55  ;;  %v17017_v27 = vld [vmem:[#allocation9 + $0x3f4] sm:$0xf]  ;;  %v16995_v13 = vld [vmem:[#allocation9 + $0x344] sm:$0xf] }
 0x752   : > { %10195 = vmatpush.bf16.msra.mxu3 %v15028_v42  ;;  %v14996_v42 = vor.u32 %v16945_v31, %v14993_v28  ;;  %v15281_v31 = vld [vmem:[#allocation9 + $0x3f8] sm:$0xf0]  ;;  %v14972_v28 = vor.u32 %v16939_v47, %v14969_v17  ;;  %v16997_v26 = vld [vmem:[#allocation9 + $0x354] sm:$0xf]  ;;  %v17011_v55 = vld [vmem:[#allocation9 + $0x3c4] sm:$0xf] }
 0x753   : > { %10157 = vmatpush.bf16.msra.mxu0 %v14828_v48  ;;  %v14796_v48 = vor.u32 %v16895_v44, %v14793_v7  ;;  %v16967_v44 = vld [vmem:[#allocation9 + $0x264] sm:$0xf]  ;;  %v15081_v7 = vld [vmem:[#allocation9 + $0x268] sm:$0xf0]  ;;  %v17013_v0 = vld [vmem:[#allocation9 + $0x3d4] sm:$0xf] }
 0x754   : > { %10170 = vmatpush.bf16.msra.mxu1 %v14892_v30  ;;  %v14860_v30 = vor.u32 %v16911_v8, %v14857_v45  ;;  %v16983_v8 = vld [vmem:[#allocation9 + $0x2e4] sm:$0xf]  ;;  %v15145_v45 = vld [vmem:[#allocation9 + $0x2e8] sm:$0xf0]  ;;  %v16961_v17 = vld [vmem:[#allocation9 + $0x234] sm:$0xf] }
 0x755   : > { %10183 = vmatpush.bf16.msra.mxu2 %v14956_v51  ;;  %v14924_v51 = vor.u32 %v16927_v40, %v14921_v39  ;;  %v16999_v40 = vld [vmem:[#allocation9 + $0x364] sm:$0xf]  ;;  %v15209_v39 = vld [vmem:[#allocation9 + $0x368] sm:$0xf0] }
 0x756   : > { %10196 = vmatpush.bf16.msra.mxu3 %v15020_v58  ;;  %v14988_v58 = vor.u32 %v16943_v46, %v14985_v14  ;;  %v17015_v46 = vld [vmem:[#allocation9 + $0x3e4] sm:$0xf]  ;;  %v15273_v14 = vld [vmem:[#allocation9 + $0x3e8] sm:$0xf0] }
 0x757   : > { %10158 = vmatpush.bf16.msra.mxu0 %v14820_v33  ;;  %v14788_v33 = vor.u32 %v16893_v19, %v14785_v20  ;;  %v16965_v19 = vld [vmem:[#allocation9 + $0x254] sm:$0xf]  ;;  %v15073_v20 = vld [vmem:[#allocation9 + $0x258] sm:$0xf0] }
 0x758   : > { %10171 = vmatpush.bf16.msra.mxu1 %v14884_v6  ;;  %v16891_v6 = vld [vmem:[#allocation9 + $0x4] sm:$0xf] }
 0x759   : > { %10184 = vmatpush.bf16.msra.mxu2 %v14948_v4  ;;  %v14777_v4 = vld [vmem:[#allocation9 + $0x8] sm:$0xf0] }
 0x75a   : > { %10197 = vmatpush.bf16.msra.mxu3 %v15012_v50  ;;  %v14841_v50 = vld [vmem:[#allocation9 + $0x88] sm:$0xf0]  ;;  %v14780_v21 = vor.u32 %v16891_v6, %v14777_v4  ;;  %v15140_v6 = vor.u32 %v16981_v53, %v15137_v56  ;;  %v15204_v4 = vor.u32 %v16997_v26, %v15201_v59  ;;  %v15105_v53 = vld [vmem:[#allocation9 + $0x298] sm:$0xf0]  ;;  %v17005_v26 = vld [vmem:[#allocation9 + $0x394] sm:$0xf] }
 0x75b   : > { %10159 = vmatpush.bf16.msra.mxu0 %v14812_v49  ;;  %v16969_v49 = vld [vmem:[#allocation9 + $0x274] sm:$0xf]  ;;  %v14844_v25 = vor.u32 %v16907_v5, %v14841_v50  ;;  %v16979_v5 = vld [vmem:[#allocation9 + $0x2c4] sm:$0xf]  ;;  %v15268_v50 = vor.u32 %v17013_v0, %v15265_v62  ;;  %v15169_v56 = vld [vmem:[#allocation9 + $0x318] sm:$0xf0] }
 0x75c   : > { %10172 = vmatpush.bf16.msra.mxu1 %v14876_v61  ;;  %v15089_v61 = vld [vmem:[#allocation9 + $0x278] sm:$0xf0]  ;;  %v16955_v62 = vld [vmem:[#allocation9 + $0x204] sm:$0xf] }
 0x75d   : > { %10185 = vmatpush.bf16.msra.mxu2 %v14940_v29  ;;  %v16985_v29 = vld [vmem:[#allocation9 + $0x2f4] sm:$0xf]  ;;  %v15233_v59 = vld [vmem:[#allocation9 + $0x398] sm:$0xf0] }
 0x75e   : > { %10198 = vmatpush.bf16.msra.mxu3 %v15004_v54  ;;  %v15217_v54 = vld [vmem:[#allocation9 + $0x378] sm:$0xf0] }
 0x75f   : > { %10160 = vmatpush.bf16.msra.mxu0 %v14804_v38  ;;  %v15092_v38 = vor.u32 %v16969_v49, %v15089_v61  ;;  %v15057_v49 = vld [vmem:[#allocation9 + $0x238] sm:$0xf0]  ;;  %v16977_v61 = vld [vmem:[#allocation9 + $0x2b4] sm:$0xf] }
 0x760   : > { %10173 = vmatpush.bf16.msra.mxu1 %v14868_v36  ;;  %v15156_v36 = vor.u32 %v16985_v29, %v15153_v52  ;;  %v16993_v52 = vld [vmem:[#allocation9 + $0x334] sm:$0xf] }
 0x761   : > { %10186 = vmatpush.bf16.msra.mxu2 %v14932_v60  ;;  %v15220_v60 = vor.u32 %v17001_v24, %v15217_v54  ;;  %v15185_v24 = vld [vmem:[#allocation9 + $0x338] sm:$0xf0]  ;;  %v17009_v54 = vld [vmem:[#allocation9 + $0x3b4] sm:$0xf] }
 0x762   : > { %10199 = vmatpush.bf16.msra.mxu3 %v14996_v42  ;;  %v15284_v42 = vor.u32 %v17017_v27, %v15281_v31  ;;  %v16959_v27 = vld [vmem:[#allocation9 + $0x224] sm:$0xf] }
 0x763   : > { %10161 = vmatpush.bf16.msra.mxu0 %v14796_v48  ;;  %v15084_v48 = vor.u32 %v16967_v44, %v15081_v7  ;;  %v16991_v7 = vld [vmem:[#allocation9 + $0x324] sm:$0xf] }
 0x764   : > { %10174 = vmatpush.bf16.msra.mxu1 %v14860_v30  ;;  %v15148_v30 = vor.u32 %v16983_v8, %v15145_v45  ;;  %v15177_v8 = vld [vmem:[#allocation9 + $0x328] sm:$0xf0]  ;;  %v17007_v45 = vld [vmem:[#allocation9 + $0x3a4] sm:$0xf] }
 0x765   : > { %10187 = vmatpush.bf16.msra.mxu2 %v14924_v51  ;;  %v15212_v51 = vor.u32 %v16999_v40, %v15209_v39  ;;  %v15241_v40 = vld [vmem:[#allocation9 + $0x3a8] sm:$0xf0] }
 0x766   : > { %10200 = vmatpush.bf16.msra.mxu3 %v14988_v58  ;;  %v15276_v58 = vor.u32 %v17015_v46, %v15273_v14  ;;  %v16957_v46 = vld [vmem:[#allocation9 + $0x214] sm:$0xf] }
 0x767   : > { %10162 = vmatpush.bf16.msra.mxu0 %v14788_v33  ;;  %v15076_v33 = vor.u32 %v16965_v19, %v15073_v20  ;;  %v15244_v20 = vor.u32 %v17007_v45, %v15241_v40  ;;  %v17047_v45 = vld [vmem:[#allocation9 + $0x4e4] sm:$0xf] }
 0x768   : > { %10175 = vmatpush.bf16.msra.mxu1 %v14852_v37  ;;  %v16963_v37 = vld [vmem:[#allocation9 + $0x244] sm:$0xf] }
 0x769   : > { %10188 = vmatpush.bf16.msra.mxu2 %v14916_v18  ;;  %v15065_v18 = vld [vmem:[#allocation9 + $0x248] sm:$0xf0] }
 0x76a   : > { %10201 = vmatpush.bf16.msra.mxu3 %v14980_v16  ;;  %v15193_v16 = vld [vmem:[#allocation9 + $0x348] sm:$0xf0] }
 0x76b   : > { %10163 = vmatpush.bf16.msra.mxu0 %v14780_v21  ;;  %v15121_v21 = vld [vmem:[#allocation9 + $0x2b8] sm:$0xf0] }
 0x76c   : > { %10176 = vmatpush.bf16.msra.mxu1 %v14844_v25  ;;  %v15249_v25 = vld [vmem:[#allocation9 + $0x3b8] sm:$0xf0]  ;;  %v15124_v31 = vor.u32 %v16977_v61, %v15121_v21  ;;  %v17065_v21 = vld [vmem:[#allocation9 + $0x574] sm:$0xf] }
 0x76d   : > { %10189 = vmatpush.bf16.msra.mxu2 %v14908_v3  ;;  %v15060_v3 = vor.u32 %v16961_v17, %v15057_v49  ;;  %v15252_v44 = vor.u32 %v17009_v54, %v15249_v25  ;;  %v17049_v17 = vld [vmem:[#allocation9 + $0x4f4] sm:$0xf] }
 0x76e   : > { %10202 = vmatpush.bf16.msra.mxu3 %v14972_v28  ;;  %10164 = vmatmul.bf16.vlgmr.msra.gmra.mxu0 %v20106_v41  ;;  %v15257_v41 = vld [vmem:[#allocation9 + $0x3c8] sm:$0xf0]  ;;  %v15188_v28 = vor.u32 %v16993_v52, %v15185_v24  ;;  %v15473_v52 = vld [vmem:[#allocation9 + $0x578] sm:$0xf0]  ;;  %v17081_v25 = vld [vmem:[#allocation9 + $0x5f4] sm:$0xf] }
 0x76f   : > { %10208 = vmatpush.bf16.msrb.mxu0 %v15092_v38  ;;  %10177 = vmatmul.bf16.vlgmr.msra.gmra.mxu1 %v20111_v22  ;;  %v15196_v22 = vor.u32 %v16995_v13, %v15193_v16  ;;  %v15260_v29 = vor.u32 %v17011_v55, %v15257_v41  ;;  %v15049_v38 = vld [vmem:[#allocation9 + $0x228] sm:$0xf0]  ;;  %v15236_v16 = vor.u32 %v17005_v26, %v15233_v59  ;;  %v17003_v41 = vld [vmem:[#allocation9 + $0x384] sm:$0xf]  ;;  %v17029_v26 = vld [vmem:[#allocation9 + $0x454] sm:$0xf] }
 0x770   : > { %10221 = vmatpush.bf16.msrb.mxu1 %v15156_v36  ;;  %10190 = vmatmul.bf16.vlgmr.msra.gmra.mxu2 %v20104_v11  ;;  %v15129_v11 = vld [vmem:[#allocation9 + $0x2c8] sm:$0xf0]  ;;  %v16975_v36 = vld [vmem:[#allocation9 + $0x2a4] sm:$0xf]  ;;  %v15052_v39 = vor.u32 %v16959_v27, %v15049_v38  ;;  %v15329_v59 = vld [vmem:[#allocation9 + $0x458] sm:$0xf0] }
 0x771   : > { %10234 = vmatpush.bf16.msrb.mxu2 %v15220_v60  ;;  %10203 = vmatmul.bf16.vlgmr.msra.gmra.mxu3 %v20108_v12  ;;  %v15068_v12 = vor.u32 %v16963_v37, %v15065_v18  ;;  %v15132_v47 = vor.u32 %v16979_v5, %v15129_v11  ;;  %v15113_v60 = vld [vmem:[#allocation9 + $0x2a8] sm:$0xf0]  ;;  %v16971_v18 = vld [vmem:[#allocation9 + $0x284] sm:$0xf] }
 0x772   : > { %10247 = vmatpush.bf16.msrb.mxu3 %v15284_v42  ;;  %v20170_v42 = vld [vmem:[#allocation11] sm:$0x3]  ;;  %v15116_v14 = vor.u32 %v16975_v36, %v15113_v60  ;;  %v15097_v5 = vld [vmem:[#allocation9 + $0x288] sm:$0xf0] }
 0x773   : > { %10209 = vmatpush.bf16.msrb.mxu0 %v15084_v48  ;;  %v15180_v48 = vor.u32 %v16991_v7, %v15177_v8  ;;  %v8664_v19 = vperm.slane %v20170_v42, 0  ;;  %v9970_v13 = vpop.f32.mrf.mxu1  ;;  %v15161_v55 = vld [vmem:[#allocation9 + $0x308] sm:$0xf0]  ;;  %v15100_v24 = vor.u32 %v16971_v18, %v15097_v5  ;;  %v17031_v7 = vld [vmem:[#allocation9 + $0x464] sm:$0xf] }
 0x774   : > { %10222 = vmatpush.bf16.msrb.mxu1 %v15148_v30  ;;  %v15041_v30 = vld [vmem:[#allocation9 + $0x218] sm:$0xf0]  ;;  %v15337_v8 = vld [vmem:[#allocation9 + $0x468] sm:$0xf0] }
 0x775   : > { %10235 = vmatpush.bf16.msrb.mxu2 %v15212_v51  ;;  %v16973_v51 = vld [vmem:[#allocation9 + $0x294] sm:$0xf]  ;;  %v15044_v0 = vor.u32 %v16957_v46, %v15041_v30  ;;  %v17063_v46 = vld [vmem:[#allocation9 + $0x564] sm:$0xf]  ;;  %v15521_v18 = vld [vmem:[#allocation9 + $0x5d8] sm:$0xf0] }
 0x776   : > { %10248 = vmatpush.bf16.msrb.mxu3 %v15276_v58  ;;  %v16989_v58 = vld [vmem:[#allocation9 + $0x314] sm:$0xf]  ;;  %v9983_v27 = vpop.f32.mrf.mxu2 }
 0x777   : > { %10210 = vmatpush.bf16.msrb.mxu0 %v15076_v33  ;;  %v15033_v33 = vld [vmem:[#allocation9 + $0x208] sm:$0xf0]  ;;  %v15172_v37 = vor.u32 %v16989_v58, %v15169_v56 }
 0x778   : > { %10223 = vmatpush.bf16.msrb.mxu1 %v15140_v6  ;;  %v9957_v6 = vpop.f32.mrf.mxu0  ;;  %v15036_v61 = vor.u32 %v16955_v62, %v15033_v33  ;;  %v9996_v36 = vpop.f32.mrf.mxu3  ;;  %v15393_v33 = vld [vmem:[#allocation9 + $0x4d8] sm:$0xf0] }
 0x779   : > { %10236 = vmatpush.bf16.msrb.mxu2 %v15204_v4  ;;  %v15108_v4 = vor.u32 %v16973_v51, %v15105_v53  ;;  %v9958_v11 = vadd.f32 %v9957_v6, %v8664_v19  ;;  %v17079_v51 = vld [vmem:[#allocation9 + $0x5e4] sm:$0xf]  ;;  %v15529_v19 = vld [vmem:[#allocation9 + $0x5e8] sm:$0xf0]  ;;  %v15340_v53 = vor.u32 %v17031_v7, %v15337_v8  ;;  %v17061_v6 = vld [vmem:[#allocation9 + $0x554] sm:$0xf] }
 0x77a   : > { %10249 = vmatpush.bf16.msrb.mxu3 %v15268_v50  ;;  %v16987_v50 = vld [vmem:[#allocation9 + $0x304] sm:$0xf]  ;;  %v15532_v62 = vor.u32 %v17079_v51, %v15529_v19  ;;  %v15305_v8 = vld [vmem:[#allocation9 + $0x428] sm:$0xf0] }
 0x77b   : > { %10211 = vmatpush.bf16.msrb.mxu0 %v15068_v12  ;;  %v15225_v12 = vld [vmem:[#allocation9 + $0x388] sm:$0xf0]  ;;  %v9971_v49 = vadd.f32 %v9970_v13, %v9958_v11  ;;  %v15164_v54 = vor.u32 %v16987_v50, %v15161_v55  ;;  %v15332_v50 = vor.u32 %v17029_v26, %v15329_v59  ;;  %v17023_v7 = vld [vmem:[#allocation9 + $0x424] sm:$0xf]  ;;  %v17021_v59 = vld [vmem:[#allocation9 + $0x414] sm:$0xf] }
 0x77c   : > { %10224 = vmatpush.bf16.msrb.mxu1 %v15132_v47  ;;  %v17033_v47 = vld [vmem:[#allocation9 + $0x474] sm:$0xf]  ;;  %v15321_v55 = vld [vmem:[#allocation9 + $0x448] sm:$0xf0]  ;;  %v17071_v19 = vld [vmem:[#allocation9 + $0x5a4] sm:$0xf] }
 0x77d   : > { %10237 = vmatpush.bf16.msrb.mxu2 %v15196_v22  ;;  %v15345_v22 = vld [vmem:[#allocation9 + $0x478] sm:$0xf0]  ;;  %v9984_v38 = vadd.f32 %v9983_v27, %v9971_v49  ;;  %v17057_v27 = vld [vmem:[#allocation9 + $0x534] sm:$0xf] }
 0x77e   : > { %10250 = vmatpush.bf16.msrb.mxu3 %v15260_v29  ;;  %v15409_v29 = vld [vmem:[#allocation9 + $0x4f8] sm:$0xf0]  ;;  %v9985_v5 = vpop.f32.mrf.mxu2 }
 0x77f   : > { %10212 = vmatpush.bf16.msrb.mxu0 %v15060_v3  ;;  %v15537_v3 = vld [vmem:[#allocation9 + $0x5f8] sm:$0xf0]  ;;  %v15412_v60 = vor.u32 %v17049_v17, %v15409_v29  ;;  %v17075_v17 = vld [vmem:[#allocation9 + $0x5c4] sm:$0xf]  ;;  %v17069_v5 = vld [vmem:[#allocation9 + $0x594] sm:$0xf] }
 0x780   : > { %10225 = vmatpush.bf16.msrb.mxu1 %v15124_v31  ;;  %v15228_v31 = vor.u32 %v17003_v41, %v15225_v12  ;;  %v15540_v40 = vor.u32 %v17081_v25, %v15537_v3  ;;  %v9959_v30 = vpop.f32.mrf.mxu0  ;;  %v9998_v11 = vpop.f32.mrf.mxu3  ;;  %v17043_v41 = vld [vmem:[#allocation9 + $0x4c4] sm:$0xf]  ;;  %v15377_v3 = vld [vmem:[#allocation9 + $0x4b8] sm:$0xf0] }
 0x781   : > { %10238 = vmatpush.bf16.msrb.mxu2 %v15188_v28  ;;  %v15348_v28 = vor.u32 %v17033_v47, %v15345_v22  ;;  %v15385_v47 = vld [vmem:[#allocation9 + $0x4c8] sm:$0xf0]  ;;  %v17059_v22 = vld [vmem:[#allocation9 + $0x544] sm:$0xf] }
 0x782   : > { %10251 = vmatpush.bf16.msrb.mxu3 %v15252_v44  ;;  %v15476_v44 = vor.u32 %v17065_v21, %v15473_v52  ;;  %v17025_v21 = vld [vmem:[#allocation9 + $0x434] sm:$0xf]  ;;  %v15313_v52 = vld [vmem:[#allocation9 + $0x438] sm:$0xf0]  ;;  %v15433_v30 = vld [vmem:[#allocation9 + $0x528] sm:$0xf0] }
 0x783   : > { %10213 = vmatpush.bf16.msrb.mxu0 %v15052_v39  ;;  %v15401_v39 = vld [vmem:[#allocation9 + $0x4e8] sm:$0xf0] }
 0x784   : > { %10226 = vmatpush.bf16.msrb.mxu1 %v15116_v14  ;;  %v15465_v14 = vld [vmem:[#allocation9 + $0x568] sm:$0xf0]  ;;  %v15404_v58 = vor.u32 %v17047_v45, %v15401_v39  ;;  %v17039_v45 = vld [vmem:[#allocation9 + $0x4a4] sm:$0xf] }
 0x785   : > { %10239 = vmatpush.bf16.msrb.mxu2 %v15180_v48  ;;  %v20173_v48 = vadd.f32 %v9996_v36, %v9984_v38  ;;  %v15468_v56 = vor.u32 %v17063_v46, %v15465_v14  ;;  %v15505_v38 = vld [vmem:[#allocation9 + $0x5b8] sm:$0xf0]  ;;  %v15316_v36 = vor.u32 %v17025_v21, %v15313_v52  ;;  %v15369_v46 = vld [vmem:[#allocation9 + $0x4a8] sm:$0xf0]  ;;  %v17055_v14 = vld [vmem:[#allocation9 + $0x524] sm:$0xf] }
 0x786   : > { %10252 = vmatpush.bf16.msrb.mxu3 %v15244_v20  ;;  %v9972_v20 = vpop.f32.mrf.mxu1  ;;  %v15436_v26 = vor.u32 %v17055_v14, %v15433_v30  ;;  %v15601_v21 = vld [vmem:[#allocation9 + $0x678] sm:$0xf0]  ;;  %v17113_v52 = vld [vmem:[#allocation9 + $0x6f4] sm:$0xf]  ;;  %v15657_v30 = vld [vmem:[#allocation9 + $0x6e8] sm:$0xf0] }
 0x787   : > { %10214 = vmatpush.bf16.msrb.mxu0 %v15044_v0  ;;  %v17045_v0 = vld [vmem:[#allocation9 + $0x4d4] sm:$0xf]  ;;  %v15497_v20 = vld [vmem:[#allocation9 + $0x5a8] sm:$0xf0] }
 0x788   : > { %10227 = vmatpush.bf16.msrb.mxu1 %v15108_v4  ;;  %v15457_v4 = vld [vmem:[#allocation9 + $0x558] sm:$0xf0]  ;;  %v15396_v13 = vor.u32 %v17045_v0, %v15393_v33 }
 0x789   : > { %10240 = vmatpush.bf16.msrb.mxu2 %v15172_v37  ;;  %v17077_v37 = vld [vmem:[#allocation9 + $0x5d4] sm:$0xf]  ;;  %v15297_v0 = vld [vmem:[#allocation9 + $0x418] sm:$0xf0] }
 0x78a   : > { %10253 = vmatpush.bf16.msrb.mxu3 %v15236_v16  ;;  %v15460_v16 = vor.u32 %v17061_v6, %v15457_v4  ;;  %v15524_v12 = vor.u32 %v17077_v37, %v15521_v18  ;;  %v15500_v6 = vor.u32 %v17071_v19, %v15497_v20  ;;  %v15361_v4 = vld [vmem:[#allocation9 + $0x498] sm:$0xf0]  ;;  %v17053_v37 = vld [vmem:[#allocation9 + $0x514] sm:$0xf]  ;;  %v15300_v11 = vor.u32 %v17021_v59, %v15297_v0  ;;  %v17127_v19 = vld [vmem:[#allocation9 + $0x764] sm:$0xf] }
 0x78b   : > { %10215 = vmatpush.bf16.msrb.mxu0 %v15036_v61  ;;  %v20179_v61 = vpop.f32.mrf.mxu0  ;;  %v15425_v18 = vld [vmem:[#allocation9 + $0x518] sm:$0xf0]  ;;  %v15721_v20 = vld [vmem:[#allocation9 + $0x768] sm:$0xf0]  ;;  %v17093_v0 = vld [vmem:[#allocation9 + $0x654] sm:$0xf] }
 0x78c   : > { %10228 = vmatpush.bf16.msrb.mxu1 %v15100_v24  ;;  %v17041_v24 = vld [vmem:[#allocation9 + $0x4b4] sm:$0xf]  ;;  %v15724_v59 = vor.u32 %v17127_v19, %v15721_v20  ;;  %v17135_v20 = vld [vmem:[#allocation9 + $0x7a4] sm:$0xf] }
 0x78d   : > { %10241 = vmatpush.bf16.msrb.mxu2 %v15164_v54 }
 0x78e   : > { %10254 = vmatpush.bf16.msrb.mxu3 %v15228_v31  ;;  %10216 = vmatmul.bf16.vlgmr.msrb.gmra.mxu0 %v20122_v32  ;;  %v15449_v32 = vld [vmem:[#allocation9 + $0x548] sm:$0xf0]  ;;  %v20181_v54 = vpop.f32.mrf.mxu1  ;;  %v15441_v31 = vld [vmem:[#allocation9 + $0x538] sm:$0xf0] }
 0x78f   : > { %10260 = vmatpush.bf16.msra.mxu0 %v15348_v28  ;;  %10229 = vmatmul.bf16.vlgmr.msrb.gmra.mxu1 %v20126_v63  ;;  %v15388_v63 = vor.u32 %v17043_v41, %v15385_v47  ;;  %v15452_v29 = vor.u32 %v17059_v22, %v15449_v32  ;;  %v17073_v28 = vld [vmem:[#allocation9 + $0x5b4] sm:$0xf]  ;;  %v17035_v41 = vld [vmem:[#allocation9 + $0x484] sm:$0xf] }
 0x790   : > { %10273 = vmatpush.bf16.msra.mxu1 %v15412_v60  ;;  %10242 = vmatmul.bf16.vlgmr.msrb.gmra.mxu2 %v20120_v57  ;;  %v17027_v57 = vld [vmem:[#allocation9 + $0x444] sm:$0xf]  ;;  %v15380_v60 = vor.u32 %v17041_v24, %v15377_v3  ;;  %v15508_v39 = vor.u32 %v17073_v28, %v15505_v38  ;;  %v17129_v3 = vld [vmem:[#allocation9 + $0x774] sm:$0xf] }
 0x791   : > { %10286 = vmatpush.bf16.msra.mxu2 %v15476_v44  ;;  %10255 = vmatmul.bf16.vlgmr.msrb.gmra.mxu3 %v20124_v10  ;;  %v15513_v10 = vld [vmem:[#allocation9 + $0x5c8] sm:$0xf0]  ;;  %v15324_v49 = vor.u32 %v17027_v57, %v15321_v55  ;;  %v15444_v44 = vor.u32 %v17057_v27, %v15441_v31  ;;  %v15428_v55 = vor.u32 %v17053_v37, %v15425_v18  ;;  %v17051_v47 = vld [vmem:[#allocation9 + $0x504] sm:$0xf]  ;;  %v15729_v27 = vld [vmem:[#allocation9 + $0x778] sm:$0xf0] }
 0x792   : > { %10299 = vmatpush.bf16.msra.mxu3 %v15540_v40  ;;  %v15516_v25 = vor.u32 %v17075_v17, %v15513_v10  ;;  %v15417_v17 = vld [vmem:[#allocation9 + $0x508] sm:$0xf0]  ;;  %v17067_v10 = vld [vmem:[#allocation9 + $0x584] sm:$0xf]  ;;  %v17145_v38 = vld [vmem:[#allocation9 + $0x7f4] sm:$0xf] }
 0x793   : > { %10261 = vmatpush.bf16.msra.mxu0 %v15340_v53  ;;  %v20183_v40 = vpop.f32.mrf.mxu2  ;;  %v15308_v53 = vor.u32 %v17023_v7, %v15305_v8  ;;  %v15420_v28 = vor.u32 %v17051_v47, %v15417_v17  ;;  %v15732_v8 = vor.u32 %v17129_v3, %v15729_v27  ;;  %v17125_v37 = vld [vmem:[#allocation9 + $0x754] sm:$0xf]  ;;  %v15713_v18 = vld [vmem:[#allocation9 + $0x758] sm:$0xf0]  ;;  %v17123_v47 = vld [vmem:[#allocation9 + $0x744] sm:$0xf] }
 0x794   : > { %10274 = vmatpush.bf16.msra.mxu1 %v15404_v58  ;;  %v20185_v51 = vpop.f32.mrf.mxu3  ;;  %v10011_v58 = vpop.f32.mrf.mxu0  ;;  %v15697_v3 = vld [vmem:[#allocation9 + $0x738] sm:$0xf0]  ;;  %v17137_v27 = vld [vmem:[#allocation9 + $0x7b4] sm:$0xf] }
 0x795   : > { %10287 = vmatpush.bf16.msra.mxu2 %v15468_v56  ;;  %v15372_v56 = vor.u32 %v17039_v45, %v15369_v46  ;;  %v17095_v45 = vld [vmem:[#allocation9 + $0x664] sm:$0xf]  ;;  %v15785_v58 = vld [vmem:[#allocation9 + $0x7e8] sm:$0xf0] }
 0x796   : > { %10300 = vmatpush.bf16.msra.mxu3 %v15532_v62  ;;  %v17037_v62 = vld [vmem:[#allocation9 + $0x494] sm:$0xf]  ;;  %v10024_v33 = vpop.f32.mrf.mxu1  ;;  %v17111_v46 = vld [vmem:[#allocation9 + $0x6e4] sm:$0xf] }
 0x797   : > { %10262 = vmatpush.bf16.msra.mxu0 %v15332_v50  ;;  %v15489_v50 = vld [vmem:[#allocation9 + $0x598] sm:$0xf0]  ;;  %v15364_v57 = vor.u32 %v17037_v62, %v15361_v4  ;;  %v17109_v33 = vld [vmem:[#allocation9 + $0x6d4] sm:$0xf] }
 0x798   : > { %10275 = vmatpush.bf16.msra.mxu1 %v15396_v13  ;;  %v17019_v13 = vld [vmem:[#allocation9 + $0x404] sm:$0xf]  ;;  %v15492_v32 = vor.u32 %v17069_v5, %v15489_v50  ;;  %v15585_v62 = vld [vmem:[#allocation9 + $0x658] sm:$0xf0]  ;;  %v17141_v5 = vld [vmem:[#allocation9 + $0x7d4] sm:$0xf] }
 0x799   : > { %10288 = vmatpush.bf16.msra.mxu2 %v15460_v16  ;;  %v15289_v16 = vld [vmem:[#allocation9 + $0x408] sm:$0xf0]  ;;  %v15649_v4 = vld [vmem:[#allocation9 + $0x6d8] sm:$0xf0] }
 0x79a   : > { %10301 = vmatpush.bf16.msra.mxu3 %v15524_v12  ;;  %v15353_v12 = vld [vmem:[#allocation9 + $0x488] sm:$0xf0]  ;;  %v15292_v24 = vor.u32 %v17019_v13, %v15289_v16  ;;  %v15777_v50 = vld [vmem:[#allocation9 + $0x7d8] sm:$0xf0]  ;;  %v15652_v13 = vor.u32 %v17109_v33, %v15649_v4  ;;  %v15716_v16 = vor.u32 %v17125_v37, %v15713_v18  ;;  %v17117_v18 = vld [vmem:[#allocation9 + $0x714] sm:$0xf] }
 0x79b   : > { %10263 = vmatpush.bf16.msra.mxu0 %v15324_v49  ;;  %v10037_v22 = vpop.f32.mrf.mxu2  ;;  %v15481_v49 = vld [vmem:[#allocation9 + $0x588] sm:$0xf0]  ;;  %v15356_v31 = vor.u32 %v17035_v41, %v15353_v12  ;;  %v15780_v41 = vor.u32 %v17141_v5, %v15777_v50  ;;  %v15553_v33 = vld [vmem:[#allocation9 + $0x618] sm:$0xf0]  ;;  %v17133_v5 = vld [vmem:[#allocation9 + $0x794] sm:$0xf] }
 0x79c   : > { %10276 = vmatpush.bf16.msra.mxu1 %v15388_v63  ;;  %v10050_v63 = vpop.f32.mrf.mxu3  ;;  %v15641_v12 = vld [vmem:[#allocation9 + $0x6c8] sm:$0xf0]  ;;  %v15617_v37 = vld [vmem:[#allocation9 + $0x698] sm:$0xf0] }
 0x79d   : > { %10289 = vmatpush.bf16.msra.mxu2 %v15452_v29  ;;  %v17097_v29 = vld [vmem:[#allocation9 + $0x674] sm:$0xf]  ;;  %v15745_v50 = vld [vmem:[#allocation9 + $0x798] sm:$0xf0] }
 0x79e   : > { %10302 = vmatpush.bf16.msra.mxu3 %v15516_v25  ;;  %v15665_v25 = vld [vmem:[#allocation9 + $0x6f8] sm:$0xf0]  ;;  %v17089_v63 = vld [vmem:[#allocation9 + $0x634] sm:$0xf] }
 0x79f   : > { %10264 = vmatpush.bf16.msra.mxu0 %v15316_v36  ;;  %v15793_v36 = vld [vmem:[#allocation9 + $0x7f8] sm:$0xf0]  ;;  %v15668_v7 = vor.u32 %v17113_v52, %v15665_v25  ;;  %v17121_v25 = vld [vmem:[#allocation9 + $0x734] sm:$0xf] }
 0x7a0   : > { %10277 = vmatpush.bf16.msra.mxu1 %v15380_v60  ;;  %v15484_v60 = vor.u32 %v17067_v10, %v15481_v49  ;;  %v15796_v14 = vor.u32 %v17145_v38, %v15793_v36  ;;  %v15700_v36 = vor.u32 %v17121_v25, %v15697_v3  ;;  %v17153_v25 = vld [vmem:[%s20288_s5 + $0x30] sm:$0xff] }
 0x7a1   : > { %10290 = vmatpush.bf16.msra.mxu2 %v15444_v44  ;;  %v15604_v44 = vor.u32 %v17097_v29, %v15601_v21  ;;  %v15569_v29 = vld [vmem:[#allocation9 + $0x638] sm:$0xf0]  ;;  %v17105_v21 = vld [vmem:[#allocation9 + $0x6b4] sm:$0xf] }
 0x7a2   : > { %10303 = vmatpush.bf16.msra.mxu3 %v15508_v39  ;;  %v15593_v39 = vld [vmem:[#allocation9 + $0x668] sm:$0xf0] }
 0x7a3   : > { %10265 = vmatpush.bf16.msra.mxu0 %v15308_v53  ;;  %v17143_v53 = vld [vmem:[#allocation9 + $0x7e4] sm:$0xf] }
 0x7a4   : > { %10278 = vmatpush.bf16.msra.mxu1 %v15372_v56  ;;  %v15596_v56 = vor.u32 %v17095_v45, %v15593_v39  ;;  %v15625_v39 = vld [vmem:[#allocation9 + $0x6a8] sm:$0xf0] }
 0x7a5   : > { %10291 = vmatpush.bf16.msra.mxu2 %v15436_v26  ;;  %v15660_v26 = vor.u32 %v17111_v46, %v15657_v30  ;;  %v17119_v46 = vld [vmem:[#allocation9 + $0x724] sm:$0xf]  ;;  %v10010_v30 = vadd.f32 %v20179_v61, %v20173_v48  ;;  %v15681_v48 = vld [vmem:[#allocation9 + $0x718] sm:$0xf0] }
 0x7a6   : > { %10304 = vmatpush.bf16.msra.mxu3 %v15500_v6  ;;  %v15788_v6 = vor.u32 %v17143_v53, %v15785_v58  ;;  %v15753_v53 = vld [vmem:[#allocation9 + $0x7a8] sm:$0xf0] }
 0x7a7   : > { %10266 = vmatpush.bf16.msra.mxu0 %v15300_v11  ;;  %v15588_v11 = vor.u32 %v17093_v0, %v15585_v62  ;;  %v17085_v62 = vld [vmem:[#allocation9 + $0x614] sm:$0xf]  ;;  %v15756_v4 = vor.u32 %v17135_v20, %v15753_v53  ;;  %v10023_v61 = vadd.f32 %v20181_v54, %v10010_v30  ;;  %v17131_v54 = vld [vmem:[#allocation9 + $0x784] sm:$0xf]  ;;  %v8665_v20 = vperm.slane %v20170_v42, 1  ;;  %v17162_v42 = vld [vmem:[%s20288_s5 + $0x78] sm:$0xff] }
 0x7a8   : > { %10279 = vmatpush.bf16.msra.mxu1 %v15364_v57  ;;  %v17091_v57 = vld [vmem:[#allocation9 + $0x644] sm:$0xf] }
 0x7a9   : > { %10292 = vmatpush.bf16.msra.mxu2 %v15428_v55  ;;  %v17107_v55 = vld [vmem:[#allocation9 + $0x6c4] sm:$0xf] }
 0x7aa   : > { %10305 = vmatpush.bf16.msra.mxu3 %v15492_v32  ;;  %v15769_v32 = vld [vmem:[#allocation9 + $0x7c8] sm:$0xf0]  ;;  %v15644_v10 = vor.u32 %v17107_v55, %v15641_v12  ;;  %v17099_v55 = vld [vmem:[#allocation9 + $0x684] sm:$0xf] }
 0x7ab   : > { %10267 = vmatpush.bf16.msra.mxu0 %v15292_v24  ;;  %v20191_v22 = vpop.f32.mrf.mxu0  ;;  %v15633_v24 = vld [vmem:[#allocation9 + $0x6b8] sm:$0xf0]  ;;  %v15609_v12 = vld [vmem:[#allocation9 + $0x688] sm:$0xf0] }
 0x7ac   : > { %10280 = vmatpush.bf16.msra.mxu1 %v15356_v31  ;;  %v20193_v17 = vpop.f32.mrf.mxu1  ;;  %v15761_v31 = vld [vmem:[#allocation9 + $0x7b8] sm:$0xf0]  ;;  %v15636_v38 = vor.u32 %v17105_v21, %v15633_v24 }
 0x7ad   : > { %10293 = vmatpush.bf16.msra.mxu2 %v15420_v28  ;;  %v15572_v28 = vor.u32 %v17089_v63, %v15569_v29  ;;  %v15612_v63 = vor.u32 %v17099_v55, %v15609_v12  ;;  %v17158_v12 = vld [vmem:[%s20288_s5 + $0x58] sm:$0xff] }
 0x7ae   : > { %10306 = vmatpush.bf16.msra.mxu3 %v15484_v60  ;;  %10268 = vmatmul.bf16.vlgmr.msra.gmra.mxu0 %v20138_v34  ;;  %v15577_v34 = vld [vmem:[#allocation9 + $0x648] sm:$0xf0]  ;;  %v17087_v60 = vld [vmem:[#allocation9 + $0x624] sm:$0xf] }
 0x7af   : > { %10312 = vmatpush.bf16.msrb.mxu0 %v15604_v44  ;;  %10281 = vmatmul.bf16.vlgmr.msra.gmra.mxu1 %v20142_v2  ;;  %v17139_v2 = vld [vmem:[#allocation9 + $0x7c4] sm:$0xf]  ;;  %v15561_v44 = vld [vmem:[#allocation9 + $0x628] sm:$0xf0] }
 0x7b0   : > { %10325 = vmatpush.bf16.msrb.mxu1 %v15668_v7  ;;  %10294 = vmatmul.bf16.vlgmr.msra.gmra.mxu2 %v20140_v1  ;;  %v15705_v1 = vld [vmem:[#allocation9 + $0x748] sm:$0xf0]  ;;  %v15772_v52 = vor.u32 %v17139_v2, %v15769_v32  ;;  %v17103_v7 = vld [vmem:[#allocation9 + $0x6a4] sm:$0xf]  ;;  %v10036_v32 = vadd.f32 %v20183_v40, %v10023_v61 }
 0x7b1   : > { %10338 = vmatpush.bf16.msrb.mxu2 %v15732_v8  ;;  %10307 = vmatmul.bf16.vlgmr.msra.gmra.mxu3 %v20144_v35  ;;  %v15580_v35 = vor.u32 %v17091_v57, %v15577_v34  ;;  %v15708_v49 = vor.u32 %v17123_v47, %v15705_v1  ;;  %v15764_v8 = vor.u32 %v17137_v27, %v15761_v31  ;;  %v17083_v57 = vld [vmem:[#allocation9 + $0x604] sm:$0xf]  ;;  %v15545_v34 = vld [vmem:[#allocation9 + $0x608] sm:$0xf0] }
 0x7b2   : > { %10351 = vmatpush.bf16.msrb.mxu3 %v15796_v14  ;;  %v15689_v14 = vld [vmem:[#allocation9 + $0x728] sm:$0xf0]  ;;  %v17115_v47 = vld [vmem:[#allocation9 + $0x704] sm:$0xf]  ;;  %v10049_v24 = vadd.f32 %v20185_v51, %v10036_v32  ;;  %v17152_v51 = vld [vmem:[%s20288_s5 + $0x28] sm:$0xff] }
 0x7b3   : > { %10313 = vmatpush.bf16.msrb.mxu0 %v15596_v56  ;;  %v20195_v45 = vpop.f32.mrf.mxu2  ;;  %v10063_v58 = vpop.f32.mrf.mxu0  ;;  %v15564_v56 = vor.u32 %v17087_v60, %v15561_v44  ;;  %v15692_v0 = vor.u32 %v17119_v46, %v15689_v14  ;;  %v15673_v1 = vld [vmem:[#allocation9 + $0x708] sm:$0xf0]  ;;  %v17149_v60 = vld [vmem:[%s20288_s5 + $0x10] sm:$0xff]  ;;  %v17147_v14 = vld [vmem:[%s20288_s5] sm:$0xff] }
 0x7b4   : > { %10326 = vmatpush.bf16.msrb.mxu1 %v15660_v26  ;;  %v20199_v19 = vpop.f32.mrf.mxu3  ;;  %v10076_v26 = vpop.f32.mrf.mxu1  ;;  %v15676_v29 = vor.u32 %v17115_v47, %v15673_v1  ;;  %v10062_v40 = vadd.f32 %v20191_v22, %v10049_v24  ;;  %v17157_v1 = vld [vmem:[%s20288_s5 + $0x50] sm:$0xff] }
 0x7b5   : > { %10339 = vmatpush.bf16.msrb.mxu2 %v15724_v59  ;;  %v15628_v59 = vor.u32 %v17103_v7, %v15625_v39 }
 0x7b6   : > { %10352 = vmatpush.bf16.msrb.mxu3 %v15788_v6  ;;  %v17101_v6 = vld [vmem:[#allocation9 + $0x694] sm:$0xf]  ;;  %v10075_v3 = vadd.f32 %v20193_v17, %v10062_v40 }
 0x7b7   : > { %10314 = vmatpush.bf16.msrb.mxu0 %v15588_v11  ;;  %v15556_v11 = vor.u32 %v17085_v62, %v15553_v33 }
 0x7b8   : > { %10327 = vmatpush.bf16.msrb.mxu1 %v15652_v13  ;;  %v15620_v13 = vor.u32 %v17101_v6, %v15617_v37  ;;  %v10088_v22 = vadd.f32 %v20195_v45, %v10075_v3 }
 0x7b9   : > { %10340 = vmatpush.bf16.msrb.mxu2 %v15716_v16  ;;  %v15684_v16 = vor.u32 %v17117_v18, %v15681_v48 }
 0x7ba   : > { %10353 = vmatpush.bf16.msrb.mxu3 %v15780_v41  ;;  %v15748_v41 = vor.u32 %v17133_v5, %v15745_v50 }
 0x7bb   : > { %10315 = vmatpush.bf16.msrb.mxu0 %v15580_v35  ;;  %v10089_v2 = vpop.f32.mrf.mxu2  ;;  %v15737_v35 = vld [vmem:[#allocation9 + $0x788] sm:$0xf0] }
 0x7bc   : > { %10328 = vmatpush.bf16.msrb.mxu1 %v15644_v10  ;;  %v10102_v10 = vpop.f32.mrf.mxu3  ;;  %v15740_v21 = vor.u32 %v17131_v54, %v15737_v35  ;;  %v17156_v54 = vld [vmem:[%s20288_s5 + $0x48] sm:$0xff] }
 0x7bd   : > { %10341 = vmatpush.bf16.msrb.mxu2 %v15708_v49  ;;  %v15548_v49 = vor.u32 %v17083_v57, %v15545_v34  ;;  %v17160_v34 = vld [vmem:[%s20288_s5 + $0x68] sm:$0xff] }
 0x7be   : > { %10354 = vmatpush.bf16.msrb.mxu3 %v15772_v52  ;;  %v17154_v52 = vld [vmem:[%s20288_s5 + $0x38] sm:$0xff] }
 0x7bf   : > { %10316 = vmatpush.bf16.msrb.mxu0 %v15572_v28 }
 0x7c0   : > { %10329 = vmatpush.bf16.msrb.mxu1 %v15636_v38 }
 0x7c1   : > { %10342 = vmatpush.bf16.msrb.mxu2 %v15700_v36 }
 0x7c2   : > { %10355 = vmatpush.bf16.msrb.mxu3 %v15764_v8  ;;  %v17148_v8 = vld [vmem:[%s20288_s5 + $0x8] sm:$0xff] }
 0x7c3   : > { %10317 = vmatpush.bf16.msrb.mxu0 %v15564_v56 }
 0x7c4   : > { %10330 = vmatpush.bf16.msrb.mxu1 %v15628_v59 }
 0x7c5   : > { %10343 = vmatpush.bf16.msrb.mxu2 %v15692_v0 }
 0x7c6   : > { %10356 = vmatpush.bf16.msrb.mxu3 %v15756_v4 }
 0x7c7   : > { %10318 = vmatpush.bf16.msrb.mxu0 %v15556_v11 }
 0x7c8   : > { %10331 = vmatpush.bf16.msrb.mxu1 %v15620_v13 }
 0x7c9   : > { %10344 = vmatpush.bf16.msrb.mxu2 %v15684_v16  ;;  %v17161_v16 = vld [vmem:[%s20288_s5 + $0x70] sm:$0xff] }
 0x7ca   : > { %10357 = vmatpush.bf16.msrb.mxu3 %v15748_v41  ;;  %v17159_v41 = vld [vmem:[%s20288_s5 + $0x60] sm:$0xff] }
 0x7cb   : > { %10319 = vmatpush.bf16.msrb.mxu0 %v15548_v49  ;;  %v10113_v27 = vpop.f32.mrf.mxu0 }
 0x7cc   : > { %10332 = vmatpush.bf16.msrb.mxu1 %v15612_v63 }
 0x7cd   : > { %10345 = vmatpush.bf16.msrb.mxu2 %v15676_v29 }
 0x7ce   : > { %10358 = vmatpush.bf16.msrb.mxu3 %v15740_v21  ;;  %10320 = vmatmul.bf16.vlgmr.msrb.gmra.mxu0 %v20154_v9  ;;  %v17151_v9 = vld [vmem:[%s20288_s5 + $0x20] sm:$0xff] }
 0x7cf   : > { %10500 = vmatpush.bf16.msra.mxu0 %v17154_v52  ;;  %10333 = vmatmul.bf16.vlgmr.msrb.gmra.mxu1 %v20158_v43  ;;  %v10126_v43 = vpop.f32.mrf.mxu1  ;;  %v17155_v21 = vld [vmem:[%s20288_s5 + $0x40] sm:$0xff] }
 0x7d0   : > { %10346 = vmatmul.bf16.vlgmr.msrb.gmra.mxu2 %v20156_v23  ;;  %v10101_v23 = vadd.f32 %v20199_v19, %v10088_v22  ;;  %10513 = vmatpush.bf16.msra.mxu1 %v17162_v42 }
 0x7d1   : > { %10359 = vmatmul.bf16.vlgmr.msrb.gmra.mxu3 %v20160_v15  ;;  %v17150_v15 = vld [vmem:[%s20288_s5 + $0x18] sm:$0xff] }
 0x7d2   : > { %v10114_v31 = vadd.f32 %v10113_v27, %v10101_v23 }
 0x7d3   : > { %10501 = vmatpush.bf16.msra.mxu0 %v17153_v25  ;;  %v10139_v17 = vpop.f32.mrf.mxu2  ;;  %v10115_v36 = vpop.f32.mrf.mxu0 }
 0x7d4   : > { %v10127_v28 = vadd.f32 %v10126_v43, %v10114_v31  ;;  %v10152_v38 = vpop.f32.mrf.mxu3  ;;  %10514 = vmatpush.bf16.msra.mxu1 %v17161_v16 }
 0x7d6   : > { %v10140_v7 = vadd.f32 %v10139_v17, %v10127_v28 }
 0x7d7   : > { %10502 = vmatpush.bf16.msra.mxu0 %v17152_v51  ;;  %v10128_v44 = vpop.f32.mrf.mxu1 }
 0x7d8   : > { %v10153_v45 = vadd.f32 %v10152_v38, %v10140_v7  ;;  %10515 = vmatpush.bf16.msra.mxu1 %v17160_v34 }
 0x7da   : > { %v10364_v30 = vmax.f32 %v10153_v45, 0.0 }
 0x7db   : > { %10503 = vmatpush.bf16.msra.mxu0 %v17151_v9  ;;  %v10141_v39 = vpop.f32.mrf.mxu2 }
 0x7dc   : > { %v10154_v46 = vpop.f32.mrf.mxu3  ;;  %v10366_v19 = vpack.c.bf16 %v10364_v30, %v10364_v30  ;;  %10516 = vmatpush.bf16.msra.mxu1 %v17159_v41 }
 0x7df   : > { %10504 = vmatpush.bf16.msra.mxu0 %v17150_v15 }
 0x7e0   : > { %10517 = vmatpush.bf16.msra.mxu1 %v17158_v12 }
 0x7e3   : > { %10505 = vmatpush.bf16.msra.mxu0 %v17149_v60 }
 0x7e4   : > { %10518 = vmatpush.bf16.msra.mxu1 %v17157_v1 }
 0x7e7   : > { %10506 = vmatpush.bf16.msra.mxu0 %v17148_v8 }
 0x7e8   : > { %10519 = vmatpush.bf16.msra.mxu1 %v17156_v54 }
 0x7eb   : > { %10507 = vmatpush.bf16.msra.mxu0 %v17147_v14  ;;  %v10165_v53 = vpop.f32.mrf.mxu0  ;;  %v17281_v14 = vld [vmem:[#allocation12] ss:$0 sm:$0xff] }
 0x7ec   : > { %v10166_v58 = vadd.f32 %v10165_v53, %v8665_v20  ;;  %v10178_v56 = vpop.f32.mrf.mxu1  ;;  %10520 = vmatpush.bf16.msra.mxu1 %v17155_v21 }
 0x7ee   : > { %10508 = vmatmul.bf16.vlgmr.msra.gmra.mxu0 %v10366_v19  ;;  %v10179_v26 = vadd.f32 %v10178_v56, %v10166_v58 }
 0x7f3   : > { %v10191_v59 = vpop.f32.mrf.mxu2  ;;  %v10167_v6 = vpop.f32.mrf.mxu0 }
 0x7f4   : > { %v10192_v0 = vadd.f32 %v10191_v59, %v10179_v26  ;;  %v10204_v62 = vpop.f32.mrf.mxu3  ;;  %v10180_v4 = vpop.f32.mrf.mxu1 }
 0x7f6   : > { %v10205_v33 = vadd.f32 %v10204_v62, %v10192_v0 }
 0x7fb   : > { %v10193_v37 = vpop.f32.mrf.mxu2 }
 0x7fc   : > { %v10206_v18 = vpop.f32.mrf.mxu3 }
 0x80b   : > { %v10217_v48 = vpop.f32.mrf.mxu0 }
 0x80c   : > { %v10230_v61 = vpop.f32.mrf.mxu1  ;;  %v10218_v32 = vadd.f32 %v10217_v48, %v10205_v33 }
 0x80e   : > { %v10231_v63 = vadd.f32 %v10230_v61, %v10218_v32 }
 0x813   : > { %v10243_v5 = vpop.f32.mrf.mxu2  ;;  %v10219_v11 = vpop.f32.mrf.mxu0 }
 0x814   : > { %v10256_v50 = vpop.f32.mrf.mxu3  ;;  %v10232_v13 = vpop.f32.mrf.mxu1  ;;  %v10244_v52 = vadd.f32 %v10243_v5, %v10231_v63 }
 0x816   : > { %v10257_v25 = vadd.f32 %v10256_v50, %v10244_v52 }
 0x81b   : > { %v10245_v57 = vpop.f32.mrf.mxu2 }
 0x81c   : > { %v10258_v55 = vpop.f32.mrf.mxu3 }
 0x82b   : > { %v10269_v47 = vpop.f32.mrf.mxu0 }
 0x82c   : > { %v10282_v2 = vpop.f32.mrf.mxu1  ;;  %v10270_v3 = vadd.f32 %v10269_v47, %v10257_v25 }
 0x82e   : > { %v10283_v51 = vadd.f32 %v10282_v2, %v10270_v3 }
 0x833   : > { %v10295_v35 = vpop.f32.mrf.mxu2  ;;  %v10271_v49 = vpop.f32.mrf.mxu0 }
 0x834   : > { %v10308_v10 = vpop.f32.mrf.mxu3  ;;  %v10284_v29 = vpop.f32.mrf.mxu1  ;;  %v10296_v22 = vadd.f32 %v10295_v35, %v10283_v51 }
 0x836   : > { %v10309_v27 = vadd.f32 %v10308_v10, %v10296_v22 }
 0x83b   : > { %v10297_v24 = vpop.f32.mrf.mxu2 }
 0x83c   : > { %v10310_v40 = vpop.f32.mrf.mxu3 }
 0x84b   : > { %v10321_v9 = vpop.f32.mrf.mxu0 }
 0x84c   : > { %v10334_v43 = vpop.f32.mrf.mxu1  ;;  %v10322_v23 = vadd.f32 %v10321_v9, %v10309_v27 }
 0x84e   : > { %v10335_v31 = vadd.f32 %v10334_v43, %v10322_v23 }
 0x853   : > { %v10347_v15 = vpop.f32.mrf.mxu2  ;;  %v10323_v38 = vpop.f32.mrf.mxu0 }
 0x854   : > { %v10348_v17 = vadd.f32 %v10347_v15, %v10335_v31  ;;  %v10360_v28 = vpop.f32.mrf.mxu3  ;;  %v10336_v36 = vpop.f32.mrf.mxu1 }
 0x856   : > { %v10361_v60 = vadd.f32 %v10360_v28, %v10348_v17 }
 0x858   : > { %v10365_v44 = vmax.f32 %v10361_v60, 0.0 }
 0x85a   : > { %v10367_v7 = vpack.c.bf16 %v10365_v44, %v10365_v44 }
 0x85b   : > { %v10349_v8 = vpop.f32.mrf.mxu2 }
 0x85c   : > { %v10362_v45 = vpop.f32.mrf.mxu3  ;;  %10521 = vmatmul.bf16.vlgmr.msra.gmra.mxu1 %v10367_v7 }
 0x86b   : > { %v10509_v39 = vpop.f32.mrf.mxu0 }
 0x86c   : > { %v10510_v30 = vadd.f32 %v17281_v14, %v10509_v39 }
 0x873   : > { %v10511_v46 = vpop.f32.mrf.mxu0 }
 0x8d9   : > { %v10522_v19 = vpop.f32.mrf.mxu1 }
 0x8da   : > { %v10523_v20 = vadd.f32 %v10522_v19, %v10510_v30 }
 0x8dc   : > { %10527 = vst.msk [vmem:[#allocation14] sm:$0xff] %vm10526_vm0, %v10523_v20 }
 0x8e1   : > { %v10524_v53 = vpop.f32.mrf.mxu1 }
 0x8e2 PF: > { %p17220_p3 = scmp.eq.s32.totalorder %s17642_s30, 3  ;;  %s10538_s8 = sshll.u32 %s20290_s7, 4  ;;  %s10539_s8 = int_to_ptr.hbm [resolvable:$true] %s10538_s8 }
 0x8e3   : > { %s17572_s12 = smov [#allocation14]  }
 0x8e4   : > { %s10536_s27 = sshll.u32 %s17572_s12, 4  ;;  %s10537_s27 = int_to_ptr.vmem [resolvable:$true] %s10536_s27 }
 0x8e5   : > { %17186 = dma.vmem_to_hbm [thread:$0]  (%p17220_p3), %s10537_s27, 128, %s10539_s8, [#allocation5]  }
 0x8e6   : > { %17535 = dma.done.wait (%p17220_p3), [#allocation5], 128  }
 0x8e7   : > { %17537 = vsyncadd (%p17220_p3), [#allocation5], 4294967168 }
 0x8e8 PF: > { %s24_s29 = sadd.s32 1, %s17560_s29   ;;  %s20299_s30 = smov %s20306_s24 }
 0x8e9   : > { %p21_p4 = scmp.ge.s32.totalorder %s24_s29, 6   ;;  %s20300_s24 = smov %s17544_s25 }
 0x8ea   : > { %s20301_s25 = smov %s17548_s26  ;;  %s20302_s26 = smov %s17709_s19 }
 0x8eb   : > { %s20303_s27 = smov %s17556_s28  ;;  %s20304_s28 = smov %s20299_s30 }
 0x8ec   :  { %23 = sbr.rel (!%p21_p4) target bundleno = 11 (0xb), region = 117 }
 0x8f1   :  { %10552 = vsyncpa [#allocation4], 1 }
 0x8f2   :  { %10554 = vsyncpa [#allocation4 + $0x1], 1 }
 0x8f3   :  { %10555 = vsyncpa [#allocation7], 1 }
 0x8f4   :  { %10557 = vsyncpa [#allocation7 + $0x1], 1 }
 0x8f5   :  { %10558 = vsyncpa [#allocation10], 1 }
 0x8f6   :  { %10559 = vsyncpa [#allocation13], 1 }
 0x8f7   :  { %10560 = vsyncpa [#allocation5], 1 }
 0x8f8   :  { %10562 = vsyncpa [#allocation5 + $0x1], 1 }

</bundles_post_ra>
